<compile_context>
chip_gen: v6e
topology: v6e:2x2x1
jax: 0.10.0
libtpu: 0.0.40
codegen_flags: <defaults>
</compile_context>

<pallas_src>
import jax
import jax.numpy as jnp
import numpy as np
from jax import lax
from jax.experimental import pallas as pl
from jax.experimental.pallas import tpu as pltpu

# ---- "globals" from the PyTorch module (small synthetic sizes) ----
BATCH_SIZE = 2
CHANNELS = 4
IMG_SIZE = 16
PATCH_SIZE = 4
NUM_PATCHS = (IMG_SIZE // PATCH_SIZE) ** 2          # 16
NUM_LAYERS = 4
NUM_HEADS = 8
EMBEDDING_DIM = NUM_LAYERS * NUM_HEADS              # 32 (required by the head reshape)
NUM_CLASSES = 10
SEQ = NUM_PATCHS + 1                                # 17
PATCH_DIM = CHANNELS * PATCH_SIZE * PATCH_SIZE      # 64
EPS = 1e-5


def _erf(x):
    # Abramowitz & Stegun 7.1.26 rational approximation (max abs err ~1.5e-7),
    # built from ops that lower cleanly in Mosaic (exp / mul / add / where).
    a1, a2, a3, a4, a5 = 0.254829592, -0.284496736, 1.421413741, -1.453152027, 1.061405429
    p = 0.3275911
    s = jnp.where(x < 0.0, -1.0, 1.0).astype(jnp.float32)
    z = jnp.abs(x)
    t = 1.0 / (1.0 + p * z)
    poly = t * (a1 + t * (a2 + t * (a3 + t * (a4 + t * a5))))
    return s * (1.0 - poly * jnp.exp(-z * z))


def _gelu_exact(x):
    # TODO(synk): exact erf-based GELU (torch nn.GELU default) is emulated with a
    # ~1.5e-7-accurate erf approximation; Mosaic has no guaranteed native erf.
    return 0.5 * x * (1.0 + _erf(x * np.float32(0.7071067811865476)))


def vit_kernel(patches_ref, convw_ref, cls_ref, pos_ref,
               wq_ref, wk_ref, wv_ref, woh_ref,
               ln1w_ref, ln1b_ref, ln2w_ref, ln2b_ref,
               w1_ref, w2_ref, hw_ref, hb_ref,
               out_ref, x_scr):
    B, S, E = ln1w_ref.shape
    NP = S - 1
    NHEADS, HD, _ = woh_ref.shape                    # 16 heads total, head_dim = 8
    scale = np.float32(HD ** (-0.5))
    total = np.float32(B * S * E)

    # --- patch embedding: ONE fused (B*NP, PD) @ (PD, E) matmul ---
    pe_all = jnp.dot(patches_ref[...], convw_ref[...],
                     preferred_element_type=jnp.float32)             # (B*NP, E)

    # Assemble [class_token; patches] + pos into a VMEM scratch (no jnp.concatenate).
    pos0 = pos_ref[0, 0:1, :]                                        # (1, E)
    posr = pos_ref[0, 1:, :]                                         # (NP, E)
    for b in range(B):
        x_scr[b, 0:1, :] = cls_ref[b] + pos0
        x_scr[b, 1:, :] = pe_all[b * NP:(b + 1) * NP, :] + posr

    wqf = wq_ref[...]                                                # (E, NL*E) = (32, 128)
    wkf = wk_ref[...]
    wvf = wv_ref[...]

    # --- multi-headed attention: fused QKV (N=128), 16 contiguous 8-lane head windows,
    #     per-head output accumulated via zero-padded wo slabs (no lane concatenates) ---
    attn = []
    for b in range(B):
        xb = x_scr[b]                                                # (S, E)
        q = jnp.dot(xb, wqf, preferred_element_type=jnp.float32) * scale   # scale folded once
        k = jnp.dot(xb, wkf, preferred_element_type=jnp.float32)
        v = jnp.dot(xb, wvf, preferred_element_type=jnp.float32)
        acc = jnp.zeros((S, E), jnp.float32)
        for h in range(NHEADS):                                      # TODO(synk): rolled fori_loop
            lo = h * HD                                              # needs dynamic lane slice
            qh = q[:, lo:lo + HD]
            kh = k[:, lo:lo + HD]
            vh = v[:, lo:lo + HD]
            sc = lax.dot_general(qh, kh, (((1,), (1,)), ((), ())),
                                 preferred_element_type=jnp.float32)   # (S, S)
            sc = sc - jnp.max(sc, axis=-1, keepdims=True)
            pexp = jnp.exp(sc)
            denom = jnp.sum(pexp, axis=-1, keepdims=True)               # (S, 1)
            wa = jnp.dot(pexp, vh, preferred_element_type=jnp.float32)  # unnormalized (S, HD)
            wa = wa * pl.reciprocal(denom)      # deferred softmax normalization (exact rcp)
            acc = acc + jnp.dot(wa, woh_ref[h], preferred_element_type=jnp.float32)
        attn.append(acc)                                              # (S, E)

    # --- LayerNorm1 over the WHOLE (B,S,E) tensor: single-pass sum / sum-of-squares ---
    s1 = jnp.sum(attn[0])
    s2 = jnp.sum(attn[0] * attn[0])
    for b in range(1, B):
        s1 = s1 + jnp.sum(attn[b])
        s2 = s2 + jnp.sum(attn[b] * attn[b])
    mu1 = s1 / total
    inv1 = lax.rsqrt(s2 / total - mu1 * mu1 + EPS)
    hs = [x_scr[b] + (attn[b] - mu1) * inv1 * ln1w_ref[b] + ln1b_ref[b] for b in range(B)]

    # --- LayerNorm2 full-tensor stats (single pass) ---
    t1 = jnp.sum(hs[0])
    t2 = jnp.sum(hs[0] * hs[0])
    for b in range(1, B):
        t1 = t1 + jnp.sum(hs[b])
        t2 = t2 + jnp.sum(hs[b] * hs[b])
    mu2 = t1 / total
    inv2 = lax.rsqrt(t2 / total - mu2 * mu2 + EPS)

    # --- only the class-token row feeds the head: fused MLP + head on (B, E) rows ---
    h_cls = jnp.concatenate([hs[b][0:1, :] for b in range(B)], axis=0)          # (B, E)
    ln2w_cls = jnp.concatenate([ln2w_ref[b, 0:1, :] for b in range(B)], axis=0)
    ln2b_cls = jnp.concatenate([ln2b_ref[b, 0:1, :] for b in range(B)], axis=0)
    ln2_cls = (h_cls - mu2) * inv2 * ln2w_cls + ln2b_cls
    t = jnp.dot(ln2_cls, w1_ref[...], preferred_element_type=jnp.float32)       # (B, 2E)
    t = _gelu_exact(t)
    enc_cls = h_cls + jnp.dot(t, w2_ref[...], preferred_element_type=jnp.float32)  # (B, E)
    # single lane-dense-ish store for the whole batch (no per-row M=1 matmuls)
    out_ref[...] = jnp.dot(enc_cls, hw_ref[...],
                           preferred_element_type=jnp.float32) + hb_ref[...]


def vit_forward(data, p):
    B, C, H, W = data.shape
    Hp, Wp = H // PATCH_SIZE, W // PATCH_SIZE
    # Patch extraction (glue, plain JAX): (B*NP, C*PS*PS), flat order (c, ph, pw).
    patches = data.reshape(B, C, Hp, PATCH_SIZE, Wp, PATCH_SIZE)
    patches = patches.transpose(0, 2, 4, 1, 3, 5).reshape(B * Hp * Wp, PATCH_DIM)
    convw_mat = p["conv_w"].reshape(EMBEDDING_DIM, PATCH_DIM).T          # (PATCH_DIM, E)

    # Fuse the NL query/key/value modules into single (E, NL*E) = (32, 128) operands.
    wq_f = p["wq"].transpose(1, 0, 2).reshape(EMBEDDING_DIM, NUM_LAYERS * EMBEDDING_DIM)
    wk_f = p["wk"].transpose(1, 0, 2).reshape(EMBEDDING_DIM, NUM_LAYERS * EMBEDDING_DIM)
    wv_f = p["wv"].transpose(1, 0, 2).reshape(EMBEDDING_DIM, NUM_LAYERS * EMBEDDING_DIM)

    # Per-head zero-padded output weights: head (m, l) -> woh[m*NL + l] of shape (NH, E),
    # nonzero only in columns [m*NH, (m+1)*NH).  Accumulating wa_h @ woh[h] reconstructs
    # torch.cat([out_m for m], dim=-1) with no in-kernel lane concatenates.
    woh = jnp.zeros((NUM_LAYERS * NUM_LAYERS, NUM_HEADS, EMBEDDING_DIM), jnp.float32)
    for m in range(NUM_LAYERS):
        for l in range(NUM_LAYERS):
            woh = woh.at[m * NUM_LAYERS + l, :,
                         m * NUM_HEADS:(m + 1) * NUM_HEADS].set(
                p["wo"][m, l * NUM_HEADS:(l + 1) * NUM_HEADS, :])

    inputs = (patches, convw_mat, p["cls"], p["pos"],
              wq_f, wk_f, wv_f, woh,
              p["ln1w"], p["ln1b"], p["ln2w"], p["ln2b"],
              p["w1"], p["w2"], p["hw"], p["hb"])

    # TODO(synk): no grid — the full-tensor LayerNorm couples the batch rows, so a
    # batch-parallel grid (v7x dual-TC) would need a cross-program reduction.
    return pl.pallas_call(
        vit_kernel,
        out_shape=jax.ShapeDtypeStruct((B, NUM_CLASSES), jnp.float32),
        in_specs=[pl.BlockSpec(memory_space=pltpu.MemorySpace.VMEM)] * len(inputs),
        out_specs=pl.BlockSpec(memory_space=pltpu.MemorySpace.VMEM),
        scratch_shapes=[pltpu.VMEM((B, SEQ, EMBEDDING_DIM), jnp.float32)],
    )(*inputs)


def torch_style_reference(data, p):
    """Pure-JAX mirror of the PyTorch forward (for verification)."""
    pe = lax.conv_general_dilated(
        data, p["conv_w"], window_strides=(PATCH_SIZE, PATCH_SIZE), padding="VALID",
        dimension_numbers=("NCHW", "OIHW", "NCHW"))                   # (B, E, Hp, Wp)
    B = data.shape[0]
    pe = pe.reshape(B, EMBEDDING_DIM, NUM_PATCHS).transpose(0, 2, 1)  # (B, NP, E)
    x = jnp.concatenate([p["cls"], pe], axis=1) + p["pos"]            # (B, S, E)

    def mha(x, wq, wk, wv, wo):
        Bs, S, E = x.shape
        q = (x @ wq).reshape(Bs, S, NUM_LAYERS, NUM_HEADS).transpose(0, 2, 1, 3)
        k = (x @ wk).reshape(Bs, S, NUM_LAYERS, NUM_HEADS).transpose(0, 2, 1, 3)
        v = (x @ wv).reshape(Bs, S, NUM_LAYERS, NUM_HEADS).transpose(0, 2, 1, 3)
        sc = jnp.einsum("blsh,blth->blst", q, k) * NUM_HEADS ** (-0.5)
        att = jax.nn.softmax(sc, axis=-1)
        wa = jnp.einsum("blst,blth->blsh", att, v).transpose(0, 2, 1, 3).reshape(Bs, S, E)
        return wa @ wo

    def ln_full(x, w, b):
        mu = jnp.mean(x)
        var = jnp.mean((x - mu) ** 2)
        return (x - mu) / jnp.sqrt(var + EPS) * w + b

    a = jnp.concatenate(
        [mha(x, p["wq"][m], p["wk"][m], p["wv"][m], p["wo"][m]) for m in range(NUM_LAYERS)],
        axis=-1)
    h = x + ln_full(a, p["ln1w"], p["ln1b"])
    t = jax.nn.gelu(ln_full(h, p["ln2w"], p["ln2b"]) @ p["w1"], approximate=False)
    enc = h + t @ p["w2"]
    return enc[:, 0] @ p["hw"] + p["hb"][0]


def make_params(key):
    ks = jax.random.split(key, 12)
    s = 0.1
    f32 = jnp.float32
    p = {
        "conv_w": jax.random.normal(ks[0], (EMBEDDING_DIM, CHANNELS, PATCH_SIZE, PATCH_SIZE), f32) * s,
        # torch inits class_token / position_embedding to zeros; random here keeps the test non-trivial.
        "cls": jax.random.normal(ks[1], (BATCH_SIZE, 1, EMBEDDING_DIM), f32) * s,
        "pos": jax.random.normal(ks[2], (1, SEQ, EMBEDDING_DIM), f32) * s,
        "wq": jax.random.normal(ks[3], (NUM_LAYERS, EMBEDDING_DIM, EMBEDDING_DIM), f32) * s,
        "wk": jax.random.normal(ks[4], (NUM_LAYERS, EMBEDDING_DIM, EMBEDDING_DIM), f32) * s,
        "wv": jax.random.normal(ks[5], (NUM_LAYERS, EMBEDDING_DIM, EMBEDDING_DIM), f32) * s,
        "wo": jax.random.normal(ks[6], (NUM_LAYERS, EMBEDDING_DIM, NUM_HEADS), f32) * s,
        "ln1w": jnp.ones((BATCH_SIZE, SEQ, EMBEDDING_DIM), f32),
        "ln1b": jnp.zeros((BATCH_SIZE, SEQ, EMBEDDING_DIM), f32),
        "ln2w": jnp.ones((BATCH_SIZE, SEQ, EMBEDDING_DIM), f32),
        "ln2b": jnp.zeros((BATCH_SIZE, SEQ, EMBEDDING_DIM), f32),
        "w1": jax.random.normal(ks[7], (EMBEDDING_DIM, 2 * EMBEDDING_DIM), f32) * s,
        "w2": jax.random.normal(ks[8], (2 * EMBEDDING_DIM, EMBEDDING_DIM), f32) * s,
        "hw": jax.random.normal(ks[9], (EMBEDDING_DIM, NUM_CLASSES), f32) * s,
        "hb": jax.random.normal(ks[10], (1, NUM_CLASSES), f32) * s,
    }
    return p


if __name__ == "__main__":
    key = jax.random.PRNGKey(0)
    pkey, dkey = jax.random.split(key)
    params = make_params(pkey)
    data = jax.random.normal(dkey, (BATCH_SIZE, CHANNELS, IMG_SIZE, IMG_SIZE), jnp.float32)

    out = jax.jit(vit_forward)(data, params)
    out = jax.block_until_ready(out)

    ref = jax.block_until_ready(torch_style_reference(data, params))
    assert out.shape == (BATCH_SIZE, NUM_CLASSES)
    assert bool(jnp.allclose(out, ref, atol=1e-3, rtol=1e-3)), (
        f"mismatch: max abs diff {float(jnp.max(jnp.abs(out - ref)))}")

    print("KERNEL_OK")
</pallas_src>

<mosaic_0001>
module attributes {stable_mosaic.version = 11 : i64} {
  func.func @vit_kernel(%arg0: memref<32x64xf32, #tpu.memory_space<vmem>>, %arg1: memref<64x32xf32, #tpu.memory_space<vmem>>, %arg2: memref<2x1x32xf32, #tpu.memory_space<vmem>>, %arg3: memref<1x17x32xf32, #tpu.memory_space<vmem>>, %arg4: memref<32x128xf32, #tpu.memory_space<vmem>>, %arg5: memref<32x128xf32, #tpu.memory_space<vmem>>, %arg6: memref<32x128xf32, #tpu.memory_space<vmem>>, %arg7: memref<16x8x32xf32, #tpu.memory_space<vmem>>, %arg8: memref<2x17x32xf32, #tpu.memory_space<vmem>>, %arg9: memref<2x17x32xf32, #tpu.memory_space<vmem>>, %arg10: memref<2x17x32xf32, #tpu.memory_space<vmem>>, %arg11: memref<2x17x32xf32, #tpu.memory_space<vmem>>, %arg12: memref<32x64xf32, #tpu.memory_space<vmem>>, %arg13: memref<64x32xf32, #tpu.memory_space<vmem>>, %arg14: memref<32x10xf32, #tpu.memory_space<vmem>>, %arg15: memref<1x10xf32, #tpu.memory_space<vmem>>, %arg16: memref<2x10xf32, #tpu.memory_space<vmem>>, %arg17: memref<2x17x32xf32, #tpu.memory_space<vmem>>) attributes {dimension_semantics = [], scalar_prefetch = 0 : i64, scratch_operands = 1 : i64, tpu.core_type = #tpu.core_type<tc>} {
    %c0 = arith.constant 0 : index
    %c0_0 = arith.constant 0 : index
    %0 = vector.load %arg0[%c0, %c0_0] : memref<32x64xf32, #tpu.memory_space<vmem>>, vector<32x64xf32>
    %c0_1 = arith.constant 0 : index
    %c0_2 = arith.constant 0 : index
    %1 = vector.load %arg1[%c0_1, %c0_2] : memref<64x32xf32, #tpu.memory_space<vmem>>, vector<64x32xf32>
    %cst = arith.constant dense<0.000000e+00> : vector<32x32xf32>
    %2 = tpu.matmul %0, %1, %cst {dimension_numbers = #tpu.dot_dimension_numbers<[1], [0], [0], [1], [0, 0, 1, 1], [], []>} : vector<32x64xf32>, vector<64x32xf32>, vector<32x32xf32> -> vector<32x32xf32>
    %c0_3 = arith.constant 0 : index
    %c0_4 = arith.constant 0 : index
    %c0_5 = arith.constant 0 : index
    %3 = vector.load %arg3[%c0_3, %c0_4, %c0_5] : memref<1x17x32xf32, #tpu.memory_space<vmem>>, vector<1x1x32xf32>
    %4 = vector.shape_cast %3 : vector<1x1x32xf32> to vector<1x32xf32>
    %c0_6 = arith.constant 0 : index
    %c1 = arith.constant 1 : index
    %c0_7 = arith.constant 0 : index
    %5 = vector.load %arg3[%c0_6, %c1, %c0_7] : memref<1x17x32xf32, #tpu.memory_space<vmem>>, vector<1x16x32xf32>
    %6 = vector.shape_cast %5 : vector<1x16x32xf32> to vector<16x32xf32>
    %c0_8 = arith.constant 0 : index
    %c0_9 = arith.constant 0 : index
    %c0_10 = arith.constant 0 : index
    %7 = vector.load %arg2[%c0_8, %c0_9, %c0_10] : memref<2x1x32xf32, #tpu.memory_space<vmem>>, vector<1x1x32xf32>
    %8 = vector.shape_cast %7 : vector<1x1x32xf32> to vector<1x32xf32>
    %9 = arith.addf %8, %4 : vector<1x32xf32>
    %c0_11 = arith.constant 0 : index
    %c0_12 = arith.constant 0 : index
    %c0_13 = arith.constant 0 : index
    %10 = vector.load %arg17[%c0_11, %c0_12, %c0_13] : memref<2x17x32xf32, #tpu.memory_space<vmem>>, vector<1x1x32xf32>
    %11 = vector.shape_cast %10 : vector<1x1x32xf32> to vector<1x32xf32>
    %12 = vector.shape_cast %9 : vector<1x32xf32> to vector<1x1x32xf32>
    tpu.vector_store %arg17[%c0_11, %c0_12, %c0_13], %12 {strides = array<i32>} : memref<2x17x32xf32, #tpu.memory_space<vmem>>, vector<1x1x32xf32>,
    %13 = vector.extract_strided_slice %2 {offsets = [0, 0], sizes = [16, 32], strides = [1, 1]} : vector<32x32xf32> to vector<16x32xf32>
    %14 = arith.addf %13, %6 : vector<16x32xf32>
    %c0_14 = arith.constant 0 : index
    %c1_15 = arith.constant 1 : index
    %c0_16 = arith.constant 0 : index
    %15 = vector.load %arg17[%c0_14, %c1_15, %c0_16] : memref<2x17x32xf32, #tpu.memory_space<vmem>>, vector<1x16x32xf32>
    %16 = vector.shape_cast %15 : vector<1x16x32xf32> to vector<16x32xf32>
    %17 = vector.shape_cast %14 : vector<16x32xf32> to vector<1x16x32xf32>
    tpu.vector_store %arg17[%c0_14, %c1_15, %c0_16], %17 {strides = array<i32>} : memref<2x17x32xf32, #tpu.memory_space<vmem>>, vector<1x16x32xf32>,
    %c1_17 = arith.constant 1 : index
    %c0_18 = arith.constant 0 : index
    %c0_19 = arith.constant 0 : index
    %18 = vector.load %arg2[%c1_17, %c0_18, %c0_19] : memref<2x1x32xf32, #tpu.memory_space<vmem>>, vector<1x1x32xf32>
    %19 = vector.shape_cast %18 : vector<1x1x32xf32> to vector<1x32xf32>
    %20 = arith.addf %19, %4 : vector<1x32xf32>
    %c1_20 = arith.constant 1 : index
    %c0_21 = arith.constant 0 : index
    %c0_22 = arith.constant 0 : index
    %21 = vector.load %arg17[%c1_20, %c0_21, %c0_22] : memref<2x17x32xf32, #tpu.memory_space<vmem>>, vector<1x1x32xf32>
    %22 = vector.shape_cast %21 : vector<1x1x32xf32> to vector<1x32xf32>
    %23 = vector.shape_cast %20 : vector<1x32xf32> to vector<1x1x32xf32>
    tpu.vector_store %arg17[%c1_20, %c0_21, %c0_22], %23 {strides = array<i32>} : memref<2x17x32xf32, #tpu.memory_space<vmem>>, vector<1x1x32xf32>,
    %24 = vector.extract_strided_slice %2 {offsets = [16, 0], sizes = [16, 32], strides = [1, 1]} : vector<32x32xf32> to vector<16x32xf32>
    %25 = arith.addf %24, %6 : vector<16x32xf32>
    %c1_23 = arith.constant 1 : index
    %c1_24 = arith.constant 1 : index
    %c0_25 = arith.constant 0 : index
    %26 = vector.load %arg17[%c1_23, %c1_24, %c0_25] : memref<2x17x32xf32, #tpu.memory_space<vmem>>, vector<1x16x32xf32>
    %27 = vector.shape_cast %26 : vector<1x16x32xf32> to vector<16x32xf32>
    %28 = vector.shape_cast %25 : vector<16x32xf32> to vector<1x16x32xf32>
    tpu.vector_store %arg17[%c1_23, %c1_24, %c0_25], %28 {strides = array<i32>} : memref<2x17x32xf32, #tpu.memory_space<vmem>>, vector<1x16x32xf32>,
    %c0_26 = arith.constant 0 : index
    %c0_27 = arith.constant 0 : index
    %29 = vector.load %arg4[%c0_26, %c0_27] : memref<32x128xf32, #tpu.memory_space<vmem>>, vector<32x128xf32>
    %c0_28 = arith.constant 0 : index
    %c0_29 = arith.constant 0 : index
    %30 = vector.load %arg5[%c0_28, %c0_29] : memref<32x128xf32, #tpu.memory_space<vmem>>, vector<32x128xf32>
    %c0_30 = arith.constant 0 : index
    %c0_31 = arith.constant 0 : index
    %31 = vector.load %arg6[%c0_30, %c0_31] : memref<32x128xf32, #tpu.memory_space<vmem>>, vector<32x128xf32>
    %c0_32 = arith.constant 0 : index
    %c0_33 = arith.constant 0 : index
    %c0_34 = arith.constant 0 : index
    %32 = vector.load %arg17[%c0_32, %c0_33, %c0_34] : memref<2x17x32xf32, #tpu.memory_space<vmem>>, vector<1x17x32xf32>
    %33 = vector.shape_cast %32 : vector<1x17x32xf32> to vector<17x32xf32>
    %cst_35 = arith.constant dense<0.000000e+00> : vector<17x128xf32>
    %34 = tpu.matmul %33, %29, %cst_35 {dimension_numbers = #tpu.dot_dimension_numbers<[1], [0], [0], [1], [0, 0, 1, 1], [], []>} : vector<17x32xf32>, vector<32x128xf32>, vector<17x128xf32> -> vector<17x128xf32>
    %cst_36 = arith.constant 0.353553385 : f32
    %35 = vector.broadcast %cst_36 : f32 to vector<17x128xf32>
    %36 = arith.mulf %34, %35 : vector<17x128xf32>
    %cst_37 = arith.constant dense<0.000000e+00> : vector<17x128xf32>
    %37 = tpu.matmul %33, %30, %cst_37 {dimension_numbers = #tpu.dot_dimension_numbers<[1], [0], [0], [1], [0, 0, 1, 1], [], []>} : vector<17x32xf32>, vector<32x128xf32>, vector<17x128xf32> -> vector<17x128xf32>
    %cst_38 = arith.constant dense<0.000000e+00> : vector<17x128xf32>
    %38 = tpu.matmul %33, %31, %cst_38 {dimension_numbers = #tpu.dot_dimension_numbers<[1], [0], [0], [1], [0, 0, 1, 1], [], []>} : vector<17x32xf32>, vector<32x128xf32>, vector<17x128xf32> -> vector<17x128xf32>
    %cst_39 = arith.constant 0.000000e+00 : f32
    %39 = vector.broadcast %cst_39 : f32 to vector<17x32xf32>
    %40 = vector.extract_strided_slice %36 {offsets = [0, 0], sizes = [17, 8], strides = [1, 1]} : vector<17x128xf32> to vector<17x8xf32>
    %41 = vector.extract_strided_slice %37 {offsets = [0, 0], sizes = [17, 8], strides = [1, 1]} : vector<17x128xf32> to vector<17x8xf32>
    %42 = vector.extract_strided_slice %38 {offsets = [0, 0], sizes = [17, 8], strides = [1, 1]} : vector<17x128xf32> to vector<17x8xf32>
    %cst_40 = arith.constant dense<0.000000e+00> : vector<17x17xf32>
    %43 = tpu.matmul %40, %41, %cst_40 {dimension_numbers = #tpu.dot_dimension_numbers<[1], [1], [0], [0], [0, 0, 1, 0], [], []>} : vector<17x8xf32>, vector<17x8xf32>, vector<17x17xf32> -> vector<17x17xf32>
    %cst_41 = arith.constant dense<0xFF800000> : vector<17xf32>
    %44 = vector.multi_reduction <maximumf>, %43, %cst_41 [1] : vector<17x17xf32> to vector<17xf32>
    %45 = vector.shape_cast %44 : vector<17xf32> to vector<17x1xf32>
    %46 = vector.broadcast %45 : vector<17x1xf32> to vector<17x17xf32>
    %47 = arith.subf %43, %46 : vector<17x17xf32>
    %48 = math.exp %47 : vector<17x17xf32>
    %cst_42 = arith.constant dense<0.000000e+00> : vector<17xf32>
    %49 = vector.multi_reduction <add>, %48, %cst_42 [1] : vector<17x17xf32> to vector<17xf32>
    %50 = vector.shape_cast %49 : vector<17xf32> to vector<17x1xf32>
    %cst_43 = arith.constant dense<0.000000e+00> : vector<17x8xf32>
    %51 = tpu.matmul %48, %42, %cst_43 {dimension_numbers = #tpu.dot_dimension_numbers<[1], [0], [0], [1], [0, 0, 1, 1], [], []>} : vector<17x17xf32>, vector<17x8xf32>, vector<17x8xf32> -> vector<17x8xf32>
    %52 = tpu.reciprocal %50 : vector<17x1xf32> -> vector<17x1xf32>
    %53 = vector.broadcast %52 : vector<17x1xf32> to vector<17x8xf32>
    %54 = arith.mulf %51, %53 : vector<17x8xf32>
    %c0_44 = arith.constant 0 : index
    %c0_45 = arith.constant 0 : index
    %c0_46 = arith.constant 0 : index
    %55 = vector.load %arg7[%c0_44, %c0_45, %c0_46] : memref<16x8x32xf32, #tpu.memory_space<vmem>>, vector<1x8x32xf32>
    %56 = vector.shape_cast %55 : vector<1x8x32xf32> to vector<8x32xf32>
    %cst_47 = arith.constant dense<0.000000e+00> : vector<17x32xf32>
    %57 = tpu.matmul %54, %56, %cst_47 {dimension_numbers = #tpu.dot_dimension_numbers<[1], [0], [0], [1], [0, 0, 1, 1], [], []>} : vector<17x8xf32>, vector<8x32xf32>, vector<17x32xf32> -> vector<17x32xf32>
    %58 = arith.addf %39, %57 : vector<17x32xf32>
    %59 = vector.extract_strided_slice %36 {offsets = [0, 8], sizes = [17, 8], strides = [1, 1]} : vector<17x128xf32> to vector<17x8xf32>
    %60 = vector.extract_strided_slice %37 {offsets = [0, 8], sizes = [17, 8], strides = [1, 1]} : vector<17x128xf32> to vector<17x8xf32>
    %61 = vector.extract_strided_slice %38 {offsets = [0, 8], sizes = [17, 8], strides = [1, 1]} : vector<17x128xf32> to vector<17x8xf32>
    %cst_48 = arith.constant dense<0.000000e+00> : vector<17x17xf32>
    %62 = tpu.matmul %59, %60, %cst_48 {dimension_numbers = #tpu.dot_dimension_numbers<[1], [1], [0], [0], [0, 0, 1, 0], [], []>} : vector<17x8xf32>, vector<17x8xf32>, vector<17x17xf32> -> vector<17x17xf32>
    %cst_49 = arith.constant dense<0xFF800000> : vector<17xf32>
    %63 = vector.multi_reduction <maximumf>, %62, %cst_49 [1] : vector<17x17xf32> to vector<17xf32>
    %64 = vector.shape_cast %63 : vector<17xf32> to vector<17x1xf32>
    %65 = vector.broadcast %64 : vector<17x1xf32> to vector<17x17xf32>
    %66 = arith.subf %62, %65 : vector<17x17xf32>
    %67 = math.exp %66 : vector<17x17xf32>
    %cst_50 = arith.constant dense<0.000000e+00> : vector<17xf32>
    %68 = vector.multi_reduction <add>, %67, %cst_50 [1] : vector<17x17xf32> to vector<17xf32>
    %69 = vector.shape_cast %68 : vector<17xf32> to vector<17x1xf32>
    %cst_51 = arith.constant dense<0.000000e+00> : vector<17x8xf32>
    %70 = tpu.matmul %67, %61, %cst_51 {dimension_numbers = #tpu.dot_dimension_numbers<[1], [0], [0], [1], [0, 0, 1, 1], [], []>} : vector<17x17xf32>, vector<17x8xf32>, vector<17x8xf32> -> vector<17x8xf32>
    %71 = tpu.reciprocal %69 : vector<17x1xf32> -> vector<17x1xf32>
    %72 = vector.broadcast %71 : vector<17x1xf32> to vector<17x8xf32>
    %73 = arith.mulf %70, %72 : vector<17x8xf32>
    %c1_52 = arith.constant 1 : index
    %c0_53 = arith.constant 0 : index
    %c0_54 = arith.constant 0 : index
    %74 = vector.load %arg7[%c1_52, %c0_53, %c0_54] : memref<16x8x32xf32, #tpu.memory_space<vmem>>, vector<1x8x32xf32>
    %75 = vector.shape_cast %74 : vector<1x8x32xf32> to vector<8x32xf32>
    %cst_55 = arith.constant dense<0.000000e+00> : vector<17x32xf32>
    %76 = tpu.matmul %73, %75, %cst_55 {dimension_numbers = #tpu.dot_dimension_numbers<[1], [0], [0], [1], [0, 0, 1, 1], [], []>} : vector<17x8xf32>, vector<8x32xf32>, vector<17x32xf32> -> vector<17x32xf32>
    %77 = arith.addf %58, %76 : vector<17x32xf32>
    %78 = vector.extract_strided_slice %36 {offsets = [0, 16], sizes = [17, 8], strides = [1, 1]} : vector<17x128xf32> to vector<17x8xf32>
    %79 = vector.extract_strided_slice %37 {offsets = [0, 16], sizes = [17, 8], strides = [1, 1]} : vector<17x128xf32> to vector<17x8xf32>
    %80 = vector.extract_strided_slice %38 {offsets = [0, 16], sizes = [17, 8], strides = [1, 1]} : vector<17x128xf32> to vector<17x8xf32>
    %cst_56 = arith.constant dense<0.000000e+00> : vector<17x17xf32>
    %81 = tpu.matmul %78, %79, %cst_56 {dimension_numbers = #tpu.dot_dimension_numbers<[1], [1], [0], [0], [0, 0, 1, 0], [], []>} : vector<17x8xf32>, vector<17x8xf32>, vector<17x17xf32> -> vector<17x17xf32>
    %cst_57 = arith.constant dense<0xFF800000> : vector<17xf32>
    %82 = vector.multi_reduction <maximumf>, %81, %cst_57 [1] : vector<17x17xf32> to vector<17xf32>
    %83 = vector.shape_cast %82 : vector<17xf32> to vector<17x1xf32>
    %84 = vector.broadcast %83 : vector<17x1xf32> to vector<17x17xf32>
    %85 = arith.subf %81, %84 : vector<17x17xf32>
    %86 = math.exp %85 : vector<17x17xf32>
    %cst_58 = arith.constant dense<0.000000e+00> : vector<17xf32>
    %87 = vector.multi_reduction <add>, %86, %cst_58 [1] : vector<17x17xf32> to vector<17xf32>
    %88 = vector.shape_cast %87 : vector<17xf32> to vector<17x1xf32>
    %cst_59 = arith.constant dense<0.000000e+00> : vector<17x8xf32>
    %89 = tpu.matmul %86, %80, %cst_59 {dimension_numbers = #tpu.dot_dimension_numbers<[1], [0], [0], [1], [0, 0, 1, 1], [], []>} : vector<17x17xf32>, vector<17x8xf32>, vector<17x8xf32> -> vector<17x8xf32>
    %90 = tpu.reciprocal %88 : vector<17x1xf32> -> vector<17x1xf32>
    %91 = vector.broadcast %90 : vector<17x1xf32> to vector<17x8xf32>
    %92 = arith.mulf %89, %91 : vector<17x8xf32>
    %c2 = arith.constant 2 : index
    %c0_60 = arith.constant 0 : index
    %c0_61 = arith.constant 0 : index
    %93 = vector.load %arg7[%c2, %c0_60, %c0_61] : memref<16x8x32xf32, #tpu.memory_space<vmem>>, vector<1x8x32xf32>
    %94 = vector.shape_cast %93 : vector<1x8x32xf32> to vector<8x32xf32>
    %cst_62 = arith.constant dense<0.000000e+00> : vector<17x32xf32>
    %95 = tpu.matmul %92, %94, %cst_62 {dimension_numbers = #tpu.dot_dimension_numbers<[1], [0], [0], [1], [0, 0, 1, 1], [], []>} : vector<17x8xf32>, vector<8x32xf32>, vector<17x32xf32> -> vector<17x32xf32>
    %96 = arith.addf %77, %95 : vector<17x32xf32>
    %97 = vector.extract_strided_slice %36 {offsets = [0, 24], sizes = [17, 8], strides = [1, 1]} : vector<17x128xf32> to vector<17x8xf32>
    %98 = vector.extract_strided_slice %37 {offsets = [0, 24], sizes = [17, 8], strides = [1, 1]} : vector<17x128xf32> to vector<17x8xf32>
    %99 = vector.extract_strided_slice %38 {offsets = [0, 24], sizes = [17, 8], strides = [1, 1]} : vector<17x128xf32> to vector<17x8xf32>
    %cst_63 = arith.constant dense<0.000000e+00> : vector<17x17xf32>
    %100 = tpu.matmul %97, %98, %cst_63 {dimension_numbers = #tpu.dot_dimension_numbers<[1], [1], [0], [0], [0, 0, 1, 0], [], []>} : vector<17x8xf32>, vector<17x8xf32>, vector<17x17xf32> -> vector<17x17xf32>
    %cst_64 = arith.constant dense<0xFF800000> : vector<17xf32>
    %101 = vector.multi_reduction <maximumf>, %100, %cst_64 [1] : vector<17x17xf32> to vector<17xf32>
    %102 = vector.shape_cast %101 : vector<17xf32> to vector<17x1xf32>
    %103 = vector.broadcast %102 : vector<17x1xf32> to vector<17x17xf32>
    %104 = arith.subf %100, %103 : vector<17x17xf32>
    %105 = math.exp %104 : vector<17x17xf32>
    %cst_65 = arith.constant dense<0.000000e+00> : vector<17xf32>
    %106 = vector.multi_reduction <add>, %105, %cst_65 [1] : vector<17x17xf32> to vector<17xf32>
    %107 = vector.shape_cast %106 : vector<17xf32> to vector<17x1xf32>
    %cst_66 = arith.constant dense<0.000000e+00> : vector<17x8xf32>
    %108 = tpu.matmul %105, %99, %cst_66 {dimension_numbers = #tpu.dot_dimension_numbers<[1], [0], [0], [1], [0, 0, 1, 1], [], []>} : vector<17x17xf32>, vector<17x8xf32>, vector<17x8xf32> -> vector<17x8xf32>
    %109 = tpu.reciprocal %107 : vector<17x1xf32> -> vector<17x1xf32>
    %110 = vector.broadcast %109 : vector<17x1xf32> to vector<17x8xf32>
    %111 = arith.mulf %108, %110 : vector<17x8xf32>
    %c3 = arith.constant 3 : index
    %c0_67 = arith.constant 0 : index
    %c0_68 = arith.constant 0 : index
    %112 = vector.load %arg7[%c3, %c0_67, %c0_68] : memref<16x8x32xf32, #tpu.memory_space<vmem>>, vector<1x8x32xf32>
    %113 = vector.shape_cast %112 : vector<1x8x32xf32> to vector<8x32xf32>
    %cst_69 = arith.constant dense<0.000000e+00> : vector<17x32xf32>
    %114 = tpu.matmul %111, %113, %cst_69 {dimension_numbers = #tpu.dot_dimension_numbers<[1], [0], [0], [1], [0, 0, 1, 1], [], []>} : vector<17x8xf32>, vector<8x32xf32>, vector<17x32xf32> -> vector<17x32xf32>
    %115 = arith.addf %96, %114 : vector<17x32xf32>
    %116 = vector.extract_strided_slice %36 {offsets = [0, 32], sizes = [17, 8], strides = [1, 1]} : vector<17x128xf32> to vector<17x8xf32>
    %117 = vector.extract_strided_slice %37 {offsets = [0, 32], sizes = [17, 8], strides = [1, 1]} : vector<17x128xf32> to vector<17x8xf32>
    %118 = vector.extract_strided_slice %38 {offsets = [0, 32], sizes = [17, 8], strides = [1, 1]} : vector<17x128xf32> to vector<17x8xf32>
    %cst_70 = arith.constant dense<0.000000e+00> : vector<17x17xf32>
    %119 = tpu.matmul %116, %117, %cst_70 {dimension_numbers = #tpu.dot_dimension_numbers<[1], [1], [0], [0], [0, 0, 1, 0], [], []>} : vector<17x8xf32>, vector<17x8xf32>, vector<17x17xf32> -> vector<17x17xf32>
    %cst_71 = arith.constant dense<0xFF800000> : vector<17xf32>
    %120 = vector.multi_reduction <maximumf>, %119, %cst_71 [1] : vector<17x17xf32> to vector<17xf32>
    %121 = vector.shape_cast %120 : vector<17xf32> to vector<17x1xf32>
    %122 = vector.broadcast %121 : vector<17x1xf32> to vector<17x17xf32>
    %123 = arith.subf %119, %122 : vector<17x17xf32>
    %124 = math.exp %123 : vector<17x17xf32>
    %cst_72 = arith.constant dense<0.000000e+00> : vector<17xf32>
    %125 = vector.multi_reduction <add>, %124, %cst_72 [1] : vector<17x17xf32> to vector<17xf32>
    %126 = vector.shape_cast %125 : vector<17xf32> to vector<17x1xf32>
    %cst_73 = arith.constant dense<0.000000e+00> : vector<17x8xf32>
    %127 = tpu.matmul %124, %118, %cst_73 {dimension_numbers = #tpu.dot_dimension_numbers<[1], [0], [0], [1], [0, 0, 1, 1], [], []>} : vector<17x17xf32>, vector<17x8xf32>, vector<17x8xf32> -> vector<17x8xf32>
    %128 = tpu.reciprocal %126 : vector<17x1xf32> -> vector<17x1xf32>
    %129 = vector.broadcast %128 : vector<17x1xf32> to vector<17x8xf32>
    %130 = arith.mulf %127, %129 : vector<17x8xf32>
    %c4 = arith.constant 4 : index
    %c0_74 = arith.constant 0 : index
    %c0_75 = arith.constant 0 : index
    %131 = vector.load %arg7[%c4, %c0_74, %c0_75] : memref<16x8x32xf32, #tpu.memory_space<vmem>>, vector<1x8x32xf32>
    %132 = vector.shape_cast %131 : vector<1x8x32xf32> to vector<8x32xf32>
    %cst_76 = arith.constant dense<0.000000e+00> : vector<17x32xf32>
    %133 = tpu.matmul %130, %132, %cst_76 {dimension_numbers = #tpu.dot_dimension_numbers<[1], [0], [0], [1], [0, 0, 1, 1], [], []>} : vector<17x8xf32>, vector<8x32xf32>, vector<17x32xf32> -> vector<17x32xf32>
    %134 = arith.addf %115, %133 : vector<17x32xf32>
    %135 = vector.extract_strided_slice %36 {offsets = [0, 40], sizes = [17, 8], strides = [1, 1]} : vector<17x128xf32> to vector<17x8xf32>
    %136 = vector.extract_strided_slice %37 {offsets = [0, 40], sizes = [17, 8], strides = [1, 1]} : vector<17x128xf32> to vector<17x8xf32>
    %137 = vector.extract_strided_slice %38 {offsets = [0, 40], sizes = [17, 8], strides = [1, 1]} : vector<17x128xf32> to vector<17x8xf32>
    %cst_77 = arith.constant dense<0.000000e+00> : vector<17x17xf32>
    %138 = tpu.matmul %135, %136, %cst_77 {dimension_numbers = #tpu.dot_dimension_numbers<[1], [1], [0], [0], [0, 0, 1, 0], [], []>} : vector<17x8xf32>, vector<17x8xf32>, vector<17x17xf32> -> vector<17x17xf32>
    %cst_78 = arith.constant dense<0xFF800000> : vector<17xf32>
    %139 = vector.multi_reduction <maximumf>, %138, %cst_78 [1] : vector<17x17xf32> to vector<17xf32>
    %140 = vector.shape_cast %139 : vector<17xf32> to vector<17x1xf32>
    %141 = vector.broadcast %140 : vector<17x1xf32> to vector<17x17xf32>
    %142 = arith.subf %138, %141 : vector<17x17xf32>
    %143 = math.exp %142 : vector<17x17xf32>
    %cst_79 = arith.constant dense<0.000000e+00> : vector<17xf32>
    %144 = vector.multi_reduction <add>, %143, %cst_79 [1] : vector<17x17xf32> to vector<17xf32>
    %145 = vector.shape_cast %144 : vector<17xf32> to vector<17x1xf32>
    %cst_80 = arith.constant dense<0.000000e+00> : vector<17x8xf32>
    %146 = tpu.matmul %143, %137, %cst_80 {dimension_numbers = #tpu.dot_dimension_numbers<[1], [0], [0], [1], [0, 0, 1, 1], [], []>} : vector<17x17xf32>, vector<17x8xf32>, vector<17x8xf32> -> vector<17x8xf32>
    %147 = tpu.reciprocal %145 : vector<17x1xf32> -> vector<17x1xf32>
    %148 = vector.broadcast %147 : vector<17x1xf32> to vector<17x8xf32>
    %149 = arith.mulf %146, %148 : vector<17x8xf32>
    %c5 = arith.constant 5 : index
    %c0_81 = arith.constant 0 : index
    %c0_82 = arith.constant 0 : index
    %150 = vector.load %arg7[%c5, %c0_81, %c0_82] : memref<16x8x32xf32, #tpu.memory_space<vmem>>, vector<1x8x32xf32>
    %151 = vector.shape_cast %150 : vector<1x8x32xf32> to vector<8x32xf32>
    %cst_83 = arith.constant dense<0.000000e+00> : vector<17x32xf32>
    %152 = tpu.matmul %149, %151, %cst_83 {dimension_numbers = #tpu.dot_dimension_numbers<[1], [0], [0], [1], [0, 0, 1, 1], [], []>} : vector<17x8xf32>, vector<8x32xf32>, vector<17x32xf32> -> vector<17x32xf32>
    %153 = arith.addf %134, %152 : vector<17x32xf32>
    %154 = vector.extract_strided_slice %36 {offsets = [0, 48], sizes = [17, 8], strides = [1, 1]} : vector<17x128xf32> to vector<17x8xf32>
    %155 = vector.extract_strided_slice %37 {offsets = [0, 48], sizes = [17, 8], strides = [1, 1]} : vector<17x128xf32> to vector<17x8xf32>
    %156 = vector.extract_strided_slice %38 {offsets = [0, 48], sizes = [17, 8], strides = [1, 1]} : vector<17x128xf32> to vector<17x8xf32>
    %cst_84 = arith.constant dense<0.000000e+00> : vector<17x17xf32>
    %157 = tpu.matmul %154, %155, %cst_84 {dimension_numbers = #tpu.dot_dimension_numbers<[1], [1], [0], [0], [0, 0, 1, 0], [], []>} : vector<17x8xf32>, vector<17x8xf32>, vector<17x17xf32> -> vector<17x17xf32>
    %cst_85 = arith.constant dense<0xFF800000> : vector<17xf32>
    %158 = vector.multi_reduction <maximumf>, %157, %cst_85 [1] : vector<17x17xf32> to vector<17xf32>
    %159 = vector.shape_cast %158 : vector<17xf32> to vector<17x1xf32>
    %160 = vector.broadcast %159 : vector<17x1xf32> to vector<17x17xf32>
    %161 = arith.subf %157, %160 : vector<17x17xf32>
    %162 = math.exp %161 : vector<17x17xf32>
    %cst_86 = arith.constant dense<0.000000e+00> : vector<17xf32>
    %163 = vector.multi_reduction <add>, %162, %cst_86 [1] : vector<17x17xf32> to vector<17xf32>
    %164 = vector.shape_cast %163 : vector<17xf32> to vector<17x1xf32>
    %cst_87 = arith.constant dense<0.000000e+00> : vector<17x8xf32>
    %165 = tpu.matmul %162, %156, %cst_87 {dimension_numbers = #tpu.dot_dimension_numbers<[1], [0], [0], [1], [0, 0, 1, 1], [], []>} : vector<17x17xf32>, vector<17x8xf32>, vector<17x8xf32> -> vector<17x8xf32>
    %166 = tpu.reciprocal %164 : vector<17x1xf32> -> vector<17x1xf32>
    %167 = vector.broadcast %166 : vector<17x1xf32> to vector<17x8xf32>
    %168 = arith.mulf %165, %167 : vector<17x8xf32>
    %c6 = arith.constant 6 : index
    %c0_88 = arith.constant 0 : index
    %c0_89 = arith.constant 0 : index
    %169 = vector.load %arg7[%c6, %c0_88, %c0_89] : memref<16x8x32xf32, #tpu.memory_space<vmem>>, vector<1x8x32xf32>
    %170 = vector.shape_cast %169 : vector<1x8x32xf32> to vector<8x32xf32>
    %cst_90 = arith.constant dense<0.000000e+00> : vector<17x32xf32>
    %171 = tpu.matmul %168, %170, %cst_90 {dimension_numbers = #tpu.dot_dimension_numbers<[1], [0], [0], [1], [0, 0, 1, 1], [], []>} : vector<17x8xf32>, vector<8x32xf32>, vector<17x32xf32> -> vector<17x32xf32>
    %172 = arith.addf %153, %171 : vector<17x32xf32>
    %173 = vector.extract_strided_slice %36 {offsets = [0, 56], sizes = [17, 8], strides = [1, 1]} : vector<17x128xf32> to vector<17x8xf32>
    %174 = vector.extract_strided_slice %37 {offsets = [0, 56], sizes = [17, 8], strides = [1, 1]} : vector<17x128xf32> to vector<17x8xf32>
    %175 = vector.extract_strided_slice %38 {offsets = [0, 56], sizes = [17, 8], strides = [1, 1]} : vector<17x128xf32> to vector<17x8xf32>
    %cst_91 = arith.constant dense<0.000000e+00> : vector<17x17xf32>
    %176 = tpu.matmul %173, %174, %cst_91 {dimension_numbers = #tpu.dot_dimension_numbers<[1], [1], [0], [0], [0, 0, 1, 0], [], []>} : vector<17x8xf32>, vector<17x8xf32>, vector<17x17xf32> -> vector<17x17xf32>
    %cst_92 = arith.constant dense<0xFF800000> : vector<17xf32>
    %177 = vector.multi_reduction <maximumf>, %176, %cst_92 [1] : vector<17x17xf32> to vector<17xf32>
    %178 = vector.shape_cast %177 : vector<17xf32> to vector<17x1xf32>
    %179 = vector.broadcast %178 : vector<17x1xf32> to vector<17x17xf32>
    %180 = arith.subf %176, %179 : vector<17x17xf32>
    %181 = math.exp %180 : vector<17x17xf32>
    %cst_93 = arith.constant dense<0.000000e+00> : vector<17xf32>
    %182 = vector.multi_reduction <add>, %181, %cst_93 [1] : vector<17x17xf32> to vector<17xf32>
    %183 = vector.shape_cast %182 : vector<17xf32> to vector<17x1xf32>
    %cst_94 = arith.constant dense<0.000000e+00> : vector<17x8xf32>
    %184 = tpu.matmul %181, %175, %cst_94 {dimension_numbers = #tpu.dot_dimension_numbers<[1], [0], [0], [1], [0, 0, 1, 1], [], []>} : vector<17x17xf32>, vector<17x8xf32>, vector<17x8xf32> -> vector<17x8xf32>
    %185 = tpu.reciprocal %183 : vector<17x1xf32> -> vector<17x1xf32>
    %186 = vector.broadcast %185 : vector<17x1xf32> to vector<17x8xf32>
    %187 = arith.mulf %184, %186 : vector<17x8xf32>
    %c7 = arith.constant 7 : index
    %c0_95 = arith.constant 0 : index
    %c0_96 = arith.constant 0 : index
    %188 = vector.load %arg7[%c7, %c0_95, %c0_96] : memref<16x8x32xf32, #tpu.memory_space<vmem>>, vector<1x8x32xf32>
    %189 = vector.shape_cast %188 : vector<1x8x32xf32> to vector<8x32xf32>
    %cst_97 = arith.constant dense<0.000000e+00> : vector<17x32xf32>
    %190 = tpu.matmul %187, %189, %cst_97 {dimension_numbers = #tpu.dot_dimension_numbers<[1], [0], [0], [1], [0, 0, 1, 1], [], []>} : vector<17x8xf32>, vector<8x32xf32>, vector<17x32xf32> -> vector<17x32xf32>
    %191 = arith.addf %172, %190 : vector<17x32xf32>
    %192 = vector.extract_strided_slice %36 {offsets = [0, 64], sizes = [17, 8], strides = [1, 1]} : vector<17x128xf32> to vector<17x8xf32>
    %193 = vector.extract_strided_slice %37 {offsets = [0, 64], sizes = [17, 8], strides = [1, 1]} : vector<17x128xf32> to vector<17x8xf32>
    %194 = vector.extract_strided_slice %38 {offsets = [0, 64], sizes = [17, 8], strides = [1, 1]} : vector<17x128xf32> to vector<17x8xf32>
    %cst_98 = arith.constant dense<0.000000e+00> : vector<17x17xf32>
    %195 = tpu.matmul %192, %193, %cst_98 {dimension_numbers = #tpu.dot_dimension_numbers<[1], [1], [0], [0], [0, 0, 1, 0], [], []>} : vector<17x8xf32>, vector<17x8xf32>, vector<17x17xf32> -> vector<17x17xf32>
    %cst_99 = arith.constant dense<0xFF800000> : vector<17xf32>
    %196 = vector.multi_reduction <maximumf>, %195, %cst_99 [1] : vector<17x17xf32> to vector<17xf32>
    %197 = vector.shape_cast %196 : vector<17xf32> to vector<17x1xf32>
    %198 = vector.broadcast %197 : vector<17x1xf32> to vector<17x17xf32>
    %199 = arith.subf %195, %198 : vector<17x17xf32>
    %200 = math.exp %199 : vector<17x17xf32>
    %cst_100 = arith.constant dense<0.000000e+00> : vector<17xf32>
    %201 = vector.multi_reduction <add>, %200, %cst_100 [1] : vector<17x17xf32> to vector<17xf32>
    %202 = vector.shape_cast %201 : vector<17xf32> to vector<17x1xf32>
    %cst_101 = arith.constant dense<0.000000e+00> : vector<17x8xf32>
    %203 = tpu.matmul %200, %194, %cst_101 {dimension_numbers = #tpu.dot_dimension_numbers<[1], [0], [0], [1], [0, 0, 1, 1], [], []>} : vector<17x17xf32>, vector<17x8xf32>, vector<17x8xf32> -> vector<17x8xf32>
    %204 = tpu.reciprocal %202 : vector<17x1xf32> -> vector<17x1xf32>
    %205 = vector.broadcast %204 : vector<17x1xf32> to vector<17x8xf32>
    %206 = arith.mulf %203, %205 : vector<17x8xf32>
    %c8 = arith.constant 8 : index
    %c0_102 = arith.constant 0 : index
    %c0_103 = arith.constant 0 : index
    %207 = vector.load %arg7[%c8, %c0_102, %c0_103] : memref<16x8x32xf32, #tpu.memory_space<vmem>>, vector<1x8x32xf32>
    %208 = vector.shape_cast %207 : vector<1x8x32xf32> to vector<8x32xf32>
    %cst_104 = arith.constant dense<0.000000e+00> : vector<17x32xf32>
    %209 = tpu.matmul %206, %208, %cst_104 {dimension_numbers = #tpu.dot_dimension_numbers<[1], [0], [0], [1], [0, 0, 1, 1], [], []>} : vector<17x8xf32>, vector<8x32xf32>, vector<17x32xf32> -> vector<17x32xf32>
    %210 = arith.addf %191, %209 : vector<17x32xf32>
    %211 = vector.extract_strided_slice %36 {offsets = [0, 72], sizes = [17, 8], strides = [1, 1]} : vector<17x128xf32> to vector<17x8xf32>
    %212 = vector.extract_strided_slice %37 {offsets = [0, 72], sizes = [17, 8], strides = [1, 1]} : vector<17x128xf32> to vector<17x8xf32>
    %213 = vector.extract_strided_slice %38 {offsets = [0, 72], sizes = [17, 8], strides = [1, 1]} : vector<17x128xf32> to vector<17x8xf32>
    %cst_105 = arith.constant dense<0.000000e+00> : vector<17x17xf32>
    %214 = tpu.matmul %211, %212, %cst_105 {dimension_numbers = #tpu.dot_dimension_numbers<[1], [1], [0], [0], [0, 0, 1, 0], [], []>} : vector<17x8xf32>, vector<17x8xf32>, vector<17x17xf32> -> vector<17x17xf32>
    %cst_106 = arith.constant dense<0xFF800000> : vector<17xf32>
    %215 = vector.multi_reduction <maximumf>, %214, %cst_106 [1] : vector<17x17xf32> to vector<17xf32>
    %216 = vector.shape_cast %215 : vector<17xf32> to vector<17x1xf32>
    %217 = vector.broadcast %216 : vector<17x1xf32> to vector<17x17xf32>
    %218 = arith.subf %214, %217 : vector<17x17xf32>
    %219 = math.exp %218 : vector<17x17xf32>
    %cst_107 = arith.constant dense<0.000000e+00> : vector<17xf32>
    %220 = vector.multi_reduction <add>, %219, %cst_107 [1] : vector<17x17xf32> to vector<17xf32>
    %221 = vector.shape_cast %220 : vector<17xf32> to vector<17x1xf32>
    %cst_108 = arith.constant dense<0.000000e+00> : vector<17x8xf32>
    %222 = tpu.matmul %219, %213, %cst_108 {dimension_numbers = #tpu.dot_dimension_numbers<[1], [0], [0], [1], [0, 0, 1, 1], [], []>} : vector<17x17xf32>, vector<17x8xf32>, vector<17x8xf32> -> vector<17x8xf32>
    %223 = tpu.reciprocal %221 : vector<17x1xf32> -> vector<17x1xf32>
    %224 = vector.broadcast %223 : vector<17x1xf32> to vector<17x8xf32>
    %225 = arith.mulf %222, %224 : vector<17x8xf32>
    %c9 = arith.constant 9 : index
    %c0_109 = arith.constant 0 : index
    %c0_110 = arith.constant 0 : index
    %226 = vector.load %arg7[%c9, %c0_109, %c0_110] : memref<16x8x32xf32, #tpu.memory_space<vmem>>, vector<1x8x32xf32>
    %227 = vector.shape_cast %226 : vector<1x8x32xf32> to vector<8x32xf32>
    %cst_111 = arith.constant dense<0.000000e+00> : vector<17x32xf32>
    %228 = tpu.matmul %225, %227, %cst_111 {dimension_numbers = #tpu.dot_dimension_numbers<[1], [0], [0], [1], [0, 0, 1, 1], [], []>} : vector<17x8xf32>, vector<8x32xf32>, vector<17x32xf32> -> vector<17x32xf32>
    %229 = arith.addf %210, %228 : vector<17x32xf32>
    %230 = vector.extract_strided_slice %36 {offsets = [0, 80], sizes = [17, 8], strides = [1, 1]} : vector<17x128xf32> to vector<17x8xf32>
    %231 = vector.extract_strided_slice %37 {offsets = [0, 80], sizes = [17, 8], strides = [1, 1]} : vector<17x128xf32> to vector<17x8xf32>
    %232 = vector.extract_strided_slice %38 {offsets = [0, 80], sizes = [17, 8], strides = [1, 1]} : vector<17x128xf32> to vector<17x8xf32>
    %cst_112 = arith.constant dense<0.000000e+00> : vector<17x17xf32>
    %233 = tpu.matmul %230, %231, %cst_112 {dimension_numbers = #tpu.dot_dimension_numbers<[1], [1], [0], [0], [0, 0, 1, 0], [], []>} : vector<17x8xf32>, vector<17x8xf32>, vector<17x17xf32> -> vector<17x17xf32>
    %cst_113 = arith.constant dense<0xFF800000> : vector<17xf32>
    %234 = vector.multi_reduction <maximumf>, %233, %cst_113 [1] : vector<17x17xf32> to vector<17xf32>
    %235 = vector.shape_cast %234 : vector<17xf32> to vector<17x1xf32>
    %236 = vector.broadcast %235 : vector<17x1xf32> to vector<17x17xf32>
    %237 = arith.subf %233, %236 : vector<17x17xf32>
    %238 = math.exp %237 : vector<17x17xf32>
    %cst_114 = arith.constant dense<0.000000e+00> : vector<17xf32>
    %239 = vector.multi_reduction <add>, %238, %cst_114 [1] : vector<17x17xf32> to vector<17xf32>
    %240 = vector.shape_cast %239 : vector<17xf32> to vector<17x1xf32>
    %cst_115 = arith.constant dense<0.000000e+00> : vector<17x8xf32>
    %241 = tpu.matmul %238, %232, %cst_115 {dimension_numbers = #tpu.dot_dimension_numbers<[1], [0], [0], [1], [0, 0, 1, 1], [], []>} : vector<17x17xf32>, vector<17x8xf32>, vector<17x8xf32> -> vector<17x8xf32>
    %242 = tpu.reciprocal %240 : vector<17x1xf32> -> vector<17x1xf32>
    %243 = vector.broadcast %242 : vector<17x1xf32> to vector<17x8xf32>
    %244 = arith.mulf %241, %243 : vector<17x8xf32>
    %c10 = arith.constant 10 : index
    %c0_116 = arith.constant 0 : index
    %c0_117 = arith.constant 0 : index
    %245 = vector.load %arg7[%c10, %c0_116, %c0_117] : memref<16x8x32xf32, #tpu.memory_space<vmem>>, vector<1x8x32xf32>
    %246 = vector.shape_cast %245 : vector<1x8x32xf32> to vector<8x32xf32>
    %cst_118 = arith.constant dense<0.000000e+00> : vector<17x32xf32>
    %247 = tpu.matmul %244, %246, %cst_118 {dimension_numbers = #tpu.dot_dimension_numbers<[1], [0], [0], [1], [0, 0, 1, 1], [], []>} : vector<17x8xf32>, vector<8x32xf32>, vector<17x32xf32> -> vector<17x32xf32>
    %248 = arith.addf %229, %247 : vector<17x32xf32>
    %249 = vector.extract_strided_slice %36 {offsets = [0, 88], sizes = [17, 8], strides = [1, 1]} : vector<17x128xf32> to vector<17x8xf32>
    %250 = vector.extract_strided_slice %37 {offsets = [0, 88], sizes = [17, 8], strides = [1, 1]} : vector<17x128xf32> to vector<17x8xf32>
    %251 = vector.extract_strided_slice %38 {offsets = [0, 88], sizes = [17, 8], strides = [1, 1]} : vector<17x128xf32> to vector<17x8xf32>
    %cst_119 = arith.constant dense<0.000000e+00> : vector<17x17xf32>
    %252 = tpu.matmul %249, %250, %cst_119 {dimension_numbers = #tpu.dot_dimension_numbers<[1], [1], [0], [0], [0, 0, 1, 0], [], []>} : vector<17x8xf32>, vector<17x8xf32>, vector<17x17xf32> -> vector<17x17xf32>
    %cst_120 = arith.constant dense<0xFF800000> : vector<17xf32>
    %253 = vector.multi_reduction <maximumf>, %252, %cst_120 [1] : vector<17x17xf32> to vector<17xf32>
    %254 = vector.shape_cast %253 : vector<17xf32> to vector<17x1xf32>
    %255 = vector.broadcast %254 : vector<17x1xf32> to vector<17x17xf32>
    %256 = arith.subf %252, %255 : vector<17x17xf32>
    %257 = math.exp %256 : vector<17x17xf32>
    %cst_121 = arith.constant dense<0.000000e+00> : vector<17xf32>
    %258 = vector.multi_reduction <add>, %257, %cst_121 [1] : vector<17x17xf32> to vector<17xf32>
    %259 = vector.shape_cast %258 : vector<17xf32> to vector<17x1xf32>
    %cst_122 = arith.constant dense<0.000000e+00> : vector<17x8xf32>
    %260 = tpu.matmul %257, %251, %cst_122 {dimension_numbers = #tpu.dot_dimension_numbers<[1], [0], [0], [1], [0, 0, 1, 1], [], []>} : vector<17x17xf32>, vector<17x8xf32>, vector<17x8xf32> -> vector<17x8xf32>
    %261 = tpu.reciprocal %259 : vector<17x1xf32> -> vector<17x1xf32>
    %262 = vector.broadcast %261 : vector<17x1xf32> to vector<17x8xf32>
    %263 = arith.mulf %260, %262 : vector<17x8xf32>
    %c11 = arith.constant 11 : index
    %c0_123 = arith.constant 0 : index
    %c0_124 = arith.constant 0 : index
    %264 = vector.load %arg7[%c11, %c0_123, %c0_124] : memref<16x8x32xf32, #tpu.memory_space<vmem>>, vector<1x8x32xf32>
    %265 = vector.shape_cast %264 : vector<1x8x32xf32> to vector<8x32xf32>
    %cst_125 = arith.constant dense<0.000000e+00> : vector<17x32xf32>
    %266 = tpu.matmul %263, %265, %cst_125 {dimension_numbers = #tpu.dot_dimension_numbers<[1], [0], [0], [1], [0, 0, 1, 1], [], []>} : vector<17x8xf32>, vector<8x32xf32>, vector<17x32xf32> -> vector<17x32xf32>
    %267 = arith.addf %248, %266 : vector<17x32xf32>
    %268 = vector.extract_strided_slice %36 {offsets = [0, 96], sizes = [17, 8], strides = [1, 1]} : vector<17x128xf32> to vector<17x8xf32>
    %269 = vector.extract_strided_slice %37 {offsets = [0, 96], sizes = [17, 8], strides = [1, 1]} : vector<17x128xf32> to vector<17x8xf32>
    %270 = vector.extract_strided_slice %38 {offsets = [0, 96], sizes = [17, 8], strides = [1, 1]} : vector<17x128xf32> to vector<17x8xf32>
    %cst_126 = arith.constant dense<0.000000e+00> : vector<17x17xf32>
    %271 = tpu.matmul %268, %269, %cst_126 {dimension_numbers = #tpu.dot_dimension_numbers<[1], [1], [0], [0], [0, 0, 1, 0], [], []>} : vector<17x8xf32>, vector<17x8xf32>, vector<17x17xf32> -> vector<17x17xf32>
    %cst_127 = arith.constant dense<0xFF800000> : vector<17xf32>
    %272 = vector.multi_reduction <maximumf>, %271, %cst_127 [1] : vector<17x17xf32> to vector<17xf32>
    %273 = vector.shape_cast %272 : vector<17xf32> to vector<17x1xf32>
    %274 = vector.broadcast %273 : vector<17x1xf32> to vector<17x17xf32>
    %275 = arith.subf %271, %274 : vector<17x17xf32>
    %276 = math.exp %275 : vector<17x17xf32>
    %cst_128 = arith.constant dense<0.000000e+00> : vector<17xf32>
    %277 = vector.multi_reduction <add>, %276, %cst_128 [1] : vector<17x17xf32> to vector<17xf32>
    %278 = vector.shape_cast %277 : vector<17xf32> to vector<17x1xf32>
    %cst_129 = arith.constant dense<0.000000e+00> : vector<17x8xf32>
    %279 = tpu.matmul %276, %270, %cst_129 {dimension_numbers = #tpu.dot_dimension_numbers<[1], [0], [0], [1], [0, 0, 1, 1], [], []>} : vector<17x17xf32>, vector<17x8xf32>, vector<17x8xf32> -> vector<17x8xf32>
    %280 = tpu.reciprocal %278 : vector<17x1xf32> -> vector<17x1xf32>
    %281 = vector.broadcast %280 : vector<17x1xf32> to vector<17x8xf32>
    %282 = arith.mulf %279, %281 : vector<17x8xf32>
    %c12 = arith.constant 12 : index
    %c0_130 = arith.constant 0 : index
    %c0_131 = arith.constant 0 : index
    %283 = vector.load %arg7[%c12, %c0_130, %c0_131] : memref<16x8x32xf32, #tpu.memory_space<vmem>>, vector<1x8x32xf32>
    %284 = vector.shape_cast %283 : vector<1x8x32xf32> to vector<8x32xf32>
    %cst_132 = arith.constant dense<0.000000e+00> : vector<17x32xf32>
    %285 = tpu.matmul %282, %284, %cst_132 {dimension_numbers = #tpu.dot_dimension_numbers<[1], [0], [0], [1], [0, 0, 1, 1], [], []>} : vector<17x8xf32>, vector<8x32xf32>, vector<17x32xf32> -> vector<17x32xf32>
    %286 = arith.addf %267, %285 : vector<17x32xf32>
    %287 = vector.extract_strided_slice %36 {offsets = [0, 104], sizes = [17, 8], strides = [1, 1]} : vector<17x128xf32> to vector<17x8xf32>
    %288 = vector.extract_strided_slice %37 {offsets = [0, 104], sizes = [17, 8], strides = [1, 1]} : vector<17x128xf32> to vector<17x8xf32>
    %289 = vector.extract_strided_slice %38 {offsets = [0, 104], sizes = [17, 8], strides = [1, 1]} : vector<17x128xf32> to vector<17x8xf32>
    %cst_133 = arith.constant dense<0.000000e+00> : vector<17x17xf32>
    %290 = tpu.matmul %287, %288, %cst_133 {dimension_numbers = #tpu.dot_dimension_numbers<[1], [1], [0], [0], [0, 0, 1, 0], [], []>} : vector<17x8xf32>, vector<17x8xf32>, vector<17x17xf32> -> vector<17x17xf32>
    %cst_134 = arith.constant dense<0xFF800000> : vector<17xf32>
    %291 = vector.multi_reduction <maximumf>, %290, %cst_134 [1] : vector<17x17xf32> to vector<17xf32>
    %292 = vector.shape_cast %291 : vector<17xf32> to vector<17x1xf32>
    %293 = vector.broadcast %292 : vector<17x1xf32> to vector<17x17xf32>
    %294 = arith.subf %290, %293 : vector<17x17xf32>
    %295 = math.exp %294 : vector<17x17xf32>
    %cst_135 = arith.constant dense<0.000000e+00> : vector<17xf32>
    %296 = vector.multi_reduction <add>, %295, %cst_135 [1] : vector<17x17xf32> to vector<17xf32>
    %297 = vector.shape_cast %296 : vector<17xf32> to vector<17x1xf32>
    %cst_136 = arith.constant dense<0.000000e+00> : vector<17x8xf32>
    %298 = tpu.matmul %295, %289, %cst_136 {dimension_numbers = #tpu.dot_dimension_numbers<[1], [0], [0], [1], [0, 0, 1, 1], [], []>} : vector<17x17xf32>, vector<17x8xf32>, vector<17x8xf32> -> vector<17x8xf32>
    %299 = tpu.reciprocal %297 : vector<17x1xf32> -> vector<17x1xf32>
    %300 = vector.broadcast %299 : vector<17x1xf32> to vector<17x8xf32>
    %301 = arith.mulf %298, %300 : vector<17x8xf32>
    %c13 = arith.constant 13 : index
    %c0_137 = arith.constant 0 : index
    %c0_138 = arith.constant 0 : index
    %302 = vector.load %arg7[%c13, %c0_137, %c0_138] : memref<16x8x32xf32, #tpu.memory_space<vmem>>, vector<1x8x32xf32>
    %303 = vector.shape_cast %302 : vector<1x8x32xf32> to vector<8x32xf32>
    %cst_139 = arith.constant dense<0.000000e+00> : vector<17x32xf32>
    %304 = tpu.matmul %301, %303, %cst_139 {dimension_numbers = #tpu.dot_dimension_numbers<[1], [0], [0], [1], [0, 0, 1, 1], [], []>} : vector<17x8xf32>, vector<8x32xf32>, vector<17x32xf32> -> vector<17x32xf32>
    %305 = arith.addf %286, %304 : vector<17x32xf32>
    %306 = vector.extract_strided_slice %36 {offsets = [0, 112], sizes = [17, 8], strides = [1, 1]} : vector<17x128xf32> to vector<17x8xf32>
    %307 = vector.extract_strided_slice %37 {offsets = [0, 112], sizes = [17, 8], strides = [1, 1]} : vector<17x128xf32> to vector<17x8xf32>
    %308 = vector.extract_strided_slice %38 {offsets = [0, 112], sizes = [17, 8], strides = [1, 1]} : vector<17x128xf32> to vector<17x8xf32>
    %cst_140 = arith.constant dense<0.000000e+00> : vector<17x17xf32>
    %309 = tpu.matmul %306, %307, %cst_140 {dimension_numbers = #tpu.dot_dimension_numbers<[1], [1], [0], [0], [0, 0, 1, 0], [], []>} : vector<17x8xf32>, vector<17x8xf32>, vector<17x17xf32> -> vector<17x17xf32>
    %cst_141 = arith.constant dense<0xFF800000> : vector<17xf32>
    %310 = vector.multi_reduction <maximumf>, %309, %cst_141 [1] : vector<17x17xf32> to vector<17xf32>
    %311 = vector.shape_cast %310 : vector<17xf32> to vector<17x1xf32>
    %312 = vector.broadcast %311 : vector<17x1xf32> to vector<17x17xf32>
    %313 = arith.subf %309, %312 : vector<17x17xf32>
    %314 = math.exp %313 : vector<17x17xf32>
    %cst_142 = arith.constant dense<0.000000e+00> : vector<17xf32>
    %315 = vector.multi_reduction <add>, %314, %cst_142 [1] : vector<17x17xf32> to vector<17xf32>
    %316 = vector.shape_cast %315 : vector<17xf32> to vector<17x1xf32>
    %cst_143 = arith.constant dense<0.000000e+00> : vector<17x8xf32>
    %317 = tpu.matmul %314, %308, %cst_143 {dimension_numbers = #tpu.dot_dimension_numbers<[1], [0], [0], [1], [0, 0, 1, 1], [], []>} : vector<17x17xf32>, vector<17x8xf32>, vector<17x8xf32> -> vector<17x8xf32>
    %318 = tpu.reciprocal %316 : vector<17x1xf32> -> vector<17x1xf32>
    %319 = vector.broadcast %318 : vector<17x1xf32> to vector<17x8xf32>
    %320 = arith.mulf %317, %319 : vector<17x8xf32>
    %c14 = arith.constant 14 : index
    %c0_144 = arith.constant 0 : index
    %c0_145 = arith.constant 0 : index
    %321 = vector.load %arg7[%c14, %c0_144, %c0_145] : memref<16x8x32xf32, #tpu.memory_space<vmem>>, vector<1x8x32xf32>
    %322 = vector.shape_cast %321 : vector<1x8x32xf32> to vector<8x32xf32>
    %cst_146 = arith.constant dense<0.000000e+00> : vector<17x32xf32>
    %323 = tpu.matmul %320, %322, %cst_146 {dimension_numbers = #tpu.dot_dimension_numbers<[1], [0], [0], [1], [0, 0, 1, 1], [], []>} : vector<17x8xf32>, vector<8x32xf32>, vector<17x32xf32> -> vector<17x32xf32>
    %324 = arith.addf %305, %323 : vector<17x32xf32>
    %325 = vector.extract_strided_slice %36 {offsets = [0, 120], sizes = [17, 8], strides = [1, 1]} : vector<17x128xf32> to vector<17x8xf32>
    %326 = vector.extract_strided_slice %37 {offsets = [0, 120], sizes = [17, 8], strides = [1, 1]} : vector<17x128xf32> to vector<17x8xf32>
    %327 = vector.extract_strided_slice %38 {offsets = [0, 120], sizes = [17, 8], strides = [1, 1]} : vector<17x128xf32> to vector<17x8xf32>
    %cst_147 = arith.constant dense<0.000000e+00> : vector<17x17xf32>
    %328 = tpu.matmul %325, %326, %cst_147 {dimension_numbers = #tpu.dot_dimension_numbers<[1], [1], [0], [0], [0, 0, 1, 0], [], []>} : vector<17x8xf32>, vector<17x8xf32>, vector<17x17xf32> -> vector<17x17xf32>
    %cst_148 = arith.constant dense<0xFF800000> : vector<17xf32>
    %329 = vector.multi_reduction <maximumf>, %328, %cst_148 [1] : vector<17x17xf32> to vector<17xf32>
    %330 = vector.shape_cast %329 : vector<17xf32> to vector<17x1xf32>
    %331 = vector.broadcast %330 : vector<17x1xf32> to vector<17x17xf32>
    %332 = arith.subf %328, %331 : vector<17x17xf32>
    %333 = math.exp %332 : vector<17x17xf32>
    %cst_149 = arith.constant dense<0.000000e+00> : vector<17xf32>
    %334 = vector.multi_reduction <add>, %333, %cst_149 [1] : vector<17x17xf32> to vector<17xf32>
    %335 = vector.shape_cast %334 : vector<17xf32> to vector<17x1xf32>
    %cst_150 = arith.constant dense<0.000000e+00> : vector<17x8xf32>
    %336 = tpu.matmul %333, %327, %cst_150 {dimension_numbers = #tpu.dot_dimension_numbers<[1], [0], [0], [1], [0, 0, 1, 1], [], []>} : vector<17x17xf32>, vector<17x8xf32>, vector<17x8xf32> -> vector<17x8xf32>
    %337 = tpu.reciprocal %335 : vector<17x1xf32> -> vector<17x1xf32>
    %338 = vector.broadcast %337 : vector<17x1xf32> to vector<17x8xf32>
    %339 = arith.mulf %336, %338 : vector<17x8xf32>
    %c15 = arith.constant 15 : index
    %c0_151 = arith.constant 0 : index
    %c0_152 = arith.constant 0 : index
    %340 = vector.load %arg7[%c15, %c0_151, %c0_152] : memref<16x8x32xf32, #tpu.memory_space<vmem>>, vector<1x8x32xf32>
    %341 = vector.shape_cast %340 : vector<1x8x32xf32> to vector<8x32xf32>
    %cst_153 = arith.constant dense<0.000000e+00> : vector<17x32xf32>
    %342 = tpu.matmul %339, %341, %cst_153 {dimension_numbers = #tpu.dot_dimension_numbers<[1], [0], [0], [1], [0, 0, 1, 1], [], []>} : vector<17x8xf32>, vector<8x32xf32>, vector<17x32xf32> -> vector<17x32xf32>
    %343 = arith.addf %324, %342 : vector<17x32xf32>
    %c1_154 = arith.constant 1 : index
    %c0_155 = arith.constant 0 : index
    %c0_156 = arith.constant 0 : index
    %344 = vector.load %arg17[%c1_154, %c0_155, %c0_156] : memref<2x17x32xf32, #tpu.memory_space<vmem>>, vector<1x17x32xf32>
    %345 = vector.shape_cast %344 : vector<1x17x32xf32> to vector<17x32xf32>
    %cst_157 = arith.constant dense<0.000000e+00> : vector<17x128xf32>
    %346 = tpu.matmul %345, %29, %cst_157 {dimension_numbers = #tpu.dot_dimension_numbers<[1], [0], [0], [1], [0, 0, 1, 1], [], []>} : vector<17x32xf32>, vector<32x128xf32>, vector<17x128xf32> -> vector<17x128xf32>
    %cst_158 = arith.constant 0.353553385 : f32
    %347 = vector.broadcast %cst_158 : f32 to vector<17x128xf32>
    %348 = arith.mulf %346, %347 : vector<17x128xf32>
    %cst_159 = arith.constant dense<0.000000e+00> : vector<17x128xf32>
    %349 = tpu.matmul %345, %30, %cst_159 {dimension_numbers = #tpu.dot_dimension_numbers<[1], [0], [0], [1], [0, 0, 1, 1], [], []>} : vector<17x32xf32>, vector<32x128xf32>, vector<17x128xf32> -> vector<17x128xf32>
    %cst_160 = arith.constant dense<0.000000e+00> : vector<17x128xf32>
    %350 = tpu.matmul %345, %31, %cst_160 {dimension_numbers = #tpu.dot_dimension_numbers<[1], [0], [0], [1], [0, 0, 1, 1], [], []>} : vector<17x32xf32>, vector<32x128xf32>, vector<17x128xf32> -> vector<17x128xf32>
    %cst_161 = arith.constant 0.000000e+00 : f32
    %351 = vector.broadcast %cst_161 : f32 to vector<17x32xf32>
    %352 = vector.extract_strided_slice %348 {offsets = [0, 0], sizes = [17, 8], strides = [1, 1]} : vector<17x128xf32> to vector<17x8xf32>
    %353 = vector.extract_strided_slice %349 {offsets = [0, 0], sizes = [17, 8], strides = [1, 1]} : vector<17x128xf32> to vector<17x8xf32>
    %354 = vector.extract_strided_slice %350 {offsets = [0, 0], sizes = [17, 8], strides = [1, 1]} : vector<17x128xf32> to vector<17x8xf32>
    %cst_162 = arith.constant dense<0.000000e+00> : vector<17x17xf32>
    %355 = tpu.matmul %352, %353, %cst_162 {dimension_numbers = #tpu.dot_dimension_numbers<[1], [1], [0], [0], [0, 0, 1, 0], [], []>} : vector<17x8xf32>, vector<17x8xf32>, vector<17x17xf32> -> vector<17x17xf32>
    %cst_163 = arith.constant dense<0xFF800000> : vector<17xf32>
    %356 = vector.multi_reduction <maximumf>, %355, %cst_163 [1] : vector<17x17xf32> to vector<17xf32>
    %357 = vector.shape_cast %356 : vector<17xf32> to vector<17x1xf32>
    %358 = vector.broadcast %357 : vector<17x1xf32> to vector<17x17xf32>
    %359 = arith.subf %355, %358 : vector<17x17xf32>
    %360 = math.exp %359 : vector<17x17xf32>
    %cst_164 = arith.constant dense<0.000000e+00> : vector<17xf32>
    %361 = vector.multi_reduction <add>, %360, %cst_164 [1] : vector<17x17xf32> to vector<17xf32>
    %362 = vector.shape_cast %361 : vector<17xf32> to vector<17x1xf32>
    %cst_165 = arith.constant dense<0.000000e+00> : vector<17x8xf32>
    %363 = tpu.matmul %360, %354, %cst_165 {dimension_numbers = #tpu.dot_dimension_numbers<[1], [0], [0], [1], [0, 0, 1, 1], [], []>} : vector<17x17xf32>, vector<17x8xf32>, vector<17x8xf32> -> vector<17x8xf32>
    %364 = tpu.reciprocal %362 : vector<17x1xf32> -> vector<17x1xf32>
    %365 = vector.broadcast %364 : vector<17x1xf32> to vector<17x8xf32>
    %366 = arith.mulf %363, %365 : vector<17x8xf32>
    %c0_166 = arith.constant 0 : index
    %c0_167 = arith.constant 0 : index
    %c0_168 = arith.constant 0 : index
    %367 = vector.load %arg7[%c0_166, %c0_167, %c0_168] : memref<16x8x32xf32, #tpu.memory_space<vmem>>, vector<1x8x32xf32>
    %368 = vector.shape_cast %367 : vector<1x8x32xf32> to vector<8x32xf32>
    %cst_169 = arith.constant dense<0.000000e+00> : vector<17x32xf32>
    %369 = tpu.matmul %366, %368, %cst_169 {dimension_numbers = #tpu.dot_dimension_numbers<[1], [0], [0], [1], [0, 0, 1, 1], [], []>} : vector<17x8xf32>, vector<8x32xf32>, vector<17x32xf32> -> vector<17x32xf32>
    %370 = arith.addf %351, %369 : vector<17x32xf32>
    %371 = vector.extract_strided_slice %348 {offsets = [0, 8], sizes = [17, 8], strides = [1, 1]} : vector<17x128xf32> to vector<17x8xf32>
    %372 = vector.extract_strided_slice %349 {offsets = [0, 8], sizes = [17, 8], strides = [1, 1]} : vector<17x128xf32> to vector<17x8xf32>
    %373 = vector.extract_strided_slice %350 {offsets = [0, 8], sizes = [17, 8], strides = [1, 1]} : vector<17x128xf32> to vector<17x8xf32>
    %cst_170 = arith.constant dense<0.000000e+00> : vector<17x17xf32>
    %374 = tpu.matmul %371, %372, %cst_170 {dimension_numbers = #tpu.dot_dimension_numbers<[1], [1], [0], [0], [0, 0, 1, 0], [], []>} : vector<17x8xf32>, vector<17x8xf32>, vector<17x17xf32> -> vector<17x17xf32>
    %cst_171 = arith.constant dense<0xFF800000> : vector<17xf32>
    %375 = vector.multi_reduction <maximumf>, %374, %cst_171 [1] : vector<17x17xf32> to vector<17xf32>
    %376 = vector.shape_cast %375 : vector<17xf32> to vector<17x1xf32>
    %377 = vector.broadcast %376 : vector<17x1xf32> to vector<17x17xf32>
    %378 = arith.subf %374, %377 : vector<17x17xf32>
    %379 = math.exp %378 : vector<17x17xf32>
    %cst_172 = arith.constant dense<0.000000e+00> : vector<17xf32>
    %380 = vector.multi_reduction <add>, %379, %cst_172 [1] : vector<17x17xf32> to vector<17xf32>
    %381 = vector.shape_cast %380 : vector<17xf32> to vector<17x1xf32>
    %cst_173 = arith.constant dense<0.000000e+00> : vector<17x8xf32>
    %382 = tpu.matmul %379, %373, %cst_173 {dimension_numbers = #tpu.dot_dimension_numbers<[1], [0], [0], [1], [0, 0, 1, 1], [], []>} : vector<17x17xf32>, vector<17x8xf32>, vector<17x8xf32> -> vector<17x8xf32>
    %383 = tpu.reciprocal %381 : vector<17x1xf32> -> vector<17x1xf32>
    %384 = vector.broadcast %383 : vector<17x1xf32> to vector<17x8xf32>
    %385 = arith.mulf %382, %384 : vector<17x8xf32>
    %c1_174 = arith.constant 1 : index
    %c0_175 = arith.constant 0 : index
    %c0_176 = arith.constant 0 : index
    %386 = vector.load %arg7[%c1_174, %c0_175, %c0_176] : memref<16x8x32xf32, #tpu.memory_space<vmem>>, vector<1x8x32xf32>
    %387 = vector.shape_cast %386 : vector<1x8x32xf32> to vector<8x32xf32>
    %cst_177 = arith.constant dense<0.000000e+00> : vector<17x32xf32>
    %388 = tpu.matmul %385, %387, %cst_177 {dimension_numbers = #tpu.dot_dimension_numbers<[1], [0], [0], [1], [0, 0, 1, 1], [], []>} : vector<17x8xf32>, vector<8x32xf32>, vector<17x32xf32> -> vector<17x32xf32>
    %389 = arith.addf %370, %388 : vector<17x32xf32>
    %390 = vector.extract_strided_slice %348 {offsets = [0, 16], sizes = [17, 8], strides = [1, 1]} : vector<17x128xf32> to vector<17x8xf32>
    %391 = vector.extract_strided_slice %349 {offsets = [0, 16], sizes = [17, 8], strides = [1, 1]} : vector<17x128xf32> to vector<17x8xf32>
    %392 = vector.extract_strided_slice %350 {offsets = [0, 16], sizes = [17, 8], strides = [1, 1]} : vector<17x128xf32> to vector<17x8xf32>
    %cst_178 = arith.constant dense<0.000000e+00> : vector<17x17xf32>
    %393 = tpu.matmul %390, %391, %cst_178 {dimension_numbers = #tpu.dot_dimension_numbers<[1], [1], [0], [0], [0, 0, 1, 0], [], []>} : vector<17x8xf32>, vector<17x8xf32>, vector<17x17xf32> -> vector<17x17xf32>
    %cst_179 = arith.constant dense<0xFF800000> : vector<17xf32>
    %394 = vector.multi_reduction <maximumf>, %393, %cst_179 [1] : vector<17x17xf32> to vector<17xf32>
    %395 = vector.shape_cast %394 : vector<17xf32> to vector<17x1xf32>
    %396 = vector.broadcast %395 : vector<17x1xf32> to vector<17x17xf32>
    %397 = arith.subf %393, %396 : vector<17x17xf32>
    %398 = math.exp %397 : vector<17x17xf32>
    %cst_180 = arith.constant dense<0.000000e+00> : vector<17xf32>
    %399 = vector.multi_reduction <add>, %398, %cst_180 [1] : vector<17x17xf32> to vector<17xf32>
    %400 = vector.shape_cast %399 : vector<17xf32> to vector<17x1xf32>
    %cst_181 = arith.constant dense<0.000000e+00> : vector<17x8xf32>
    %401 = tpu.matmul %398, %392, %cst_181 {dimension_numbers = #tpu.dot_dimension_numbers<[1], [0], [0], [1], [0, 0, 1, 1], [], []>} : vector<17x17xf32>, vector<17x8xf32>, vector<17x8xf32> -> vector<17x8xf32>
    %402 = tpu.reciprocal %400 : vector<17x1xf32> -> vector<17x1xf32>
    %403 = vector.broadcast %402 : vector<17x1xf32> to vector<17x8xf32>
    %404 = arith.mulf %401, %403 : vector<17x8xf32>
    %c2_182 = arith.constant 2 : index
    %c0_183 = arith.constant 0 : index
    %c0_184 = arith.constant 0 : index
    %405 = vector.load %arg7[%c2_182, %c0_183, %c0_184] : memref<16x8x32xf32, #tpu.memory_space<vmem>>, vector<1x8x32xf32>
    %406 = vector.shape_cast %405 : vector<1x8x32xf32> to vector<8x32xf32>
    %cst_185 = arith.constant dense<0.000000e+00> : vector<17x32xf32>
    %407 = tpu.matmul %404, %406, %cst_185 {dimension_numbers = #tpu.dot_dimension_numbers<[1], [0], [0], [1], [0, 0, 1, 1], [], []>} : vector<17x8xf32>, vector<8x32xf32>, vector<17x32xf32> -> vector<17x32xf32>
    %408 = arith.addf %389, %407 : vector<17x32xf32>
    %409 = vector.extract_strided_slice %348 {offsets = [0, 24], sizes = [17, 8], strides = [1, 1]} : vector<17x128xf32> to vector<17x8xf32>
    %410 = vector.extract_strided_slice %349 {offsets = [0, 24], sizes = [17, 8], strides = [1, 1]} : vector<17x128xf32> to vector<17x8xf32>
    %411 = vector.extract_strided_slice %350 {offsets = [0, 24], sizes = [17, 8], strides = [1, 1]} : vector<17x128xf32> to vector<17x8xf32>
    %cst_186 = arith.constant dense<0.000000e+00> : vector<17x17xf32>
    %412 = tpu.matmul %409, %410, %cst_186 {dimension_numbers = #tpu.dot_dimension_numbers<[1], [1], [0], [0], [0, 0, 1, 0], [], []>} : vector<17x8xf32>, vector<17x8xf32>, vector<17x17xf32> -> vector<17x17xf32>
    %cst_187 = arith.constant dense<0xFF800000> : vector<17xf32>
    %413 = vector.multi_reduction <maximumf>, %412, %cst_187 [1] : vector<17x17xf32> to vector<17xf32>
    %414 = vector.shape_cast %413 : vector<17xf32> to vector<17x1xf32>
    %415 = vector.broadcast %414 : vector<17x1xf32> to vector<17x17xf32>
    %416 = arith.subf %412, %415 : vector<17x17xf32>
    %417 = math.exp %416 : vector<17x17xf32>
    %cst_188 = arith.constant dense<0.000000e+00> : vector<17xf32>
    %418 = vector.multi_reduction <add>, %417, %cst_188 [1] : vector<17x17xf32> to vector<17xf32>
    %419 = vector.shape_cast %418 : vector<17xf32> to vector<17x1xf32>
    %cst_189 = arith.constant dense<0.000000e+00> : vector<17x8xf32>
    %420 = tpu.matmul %417, %411, %cst_189 {dimension_numbers = #tpu.dot_dimension_numbers<[1], [0], [0], [1], [0, 0, 1, 1], [], []>} : vector<17x17xf32>, vector<17x8xf32>, vector<17x8xf32> -> vector<17x8xf32>
    %421 = tpu.reciprocal %419 : vector<17x1xf32> -> vector<17x1xf32>
    %422 = vector.broadcast %421 : vector<17x1xf32> to vector<17x8xf32>
    %423 = arith.mulf %420, %422 : vector<17x8xf32>
    %c3_190 = arith.constant 3 : index
    %c0_191 = arith.constant 0 : index
    %c0_192 = arith.constant 0 : index
    %424 = vector.load %arg7[%c3_190, %c0_191, %c0_192] : memref<16x8x32xf32, #tpu.memory_space<vmem>>, vector<1x8x32xf32>
    %425 = vector.shape_cast %424 : vector<1x8x32xf32> to vector<8x32xf32>
    %cst_193 = arith.constant dense<0.000000e+00> : vector<17x32xf32>
    %426 = tpu.matmul %423, %425, %cst_193 {dimension_numbers = #tpu.dot_dimension_numbers<[1], [0], [0], [1], [0, 0, 1, 1], [], []>} : vector<17x8xf32>, vector<8x32xf32>, vector<17x32xf32> -> vector<17x32xf32>
    %427 = arith.addf %408, %426 : vector<17x32xf32>
    %428 = vector.extract_strided_slice %348 {offsets = [0, 32], sizes = [17, 8], strides = [1, 1]} : vector<17x128xf32> to vector<17x8xf32>
    %429 = vector.extract_strided_slice %349 {offsets = [0, 32], sizes = [17, 8], strides = [1, 1]} : vector<17x128xf32> to vector<17x8xf32>
    %430 = vector.extract_strided_slice %350 {offsets = [0, 32], sizes = [17, 8], strides = [1, 1]} : vector<17x128xf32> to vector<17x8xf32>
    %cst_194 = arith.constant dense<0.000000e+00> : vector<17x17xf32>
    %431 = tpu.matmul %428, %429, %cst_194 {dimension_numbers = #tpu.dot_dimension_numbers<[1], [1], [0], [0], [0, 0, 1, 0], [], []>} : vector<17x8xf32>, vector<17x8xf32>, vector<17x17xf32> -> vector<17x17xf32>
    %cst_195 = arith.constant dense<0xFF800000> : vector<17xf32>
    %432 = vector.multi_reduction <maximumf>, %431, %cst_195 [1] : vector<17x17xf32> to vector<17xf32>
    %433 = vector.shape_cast %432 : vector<17xf32> to vector<17x1xf32>
    %434 = vector.broadcast %433 : vector<17x1xf32> to vector<17x17xf32>
    %435 = arith.subf %431, %434 : vector<17x17xf32>
    %436 = math.exp %435 : vector<17x17xf32>
    %cst_196 = arith.constant dense<0.000000e+00> : vector<17xf32>
    %437 = vector.multi_reduction <add>, %436, %cst_196 [1] : vector<17x17xf32> to vector<17xf32>
    %438 = vector.shape_cast %437 : vector<17xf32> to vector<17x1xf32>
    %cst_197 = arith.constant dense<0.000000e+00> : vector<17x8xf32>
    %439 = tpu.matmul %436, %430, %cst_197 {dimension_numbers = #tpu.dot_dimension_numbers<[1], [0], [0], [1], [0, 0, 1, 1], [], []>} : vector<17x17xf32>, vector<17x8xf32>, vector<17x8xf32> -> vector<17x8xf32>
    %440 = tpu.reciprocal %438 : vector<17x1xf32> -> vector<17x1xf32>
    %441 = vector.broadcast %440 : vector<17x1xf32> to vector<17x8xf32>
    %442 = arith.mulf %439, %441 : vector<17x8xf32>
    %c4_198 = arith.constant 4 : index
    %c0_199 = arith.constant 0 : index
    %c0_200 = arith.constant 0 : index
    %443 = vector.load %arg7[%c4_198, %c0_199, %c0_200] : memref<16x8x32xf32, #tpu.memory_space<vmem>>, vector<1x8x32xf32>
    %444 = vector.shape_cast %443 : vector<1x8x32xf32> to vector<8x32xf32>
    %cst_201 = arith.constant dense<0.000000e+00> : vector<17x32xf32>
    %445 = tpu.matmul %442, %444, %cst_201 {dimension_numbers = #tpu.dot_dimension_numbers<[1], [0], [0], [1], [0, 0, 1, 1], [], []>} : vector<17x8xf32>, vector<8x32xf32>, vector<17x32xf32> -> vector<17x32xf32>
    %446 = arith.addf %427, %445 : vector<17x32xf32>
    %447 = vector.extract_strided_slice %348 {offsets = [0, 40], sizes = [17, 8], strides = [1, 1]} : vector<17x128xf32> to vector<17x8xf32>
    %448 = vector.extract_strided_slice %349 {offsets = [0, 40], sizes = [17, 8], strides = [1, 1]} : vector<17x128xf32> to vector<17x8xf32>
    %449 = vector.extract_strided_slice %350 {offsets = [0, 40], sizes = [17, 8], strides = [1, 1]} : vector<17x128xf32> to vector<17x8xf32>
    %cst_202 = arith.constant dense<0.000000e+00> : vector<17x17xf32>
    %450 = tpu.matmul %447, %448, %cst_202 {dimension_numbers = #tpu.dot_dimension_numbers<[1], [1], [0], [0], [0, 0, 1, 0], [], []>} : vector<17x8xf32>, vector<17x8xf32>, vector<17x17xf32> -> vector<17x17xf32>
    %cst_203 = arith.constant dense<0xFF800000> : vector<17xf32>
    %451 = vector.multi_reduction <maximumf>, %450, %cst_203 [1] : vector<17x17xf32> to vector<17xf32>
    %452 = vector.shape_cast %451 : vector<17xf32> to vector<17x1xf32>
    %453 = vector.broadcast %452 : vector<17x1xf32> to vector<17x17xf32>
    %454 = arith.subf %450, %453 : vector<17x17xf32>
    %455 = math.exp %454 : vector<17x17xf32>
    %cst_204 = arith.constant dense<0.000000e+00> : vector<17xf32>
    %456 = vector.multi_reduction <add>, %455, %cst_204 [1] : vector<17x17xf32> to vector<17xf32>
    %457 = vector.shape_cast %456 : vector<17xf32> to vector<17x1xf32>
    %cst_205 = arith.constant dense<0.000000e+00> : vector<17x8xf32>
    %458 = tpu.matmul %455, %449, %cst_205 {dimension_numbers = #tpu.dot_dimension_numbers<[1], [0], [0], [1], [0, 0, 1, 1], [], []>} : vector<17x17xf32>, vector<17x8xf32>, vector<17x8xf32> -> vector<17x8xf32>
    %459 = tpu.reciprocal %457 : vector<17x1xf32> -> vector<17x1xf32>
    %460 = vector.broadcast %459 : vector<17x1xf32> to vector<17x8xf32>
    %461 = arith.mulf %458, %460 : vector<17x8xf32>
    %c5_206 = arith.constant 5 : index
    %c0_207 = arith.constant 0 : index
    %c0_208 = arith.constant 0 : index
    %462 = vector.load %arg7[%c5_206, %c0_207, %c0_208] : memref<16x8x32xf32, #tpu.memory_space<vmem>>, vector<1x8x32xf32>
    %463 = vector.shape_cast %462 : vector<1x8x32xf32> to vector<8x32xf32>
    %cst_209 = arith.constant dense<0.000000e+00> : vector<17x32xf32>
    %464 = tpu.matmul %461, %463, %cst_209 {dimension_numbers = #tpu.dot_dimension_numbers<[1], [0], [0], [1], [0, 0, 1, 1], [], []>} : vector<17x8xf32>, vector<8x32xf32>, vector<17x32xf32> -> vector<17x32xf32>
    %465 = arith.addf %446, %464 : vector<17x32xf32>
    %466 = vector.extract_strided_slice %348 {offsets = [0, 48], sizes = [17, 8], strides = [1, 1]} : vector<17x128xf32> to vector<17x8xf32>
    %467 = vector.extract_strided_slice %349 {offsets = [0, 48], sizes = [17, 8], strides = [1, 1]} : vector<17x128xf32> to vector<17x8xf32>
    %468 = vector.extract_strided_slice %350 {offsets = [0, 48], sizes = [17, 8], strides = [1, 1]} : vector<17x128xf32> to vector<17x8xf32>
    %cst_210 = arith.constant dense<0.000000e+00> : vector<17x17xf32>
    %469 = tpu.matmul %466, %467, %cst_210 {dimension_numbers = #tpu.dot_dimension_numbers<[1], [1], [0], [0], [0, 0, 1, 0], [], []>} : vector<17x8xf32>, vector<17x8xf32>, vector<17x17xf32> -> vector<17x17xf32>
    %cst_211 = arith.constant dense<0xFF800000> : vector<17xf32>
    %470 = vector.multi_reduction <maximumf>, %469, %cst_211 [1] : vector<17x17xf32> to vector<17xf32>
    %471 = vector.shape_cast %470 : vector<17xf32> to vector<17x1xf32>
    %472 = vector.broadcast %471 : vector<17x1xf32> to vector<17x17xf32>
    %473 = arith.subf %469, %472 : vector<17x17xf32>
    %474 = math.exp %473 : vector<17x17xf32>
    %cst_212 = arith.constant dense<0.000000e+00> : vector<17xf32>
    %475 = vector.multi_reduction <add>, %474, %cst_212 [1] : vector<17x17xf32> to vector<17xf32>
    %476 = vector.shape_cast %475 : vector<17xf32> to vector<17x1xf32>
    %cst_213 = arith.constant dense<0.000000e+00> : vector<17x8xf32>
    %477 = tpu.matmul %474, %468, %cst_213 {dimension_numbers = #tpu.dot_dimension_numbers<[1], [0], [0], [1], [0, 0, 1, 1], [], []>} : vector<17x17xf32>, vector<17x8xf32>, vector<17x8xf32> -> vector<17x8xf32>
    %478 = tpu.reciprocal %476 : vector<17x1xf32> -> vector<17x1xf32>
    %479 = vector.broadcast %478 : vector<17x1xf32> to vector<17x8xf32>
    %480 = arith.mulf %477, %479 : vector<17x8xf32>
    %c6_214 = arith.constant 6 : index
    %c0_215 = arith.constant 0 : index
    %c0_216 = arith.constant 0 : index
    %481 = vector.load %arg7[%c6_214, %c0_215, %c0_216] : memref<16x8x32xf32, #tpu.memory_space<vmem>>, vector<1x8x32xf32>
    %482 = vector.shape_cast %481 : vector<1x8x32xf32> to vector<8x32xf32>
    %cst_217 = arith.constant dense<0.000000e+00> : vector<17x32xf32>
    %483 = tpu.matmul %480, %482, %cst_217 {dimension_numbers = #tpu.dot_dimension_numbers<[1], [0], [0], [1], [0, 0, 1, 1], [], []>} : vector<17x8xf32>, vector<8x32xf32>, vector<17x32xf32> -> vector<17x32xf32>
    %484 = arith.addf %465, %483 : vector<17x32xf32>
    %485 = vector.extract_strided_slice %348 {offsets = [0, 56], sizes = [17, 8], strides = [1, 1]} : vector<17x128xf32> to vector<17x8xf32>
    %486 = vector.extract_strided_slice %349 {offsets = [0, 56], sizes = [17, 8], strides = [1, 1]} : vector<17x128xf32> to vector<17x8xf32>
    %487 = vector.extract_strided_slice %350 {offsets = [0, 56], sizes = [17, 8], strides = [1, 1]} : vector<17x128xf32> to vector<17x8xf32>
    %cst_218 = arith.constant dense<0.000000e+00> : vector<17x17xf32>
    %488 = tpu.matmul %485, %486, %cst_218 {dimension_numbers = #tpu.dot_dimension_numbers<[1], [1], [0], [0], [0, 0, 1, 0], [], []>} : vector<17x8xf32>, vector<17x8xf32>, vector<17x17xf32> -> vector<17x17xf32>
    %cst_219 = arith.constant dense<0xFF800000> : vector<17xf32>
    %489 = vector.multi_reduction <maximumf>, %488, %cst_219 [1] : vector<17x17xf32> to vector<17xf32>
    %490 = vector.shape_cast %489 : vector<17xf32> to vector<17x1xf32>
    %491 = vector.broadcast %490 : vector<17x1xf32> to vector<17x17xf32>
    %492 = arith.subf %488, %491 : vector<17x17xf32>
    %493 = math.exp %492 : vector<17x17xf32>
    %cst_220 = arith.constant dense<0.000000e+00> : vector<17xf32>
    %494 = vector.multi_reduction <add>, %493, %cst_220 [1] : vector<17x17xf32> to vector<17xf32>
    %495 = vector.shape_cast %494 : vector<17xf32> to vector<17x1xf32>
    %cst_221 = arith.constant dense<0.000000e+00> : vector<17x8xf32>
    %496 = tpu.matmul %493, %487, %cst_221 {dimension_numbers = #tpu.dot_dimension_numbers<[1], [0], [0], [1], [0, 0, 1, 1], [], []>} : vector<17x17xf32>, vector<17x8xf32>, vector<17x8xf32> -> vector<17x8xf32>
    %497 = tpu.reciprocal %495 : vector<17x1xf32> -> vector<17x1xf32>
    %498 = vector.broadcast %497 : vector<17x1xf32> to vector<17x8xf32>
    %499 = arith.mulf %496, %498 : vector<17x8xf32>
    %c7_222 = arith.constant 7 : index
    %c0_223 = arith.constant 0 : index
    %c0_224 = arith.constant 0 : index
    %500 = vector.load %arg7[%c7_222, %c0_223, %c0_224] : memref<16x8x32xf32, #tpu.memory_space<vmem>>, vector<1x8x32xf32>
    %501 = vector.shape_cast %500 : vector<1x8x32xf32> to vector<8x32xf32>
    %cst_225 = arith.constant dense<0.000000e+00> : vector<17x32xf32>
    %502 = tpu.matmul %499, %501, %cst_225 {dimension_numbers = #tpu.dot_dimension_numbers<[1], [0], [0], [1], [0, 0, 1, 1], [], []>} : vector<17x8xf32>, vector<8x32xf32>, vector<17x32xf32> -> vector<17x32xf32>
    %503 = arith.addf %484, %502 : vector<17x32xf32>
    %504 = vector.extract_strided_slice %348 {offsets = [0, 64], sizes = [17, 8], strides = [1, 1]} : vector<17x128xf32> to vector<17x8xf32>
    %505 = vector.extract_strided_slice %349 {offsets = [0, 64], sizes = [17, 8], strides = [1, 1]} : vector<17x128xf32> to vector<17x8xf32>
    %506 = vector.extract_strided_slice %350 {offsets = [0, 64], sizes = [17, 8], strides = [1, 1]} : vector<17x128xf32> to vector<17x8xf32>
    %cst_226 = arith.constant dense<0.000000e+00> : vector<17x17xf32>
    %507 = tpu.matmul %504, %505, %cst_226 {dimension_numbers = #tpu.dot_dimension_numbers<[1], [1], [0], [0], [0, 0, 1, 0], [], []>} : vector<17x8xf32>, vector<17x8xf32>, vector<17x17xf32> -> vector<17x17xf32>
    %cst_227 = arith.constant dense<0xFF800000> : vector<17xf32>
    %508 = vector.multi_reduction <maximumf>, %507, %cst_227 [1] : vector<17x17xf32> to vector<17xf32>
    %509 = vector.shape_cast %508 : vector<17xf32> to vector<17x1xf32>
    %510 = vector.broadcast %509 : vector<17x1xf32> to vector<17x17xf32>
    %511 = arith.subf %507, %510 : vector<17x17xf32>
    %512 = math.exp %511 : vector<17x17xf32>
    %cst_228 = arith.constant dense<0.000000e+00> : vector<17xf32>
    %513 = vector.multi_reduction <add>, %512, %cst_228 [1] : vector<17x17xf32> to vector<17xf32>
    %514 = vector.shape_cast %513 : vector<17xf32> to vector<17x1xf32>
    %cst_229 = arith.constant dense<0.000000e+00> : vector<17x8xf32>
    %515 = tpu.matmul %512, %506, %cst_229 {dimension_numbers = #tpu.dot_dimension_numbers<[1], [0], [0], [1], [0, 0, 1, 1], [], []>} : vector<17x17xf32>, vector<17x8xf32>, vector<17x8xf32> -> vector<17x8xf32>
    %516 = tpu.reciprocal %514 : vector<17x1xf32> -> vector<17x1xf32>
    %517 = vector.broadcast %516 : vector<17x1xf32> to vector<17x8xf32>
    %518 = arith.mulf %515, %517 : vector<17x8xf32>
    %c8_230 = arith.constant 8 : index
    %c0_231 = arith.constant 0 : index
    %c0_232 = arith.constant 0 : index
    %519 = vector.load %arg7[%c8_230, %c0_231, %c0_232] : memref<16x8x32xf32, #tpu.memory_space<vmem>>, vector<1x8x32xf32>
    %520 = vector.shape_cast %519 : vector<1x8x32xf32> to vector<8x32xf32>
    %cst_233 = arith.constant dense<0.000000e+00> : vector<17x32xf32>
    %521 = tpu.matmul %518, %520, %cst_233 {dimension_numbers = #tpu.dot_dimension_numbers<[1], [0], [0], [1], [0, 0, 1, 1], [], []>} : vector<17x8xf32>, vector<8x32xf32>, vector<17x32xf32> -> vector<17x32xf32>
    %522 = arith.addf %503, %521 : vector<17x32xf32>
    %523 = vector.extract_strided_slice %348 {offsets = [0, 72], sizes = [17, 8], strides = [1, 1]} : vector<17x128xf32> to vector<17x8xf32>
    %524 = vector.extract_strided_slice %349 {offsets = [0, 72], sizes = [17, 8], strides = [1, 1]} : vector<17x128xf32> to vector<17x8xf32>
    %525 = vector.extract_strided_slice %350 {offsets = [0, 72], sizes = [17, 8], strides = [1, 1]} : vector<17x128xf32> to vector<17x8xf32>
    %cst_234 = arith.constant dense<0.000000e+00> : vector<17x17xf32>
    %526 = tpu.matmul %523, %524, %cst_234 {dimension_numbers = #tpu.dot_dimension_numbers<[1], [1], [0], [0], [0, 0, 1, 0], [], []>} : vector<17x8xf32>, vector<17x8xf32>, vector<17x17xf32> -> vector<17x17xf32>
    %cst_235 = arith.constant dense<0xFF800000> : vector<17xf32>
    %527 = vector.multi_reduction <maximumf>, %526, %cst_235 [1] : vector<17x17xf32> to vector<17xf32>
    %528 = vector.shape_cast %527 : vector<17xf32> to vector<17x1xf32>
    %529 = vector.broadcast %528 : vector<17x1xf32> to vector<17x17xf32>
    %530 = arith.subf %526, %529 : vector<17x17xf32>
    %531 = math.exp %530 : vector<17x17xf32>
    %cst_236 = arith.constant dense<0.000000e+00> : vector<17xf32>
    %532 = vector.multi_reduction <add>, %531, %cst_236 [1] : vector<17x17xf32> to vector<17xf32>
    %533 = vector.shape_cast %532 : vector<17xf32> to vector<17x1xf32>
    %cst_237 = arith.constant dense<0.000000e+00> : vector<17x8xf32>
    %534 = tpu.matmul %531, %525, %cst_237 {dimension_numbers = #tpu.dot_dimension_numbers<[1], [0], [0], [1], [0, 0, 1, 1], [], []>} : vector<17x17xf32>, vector<17x8xf32>, vector<17x8xf32> -> vector<17x8xf32>
    %535 = tpu.reciprocal %533 : vector<17x1xf32> -> vector<17x1xf32>
    %536 = vector.broadcast %535 : vector<17x1xf32> to vector<17x8xf32>
    %537 = arith.mulf %534, %536 : vector<17x8xf32>
    %c9_238 = arith.constant 9 : index
    %c0_239 = arith.constant 0 : index
    %c0_240 = arith.constant 0 : index
    %538 = vector.load %arg7[%c9_238, %c0_239, %c0_240] : memref<16x8x32xf32, #tpu.memory_space<vmem>>, vector<1x8x32xf32>
    %539 = vector.shape_cast %538 : vector<1x8x32xf32> to vector<8x32xf32>
    %cst_241 = arith.constant dense<0.000000e+00> : vector<17x32xf32>
    %540 = tpu.matmul %537, %539, %cst_241 {dimension_numbers = #tpu.dot_dimension_numbers<[1], [0], [0], [1], [0, 0, 1, 1], [], []>} : vector<17x8xf32>, vector<8x32xf32>, vector<17x32xf32> -> vector<17x32xf32>
    %541 = arith.addf %522, %540 : vector<17x32xf32>
    %542 = vector.extract_strided_slice %348 {offsets = [0, 80], sizes = [17, 8], strides = [1, 1]} : vector<17x128xf32> to vector<17x8xf32>
    %543 = vector.extract_strided_slice %349 {offsets = [0, 80], sizes = [17, 8], strides = [1, 1]} : vector<17x128xf32> to vector<17x8xf32>
    %544 = vector.extract_strided_slice %350 {offsets = [0, 80], sizes = [17, 8], strides = [1, 1]} : vector<17x128xf32> to vector<17x8xf32>
    %cst_242 = arith.constant dense<0.000000e+00> : vector<17x17xf32>
    %545 = tpu.matmul %542, %543, %cst_242 {dimension_numbers = #tpu.dot_dimension_numbers<[1], [1], [0], [0], [0, 0, 1, 0], [], []>} : vector<17x8xf32>, vector<17x8xf32>, vector<17x17xf32> -> vector<17x17xf32>
    %cst_243 = arith.constant dense<0xFF800000> : vector<17xf32>
    %546 = vector.multi_reduction <maximumf>, %545, %cst_243 [1] : vector<17x17xf32> to vector<17xf32>
    %547 = vector.shape_cast %546 : vector<17xf32> to vector<17x1xf32>
    %548 = vector.broadcast %547 : vector<17x1xf32> to vector<17x17xf32>
    %549 = arith.subf %545, %548 : vector<17x17xf32>
    %550 = math.exp %549 : vector<17x17xf32>
    %cst_244 = arith.constant dense<0.000000e+00> : vector<17xf32>
    %551 = vector.multi_reduction <add>, %550, %cst_244 [1] : vector<17x17xf32> to vector<17xf32>
    %552 = vector.shape_cast %551 : vector<17xf32> to vector<17x1xf32>
    %cst_245 = arith.constant dense<0.000000e+00> : vector<17x8xf32>
    %553 = tpu.matmul %550, %544, %cst_245 {dimension_numbers = #tpu.dot_dimension_numbers<[1], [0], [0], [1], [0, 0, 1, 1], [], []>} : vector<17x17xf32>, vector<17x8xf32>, vector<17x8xf32> -> vector<17x8xf32>
    %554 = tpu.reciprocal %552 : vector<17x1xf32> -> vector<17x1xf32>
    %555 = vector.broadcast %554 : vector<17x1xf32> to vector<17x8xf32>
    %556 = arith.mulf %553, %555 : vector<17x8xf32>
    %c10_246 = arith.constant 10 : index
    %c0_247 = arith.constant 0 : index
    %c0_248 = arith.constant 0 : index
    %557 = vector.load %arg7[%c10_246, %c0_247, %c0_248] : memref<16x8x32xf32, #tpu.memory_space<vmem>>, vector<1x8x32xf32>
    %558 = vector.shape_cast %557 : vector<1x8x32xf32> to vector<8x32xf32>
    %cst_249 = arith.constant dense<0.000000e+00> : vector<17x32xf32>
    %559 = tpu.matmul %556, %558, %cst_249 {dimension_numbers = #tpu.dot_dimension_numbers<[1], [0], [0], [1], [0, 0, 1, 1], [], []>} : vector<17x8xf32>, vector<8x32xf32>, vector<17x32xf32> -> vector<17x32xf32>
    %560 = arith.addf %541, %559 : vector<17x32xf32>
    %561 = vector.extract_strided_slice %348 {offsets = [0, 88], sizes = [17, 8], strides = [1, 1]} : vector<17x128xf32> to vector<17x8xf32>
    %562 = vector.extract_strided_slice %349 {offsets = [0, 88], sizes = [17, 8], strides = [1, 1]} : vector<17x128xf32> to vector<17x8xf32>
    %563 = vector.extract_strided_slice %350 {offsets = [0, 88], sizes = [17, 8], strides = [1, 1]} : vector<17x128xf32> to vector<17x8xf32>
    %cst_250 = arith.constant dense<0.000000e+00> : vector<17x17xf32>
    %564 = tpu.matmul %561, %562, %cst_250 {dimension_numbers = #tpu.dot_dimension_numbers<[1], [1], [0], [0], [0, 0, 1, 0], [], []>} : vector<17x8xf32>, vector<17x8xf32>, vector<17x17xf32> -> vector<17x17xf32>
    %cst_251 = arith.constant dense<0xFF800000> : vector<17xf32>
    %565 = vector.multi_reduction <maximumf>, %564, %cst_251 [1] : vector<17x17xf32> to vector<17xf32>
    %566 = vector.shape_cast %565 : vector<17xf32> to vector<17x1xf32>
    %567 = vector.broadcast %566 : vector<17x1xf32> to vector<17x17xf32>
    %568 = arith.subf %564, %567 : vector<17x17xf32>
    %569 = math.exp %568 : vector<17x17xf32>
    %cst_252 = arith.constant dense<0.000000e+00> : vector<17xf32>
    %570 = vector.multi_reduction <add>, %569, %cst_252 [1] : vector<17x17xf32> to vector<17xf32>
    %571 = vector.shape_cast %570 : vector<17xf32> to vector<17x1xf32>
    %cst_253 = arith.constant dense<0.000000e+00> : vector<17x8xf32>
    %572 = tpu.matmul %569, %563, %cst_253 {dimension_numbers = #tpu.dot_dimension_numbers<[1], [0], [0], [1], [0, 0, 1, 1], [], []>} : vector<17x17xf32>, vector<17x8xf32>, vector<17x8xf32> -> vector<17x8xf32>
    %573 = tpu.reciprocal %571 : vector<17x1xf32> -> vector<17x1xf32>
    %574 = vector.broadcast %573 : vector<17x1xf32> to vector<17x8xf32>
    %575 = arith.mulf %572, %574 : vector<17x8xf32>
    %c11_254 = arith.constant 11 : index
    %c0_255 = arith.constant 0 : index
    %c0_256 = arith.constant 0 : index
    %576 = vector.load %arg7[%c11_254, %c0_255, %c0_256] : memref<16x8x32xf32, #tpu.memory_space<vmem>>, vector<1x8x32xf32>
    %577 = vector.shape_cast %576 : vector<1x8x32xf32> to vector<8x32xf32>
    %cst_257 = arith.constant dense<0.000000e+00> : vector<17x32xf32>
    %578 = tpu.matmul %575, %577, %cst_257 {dimension_numbers = #tpu.dot_dimension_numbers<[1], [0], [0], [1], [0, 0, 1, 1], [], []>} : vector<17x8xf32>, vector<8x32xf32>, vector<17x32xf32> -> vector<17x32xf32>
    %579 = arith.addf %560, %578 : vector<17x32xf32>
    %580 = vector.extract_strided_slice %348 {offsets = [0, 96], sizes = [17, 8], strides = [1, 1]} : vector<17x128xf32> to vector<17x8xf32>
    %581 = vector.extract_strided_slice %349 {offsets = [0, 96], sizes = [17, 8], strides = [1, 1]} : vector<17x128xf32> to vector<17x8xf32>
    %582 = vector.extract_strided_slice %350 {offsets = [0, 96], sizes = [17, 8], strides = [1, 1]} : vector<17x128xf32> to vector<17x8xf32>
    %cst_258 = arith.constant dense<0.000000e+00> : vector<17x17xf32>
    %583 = tpu.matmul %580, %581, %cst_258 {dimension_numbers = #tpu.dot_dimension_numbers<[1], [1], [0], [0], [0, 0, 1, 0], [], []>} : vector<17x8xf32>, vector<17x8xf32>, vector<17x17xf32> -> vector<17x17xf32>
    %cst_259 = arith.constant dense<0xFF800000> : vector<17xf32>
    %584 = vector.multi_reduction <maximumf>, %583, %cst_259 [1] : vector<17x17xf32> to vector<17xf32>
    %585 = vector.shape_cast %584 : vector<17xf32> to vector<17x1xf32>
    %586 = vector.broadcast %585 : vector<17x1xf32> to vector<17x17xf32>
    %587 = arith.subf %583, %586 : vector<17x17xf32>
    %588 = math.exp %587 : vector<17x17xf32>
    %cst_260 = arith.constant dense<0.000000e+00> : vector<17xf32>
    %589 = vector.multi_reduction <add>, %588, %cst_260 [1] : vector<17x17xf32> to vector<17xf32>
    %590 = vector.shape_cast %589 : vector<17xf32> to vector<17x1xf32>
    %cst_261 = arith.constant dense<0.000000e+00> : vector<17x8xf32>
    %591 = tpu.matmul %588, %582, %cst_261 {dimension_numbers = #tpu.dot_dimension_numbers<[1], [0], [0], [1], [0, 0, 1, 1], [], []>} : vector<17x17xf32>, vector<17x8xf32>, vector<17x8xf32> -> vector<17x8xf32>
    %592 = tpu.reciprocal %590 : vector<17x1xf32> -> vector<17x1xf32>
    %593 = vector.broadcast %592 : vector<17x1xf32> to vector<17x8xf32>
    %594 = arith.mulf %591, %593 : vector<17x8xf32>
    %c12_262 = arith.constant 12 : index
    %c0_263 = arith.constant 0 : index
    %c0_264 = arith.constant 0 : index
    %595 = vector.load %arg7[%c12_262, %c0_263, %c0_264] : memref<16x8x32xf32, #tpu.memory_space<vmem>>, vector<1x8x32xf32>
    %596 = vector.shape_cast %595 : vector<1x8x32xf32> to vector<8x32xf32>
    %cst_265 = arith.constant dense<0.000000e+00> : vector<17x32xf32>
    %597 = tpu.matmul %594, %596, %cst_265 {dimension_numbers = #tpu.dot_dimension_numbers<[1], [0], [0], [1], [0, 0, 1, 1], [], []>} : vector<17x8xf32>, vector<8x32xf32>, vector<17x32xf32> -> vector<17x32xf32>
    %598 = arith.addf %579, %597 : vector<17x32xf32>
    %599 = vector.extract_strided_slice %348 {offsets = [0, 104], sizes = [17, 8], strides = [1, 1]} : vector<17x128xf32> to vector<17x8xf32>
    %600 = vector.extract_strided_slice %349 {offsets = [0, 104], sizes = [17, 8], strides = [1, 1]} : vector<17x128xf32> to vector<17x8xf32>
    %601 = vector.extract_strided_slice %350 {offsets = [0, 104], sizes = [17, 8], strides = [1, 1]} : vector<17x128xf32> to vector<17x8xf32>
    %cst_266 = arith.constant dense<0.000000e+00> : vector<17x17xf32>
    %602 = tpu.matmul %599, %600, %cst_266 {dimension_numbers = #tpu.dot_dimension_numbers<[1], [1], [0], [0], [0, 0, 1, 0], [], []>} : vector<17x8xf32>, vector<17x8xf32>, vector<17x17xf32> -> vector<17x17xf32>
    %cst_267 = arith.constant dense<0xFF800000> : vector<17xf32>
    %603 = vector.multi_reduction <maximumf>, %602, %cst_267 [1] : vector<17x17xf32> to vector<17xf32>
    %604 = vector.shape_cast %603 : vector<17xf32> to vector<17x1xf32>
    %605 = vector.broadcast %604 : vector<17x1xf32> to vector<17x17xf32>
    %606 = arith.subf %602, %605 : vector<17x17xf32>
    %607 = math.exp %606 : vector<17x17xf32>
    %cst_268 = arith.constant dense<0.000000e+00> : vector<17xf32>
    %608 = vector.multi_reduction <add>, %607, %cst_268 [1] : vector<17x17xf32> to vector<17xf32>
    %609 = vector.shape_cast %608 : vector<17xf32> to vector<17x1xf32>
    %cst_269 = arith.constant dense<0.000000e+00> : vector<17x8xf32>
    %610 = tpu.matmul %607, %601, %cst_269 {dimension_numbers = #tpu.dot_dimension_numbers<[1], [0], [0], [1], [0, 0, 1, 1], [], []>} : vector<17x17xf32>, vector<17x8xf32>, vector<17x8xf32> -> vector<17x8xf32>
    %611 = tpu.reciprocal %609 : vector<17x1xf32> -> vector<17x1xf32>
    %612 = vector.broadcast %611 : vector<17x1xf32> to vector<17x8xf32>
    %613 = arith.mulf %610, %612 : vector<17x8xf32>
    %c13_270 = arith.constant 13 : index
    %c0_271 = arith.constant 0 : index
    %c0_272 = arith.constant 0 : index
    %614 = vector.load %arg7[%c13_270, %c0_271, %c0_272] : memref<16x8x32xf32, #tpu.memory_space<vmem>>, vector<1x8x32xf32>
    %615 = vector.shape_cast %614 : vector<1x8x32xf32> to vector<8x32xf32>
    %cst_273 = arith.constant dense<0.000000e+00> : vector<17x32xf32>
    %616 = tpu.matmul %613, %615, %cst_273 {dimension_numbers = #tpu.dot_dimension_numbers<[1], [0], [0], [1], [0, 0, 1, 1], [], []>} : vector<17x8xf32>, vector<8x32xf32>, vector<17x32xf32> -> vector<17x32xf32>
    %617 = arith.addf %598, %616 : vector<17x32xf32>
    %618 = vector.extract_strided_slice %348 {offsets = [0, 112], sizes = [17, 8], strides = [1, 1]} : vector<17x128xf32> to vector<17x8xf32>
    %619 = vector.extract_strided_slice %349 {offsets = [0, 112], sizes = [17, 8], strides = [1, 1]} : vector<17x128xf32> to vector<17x8xf32>
    %620 = vector.extract_strided_slice %350 {offsets = [0, 112], sizes = [17, 8], strides = [1, 1]} : vector<17x128xf32> to vector<17x8xf32>
    %cst_274 = arith.constant dense<0.000000e+00> : vector<17x17xf32>
    %621 = tpu.matmul %618, %619, %cst_274 {dimension_numbers = #tpu.dot_dimension_numbers<[1], [1], [0], [0], [0, 0, 1, 0], [], []>} : vector<17x8xf32>, vector<17x8xf32>, vector<17x17xf32> -> vector<17x17xf32>
    %cst_275 = arith.constant dense<0xFF800000> : vector<17xf32>
    %622 = vector.multi_reduction <maximumf>, %621, %cst_275 [1] : vector<17x17xf32> to vector<17xf32>
    %623 = vector.shape_cast %622 : vector<17xf32> to vector<17x1xf32>
    %624 = vector.broadcast %623 : vector<17x1xf32> to vector<17x17xf32>
    %625 = arith.subf %621, %624 : vector<17x17xf32>
    %626 = math.exp %625 : vector<17x17xf32>
    %cst_276 = arith.constant dense<0.000000e+00> : vector<17xf32>
    %627 = vector.multi_reduction <add>, %626, %cst_276 [1] : vector<17x17xf32> to vector<17xf32>
    %628 = vector.shape_cast %627 : vector<17xf32> to vector<17x1xf32>
    %cst_277 = arith.constant dense<0.000000e+00> : vector<17x8xf32>
    %629 = tpu.matmul %626, %620, %cst_277 {dimension_numbers = #tpu.dot_dimension_numbers<[1], [0], [0], [1], [0, 0, 1, 1], [], []>} : vector<17x17xf32>, vector<17x8xf32>, vector<17x8xf32> -> vector<17x8xf32>
    %630 = tpu.reciprocal %628 : vector<17x1xf32> -> vector<17x1xf32>
    %631 = vector.broadcast %630 : vector<17x1xf32> to vector<17x8xf32>
    %632 = arith.mulf %629, %631 : vector<17x8xf32>
    %c14_278 = arith.constant 14 : index
    %c0_279 = arith.constant 0 : index
    %c0_280 = arith.constant 0 : index
    %633 = vector.load %arg7[%c14_278, %c0_279, %c0_280] : memref<16x8x32xf32, #tpu.memory_space<vmem>>, vector<1x8x32xf32>
    %634 = vector.shape_cast %633 : vector<1x8x32xf32> to vector<8x32xf32>
    %cst_281 = arith.constant dense<0.000000e+00> : vector<17x32xf32>
    %635 = tpu.matmul %632, %634, %cst_281 {dimension_numbers = #tpu.dot_dimension_numbers<[1], [0], [0], [1], [0, 0, 1, 1], [], []>} : vector<17x8xf32>, vector<8x32xf32>, vector<17x32xf32> -> vector<17x32xf32>
    %636 = arith.addf %617, %635 : vector<17x32xf32>
    %637 = vector.extract_strided_slice %348 {offsets = [0, 120], sizes = [17, 8], strides = [1, 1]} : vector<17x128xf32> to vector<17x8xf32>
    %638 = vector.extract_strided_slice %349 {offsets = [0, 120], sizes = [17, 8], strides = [1, 1]} : vector<17x128xf32> to vector<17x8xf32>
    %639 = vector.extract_strided_slice %350 {offsets = [0, 120], sizes = [17, 8], strides = [1, 1]} : vector<17x128xf32> to vector<17x8xf32>
    %cst_282 = arith.constant dense<0.000000e+00> : vector<17x17xf32>
    %640 = tpu.matmul %637, %638, %cst_282 {dimension_numbers = #tpu.dot_dimension_numbers<[1], [1], [0], [0], [0, 0, 1, 0], [], []>} : vector<17x8xf32>, vector<17x8xf32>, vector<17x17xf32> -> vector<17x17xf32>
    %cst_283 = arith.constant dense<0xFF800000> : vector<17xf32>
    %641 = vector.multi_reduction <maximumf>, %640, %cst_283 [1] : vector<17x17xf32> to vector<17xf32>
    %642 = vector.shape_cast %641 : vector<17xf32> to vector<17x1xf32>
    %643 = vector.broadcast %642 : vector<17x1xf32> to vector<17x17xf32>
    %644 = arith.subf %640, %643 : vector<17x17xf32>
    %645 = math.exp %644 : vector<17x17xf32>
    %cst_284 = arith.constant dense<0.000000e+00> : vector<17xf32>
    %646 = vector.multi_reduction <add>, %645, %cst_284 [1] : vector<17x17xf32> to vector<17xf32>
    %647 = vector.shape_cast %646 : vector<17xf32> to vector<17x1xf32>
    %cst_285 = arith.constant dense<0.000000e+00> : vector<17x8xf32>
    %648 = tpu.matmul %645, %639, %cst_285 {dimension_numbers = #tpu.dot_dimension_numbers<[1], [0], [0], [1], [0, 0, 1, 1], [], []>} : vector<17x17xf32>, vector<17x8xf32>, vector<17x8xf32> -> vector<17x8xf32>
    %649 = tpu.reciprocal %647 : vector<17x1xf32> -> vector<17x1xf32>
    %650 = vector.broadcast %649 : vector<17x1xf32> to vector<17x8xf32>
    %651 = arith.mulf %648, %650 : vector<17x8xf32>
    %c15_286 = arith.constant 15 : index
    %c0_287 = arith.constant 0 : index
    %c0_288 = arith.constant 0 : index
    %652 = vector.load %arg7[%c15_286, %c0_287, %c0_288] : memref<16x8x32xf32, #tpu.memory_space<vmem>>, vector<1x8x32xf32>
    %653 = vector.shape_cast %652 : vector<1x8x32xf32> to vector<8x32xf32>
    %cst_289 = arith.constant dense<0.000000e+00> : vector<17x32xf32>
    %654 = tpu.matmul %651, %653, %cst_289 {dimension_numbers = #tpu.dot_dimension_numbers<[1], [0], [0], [1], [0, 0, 1, 1], [], []>} : vector<17x8xf32>, vector<8x32xf32>, vector<17x32xf32> -> vector<17x32xf32>
    %655 = arith.addf %636, %654 : vector<17x32xf32>
    %656 = vector.shape_cast %343 : vector<17x32xf32> to vector<1x17x32xf32>
    %cst_290 = arith.constant dense<0.000000e+00> : vector<1xf32>
    %657 = vector.multi_reduction <add>, %656, %cst_290 [1, 2] : vector<1x17x32xf32> to vector<1xf32>
    %658 = vector.shape_cast %657 : vector<1xf32> to vector<1x1x1xf32>
    %659 = vector.extract %658[0, 0, 0] : f32 from vector<1x1x1xf32>
    %660 = arith.mulf %343, %343 : vector<17x32xf32>
    %661 = vector.shape_cast %660 : vector<17x32xf32> to vector<1x17x32xf32>
    %cst_291 = arith.constant dense<0.000000e+00> : vector<1xf32>
    %662 = vector.multi_reduction <add>, %661, %cst_291 [1, 2] : vector<1x17x32xf32> to vector<1xf32>
    %663 = vector.shape_cast %662 : vector<1xf32> to vector<1x1x1xf32>
    %664 = vector.extract %663[0, 0, 0] : f32 from vector<1x1x1xf32>
    %665 = vector.shape_cast %655 : vector<17x32xf32> to vector<1x17x32xf32>
    %cst_292 = arith.constant dense<0.000000e+00> : vector<1xf32>
    %666 = vector.multi_reduction <add>, %665, %cst_292 [1, 2] : vector<1x17x32xf32> to vector<1xf32>
    %667 = vector.shape_cast %666 : vector<1xf32> to vector<1x1x1xf32>
    %668 = vector.extract %667[0, 0, 0] : f32 from vector<1x1x1xf32>
    %669 = arith.addf %659, %668 : f32
    %670 = arith.mulf %655, %655 : vector<17x32xf32>
    %671 = vector.shape_cast %670 : vector<17x32xf32> to vector<1x17x32xf32>
    %cst_293 = arith.constant dense<0.000000e+00> : vector<1xf32>
    %672 = vector.multi_reduction <add>, %671, %cst_293 [1, 2] : vector<1x17x32xf32> to vector<1xf32>
    %673 = vector.shape_cast %672 : vector<1xf32> to vector<1x1x1xf32>
    %674 = vector.extract %673[0, 0, 0] : f32 from vector<1x1x1xf32>
    %675 = arith.addf %664, %674 : f32
    %cst_294 = arith.constant 1.088000e+03 : f32
    %676 = arith.divf %669, %cst_294 : f32
    %cst_295 = arith.constant 1.088000e+03 : f32
    %677 = arith.divf %675, %cst_295 : f32
    %678 = arith.mulf %676, %676 : f32
    %679 = arith.subf %677, %678 : f32
    %cst_296 = arith.constant 9.99999974E-6 : f32
    %680 = arith.addf %679, %cst_296 : f32
    %681 = math.rsqrt %680 : f32
    %c0_297 = arith.constant 0 : index
    %c0_298 = arith.constant 0 : index
    %c0_299 = arith.constant 0 : index
    %682 = vector.load %arg17[%c0_297, %c0_298, %c0_299] : memref<2x17x32xf32, #tpu.memory_space<vmem>>, vector<1x17x32xf32>
    %683 = vector.shape_cast %682 : vector<1x17x32xf32> to vector<17x32xf32>
    %684 = vector.broadcast %676 : f32 to vector<17x32xf32>
    %685 = arith.subf %343, %684 : vector<17x32xf32>
    %686 = vector.broadcast %681 : f32 to vector<17x32xf32>
    %687 = arith.mulf %685, %686 : vector<17x32xf32>
    %c0_300 = arith.constant 0 : index
    %c0_301 = arith.constant 0 : index
    %c0_302 = arith.constant 0 : index
    %688 = vector.load %arg8[%c0_300, %c0_301, %c0_302] : memref<2x17x32xf32, #tpu.memory_space<vmem>>, vector<1x17x32xf32>
    %689 = vector.shape_cast %688 : vector<1x17x32xf32> to vector<17x32xf32>
    %690 = arith.mulf %687, %689 : vector<17x32xf32>
    %691 = arith.addf %683, %690 : vector<17x32xf32>
    %c0_303 = arith.constant 0 : index
    %c0_304 = arith.constant 0 : index
    %c0_305 = arith.constant 0 : index
    %692 = vector.load %arg9[%c0_303, %c0_304, %c0_305] : memref<2x17x32xf32, #tpu.memory_space<vmem>>, vector<1x17x32xf32>
    %693 = vector.shape_cast %692 : vector<1x17x32xf32> to vector<17x32xf32>
    %694 = arith.addf %691, %693 : vector<17x32xf32>
    %c1_306 = arith.constant 1 : index
    %c0_307 = arith.constant 0 : index
    %c0_308 = arith.constant 0 : index
    %695 = vector.load %arg17[%c1_306, %c0_307, %c0_308] : memref<2x17x32xf32, #tpu.memory_space<vmem>>, vector<1x17x32xf32>
    %696 = vector.shape_cast %695 : vector<1x17x32xf32> to vector<17x32xf32>
    %697 = vector.broadcast %676 : f32 to vector<17x32xf32>
    %698 = arith.subf %655, %697 : vector<17x32xf32>
    %699 = vector.broadcast %681 : f32 to vector<17x32xf32>
    %700 = arith.mulf %698, %699 : vector<17x32xf32>
    %c1_309 = arith.constant 1 : index
    %c0_310 = arith.constant 0 : index
    %c0_311 = arith.constant 0 : index
    %701 = vector.load %arg8[%c1_309, %c0_310, %c0_311] : memref<2x17x32xf32, #tpu.memory_space<vmem>>, vector<1x17x32xf32>
    %702 = vector.shape_cast %701 : vector<1x17x32xf32> to vector<17x32xf32>
    %703 = arith.mulf %700, %702 : vector<17x32xf32>
    %704 = arith.addf %696, %703 : vector<17x32xf32>
    %c1_312 = arith.constant 1 : index
    %c0_313 = arith.constant 0 : index
    %c0_314 = arith.constant 0 : index
    %705 = vector.load %arg9[%c1_312, %c0_313, %c0_314] : memref<2x17x32xf32, #tpu.memory_space<vmem>>, vector<1x17x32xf32>
    %706 = vector.shape_cast %705 : vector<1x17x32xf32> to vector<17x32xf32>
    %707 = arith.addf %704, %706 : vector<17x32xf32>
    %708 = vector.shape_cast %694 : vector<17x32xf32> to vector<1x17x32xf32>
    %cst_315 = arith.constant dense<0.000000e+00> : vector<1xf32>
    %709 = vector.multi_reduction <add>, %708, %cst_315 [1, 2] : vector<1x17x32xf32> to vector<1xf32>
    %710 = vector.shape_cast %709 : vector<1xf32> to vector<1x1x1xf32>
    %711 = vector.extract %710[0, 0, 0] : f32 from vector<1x1x1xf32>
    %712 = arith.mulf %694, %694 : vector<17x32xf32>
    %713 = vector.shape_cast %712 : vector<17x32xf32> to vector<1x17x32xf32>
    %cst_316 = arith.constant dense<0.000000e+00> : vector<1xf32>
    %714 = vector.multi_reduction <add>, %713, %cst_316 [1, 2] : vector<1x17x32xf32> to vector<1xf32>
    %715 = vector.shape_cast %714 : vector<1xf32> to vector<1x1x1xf32>
    %716 = vector.extract %715[0, 0, 0] : f32 from vector<1x1x1xf32>
    %717 = vector.shape_cast %707 : vector<17x32xf32> to vector<1x17x32xf32>
    %cst_317 = arith.constant dense<0.000000e+00> : vector<1xf32>
    %718 = vector.multi_reduction <add>, %717, %cst_317 [1, 2] : vector<1x17x32xf32> to vector<1xf32>
    %719 = vector.shape_cast %718 : vector<1xf32> to vector<1x1x1xf32>
    %720 = vector.extract %719[0, 0, 0] : f32 from vector<1x1x1xf32>
    %721 = arith.addf %711, %720 : f32
    %722 = arith.mulf %707, %707 : vector<17x32xf32>
    %723 = vector.shape_cast %722 : vector<17x32xf32> to vector<1x17x32xf32>
    %cst_318 = arith.constant dense<0.000000e+00> : vector<1xf32>
    %724 = vector.multi_reduction <add>, %723, %cst_318 [1, 2] : vector<1x17x32xf32> to vector<1xf32>
    %725 = vector.shape_cast %724 : vector<1xf32> to vector<1x1x1xf32>
    %726 = vector.extract %725[0, 0, 0] : f32 from vector<1x1x1xf32>
    %727 = arith.addf %716, %726 : f32
    %cst_319 = arith.constant 1.088000e+03 : f32
    %728 = arith.divf %721, %cst_319 : f32
    %cst_320 = arith.constant 1.088000e+03 : f32
    %729 = arith.divf %727, %cst_320 : f32
    %730 = arith.mulf %728, %728 : f32
    %731 = arith.subf %729, %730 : f32
    %cst_321 = arith.constant 9.99999974E-6 : f32
    %732 = arith.addf %731, %cst_321 : f32
    %733 = math.rsqrt %732 : f32
    %734 = vector.extract_strided_slice %694 {offsets = [0, 0], sizes = [1, 32], strides = [1, 1]} : vector<17x32xf32> to vector<1x32xf32>
    %735 = vector.extract_strided_slice %707 {offsets = [0, 0], sizes = [1, 32], strides = [1, 1]} : vector<17x32xf32> to vector<1x32xf32>
    %736 = tpu.concatenate %734, %735 in 0 : vector<1x32xf32>, vector<1x32xf32> -> vector<2x32xf32>
    %c0_322 = arith.constant 0 : index
    %c0_323 = arith.constant 0 : index
    %c0_324 = arith.constant 0 : index
    %737 = vector.load %arg10[%c0_322, %c0_323, %c0_324] : memref<2x17x32xf32, #tpu.memory_space<vmem>>, vector<1x1x32xf32>
    %738 = vector.shape_cast %737 : vector<1x1x32xf32> to vector<1x32xf32>
    %c1_325 = arith.constant 1 : index
    %c0_326 = arith.constant 0 : index
    %c0_327 = arith.constant 0 : index
    %739 = vector.load %arg10[%c1_325, %c0_326, %c0_327] : memref<2x17x32xf32, #tpu.memory_space<vmem>>, vector<1x1x32xf32>
    %740 = vector.shape_cast %739 : vector<1x1x32xf32> to vector<1x32xf32>
    %741 = tpu.concatenate %738, %740 in 0 : vector<1x32xf32>, vector<1x32xf32> -> vector<2x32xf32>
    %c0_328 = arith.constant 0 : index
    %c0_329 = arith.constant 0 : index
    %c0_330 = arith.constant 0 : index
    %742 = vector.load %arg11[%c0_328, %c0_329, %c0_330] : memref<2x17x32xf32, #tpu.memory_space<vmem>>, vector<1x1x32xf32>
    %743 = vector.shape_cast %742 : vector<1x1x32xf32> to vector<1x32xf32>
    %c1_331 = arith.constant 1 : index
    %c0_332 = arith.constant 0 : index
    %c0_333 = arith.constant 0 : index
    %744 = vector.load %arg11[%c1_331, %c0_332, %c0_333] : memref<2x17x32xf32, #tpu.memory_space<vmem>>, vector<1x1x32xf32>
    %745 = vector.shape_cast %744 : vector<1x1x32xf32> to vector<1x32xf32>
    %746 = tpu.concatenate %743, %745 in 0 : vector<1x32xf32>, vector<1x32xf32> -> vector<2x32xf32>
    %747 = vector.broadcast %728 : f32 to vector<2x32xf32>
    %748 = arith.subf %736, %747 : vector<2x32xf32>
    %749 = vector.broadcast %733 : f32 to vector<2x32xf32>
    %750 = arith.mulf %748, %749 : vector<2x32xf32>
    %751 = arith.mulf %750, %741 : vector<2x32xf32>
    %752 = arith.addf %751, %746 : vector<2x32xf32>
    %c0_334 = arith.constant 0 : index
    %c0_335 = arith.constant 0 : index
    %753 = vector.load %arg12[%c0_334, %c0_335] : memref<32x64xf32, #tpu.memory_space<vmem>>, vector<32x64xf32>
    %cst_336 = arith.constant dense<0.000000e+00> : vector<2x64xf32>
    %754 = tpu.matmul %752, %753, %cst_336 {dimension_numbers = #tpu.dot_dimension_numbers<[1], [0], [0], [1], [0, 0, 1, 1], [], []>} : vector<2x32xf32>, vector<32x64xf32>, vector<2x64xf32> -> vector<2x64xf32>
    %cst_337 = arith.constant 5.000000e-01 : f32
    %755 = vector.broadcast %cst_337 : f32 to vector<2x64xf32>
    %756 = arith.mulf %755, %754 : vector<2x64xf32>
    %cst_338 = arith.constant 0.707106769 : f32
    %757 = vector.broadcast %cst_338 : f32 to vector<2x64xf32>
    %758 = arith.mulf %754, %757 : vector<2x64xf32>
    %cst_339 = arith.constant 0.000000e+00 : f32
    %759 = vector.broadcast %cst_339 : f32 to vector<2x64xf32>
    %760 = arith.cmpf olt, %758, %759 : vector<2x64xf32>
    %cst_340 = arith.constant -1.000000e+00 : f32
    %cst_341 = arith.constant 1.000000e+00 : f32
    %761 = vector.broadcast %cst_340 : f32 to vector<2x64xf32>
    %762 = vector.broadcast %cst_341 : f32 to vector<2x64xf32>
    %763 = arith.select %760, %761, %762 : vector<2x64xi1>, vector<2x64xf32>
    %764 = math.absf %758 : vector<2x64xf32>
    %cst_342 = arith.constant 0.327591091 : f32
    %765 = vector.broadcast %cst_342 : f32 to vector<2x64xf32>
    %766 = arith.mulf %765, %764 : vector<2x64xf32>
    %cst_343 = arith.constant 1.000000e+00 : f32
    %767 = vector.broadcast %cst_343 : f32 to vector<2x64xf32>
    %768 = arith.addf %767, %766 : vector<2x64xf32>
    %cst_344 = arith.constant 1.000000e+00 : f32
    %769 = vector.broadcast %cst_344 : f32 to vector<2x64xf32>
    %770 = arith.divf %769, %768 : vector<2x64xf32>
    %cst_345 = arith.constant 1.06140542 : f32
    %771 = vector.broadcast %cst_345 : f32 to vector<2x64xf32>
    %772 = arith.mulf %770, %771 : vector<2x64xf32>
    %cst_346 = arith.constant -1.45315206 : f32
    %773 = vector.broadcast %cst_346 : f32 to vector<2x64xf32>
    %774 = arith.addf %773, %772 : vector<2x64xf32>
    %775 = arith.mulf %770, %774 : vector<2x64xf32>
    %cst_347 = arith.constant 1.42141378 : f32
    %776 = vector.broadcast %cst_347 : f32 to vector<2x64xf32>
    %777 = arith.addf %776, %775 : vector<2x64xf32>
    %778 = arith.mulf %770, %777 : vector<2x64xf32>
    %cst_348 = arith.constant -0.284496725 : f32
    %779 = vector.broadcast %cst_348 : f32 to vector<2x64xf32>
    %780 = arith.addf %779, %778 : vector<2x64xf32>
    %781 = arith.mulf %770, %780 : vector<2x64xf32>
    %cst_349 = arith.constant 0.254829586 : f32
    %782 = vector.broadcast %cst_349 : f32 to vector<2x64xf32>
    %783 = arith.addf %782, %781 : vector<2x64xf32>
    %784 = arith.mulf %770, %783 : vector<2x64xf32>
    %cst_350 = arith.constant 0.000000e+00 : f32
    %785 = vector.broadcast %cst_350 : f32 to vector<2x64xf32>
    %786 = arith.subf %785, %764 : vector<2x64xf32>
    %787 = arith.mulf %786, %764 : vector<2x64xf32>
    %788 = math.exp %787 : vector<2x64xf32>
    %789 = arith.mulf %784, %788 : vector<2x64xf32>
    %cst_351 = arith.constant 1.000000e+00 : f32
    %790 = vector.broadcast %cst_351 : f32 to vector<2x64xf32>
    %791 = arith.subf %790, %789 : vector<2x64xf32>
    %792 = arith.mulf %763, %791 : vector<2x64xf32>
    %cst_352 = arith.constant 1.000000e+00 : f32
    %793 = vector.broadcast %cst_352 : f32 to vector<2x64xf32>
    %794 = arith.addf %793, %792 : vector<2x64xf32>
    %795 = arith.mulf %756, %794 : vector<2x64xf32>
    %c0_353 = arith.constant 0 : index
    %c0_354 = arith.constant 0 : index
    %796 = vector.load %arg13[%c0_353, %c0_354] : memref<64x32xf32, #tpu.memory_space<vmem>>, vector<64x32xf32>
    %cst_355 = arith.constant dense<0.000000e+00> : vector<2x32xf32>
    %797 = tpu.matmul %795, %796, %cst_355 {dimension_numbers = #tpu.dot_dimension_numbers<[1], [0], [0], [1], [0, 0, 1, 1], [], []>} : vector<2x64xf32>, vector<64x32xf32>, vector<2x32xf32> -> vector<2x32xf32>
    %798 = arith.addf %736, %797 : vector<2x32xf32>
    %c0_356 = arith.constant 0 : index
    %c0_357 = arith.constant 0 : index
    %799 = vector.load %arg14[%c0_356, %c0_357] : memref<32x10xf32, #tpu.memory_space<vmem>>, vector<32x10xf32>
    %cst_358 = arith.constant dense<0.000000e+00> : vector<2x10xf32>
    %800 = tpu.matmul %798, %799, %cst_358 {dimension_numbers = #tpu.dot_dimension_numbers<[1], [0], [0], [1], [0, 0, 1, 1], [], []>} : vector<2x32xf32>, vector<32x10xf32>, vector<2x10xf32> -> vector<2x10xf32>
    %c0_359 = arith.constant 0 : index
    %c0_360 = arith.constant 0 : index
    %801 = vector.load %arg15[%c0_359, %c0_360] : memref<1x10xf32, #tpu.memory_space<vmem>>, vector<1x10xf32>
    %802 = vector.broadcast %801 : vector<1x10xf32> to vector<2x10xf32>
    %803 = arith.addf %800, %802 : vector<2x10xf32>
    %c0_361 = arith.constant 0 : index
    %c0_362 = arith.constant 0 : index
    %804 = vector.load %arg16[%c0_361, %c0_362] : memref<2x10xf32, #tpu.memory_space<vmem>>, vector<2x10xf32>
    tpu.vector_store %arg16[%c0_361, %c0_362], %803 {strides = array<i32>} : memref<2x10xf32, #tpu.memory_space<vmem>>, vector<2x10xf32>,
    return
  }
}

</mosaic_0001>

<bundles_post_ra>
// kernel: vit_forward.1
= control target key start
LH: loop header
LB: loop body
LE: loop exit
PB: predicated region body
PF: predicated region fallthrough
CT: control target
= control target key end

     0   :  { %s17616_s0 = inlined_call_operand.vmem [shape: f32[32,64], index: 0, kind: input, shape index: {}]   ;;  %s17617_s1 = inlined_call_operand.vmem [shape: f32[64,32], index: 1, kind: input, shape index: {}]   ;;  %s17618_s2 = inlined_call_operand.vmem [shape: f32[2,1,32], index: 2, kind: input, shape index: {}]   ;;  %s17619_s3 = inlined_call_operand.vmem [shape: f32[1,17,32], index: 3, kind: input, shape index: {}]   ;;  %s17620_s4 = inlined_call_operand.vmem [shape: f32[32,128], index: 4, kind: input, shape index: {}]   ;;  %s17621_s5 = inlined_call_operand.vmem [shape: f32[32,128], index: 5, kind: input, shape index: {}]   ;;  %s17622_s6 = inlined_call_operand.vmem [shape: f32[32,128], index: 6, kind: input, shape index: {}]   ;;  %s17623_s7 = inlined_call_operand.vmem [shape: f32[16,8,32], index: 7, kind: input, shape index: {}]   ;;  %s17624_s8 = inlined_call_operand.vmem [shape: f32[2,17,32], index: 8, kind: input, shape index: {}]   ;;  %s17625_s9 = inlined_call_operand.vmem [shape: f32[2,17,32], index: 9, kind: input, shape index: {}]   ;;  %s17626_s10 = inlined_call_operand.vmem [shape: f32[2,17,32], index: 10, kind: input, shape index: {}]   ;;  %s17627_s11 = inlined_call_operand.vmem [shape: f32[2,17,32], index: 11, kind: input, shape index: {}]   ;;  %s17628_s12 = inlined_call_operand.vmem [shape: f32[32,64], index: 12, kind: input, shape index: {}]   ;;  %s17629_s13 = inlined_call_operand.vmem [shape: f32[64,32], index: 13, kind: input, shape index: {}]   ;;  %s17630_s14 = inlined_call_operand.vmem [shape: f32[32,10], index: 14, kind: input, shape index: {}]   ;;  %s17631_s15 = inlined_call_operand.vmem [shape: f32[1,10], index: 15, kind: input, shape index: {}]   ;;  %s17632_s16 = inlined_call_operand.hbm [shape: f32[2,10], index: 16, kind: output, shape index: {}]  }
   0x1   :  { %17640 = sst [smem:[#allocation6_spill]] %s17616_s0 }
   0x2   :  { %v65_v0 = vld [vmem:[%s17617_s1 + $0x38] sm:$0xff]  ;;  %v64_v1 = vld [vmem:[%s17617_s1 + $0x30] sm:$0xff]  ;;  %vm66_vm0 = vcmask 523264   ;;  %v63_v2 = vld [vmem:[%s17617_s1 + $0x28] sm:$0xff]  ;;  %s17641_s29 = sld [smem:[#allocation6_spill]] }
   0x3   :  { %12763 = vmatprep.subr.mxu0 %v65_v0 }
   0x4   :  { %12764 = vmatpush3.msra.mxu0 %v65_v0 }
   0x5   :  { %12765 = vmatprep.subr.mxu0 %v64_v1 }
   0x8   :  { %v54_v3 = vld [vmem:[%s17641_s29] sm:$0xff] }
   0x9   :  { %12779 = vmatprep.mubr.msk.f32.mxu0 %vm66_vm0, %v54_v3 }
   0xa   :  { %21 = vsyncpa [#allocation4], 0  ;;  %12766 = vmatpush3.msra.mxu0 %v64_v1  ;;  %v62_v4 = vld [vmem:[%s17617_s1 + $0x20] sm:$0xff]  ;;  %v61_v5 = vld [vmem:[%s17617_s1 + $0x18] sm:$0xff]  ;;  %vm169_vm1 = vcmask 253952   ;;  %v14727_v13 = vmov 0.0  }
   0xb   :  { %12767 = vmatprep.subr.mxu0 %v63_v2  ;;  %v60_v6 = vld [vmem:[%s17617_s1 + $0x10] sm:$0xff]  ;;  %v59_v7 = vld [vmem:[%s17617_s1 + $0x8] sm:$0xff]  ;;  %v58_v8 = vld [vmem:[%s17617_s1] sm:$0xff]  ;;  %12785 = vmatprep.subr.mxu1 %v14727_v13  ;;  %vm14728_vm2 = vmmov 0   ;;  %vm173_vm3 = vcmask 261120   ;;  %vm589_vm4 = vcmask 1040384  }
   0xc   :  { %12768 = vmatpush3.msra.mxu0 %v63_v2  ;;  %v55_v9 = vld [vmem:[%s17641_s29 + $0x8] sm:$0xff]  ;;  %v164_v10 = vld [vmem:[%s17619_s3] sm:$0x1]  ;;  %v188_v14 = vld [vmem:[%s17620_s4 + $0x18] sm:$0xff]  ;;  %12793 = vmatprep.mubr.msk.f32.mxu1 %vm14728_vm2, %v14727_v13  ;;  %s14729_s17 = smov 120   ;;  %vm452_vm5 = vcmask 64512  }
   0xd   :  { %12769 = vmatprep.subr.mxu0 %v62_v4  ;;  %v167_v11 = vld [vmem:[%s17618_s2] sm:$0x1]  ;;  %v196_v15 = vld [vmem:[%s17622_s6 + $0x18] sm:$0xff]  ;;  %v56_v16 = vld [vmem:[%s17641_s29 + $0x10] sm:$0xff]  ;;  %12786 = vmatpush3.msra.mxu1 %v188_v14  ;;  %vm551_vm6 = vcmask 138240   ;;  %vm558_vm7 = vcmask 131072  }
   0xe   :  { %12770 = vmatpush3.msra.mxu0 %v62_v4  ;;  %v168_v12 = vadd.f32 %v167_v11, %v164_v10  ;;  %v187_v17 = vld [vmem:[%s17620_s4 + $0x10] sm:$0xff]  ;;  %12787 = vmatprep.subr.mxu1 %v14727_v13  ;;  %v57_v19 = vld [vmem:[%s17641_s29 + $0x18] sm:$0xff]  ;;  %v186_v20 = vld [vmem:[%s17620_s4 + $0x8] sm:$0xff]  ;;  %s14730_s18 = smov 112   ;;  %s14731_s20 = smov 104   ;;  %vm11696_vm9 = vcmask 74752  }
   0xf   :  { %12771 = vmatprep.subr.mxu0 %v61_v5  ;;  %v195_v18 = vld [vmem:[%s17622_s6 + $0x10] sm:$0xff]  ;;  %12788 = vmatpush3.msra.mxu1 %v187_v17  ;;  %v194_v21 = vld [vmem:[%s17622_s6 + $0x8] sm:$0xff]  ;;  %v11716_v22 = vld [vmem:[%s17618_s2 + $0x1] sm:$0x1]  ;;  %s14732_s24 = smov 96   ;;  %s14733_s25 = smov 88  }
  0x10   :  { %12772 = vmatpush3.msra.mxu0 %v61_v5  ;;  %170 = vst.msk [vmem:[#allocation2] sm:$0x1] %vm169_vm1, %v168_v12  ;;  %12789 = vmatprep.subr.mxu1 %v14727_v13  ;;  %v178_v23 = vadd.f32 %v11716_v22, %v164_v10  ;;  %v185_v24 = vld [vmem:[%s17620_s4] sm:$0xff]  ;;  %v166_v26 = vld [vmem:[%s17619_s3 + $0x9] sm:$0xff]  ;;  %v192_v32 = vld [vmem:[%s17621_s5 + $0x18] sm:$0xff]  ;;  %s14734_s30 = smov 80  }
  0x11   :  { %12773 = vmatprep.subr.mxu0 %v60_v6  ;;  %12790 = vmatpush3.msra.mxu1 %v186_v20  ;;  %v193_v25 = vld [vmem:[%s17622_s6] sm:$0xff]  ;;  %v191_v34 = vld [vmem:[%s17621_s5 + $0x10] sm:$0xff]  ;;  %v190_v36 = vld [vmem:[%s17621_s5 + $0x8] sm:$0xff]  ;;  %s14735_s0 = smov 72   ;;  %s14736_s2 = smov 64  }
  0x12   :  { %12774 = vmatpush3.msra.mxu0 %v60_v6  ;;  %180 = vst.msk [vmem:[#allocation2 + $0x18] sm:$0x1] %vm169_vm1, %v178_v23  ;;  %12791 = vmatprep.subr.mxu1 %v14727_v13  ;;  %v165_v28 = vld [vmem:[%s17619_s3 + $0x1] sm:$0xff]  ;;  %s14737_s22 = smov 56   ;;  %s14738_s3 = smov 48  }
  0x13   :  { %12775 = vmatprep.subr.mxu0 %v59_v7  ;;  %12792 = vmatpush3.msra.mxu1 %v185_v24  ;;  %v189_v37 = vld [vmem:[%s17621_s5] sm:$0xff]  ;;  %s14739_s1 = smov 40   ;;  %s14740_s26 = smov 32  }
  0x14   :  { %12776 = vmatpush3.msra.mxu0 %v59_v7  ;;  %12802 = vmatprep.subr.mxu1 %v14727_v13  ;;  %s17638_s27 = smov 24   ;;  %s17636_s23 = smov 16  }
  0x15   :  { %12777 = vmatprep.subr.mxu0 %v58_v8  ;;  %s17634_s28 = smov 8   ;;  %s17642_s29 = smov 24  }
  0x16   :  { %12778 = vmatpush3.msra.mxu0 %v58_v8 }
  0x17   :  { %12780 = vmatmul.mubr.msk.f32.vlgmr.msra.gmra.mxu0 %vm66_vm0, %v55_v9  ;;  %12819 = vmatprep.subr.mxu0 %v14727_v13 }
  0x18   :  { %12820 = vmatpush3.msra.mxu0 %v196_v15  ;;  %12782 = vmatprep.mubr.msk.f32.mxu0 %vm66_vm0, %v56_v16 }
  0x19   :  { %12821 = vmatprep.subr.mxu0 %v14727_v13 }
  0x1a   :  { %12822 = vmatpush3.msra.mxu0 %v195_v18 }
  0x1b   :  { %12783 = vmatmul.mubr.msk.f32.gmra.mxu0 %vm66_vm0, %v57_v19  ;;  %12823 = vmatprep.subr.mxu0 %v14727_v13 }
  0x1c   :  { %12824 = vmatpush3.msra.mxu0 %v194_v21  ;;  %12827 = vmatprep.mubr.msk.f32.mxu0 %vm14728_vm2, %v14727_v13 }
  0x1d   :  { %12825 = vmatprep.subr.mxu0 %v14727_v13 }
  0x1e   :  { %12826 = vmatpush3.msra.mxu0 %v193_v25 }
  0x1f   :  { %12851 = vmatprep.subr.mxu0 %v14727_v13 }
  0xd7   :  { %v12781_v27 = vpop.f32.mrf.mxu0 }
  0xd8   :  { %v172_v29 = vadd.f32 %v12781_v27, %v166_v26 }
  0xd9   :  { %v145_v30 = vpop.f32.mrf.mxu0 }
  0xda   :  { %175 = vst.msk [vmem:[#allocation2 + $0x9] sm:$0xff] %vm173_vm3, %v172_v29  ;;  %v171_v31 = vadd.f32 %v165_v28, %v145_v30 }
  0xdb   :  { %v12784_v39 = vpop.f32.mrf.mxu0 }
  0xdc   :  { %174 = vst.msk [vmem:[#allocation2 + $0x1] sm:$0xff] %vm173_vm3, %v171_v31  ;;  %v182_v40 = vadd.f32 %v12784_v39, %v166_v26 }
  0xdd   :  { %v155_v41 = vpop.f32.mrf.mxu0 }
  0xde   :  { %184 = vst.msk [vmem:[#allocation2 + $0x21] sm:$0xff] %vm173_vm3, %v182_v40  ;;  %v181_v42 = vadd.f32 %v165_v28, %v155_v41 }
  0xe0   :  { %183 = vst.msk [vmem:[#allocation2 + $0x19] sm:$0xff] %vm173_vm3, %v181_v42 }
  0xe1   :  { %v199_v38 = vld [vmem:[#allocation2 + $0x10] sm:$0x1] }
  0xe3   :  { %v197_v33 = vld [vmem:[#allocation2] sm:$0xff]  ;;  %v198_v35 = vld [vmem:[#allocation2 + $0x8] sm:$0xff] }
  0xe4   :  { %12794 = vmatmul.mubr.msk.f32.vlgmr.msra.gmra.mxu1 %vm173_vm3, %v197_v33  ;;  %12828 = vmatmul.mubr.msk.f32.vlgmr.msra.gmra.mxu0 %vm173_vm3, %v197_v33 }
  0xe5   :  { %12803 = vmatpush3.msra.mxu1 %v192_v32  ;;  %12796 = vmatprep.mubr.msk.f32.mxu1 %vm14728_vm2, %v14727_v13 }
  0xe6   :  { %12830 = vmatprep.mubr.msk.f32.mxu0 %vm14728_vm2, %v14727_v13  ;;  %12804 = vmatprep.subr.mxu1 %v14727_v13 }
  0xe7   :  { %12805 = vmatpush3.msra.mxu1 %v191_v34 }
  0xe8   :  { %12797 = vmatmul.mubr.msk.f32.gmra.mxu1 %vm173_vm3, %v198_v35  ;;  %12831 = vmatmul.mubr.msk.f32.gmra.mxu0 %vm173_vm3, %v198_v35 }
  0xe9   :  { %12799 = vmatprep.mubr.msk.f32.mxu1 %vm14728_vm2, %v14727_v13  ;;  %12806 = vmatprep.subr.mxu1 %v14727_v13 }
  0xea   :  { %12833 = vmatprep.mubr.msk.f32.mxu0 %vm14728_vm2, %v14727_v13  ;;  %12807 = vmatpush3.msra.mxu1 %v190_v36 }
  0xeb   :  { %12808 = vmatprep.subr.mxu1 %v14727_v13 }
  0xec   :  { %12800 = vmatmul.mubr.msk.f32.gmra.mxu1 %vm173_vm3, %v199_v38  ;;  %12834 = vmatmul.mubr.msk.f32.gmra.mxu0 %vm173_vm3, %v199_v38 }
  0xed   :  { %12809 = vmatpush3.msra.mxu1 %v189_v37  ;;  %12810 = vmatprep.mubr.msk.f32.mxu1 %vm14728_vm2, %v14727_v13 }
  0xee   :  { %12836 = vmatprep.subr.mxu1 %v14727_v13  ;;  %12857 = vmatprep.mubr.msk.f32.mxu0 %vm14728_vm2, %v14727_v13 }
  0xf0   :  { %12811 = vmatmul.mubr.msk.f32.vlgmr.msra.gmra.mxu1 %vm173_vm3, %v197_v33 }
  0xf1   :  { %12813 = vmatprep.mubr.msk.f32.mxu1 %vm14728_vm2, %v14727_v13 }
  0xf4   :  { %12814 = vmatmul.mubr.msk.f32.gmra.mxu1 %vm173_vm3, %v198_v35 }
  0xf5   :  { %12816 = vmatprep.mubr.msk.f32.mxu1 %vm14728_vm2, %v14727_v13 }
  0xf8   :  { %12817 = vmatmul.mubr.msk.f32.gmra.mxu1 %vm173_vm3, %v199_v38 }
  0xf9   :  { %12842 = vmatprep.mubr.msk.f32.mxu1 %vm14728_vm2, %v14727_v13 }
 0x1a4   :  { %v275_v43 = vpop.f32.mrf.mxu1  ;;  %v14973_v44 = vpop.f32.mrf.mxu0 }
 0x1a5   :  { %v14990_v57 = vmul.f32 0.35355338, %v275_v43 }
 0x1a6   :  { %v12795_v45 = vpop.f32.mrf.mxu1  ;;  %v12829_v46 = vpop.f32.mrf.mxu0 }
 0x1a8   :  { %v280_v47 = vpop.f32.mrf.mxu1  ;;  %v14975_v48 = vpop.f32.mrf.mxu0 }
 0x1a9   :  { %v15013_v63 = vmul.f32 0.35355338, %v280_v47 }
 0x1aa   :  { %v12798_v49 = vpop.f32.mrf.mxu1  ;;  %v12832_v50 = vpop.f32.mrf.mxu0 }
 0x1ac   :  { %v285_v51 = vpop.f32.mrf.mxu1  ;;  %v14977_v52 = vpop.f32.mrf.mxu0 }
 0x1ad   :  { %12852 = vmatpush3.msk.msra.mxu0 %vm589_vm4, %v14977_v52  ;;  %v14996_v60 = vmul.f32 0.35355338, %v285_v51 }
 0x1ae   :  { %v12801_v53 = vpop.f32.mrf.mxu1  ;;  %v12835_v54 = vpop.f32.mrf.mxu0  ;;  %12853 = vmatprep.subr.mxu0 %v14727_v13 }
 0x1af   :  { %12854 = vmatpush3.msra.mxu0 %v14975_v48 }
 0x1b0   :  { %v14983_v55 = vpop.f32.mrf.mxu1  ;;  %12855 = vmatprep.subr.mxu0 %v14727_v13 }
 0x1b1   :  { %686 = vrot.lane.b32.xlu1 %v14983_v55, %s14729_s17  ;;  %12856 = vmatpush3.msra.mxu0 %v14973_v44 }
 0x1b2   :  { %v12812_v56 = vpop.f32.mrf.mxu1  ;;  %12881 = vmatprep.subr.mxu0 %v14727_v13 }
 0x1b4   :  { %v14992_v58 = vpop.f32.mrf.mxu1 }
 0x1b5   :  { %680 = vrot.lane.b32.xlu1 %v14990_v57, %s14729_s17 }
 0x1b6   :  { %v12815_v59 = vpop.f32.mrf.mxu1 }
 0x1b8   :  { %v14998_v61 = vpop.f32.mrf.mxu1 }
 0x1b9   :  { %684 = vrot.lane.b32.xlu1 %v14996_v60, %s14729_s17  ;;  %690 = vrot.lane.b32.xlu0 %v14998_v61, %s14729_s17 }
 0x1ba   :  { %12837 = vmatpush3.xpose.msk.msra.mxu1 %vm452_vm5, %v14998_v61  ;;  %v12818_v62 = vpop.f32.mrf.mxu1 }
 0x1bb   :  { %12838 = vmatprep.subr.mxu1 %v14727_v13 }
 0x1bd   :  { %688 = vrot.lane.b32.xlu0 %v14992_v58, %s14729_s17  ;;  %817 = vrot.lane.b32.xlu1 %v14977_v52, %s14729_s17 }
 0x1be   :  { %12839 = vmatpush3.xpose.msk.msra.mxu1 %vm452_vm5, %v14992_v58 }
 0x1bf   :  { %12840 = vmatprep.subr.mxu1 %v14727_v13 }
 0x1c1   :  { %682 = vrot.lane.b32.xlu0 %v15013_v63, %s14729_s17 }
 0x1c2   :  { %12841 = vmatpush3.xpose.msk.msra.mxu1 %vm452_vm5, %v14983_v55 }
 0x1c3   :  { %12866 = vmatprep.subr.mxu1 %v14727_v13 }
 0x1c5   :  { %12843 = vmatmul.mubr.msk.f32.vlgmr.msra.gmra.mxu1 %vm452_vm5, %v14990_v57 }
 0x1c6   :  { %12845 = vmatprep.mubr.msk.f32.mxu1 %vm14728_vm2, %v14727_v13 }
 0x1c9   :  { %12846 = vmatmul.mubr.msk.f32.gmra.mxu1 %vm452_vm5, %v15013_v63 }
 0x1ca   :  { %12848 = vmatprep.mubr.msk.f32.mxu1 %vm14728_vm2, %v14727_v13 }
 0x1cd   :  { %12849 = vmatmul.mubr.msk.f32.gmra.mxu1 %vm452_vm5, %v14996_v60 }
 0x1ce   :  { %12872 = vmatprep.mubr.msk.f32.mxu1 %vm14728_vm2, %v14727_v13 }
 0x223   :  { %v687_v2 = vpop.permute.xlu1 %686 }
 0x227   :  { %v681_v3 = vpop.permute.xlu1 %680 }
 0x22b   :  { %v691_v0 = vpop.permute.xlu0 %690  ;;  %v685_v5 = vpop.permute.xlu1 %684 }
 0x22c   :  { %12867 = vmatpush3.xpose.msk.msra.mxu1 %vm452_vm5, %v691_v0  ;;  %v11746_v0 = vld [vmem:[%s17623_s7 + $0x8] sm:$0xff] }
 0x22d   :  { %12868 = vmatprep.subr.mxu1 %v14727_v13 }
 0x22f   :  { %v689_v1 = vpop.permute.xlu0 %688  ;;  %v818_v25 = vpop.permute.xlu1 %817 }
 0x230   :  { %12869 = vmatpush3.xpose.msk.msra.mxu1 %vm452_vm5, %v689_v1 }
 0x231   :  { %12870 = vmatprep.subr.mxu1 %v14727_v13 }
 0x233   :  { %v683_v4 = vpop.permute.xlu0 %682 }
 0x234   :  { %12871 = vmatpush3.xpose.msk.msra.mxu1 %vm452_vm5, %v687_v2 }
 0x235   :  { %12896 = vmatprep.subr.mxu1 %v14727_v13 }
 0x237   :  { %12873 = vmatmul.mubr.msk.f32.vlgmr.msra.gmra.mxu1 %vm452_vm5, %v681_v3 }
 0x238   :  { %12875 = vmatprep.mubr.msk.f32.mxu1 %vm14728_vm2, %v14727_v13  ;;  %12897 = vmatpush3.msra.mxu1 %v11746_v0 }
 0x239   :  { %12918 = vmatprep.subr.mxu1 %v14727_v13 }
 0x23b   :  { %12876 = vmatmul.mubr.msk.f32.gmra.mxu1 %vm452_vm5, %v683_v4 }
 0x23c   :  { %12878 = vmatprep.mubr.msk.f32.mxu1 %vm14728_vm2, %v14727_v13 }
 0x23f   :  { %12879 = vmatmul.mubr.msk.f32.gmra.mxu1 %vm452_vm5, %v685_v5 }
 0x240   :  { %12898 = vmatprep.mubr.msk.f32.mxu1 %vm14728_vm2, %v14727_v13 }
 0x285   :  { %v537_v6 = vpop.f32.mrf.mxu1 }
 0x286   :  { %v552_v7 = vsel %vm551_vm6, %v537_v6, -inf }
 0x287   :  { %553 = vmax.xlane.f32.xlu0 %v552_v7  ;;  %v12844_v8 = vpop.f32.mrf.mxu1 }
 0x289   :  { %v542_v9 = vpop.f32.mrf.mxu1 }
 0x28a   :  { %v555_v10 = vsel %vm551_vm6, %v542_v9, -inf }
 0x28b   :  { %v12847_v11 = vpop.f32.mrf.mxu1  ;;  %556 = vmax.xlane.f32.xlu1 %v555_v10  ;;  %v679_v10 = vld [vmem:[%s17623_s7] sm:$0xff] }
 0x28d   :  { %v547_v12 = vpop.f32.mrf.mxu1 }
 0x28e   :  { %v559_v14 = vsel %vm558_vm7, %v547_v12, -inf }
 0x28f   :  { %560 = vmax.xlane.f32.xlu0 %v559_v14  ;;  %v12850_v15 = vpop.f32.mrf.mxu1 }
 0x2f7   :  { %v770_v16 = vpop.f32.mrf.mxu1 }
 0x2f8   :  { %v784_v17 = vsel %vm551_vm6, %v770_v16, -inf }
 0x2f9   :  { %785 = vmax.xlane.f32.xlu0 %v784_v17  ;;  %v12874_v18 = vpop.f32.mrf.mxu1 }
 0x2fb   :  { %v775_v19 = vpop.f32.mrf.mxu1 }
 0x2fc   :  { %v787_v20 = vsel %vm551_vm6, %v775_v19, -inf }
 0x2fd   :  { %v12877_v21 = vpop.f32.mrf.mxu1  ;;  %788 = vmax.xlane.f32.xlu1 %v787_v20 }
 0x2ff   :  { %v780_v22 = vpop.f32.mrf.mxu1 }
 0x300   :  { %v790_v23 = vsel %vm558_vm7, %v780_v22, -inf }
 0x301   :  { %791 = vmax.xlane.f32.xlu0 %v790_v23  ;;  %v12880_v24 = vpop.f32.mrf.mxu1 }
 0x30e   :  { %813 = vrot.lane.b32.xlu1 %v14973_v44, %s14729_s17 }
 0x310   :  { %v554_v26 = vpop.xlane.xlu0 %553 }
 0x311   :  { %v562_v27 = vsub.f32 %v537_v6, %v554_v26 }
 0x312   :  { %1108 = vrot.lane.b32.xlu1 %v14998_v61, %s14730_s18 }
 0x313   :  { %v565_v28 = vmul.f32 1.442695, %v562_v27 }
 0x314   :  { %v557_v29 = vpop.xlane.xlu1 %556 }
 0x315   :  { %14279 = vpow2.f32 %v565_v28  ;;  %v563_v30 = vsub.f32 %v542_v9, %v557_v29 }
 0x317   :  { %v567_v31 = vmul.f32 1.442695, %v563_v30  ;;  %815 = vrot.lane.b32.xlu0 %v14975_v48, %s14729_s17 }
 0x318   :  { %v561_v32 = vpop.xlane.xlu0 %560 }
 0x319   :  { %14281 = vpow2.f32 %v567_v31  ;;  %v564_v33 = vsub.f32 %v547_v12, %v561_v32 }
 0x31b   :  { %v569_v34 = vmul.f32 1.442695, %v564_v33 }
 0x31d   :  { %14283 = vpow2.f32 %v569_v34 }
 0x322   :  { %v14280_v35 = vpop.eup %14279 }
 0x323   :  { %12858 = vmatmul.mubr.msk.f32.vlgmr.msra.gmra.mxu0 %vm551_vm6, %v14280_v35  ;;  %v571_v2 = vsel %vm551_vm6, %v14280_v35, 0.0 }
 0x324   :  { %12882 = vmatpush3.msk.msra.mxu0 %vm589_vm4, %v818_v25  ;;  %12860 = vmatprep.mubr.msk.f32.mxu0 %vm14728_vm2, %v14727_v13 }
 0x325   :  { %12883 = vmatprep.subr.mxu0 %v14727_v13 }
 0x326   :  { %v14282_v36 = vpop.eup %14281 }
 0x327   :  { %12861 = vmatmul.mubr.msk.f32.gmra.mxu0 %vm551_vm6, %v14282_v36  ;;  %v574_v1 = vsel %vm551_vm6, %v14282_v36, 0.0 }
 0x328   :  { %12863 = vmatprep.mubr.msk.f32.mxu0 %vm14728_vm2, %v14727_v13 }
 0x32a   :  { %v14284_v37 = vpop.eup %14283 }
 0x32b   :  { %12864 = vmatmul.mubr.msk.f32.gmra.mxu0 %vm551_vm6, %v14284_v37  ;;  %v577_v3 = vsel %vm558_vm7, %v14284_v37, 0.0 }
 0x32c   :  { %12887 = vmatprep.mubr.msk.f32.mxu0 %vm14728_vm2, %v14727_v13 }
 0x382   :  { %v786_v38 = vpop.xlane.xlu0 %785 }
 0x383   :  { %v793_v39 = vsub.f32 %v770_v16, %v786_v38 }
 0x385   :  { %v796_v40 = vmul.f32 1.442695, %v793_v39 }
 0x386   :  { %v789_v41 = vpop.xlane.xlu1 %788 }
 0x387   :  { %14285 = vpow2.f32 %v796_v40  ;;  %v794_v42 = vsub.f32 %v775_v19, %v789_v41 }
 0x389   :  { %v798_v43 = vmul.f32 1.442695, %v794_v42 }
 0x38a   :  { %v792_v45 = vpop.xlane.xlu0 %791  ;;  %v814_v50 = vpop.permute.xlu1 %813 }
 0x38b   :  { %14287 = vpow2.f32 %v798_v43  ;;  %v795_v46 = vsub.f32 %v780_v22, %v792_v45 }
 0x38d   :  { %v800_v47 = vmul.f32 1.442695, %v795_v46 }
 0x38e   :  { %v816_v49 = vpop.permute.xlu0 %815  ;;  %v1109_v11 = vpop.permute.xlu1 %1108 }
 0x38f   :  { %14289 = vpow2.f32 %v800_v47  ;;  %12884 = vmatpush3.msra.mxu0 %v816_v49 }
 0x390   :  { %12885 = vmatprep.subr.mxu0 %v14727_v13 }
 0x391   :  { %12886 = vmatpush3.msra.mxu0 %v814_v50 }
 0x392   :  { %12907 = vmatprep.subr.mxu0 %v14727_v13 }
 0x394   :  { %v14286_v51 = vpop.eup %14285 }
 0x395   :  { %12888 = vmatmul.mubr.msk.f32.vlgmr.msra.gmra.mxu0 %vm551_vm6, %v14286_v51  ;;  %v802_v53 = vsel %vm551_vm6, %v14286_v51, 0.0 }
 0x396   :  { %803 = vadd.xlane.f32.xlu1 %v802_v53  ;;  %12890 = vmatprep.mubr.msk.f32.mxu0 %vm14728_vm2, %v14727_v13 }
 0x397   :  { %12908 = vmatpush3.msra.mxu0 %v679_v10 }
 0x398   :  { %v14288_v54 = vpop.eup %14287  ;;  %12933 = vmatprep.subr.mxu0 %v14727_v13 }
 0x399   :  { %12891 = vmatmul.mubr.msk.f32.gmra.mxu0 %vm551_vm6, %v14288_v54  ;;  %v805_v56 = vsel %vm551_vm6, %v14288_v54, 0.0 }
 0x39a   :  { %806 = vadd.xlane.f32.xlu0 %v805_v56  ;;  %12893 = vmatprep.mubr.msk.f32.mxu0 %vm14728_vm2, %v14727_v13 }
 0x39c   :  { %v14290_v59 = vpop.eup %14289 }
 0x39d   :  { %12894 = vmatmul.mubr.msk.f32.gmra.mxu0 %vm551_vm6, %v14290_v59  ;;  %v808_v62 = vsel %vm558_vm7, %v14290_v59, 0.0 }
 0x39e   :  { %809 = vadd.xlane.f32.xlu0 %v808_v62  ;;  %12909 = vmatprep.mubr.msk.f32.mxu0 %vm14728_vm2, %v14727_v13 }
 0x3a7   :  { %1104 = vrot.lane.b32.xlu1 %v14983_v55, %s14730_s18 }
 0x3ab   :  { %1098 = vrot.lane.b32.xlu1 %v14990_v57, %s14730_s18 }
 0x3af   :  { %1102 = vrot.lane.b32.xlu1 %v14996_v60, %s14730_s18 }
 0x3b4   :  { %1106 = vrot.lane.b32.xlu0 %v14992_v58, %s14730_s18 }
 0x3b8   :  { %1100 = vrot.lane.b32.xlu0 %v15013_v63, %s14730_s18 }
 0x3d3   :  { %575 = vadd.xlane.f32.xlu1 %v574_v1 }
 0x3d7   :  { %572 = vadd.xlane.f32.xlu0 %v571_v2 }
 0x3db   :  { %578 = vadd.xlane.f32.xlu0 %v577_v3 }
 0x3e3   :  { %v15102_v4 = vpop.f32.mrf.mxu0 }
 0x3e4   :  { %1233 = vrot.lane.b32.xlu1 %v14977_v52, %s14730_s18 }
 0x3e5   :  { %v12859_v5 = vpop.f32.mrf.mxu0 }
 0x3e7   :  { %v15106_v6 = vpop.f32.mrf.mxu0 }
 0x3e8   :  { %1229 = vrot.lane.b32.xlu1 %v14973_v44, %s14730_s18 }
 0x3e9   :  { %v12862_v7 = vpop.f32.mrf.mxu0 }
 0x3eb   :  { %v15110_v8 = vpop.f32.mrf.mxu0 }
 0x3ec   :  { %1438 = vrot.lane.b32.xlu1 %v14998_v61, %s14731_s20 }
 0x3ed   :  { %v12865_v9 = vpop.f32.mrf.mxu0 }
 0x3f1   :  { %1231 = vrot.lane.b32.xlu0 %v14975_v48, %s14730_s18 }
 0x41f   :  { %v804_v12 = vpop.xlane.xlu1 %803 }
 0x420   :  { %14291 = vrcp.f32 %v804_v12 }
 0x423   :  { %v807_v14 = vpop.xlane.xlu0 %806  ;;  %v1105_v16 = vpop.permute.xlu1 %1104 }
 0x424   :  { %14293 = vrcp.f32 %v807_v14 }
 0x427   :  { %v810_v15 = vpop.xlane.xlu0 %809  ;;  %v1099_v19 = vpop.permute.xlu1 %1098 }
 0x428   :  { %14295 = vrcp.f32 %v810_v15 }
 0x42b   :  { %v1107_v20 = vpop.permute.xlu0 %1106  ;;  %v1103_v27 = vpop.permute.xlu1 %1102 }
 0x42d   :  { %v14292_v17 = vpop.eup %14291 }
 0x42f   :  { %v1101_v28 = vpop.permute.xlu0 %1100 }
 0x431   :  { %v14294_v23 = vpop.eup %14293 }
 0x435   :  { %v14296_v29 = vpop.eup %14295 }
 0x455   :  { %v898_v18 = vpop.f32.mrf.mxu0 }
 0x456   :  { %v915_v21 = vmul.f32 %v14292_v17, %v898_v18 }
 0x457   :  { %v12889_v22 = vpop.f32.mrf.mxu0 }
 0x458   :  { %12899 = vmatmul.mubr.msk.f32.vlgmr.msra.gmra.mxu1 %vm452_vm5, %v915_v21 }
 0x459   :  { %12919 = vmatpush3.xpose.msk.msra.mxu1 %vm452_vm5, %v1109_v11  ;;  %v903_v24 = vpop.f32.mrf.mxu0  ;;  %12901 = vmatprep.mubr.msk.f32.mxu1 %vm14728_vm2, %v14727_v13 }
 0x45a   :  { %v916_v25 = vmul.f32 %v14294_v23, %v903_v24  ;;  %12920 = vmatprep.subr.mxu1 %v14727_v13 }
 0x45b   :  { %v12892_v26 = vpop.f32.mrf.mxu0 }
 0x45c   :  { %12902 = vmatmul.mubr.msk.f32.gmra.mxu1 %vm452_vm5, %v916_v25  ;;  %v576_v33 = vpop.xlane.xlu1 %575 }
 0x45d   :  { %12921 = vmatpush3.xpose.msk.msra.mxu1 %vm452_vm5, %v1107_v20  ;;  %v908_v30 = vpop.f32.mrf.mxu0  ;;  %12904 = vmatprep.mubr.msk.f32.mxu1 %vm14728_vm2, %v14727_v13 }
 0x45e   :  { %v917_v31 = vmul.f32 %v14296_v29, %v908_v30  ;;  %12922 = vmatprep.subr.mxu1 %v14727_v13 }
 0x45f   :  { %v12895_v32 = vpop.f32.mrf.mxu0 }
 0x460   :  { %v573_v34 = vpop.xlane.xlu0 %572  ;;  %12905 = vmatmul.mubr.msk.f32.gmra.mxu1 %vm452_vm5, %v917_v31  ;;  %v1234_v38 = vpop.permute.xlu1 %1233 }
 0x461   :  { %14297 = vrcp.f32 %v573_v34  ;;  %12923 = vmatpush3.xpose.msk.msra.mxu1 %vm452_vm5, %v1105_v16  ;;  %12924 = vmatprep.mubr.msk.f32.mxu1 %vm14728_vm2, %v14727_v13 }
 0x462   :  { %12948 = vmatprep.subr.mxu1 %v14727_v13  ;;  %14299 = vrcp.f32 %v576_v33 }
 0x464   :  { %v579_v35 = vpop.xlane.xlu0 %578  ;;  %12925 = vmatmul.mubr.msk.f32.vlgmr.msra.gmra.mxu1 %vm452_vm5, %v1099_v19  ;;  %v1230_v43 = vpop.permute.xlu1 %1229 }
 0x465   :  { %12927 = vmatprep.mubr.msk.f32.mxu1 %vm14728_vm2, %v14727_v13  ;;  %14301 = vrcp.f32 %v579_v35 }
 0x468   :  { %12928 = vmatmul.mubr.msk.f32.gmra.mxu1 %vm452_vm5, %v1101_v28  ;;  %v1232_v40 = vpop.permute.xlu0 %1231  ;;  %v1439_v15 = vpop.permute.xlu1 %1438 }
 0x469   :  { %12930 = vmatprep.mubr.msk.f32.mxu1 %vm14728_vm2, %v14727_v13 }
 0x46c   :  { %12931 = vmatmul.mubr.msk.f32.gmra.mxu1 %vm452_vm5, %v1103_v27 }
 0x46d   :  { %12950 = vmatprep.mubr.msk.f32.mxu1 %vm14728_vm2, %v14727_v13 }
 0x46e   :  { %v14298_v36 = vpop.eup %14297 }
 0x46f   :  { %v676_v37 = vmul.f32 %v14298_v36, %v15102_v4  ;;  %v14300_v39 = vpop.eup %14299  ;;  %v11763_v36 = vld [vmem:[%s17623_s7 + $0x10] sm:$0xff] }
 0x470   :  { %v677_v41 = vmul.f32 %v14300_v39, %v15106_v6  ;;  %12949 = vmatpush3.msra.mxu1 %v11763_v36 }
 0x471   :  { %12910 = vmatmul.mubr.msk.f32.vlgmr.msra.gmra.mxu0 %vm452_vm5, %v676_v37  ;;  %12974 = vmatprep.subr.mxu1 %v14727_v13 }
 0x472   :  { %12934 = vmatpush3.msk.msra.mxu0 %vm589_vm4, %v1234_v38  ;;  %12912 = vmatprep.mubr.msk.f32.mxu0 %vm14728_vm2, %v14727_v13  ;;  %v14302_v42 = vpop.eup %14301 }
 0x473   :  { %12935 = vmatprep.subr.mxu0 %v14727_v13  ;;  %v678_v45 = vmul.f32 %v14302_v42, %v15110_v8 }
 0x474   :  { %12936 = vmatpush3.msra.mxu0 %v1232_v40 }
 0x475   :  { %12937 = vmatprep.subr.mxu0 %v14727_v13  ;;  %12913 = vmatmul.mubr.msk.f32.gmra.mxu0 %vm452_vm5, %v677_v41 }
 0x476   :  { %12938 = vmatpush3.msra.mxu0 %v1230_v43  ;;  %12915 = vmatprep.mubr.msk.f32.mxu0 %vm14728_vm2, %v14727_v13 }
 0x477   :  { %12959 = vmatprep.subr.mxu0 %v14727_v13 }
 0x479   :  { %12916 = vmatmul.mubr.msk.f32.gmra.mxu0 %vm452_vm5, %v678_v45 }
 0x47a   :  { %12939 = vmatprep.mubr.msk.f32.mxu0 %vm14728_vm2, %v14727_v13 }
 0x518   :  { %v995_v46 = vpop.f32.mrf.mxu1 }
 0x51a   :  { %v12900_v47 = vpop.f32.mrf.mxu1 }
 0x51c   :  { %v1000_v49 = vpop.f32.mrf.mxu1 }
 0x51e   :  { %v12903_v50 = vpop.f32.mrf.mxu1 }
 0x520   :  { %v1005_v51 = vpop.f32.mrf.mxu1 }
 0x522   :  { %v12906_v53 = vpop.f32.mrf.mxu1 }
 0x524   :  { %v1188_v54 = vpop.f32.mrf.mxu1 }
 0x525   :  { %v1202_v56 = vsel %vm551_vm6, %v1188_v54, -inf }
 0x526   :  { %1203 = vmax.xlane.f32.xlu0 %v1202_v56  ;;  %v12926_v59 = vpop.f32.mrf.mxu1 }
 0x528   :  { %v1193_v62 = vpop.f32.mrf.mxu1 }
 0x529   :  { %v1205_v0 = vsel %vm551_vm6, %v1193_v62, -inf }
 0x52a   :  { %1206 = vmax.xlane.f32.xlu1 %v1205_v0  ;;  %v12929_v1 = vpop.f32.mrf.mxu1 }
 0x52c   :  { %v1198_v2 = vpop.f32.mrf.mxu1 }
 0x52d   :  { %v1208_v3 = vsel %vm558_vm7, %v1198_v2, -inf }
 0x52e   :  { %1209 = vmax.xlane.f32.xlu0 %v1208_v3  ;;  %v12932_v4 = vpop.f32.mrf.mxu1 }
 0x531   :  { %v1084_v5 = vpop.f32.mrf.mxu0 }
 0x532   :  { %v15163_v6 = vadd.f32 %v1084_v5, %v995_v46 }
 0x533   :  { %v12911_v7 = vpop.f32.mrf.mxu0 }
 0x535   :  { %v1089_v8 = vpop.f32.mrf.mxu0 }
 0x536   :  { %v15165_v9 = vadd.f32 %v1089_v8, %v1000_v49 }
 0x537   :  { %v12914_v10 = vpop.f32.mrf.mxu0 }
 0x539   :  { %v1094_v11 = vpop.f32.mrf.mxu0 }
 0x53a   :  { %v15167_v12 = vadd.f32 %v1094_v11, %v1005_v51 }
 0x53b   :  { %1434 = vrot.lane.b32.xlu1 %v14983_v55, %s14731_s20  ;;  %v12917_v14 = vpop.f32.mrf.mxu0 }
 0x53f   :  { %1430 = vrot.lane.b32.xlu1 %v15013_v63, %s14731_s20 }
 0x543   :  { %1561 = vrot.lane.b32.xlu1 %v14975_v48, %s14731_s20 }
 0x544   :  { %1436 = vrot.lane.b32.xlu0 %v14992_v58, %s14731_s20 }
 0x547   :  { %1559 = vrot.lane.b32.xlu1 %v14973_v44, %s14731_s20 }
 0x548   :  { %1428 = vrot.lane.b32.xlu0 %v14990_v57, %s14731_s20 }
 0x54c   :  { %1432 = vrot.lane.b32.xlu0 %v14996_v60, %s14731_s20 }
 0x550   :  { %1563 = vrot.lane.b32.xlu0 %v14977_v52, %s14731_s20 }
 0x5af   :  { %v1204_v16 = vpop.xlane.xlu0 %1203 }
 0x5b0   :  { %v1211_v17 = vsub.f32 %v1188_v54, %v1204_v16 }
 0x5b2   :  { %v1214_v18 = vmul.f32 1.442695, %v1211_v17 }
 0x5b3   :  { %v1207_v19 = vpop.xlane.xlu1 %1206 }
 0x5b4   :  { %14303 = vpow2.f32 %v1214_v18  ;;  %v1212_v20 = vsub.f32 %v1193_v62, %v1207_v19 }
 0x5b6   :  { %v1216_v21 = vmul.f32 1.442695, %v1212_v20 }
 0x5b7   :  { %v1210_v22 = vpop.xlane.xlu0 %1209  ;;  %v1435_v31 = vpop.permute.xlu1 %1434 }
 0x5b8   :  { %14305 = vpow2.f32 %v1216_v21  ;;  %v1213_v23 = vsub.f32 %v1198_v2, %v1210_v22 }
 0x5ba   :  { %v1218_v24 = vmul.f32 1.442695, %v1213_v23 }
 0x5bb   :  { %v1437_v28 = vpop.permute.xlu0 %1436  ;;  %v1431_v34 = vpop.permute.xlu1 %1430 }
 0x5bc   :  { %14307 = vpow2.f32 %v1218_v24 }
 0x5bf   :  { %v1429_v33 = vpop.permute.xlu0 %1428  ;;  %v1562_v37 = vpop.permute.xlu1 %1561 }
 0x5c1   :  { %v14304_v25 = vpop.eup %14303 }
 0x5c2   :  { %12940 = vmatmul.mubr.msk.f32.vlgmr.msra.gmra.mxu0 %vm551_vm6, %v14304_v25  ;;  %v1220_v26 = vsel %vm551_vm6, %v14304_v25, 0.0 }
 0x5c3   :  { %12960 = vmatpush3.xpose.msk.msra.mxu0 %vm452_vm5, %v1439_v15  ;;  %1221 = vadd.xlane.f32.xlu1 %v1220_v26  ;;  %v1433_v35 = vpop.permute.xlu0 %1432  ;;  %v1560_v38 = vpop.permute.xlu1 %1559 }
 0x5c4   :  { %12942 = vmatprep.mubr.msk.f32.mxu0 %vm14728_vm2, %v14727_v13  ;;  %12961 = vmatprep.subr.mxu0 %v14727_v13 }
 0x5c5   :  { %v14306_v27 = vpop.eup %14305 }
 0x5c6   :  { %12943 = vmatmul.mubr.msk.f32.gmra.mxu0 %vm551_vm6, %v14306_v27  ;;  %v1223_v29 = vsel %vm551_vm6, %v14306_v27, 0.0 }
 0x5c7   :  { %12962 = vmatpush3.xpose.msk.msra.mxu0 %vm452_vm5, %v1437_v28  ;;  %1224 = vadd.xlane.f32.xlu0 %v1223_v29  ;;  %v1564_v39 = vpop.permute.xlu0 %1563 }
 0x5c8   :  { %12945 = vmatprep.mubr.msk.f32.mxu0 %vm14728_vm2, %v14727_v13  ;;  %12963 = vmatprep.subr.mxu0 %v14727_v13 }
 0x5c9   :  { %v14308_v30 = vpop.eup %14307 }
 0x5ca   :  { %12946 = vmatmul.mubr.msk.f32.gmra.mxu0 %vm551_vm6, %v14308_v30  ;;  %v1226_v32 = vsel %vm558_vm7, %v14308_v30, 0.0 }
 0x5cb   :  { %12964 = vmatpush3.xpose.msk.msra.mxu0 %vm452_vm5, %v1435_v31  ;;  %1227 = vadd.xlane.f32.xlu0 %v1226_v32 }
 0x5cc   :  { %12965 = vmatprep.mubr.msk.f32.mxu0 %vm14728_vm2, %v14727_v13  ;;  %12989 = vmatprep.subr.mxu0 %v14727_v13 }
 0x5ce   :  { %12966 = vmatmul.mubr.msk.f32.vlgmr.msra.gmra.mxu0 %vm452_vm5, %v1429_v33 }
 0x5cf   :  { %12968 = vmatprep.mubr.msk.f32.mxu0 %vm14728_vm2, %v14727_v13 }
 0x5d2   :  { %12969 = vmatmul.mubr.msk.f32.gmra.mxu0 %vm452_vm5, %v1431_v34 }
 0x5d3   :  { %12971 = vmatprep.mubr.msk.f32.mxu0 %vm14728_vm2, %v14727_v13 }
 0x5d6   :  { %12972 = vmatmul.mubr.msk.f32.gmra.mxu0 %vm452_vm5, %v1433_v35 }
 0x5d7   :  { %12991 = vmatprep.mubr.msk.f32.mxu0 %vm14728_vm2, %v14727_v13 }
 0x64c   :  { %v1222_v40 = vpop.xlane.xlu1 %1221 }
 0x64d   :  { %14309 = vrcp.f32 %v1222_v40  ;;  %v11777_v40 = vld [vmem:[%s17623_s7 + $0x18] sm:$0xff] }
 0x64e   :  { %12990 = vmatpush3.msra.mxu0 %v11777_v40 }
 0x64f   :  { %13015 = vmatprep.subr.mxu0 %v14727_v13 }
 0x650   :  { %v1225_v41 = vpop.xlane.xlu0 %1224 }
 0x651   :  { %14311 = vrcp.f32 %v1225_v41 }
 0x654   :  { %v1228_v42 = vpop.xlane.xlu0 %1227 }
 0x655   :  { %14313 = vrcp.f32 %v1228_v42 }
 0x65a   :  { %v14310_v43 = vpop.eup %14309 }
 0x65e   :  { %v14312_v49 = vpop.eup %14311 }
 0x662   :  { %v14314_v54 = vpop.eup %14313 }
 0x682   :  { %v1314_v45 = vpop.f32.mrf.mxu0 }
 0x683   :  { %v1331_v46 = vmul.f32 %v14310_v43, %v1314_v45 }
 0x684   :  { %v12941_v47 = vpop.f32.mrf.mxu0 }
 0x685   :  { %12951 = vmatmul.mubr.msk.f32.vlgmr.msra.gmra.mxu1 %vm452_vm5, %v1331_v46 }
 0x686   :  { %12975 = vmatpush3.msk.msra.mxu1 %vm589_vm4, %v1564_v39  ;;  %v1319_v50 = vpop.f32.mrf.mxu0  ;;  %12953 = vmatprep.mubr.msk.f32.mxu1 %vm14728_vm2, %v14727_v13 }
 0x687   :  { %v1332_v51 = vmul.f32 %v14312_v49, %v1319_v50  ;;  %12976 = vmatprep.subr.mxu1 %v14727_v13 }
 0x688   :  { %12977 = vmatpush3.msra.mxu1 %v1562_v37  ;;  %v12944_v53 = vpop.f32.mrf.mxu0 }
 0x689   :  { %12978 = vmatprep.subr.mxu1 %v14727_v13  ;;  %12954 = vmatmul.mubr.msk.f32.gmra.mxu1 %vm452_vm5, %v1332_v51 }
 0x68a   :  { %12979 = vmatpush3.msra.mxu1 %v1560_v38  ;;  %v1324_v56 = vpop.f32.mrf.mxu0  ;;  %12956 = vmatprep.mubr.msk.f32.mxu1 %vm14728_vm2, %v14727_v13 }
 0x68b   :  { %v1333_v59 = vmul.f32 %v14314_v54, %v1324_v56  ;;  %13000 = vmatprep.subr.mxu1 %v14727_v13 }
 0x68c   :  { %v12947_v62 = vpop.f32.mrf.mxu0 }
 0x68d   :  { %12957 = vmatmul.mubr.msk.f32.gmra.mxu1 %vm452_vm5, %v1333_v59 }
 0x68e   :  { %v1518_v0 = vpop.f32.mrf.mxu0  ;;  %12980 = vmatprep.mubr.msk.f32.mxu1 %vm14728_vm2, %v14727_v13 }
 0x68f   :  { %v1532_v1 = vsel %vm551_vm6, %v1518_v0, -inf }
 0x690   :  { %1533 = vmax.xlane.f32.xlu1 %v1532_v1  ;;  %v12967_v2 = vpop.f32.mrf.mxu0 }
 0x692   :  { %v1523_v3 = vpop.f32.mrf.mxu0 }
 0x693   :  { %v1535_v4 = vsel %vm551_vm6, %v1523_v3, -inf }
 0x694   :  { %1536 = vmax.xlane.f32.xlu0 %v1535_v4  ;;  %v12970_v5 = vpop.f32.mrf.mxu0 }
 0x696   :  { %v1528_v7 = vpop.f32.mrf.mxu0 }
 0x697   :  { %v1538_v10 = vsel %vm558_vm7, %v1528_v7, -inf }
 0x698   :  { %v12973_v8 = vpop.f32.mrf.mxu0 }
 0x6a1   :  { %1766 = vrot.lane.b32.xlu1 %v14992_v58, %s14732_s24 }
 0x6aa   :  { %1768 = vrot.lane.b32.xlu0 %v14998_v61, %s14732_s24 }
 0x6ae   :  { %1764 = vrot.lane.b32.xlu0 %v14983_v55, %s14732_s24 }
 0x6b2   :  { %1760 = vrot.lane.b32.xlu0 %v15013_v63, %s14732_s24 }
 0x6c5   :  { %1539 = vmax.xlane.f32.xlu1 %v1538_v10 }
 0x6d6   :  { %1758 = vrot.lane.b32.xlu1 %v14990_v57, %s14732_s24 }
 0x6da   :  { %1762 = vrot.lane.b32.xlu1 %v14996_v60, %s14732_s24 }
 0x6de   :  { %1893 = vrot.lane.b32.xlu1 %v14977_v52, %s14732_s24 }
 0x6e2   :  { %1889 = vrot.lane.b32.xlu1 %v14973_v44, %s14732_s24 }
 0x719   :  { %v1534_v11 = vpop.xlane.xlu1 %1533 }
 0x71a   :  { %v1541_v14 = vsub.f32 %v1518_v0, %v1534_v11 }
 0x71c   :  { %v1544_v15 = vmul.f32 1.442695, %v1541_v14 }
 0x71d   :  { %v1537_v16 = vpop.xlane.xlu0 %1536  ;;  %v1767_v23 = vpop.permute.xlu1 %1766 }
 0x71e   :  { %14315 = vpow2.f32 %v1544_v15  ;;  %v1542_v17 = vsub.f32 %v1523_v3, %v1537_v16 }
 0x720   :  { %v1546_v18 = vmul.f32 1.442695, %v1542_v17 }
 0x721   :  { %v1769_v20 = vpop.permute.xlu0 %1768 }
 0x722   :  { %14317 = vpow2.f32 %v1546_v18 }
 0x725   :  { %v1765_v25 = vpop.permute.xlu0 %1764 }
 0x72b   :  { %v14316_v19 = vpop.eup %14315 }
 0x72c   :  { %12981 = vmatmul.mubr.msk.f32.vlgmr.msra.gmra.mxu1 %vm551_vm6, %v14316_v19  ;;  %v1550_v21 = vsel %vm551_vm6, %v14316_v19, 0.0 }
 0x72d   :  { %13001 = vmatpush3.xpose.msk.msra.mxu1 %vm452_vm5, %v1769_v20  ;;  %1551 = vadd.xlane.f32.xlu0 %v1550_v21 }
 0x72e   :  { %12983 = vmatprep.mubr.msk.f32.mxu1 %vm14728_vm2, %v14727_v13  ;;  %13002 = vmatprep.subr.mxu1 %v14727_v13 }
 0x72f   :  { %v14318_v22 = vpop.eup %14317 }
 0x730   :  { %12984 = vmatmul.mubr.msk.f32.gmra.mxu1 %vm551_vm6, %v14318_v22  ;;  %v1553_v24 = vsel %vm551_vm6, %v14318_v22, 0.0 }
 0x731   :  { %13003 = vmatpush3.xpose.msk.msra.mxu1 %vm452_vm5, %v1767_v23  ;;  %1554 = vadd.xlane.f32.xlu1 %v1553_v24 }
 0x732   :  { %13004 = vmatprep.subr.mxu1 %v14727_v13  ;;  %12986 = vmatprep.mubr.msk.f32.mxu1 %vm14728_vm2, %v14727_v13 }
 0x735   :  { %13005 = vmatpush3.xpose.msk.msra.mxu1 %vm452_vm5, %v1765_v25 }
 0x736   :  { %13030 = vmatprep.subr.mxu1 %v14727_v13 }
 0x742   :  { %2098 = vrot.lane.b32.xlu1 %v14998_v61, %s14733_s25 }
 0x743   :  { %1891 = vrot.lane.b32.xlu0 %v14975_v48, %s14732_s24 }
 0x745   :  { %v1411_v26 = vpop.f32.mrf.mxu1 }
 0x746   :  { %v15267_v27 = vadd.f32 %v1411_v26, %v15163_v6 }
 0x747   :  { %v12952_v28 = vpop.f32.mrf.mxu1 }
 0x749   :  { %v1416_v29 = vpop.f32.mrf.mxu1 }
 0x74a   :  { %v15270_v30 = vadd.f32 %v1416_v29, %v15165_v9 }
 0x74b   :  { %v12955_v31 = vpop.f32.mrf.mxu1 }
 0x74d   :  { %v1421_v32 = vpop.f32.mrf.mxu1 }
 0x74e   :  { %v15273_v33 = vadd.f32 %v1421_v32, %v15167_v12  ;;  %v1540_v34 = vpop.xlane.xlu1 %1539  ;;  %v1761_v12 = vpop.permute.xlu0 %1760 }
 0x74f   :  { %v1543_v35 = vsub.f32 %v1528_v7, %v1540_v34  ;;  %v12958_v36 = vpop.f32.mrf.mxu1 }
 0x751   :  { %v1548_v37 = vmul.f32 1.442695, %v1543_v35 }
 0x752   :  { %v1759_v9 = vpop.permute.xlu1 %1758 }
 0x753   :  { %14319 = vpow2.f32 %v1548_v37 }
 0x756   :  { %v1763_v39 = vpop.permute.xlu1 %1762 }
 0x75a   :  { %v1894_v41 = vpop.permute.xlu1 %1893 }
 0x75e   :  { %v1890_v42 = vpop.permute.xlu1 %1889 }
 0x760   :  { %v14320_v38 = vpop.eup %14319 }
 0x761   :  { %12987 = vmatmul.mubr.msk.f32.gmra.mxu1 %vm551_vm6, %v14320_v38  ;;  %v1556_v6 = vsel %vm558_vm7, %v14320_v38, 0.0 }
 0x762   :  { %1557 = vadd.xlane.f32.xlu0 %v1556_v6  ;;  %13006 = vmatprep.mubr.msk.f32.mxu1 %vm14728_vm2, %v14727_v13 }
 0x765   :  { %13007 = vmatmul.mubr.msk.f32.vlgmr.msra.gmra.mxu1 %vm452_vm5, %v1759_v9 }
 0x766   :  { %13009 = vmatprep.mubr.msk.f32.mxu1 %vm14728_vm2, %v14727_v13 }
 0x769   :  { %13010 = vmatmul.mubr.msk.f32.gmra.mxu1 %vm452_vm5, %v1761_v12 }
 0x76a   :  { %13012 = vmatprep.mubr.msk.f32.mxu1 %vm14728_vm2, %v14727_v13 }
 0x76d   :  { %13013 = vmatmul.mubr.msk.f32.gmra.mxu1 %vm452_vm5, %v1763_v39 }
 0x76e   :  { %13032 = vmatprep.mubr.msk.f32.mxu1 %vm14728_vm2, %v14727_v13 }
 0x7b6   :  { %v1552_v43 = vpop.xlane.xlu0 %1551 }
 0x7b7   :  { %14321 = vrcp.f32 %v1552_v43 }
 0x7ba   :  { %v1555_v45 = vpop.xlane.xlu1 %1554  ;;  %v1892_v54 = vpop.permute.xlu0 %1891 }
 0x7bb   :  { %14323 = vrcp.f32 %v1555_v45 }
 0x7be   :  { %v2099_v18 = vpop.permute.xlu1 %2098 }
 0x7c4   :  { %v14322_v46 = vpop.eup %14321 }
 0x7c8   :  { %v14324_v51 = vpop.eup %14323 }
 0x7eb   :  { %v1558_v62 = vpop.xlane.xlu0 %1557 }
 0x7ec   :  { %v1644_v47 = vpop.f32.mrf.mxu1  ;;  %14325 = vrcp.f32 %v1558_v62 }
 0x7ed   :  { %v1661_v49 = vmul.f32 %v14322_v46, %v1644_v47  ;;  %v11791_v46 = vld [vmem:[%s17623_s7 + $0x20] sm:$0xff] }
 0x7ee   :  { %v12982_v50 = vpop.f32.mrf.mxu1  ;;  %13031 = vmatpush3.msra.mxu1 %v11791_v46 }
 0x7ef   :  { %12992 = vmatmul.mubr.msk.f32.vlgmr.msra.gmra.mxu0 %vm452_vm5, %v1661_v49  ;;  %13056 = vmatprep.subr.mxu1 %v14727_v13 }
 0x7f0   :  { %13016 = vmatpush3.msk.msra.mxu0 %vm589_vm4, %v1894_v41  ;;  %v1649_v53 = vpop.f32.mrf.mxu1  ;;  %12994 = vmatprep.mubr.msk.f32.mxu0 %vm14728_vm2, %v14727_v13 }
 0x7f1   :  { %v1662_v56 = vmul.f32 %v14324_v51, %v1649_v53  ;;  %13017 = vmatprep.subr.mxu0 %v14727_v13 }
 0x7f2   :  { %13018 = vmatpush3.msra.mxu0 %v1892_v54  ;;  %v12985_v59 = vpop.f32.mrf.mxu1 }
 0x7f3   :  { %13019 = vmatprep.subr.mxu0 %v14727_v13  ;;  %12995 = vmatmul.mubr.msk.f32.gmra.mxu0 %vm452_vm5, %v1662_v56 }
 0x7f4   :  { %13020 = vmatpush3.msra.mxu0 %v1890_v42  ;;  %12997 = vmatprep.mubr.msk.f32.mxu0 %vm14728_vm2, %v14727_v13 }
 0x7f5   :  { %13041 = vmatprep.subr.mxu0 %v14727_v13 }
 0x7f9   :  { %v14326_v0 = vpop.eup %14325 }
 0x821   :  { %v1654_v1 = vpop.f32.mrf.mxu1 }
 0x822   :  { %v1663_v2 = vmul.f32 %v14326_v0, %v1654_v1 }
 0x823   :  { %v12988_v3 = vpop.f32.mrf.mxu1 }
 0x824   :  { %12998 = vmatmul.mubr.msk.f32.gmra.mxu0 %vm452_vm5, %v1663_v2 }
 0x825   :  { %v1848_v4 = vpop.f32.mrf.mxu1  ;;  %13021 = vmatprep.mubr.msk.f32.mxu0 %vm14728_vm2, %v14727_v13 }
 0x826   :  { %v1862_v5 = vsel %vm551_vm6, %v1848_v4, -inf }
 0x827   :  { %1863 = vmax.xlane.f32.xlu0 %v1862_v5  ;;  %v13008_v7 = vpop.f32.mrf.mxu1 }
 0x829   :  { %v1853_v8 = vpop.f32.mrf.mxu1 }
 0x82a   :  { %v1865_v10 = vsel %vm551_vm6, %v1853_v8, -inf }
 0x82b   :  { %1866 = vmax.xlane.f32.xlu1 %v1865_v10  ;;  %v13011_v11 = vpop.f32.mrf.mxu1 }
 0x82d   :  { %v1858_v14 = vpop.f32.mrf.mxu1 }
 0x82e   :  { %v1868_v15 = vsel %vm558_vm7, %v1858_v14, -inf }
 0x82f   :  { %1869 = vmax.xlane.f32.xlu0 %v1868_v15  ;;  %v13014_v16 = vpop.f32.mrf.mxu1 }
 0x83c   :  { %2094 = vrot.lane.b32.xlu1 %v14983_v55, %s14733_s25 }
 0x840   :  { %2090 = vrot.lane.b32.xlu1 %v15013_v63, %s14733_s25 }
 0x844   :  { %2221 = vrot.lane.b32.xlu1 %v14975_v48, %s14733_s25 }
 0x845   :  { %2096 = vrot.lane.b32.xlu0 %v14992_v58, %s14733_s25 }
 0x848   :  { %2219 = vrot.lane.b32.xlu1 %v14973_v44, %s14733_s25 }
 0x849   :  { %2088 = vrot.lane.b32.xlu0 %v14990_v57, %s14733_s25 }
 0x84d   :  { %2092 = vrot.lane.b32.xlu0 %v14996_v60, %s14733_s25 }
 0x851   :  { %2223 = vrot.lane.b32.xlu0 %v14977_v52, %s14733_s25 }
 0x8af   :  { %v1741_v17 = vpop.f32.mrf.mxu0 }
 0x8b0   :  { %v15325_v19 = vadd.f32 %v1741_v17, %v15267_v27  ;;  %v1864_v20 = vpop.xlane.xlu0 %1863 }
 0x8b1   :  { %v1871_v21 = vsub.f32 %v1848_v4, %v1864_v20  ;;  %v12993_v22 = vpop.f32.mrf.mxu0 }
 0x8b3   :  { %v1874_v23 = vmul.f32 1.442695, %v1871_v21  ;;  %v1746_v24 = vpop.f32.mrf.mxu0 }
 0x8b4   :  { %v15328_v25 = vadd.f32 %v1746_v24, %v15270_v30  ;;  %v1867_v26 = vpop.xlane.xlu1 %1866 }
 0x8b5   :  { %14327 = vpow2.f32 %v1874_v23  ;;  %v1872_v28 = vsub.f32 %v1853_v8, %v1867_v26  ;;  %v12996_v29 = vpop.f32.mrf.mxu0 }
 0x8b7   :  { %v1876_v31 = vmul.f32 1.442695, %v1872_v28 }
 0x8b8   :  { %v1870_v32 = vpop.xlane.xlu0 %1869  ;;  %v2095_v9 = vpop.permute.xlu1 %2094 }
 0x8b9   :  { %14329 = vpow2.f32 %v1876_v31  ;;  %v1873_v34 = vsub.f32 %v1858_v14, %v1870_v32 }
 0x8bb   :  { %v1878_v35 = vmul.f32 1.442695, %v1873_v34 }
 0x8bc   :  { %v2097_v37 = vpop.permute.xlu0 %2096  ;;  %v2091_v40 = vpop.permute.xlu1 %2090 }
 0x8bd   :  { %14331 = vpow2.f32 %v1878_v35 }
 0x8c0   :  { %v2089_v39 = vpop.permute.xlu0 %2088  ;;  %v2222_v47 = vpop.permute.xlu1 %2221 }
 0x8c2   :  { %v14328_v27 = vpop.eup %14327 }
 0x8c3   :  { %13022 = vmatmul.mubr.msk.f32.vlgmr.msra.gmra.mxu0 %vm551_vm6, %v14328_v27  ;;  %v1880_v36 = vsel %vm551_vm6, %v14328_v27, 0.0 }
 0x8c4   :  { %13042 = vmatpush3.xpose.msk.msra.mxu0 %vm452_vm5, %v2099_v18  ;;  %1881 = vadd.xlane.f32.xlu1 %v1880_v36  ;;  %v2093_v41 = vpop.permute.xlu0 %2092  ;;  %v2220_v49 = vpop.permute.xlu1 %2219 }
 0x8c5   :  { %13024 = vmatprep.mubr.msk.f32.mxu0 %vm14728_vm2, %v14727_v13  ;;  %13043 = vmatprep.subr.mxu0 %v14727_v13 }
 0x8c6   :  { %v14330_v30 = vpop.eup %14329 }
 0x8c7   :  { %13025 = vmatmul.mubr.msk.f32.gmra.mxu0 %vm551_vm6, %v14330_v30  ;;  %v1883_v38 = vsel %vm551_vm6, %v14330_v30, 0.0 }
 0x8c8   :  { %13044 = vmatpush3.xpose.msk.msra.mxu0 %vm452_vm5, %v2097_v37  ;;  %1884 = vadd.xlane.f32.xlu0 %v1883_v38  ;;  %v2224_v50 = vpop.permute.xlu0 %2223 }
 0x8c9   :  { %13027 = vmatprep.mubr.msk.f32.mxu0 %vm14728_vm2, %v14727_v13  ;;  %13045 = vmatprep.subr.mxu0 %v14727_v13 }
 0x8ca   :  { %v14332_v6 = vpop.eup %14331 }
 0x8cb   :  { %13028 = vmatmul.mubr.msk.f32.gmra.mxu0 %vm551_vm6, %v14332_v6  ;;  %v1886_v12 = vsel %vm558_vm7, %v14332_v6, 0.0 }
 0x8cc   :  { %13046 = vmatpush3.xpose.msk.msra.mxu0 %vm452_vm5, %v2095_v9  ;;  %1887 = vadd.xlane.f32.xlu0 %v1886_v12 }
 0x8cd   :  { %13047 = vmatprep.mubr.msk.f32.mxu0 %vm14728_vm2, %v14727_v13  ;;  %13071 = vmatprep.subr.mxu0 %v14727_v13 }
 0x8cf   :  { %13048 = vmatmul.mubr.msk.f32.vlgmr.msra.gmra.mxu0 %vm452_vm5, %v2089_v39 }
 0x8d0   :  { %13050 = vmatprep.mubr.msk.f32.mxu0 %vm14728_vm2, %v14727_v13 }
 0x8d3   :  { %13051 = vmatmul.mubr.msk.f32.gmra.mxu0 %vm452_vm5, %v2091_v40 }
 0x8d4   :  { %13053 = vmatprep.mubr.msk.f32.mxu0 %vm14728_vm2, %v14727_v13 }
 0x8d7   :  { %13054 = vmatmul.mubr.msk.f32.gmra.mxu0 %vm452_vm5, %v2093_v41 }
 0x8d8   :  { %13073 = vmatprep.mubr.msk.f32.mxu0 %vm14728_vm2, %v14727_v13 }
 0x8e4   :  { %v1751_v42 = vpop.f32.mrf.mxu0 }
 0x8e5   :  { %v15358_v43 = vadd.f32 %v1751_v42, %v15273_v33 }
 0x8e6   :  { %v12999_v45 = vpop.f32.mrf.mxu0 }
 0x94d   :  { %v1882_v51 = vpop.xlane.xlu1 %1881 }
 0x94e   :  { %14333 = vrcp.f32 %v1882_v51  ;;  %v11805_v51 = vld [vmem:[%s17623_s7 + $0x28] sm:$0xff] }
 0x94f   :  { %13072 = vmatpush3.msra.mxu0 %v11805_v51 }
 0x950   :  { %13097 = vmatprep.subr.mxu0 %v14727_v13 }
 0x951   :  { %v1885_v53 = vpop.xlane.xlu0 %1884 }
 0x952   :  { %14335 = vrcp.f32 %v1885_v53 }
 0x955   :  { %v1888_v54 = vpop.xlane.xlu0 %1887 }
 0x956   :  { %14337 = vrcp.f32 %v1888_v54 }
 0x95b   :  { %v14334_v56 = vpop.eup %14333 }
 0x95f   :  { %v14336_v0 = vpop.eup %14335 }
 0x963   :  { %v14338_v4 = vpop.eup %14337 }
 0x983   :  { %v1974_v33 = vpop.f32.mrf.mxu0 }
 0x984   :  { %v1991_v59 = vmul.f32 %v14334_v56, %v1974_v33 }
 0x985   :  { %v13023_v62 = vpop.f32.mrf.mxu0 }
 0x986   :  { %13033 = vmatmul.mubr.msk.f32.vlgmr.msra.gmra.mxu1 %vm452_vm5, %v1991_v59 }
 0x987   :  { %13057 = vmatpush3.msk.msra.mxu1 %vm589_vm4, %v2224_v50  ;;  %v1979_v1 = vpop.f32.mrf.mxu0  ;;  %13035 = vmatprep.mubr.msk.f32.mxu1 %vm14728_vm2, %v14727_v13 }
 0x988   :  { %v1992_v2 = vmul.f32 %v14336_v0, %v1979_v1  ;;  %13058 = vmatprep.subr.mxu1 %v14727_v13 }
 0x989   :  { %13059 = vmatpush3.msra.mxu1 %v2222_v47  ;;  %v13026_v3 = vpop.f32.mrf.mxu0 }
 0x98a   :  { %13060 = vmatprep.subr.mxu1 %v14727_v13  ;;  %13036 = vmatmul.mubr.msk.f32.gmra.mxu1 %vm452_vm5, %v1992_v2 }
 0x98b   :  { %13061 = vmatpush3.msra.mxu1 %v2220_v49  ;;  %v1984_v5 = vpop.f32.mrf.mxu0  ;;  %13038 = vmatprep.mubr.msk.f32.mxu1 %vm14728_vm2, %v14727_v13 }
 0x98c   :  { %v1993_v7 = vmul.f32 %v14338_v4, %v1984_v5  ;;  %13082 = vmatprep.subr.mxu1 %v14727_v13 }
 0x98d   :  { %v13029_v8 = vpop.f32.mrf.mxu0 }
 0x98e   :  { %13039 = vmatmul.mubr.msk.f32.gmra.mxu1 %vm452_vm5, %v1993_v7 }
 0x98f   :  { %v2178_v10 = vpop.f32.mrf.mxu0  ;;  %13062 = vmatprep.mubr.msk.f32.mxu1 %vm14728_vm2, %v14727_v13 }
 0x990   :  { %v2192_v11 = vsel %vm551_vm6, %v2178_v10, -inf }
 0x991   :  { %2193 = vmax.xlane.f32.xlu1 %v2192_v11  ;;  %v13049_v14 = vpop.f32.mrf.mxu0 }
 0x993   :  { %v2183_v15 = vpop.f32.mrf.mxu0 }
 0x994   :  { %v2195_v16 = vsel %vm551_vm6, %v2183_v15, -inf }
 0x995   :  { %2196 = vmax.xlane.f32.xlu0 %v2195_v16  ;;  %v13052_v17 = vpop.f32.mrf.mxu0 }
 0x997   :  { %v2188_v18 = vpop.f32.mrf.mxu0 }
 0x998   :  { %v2198_v21 = vsel %vm558_vm7, %v2188_v18, -inf }
 0x999   :  { %v13055_v20 = vpop.f32.mrf.mxu0 }
 0x9a2   :  { %2426 = vrot.lane.b32.xlu1 %v14992_v58, %s14734_s30 }
 0x9ab   :  { %2428 = vrot.lane.b32.xlu0 %v14998_v61, %s14734_s30 }
 0x9af   :  { %2424 = vrot.lane.b32.xlu0 %v14983_v55, %s14734_s30 }
 0x9b3   :  { %2420 = vrot.lane.b32.xlu0 %v15013_v63, %s14734_s30 }
 0x9c6   :  { %2199 = vmax.xlane.f32.xlu1 %v2198_v21 }
 0x9d7   :  { %2418 = vrot.lane.b32.xlu1 %v14990_v57, %s14734_s30 }
 0x9db   :  { %2422 = vrot.lane.b32.xlu1 %v14996_v60, %s14734_s30 }
 0x9df   :  { %2553 = vrot.lane.b32.xlu1 %v14977_v52, %s14734_s30 }
 0x9e3   :  { %2549 = vrot.lane.b32.xlu1 %v14973_v44, %s14734_s30 }
 0xa1a   :  { %v2194_v22 = vpop.xlane.xlu1 %2193 }
 0xa1b   :  { %v2201_v23 = vsub.f32 %v2178_v10, %v2194_v22 }
 0xa1d   :  { %v2204_v24 = vmul.f32 1.442695, %v2201_v23 }
 0xa1e   :  { %v2197_v26 = vpop.xlane.xlu0 %2196  ;;  %v2427_v27 = vpop.permute.xlu1 %2426 }
 0xa1f   :  { %14339 = vpow2.f32 %v2204_v24  ;;  %v2202_v28 = vsub.f32 %v2183_v15, %v2197_v26 }
 0xa21   :  { %v2206_v29 = vmul.f32 1.442695, %v2202_v28 }
 0xa22   :  { %v2429_v32 = vpop.permute.xlu0 %2428 }
 0xa23   :  { %14341 = vpow2.f32 %v2206_v29 }
 0xa26   :  { %v2425_v30 = vpop.permute.xlu0 %2424 }
 0xa2c   :  { %v14340_v31 = vpop.eup %14339 }
 0xa2d   :  { %13063 = vmatmul.mubr.msk.f32.vlgmr.msra.gmra.mxu1 %vm551_vm6, %v14340_v31  ;;  %v2210_v34 = vsel %vm551_vm6, %v14340_v31, 0.0 }
 0xa2e   :  { %13083 = vmatpush3.xpose.msk.msra.mxu1 %vm452_vm5, %v2429_v32  ;;  %2211 = vadd.xlane.f32.xlu0 %v2210_v34 }
 0xa2f   :  { %13065 = vmatprep.mubr.msk.f32.mxu1 %vm14728_vm2, %v14727_v13  ;;  %13084 = vmatprep.subr.mxu1 %v14727_v13 }
 0xa30   :  { %v14342_v35 = vpop.eup %14341 }
 0xa31   :  { %13066 = vmatmul.mubr.msk.f32.gmra.mxu1 %vm551_vm6, %v14342_v35  ;;  %v2213_v36 = vsel %vm551_vm6, %v14342_v35, 0.0 }
 0xa32   :  { %13085 = vmatpush3.xpose.msk.msra.mxu1 %vm452_vm5, %v2427_v27  ;;  %2214 = vadd.xlane.f32.xlu1 %v2213_v36 }
 0xa33   :  { %13086 = vmatprep.subr.mxu1 %v14727_v13  ;;  %13068 = vmatprep.mubr.msk.f32.mxu1 %vm14728_vm2, %v14727_v13 }
 0xa36   :  { %13087 = vmatpush3.xpose.msk.msra.mxu1 %vm452_vm5, %v2425_v30 }
 0xa37   :  { %13112 = vmatprep.subr.mxu1 %v14727_v13 }
 0xa43   :  { %2758 = vrot.lane.b32.xlu1 %v14998_v61, %s14735_s0 }
 0xa44   :  { %2551 = vrot.lane.b32.xlu0 %v14975_v48, %s14734_s30 }
 0xa46   :  { %v2071_v37 = vpop.f32.mrf.mxu1 }
 0xa47   :  { %v15415_v38 = vadd.f32 %v2071_v37, %v15325_v19 }
 0xa48   :  { %v13034_v6 = vpop.f32.mrf.mxu1 }
 0xa4a   :  { %v2076_v9 = vpop.f32.mrf.mxu1 }
 0xa4b   :  { %v15418_v12 = vadd.f32 %v2076_v9, %v15328_v25 }
 0xa4c   :  { %v13037_v39 = vpop.f32.mrf.mxu1 }
 0xa4e   :  { %v2081_v40 = vpop.f32.mrf.mxu1 }
 0xa4f   :  { %v15421_v41 = vadd.f32 %v2081_v40, %v15358_v43  ;;  %v2200_v42 = vpop.xlane.xlu1 %2199  ;;  %v2421_v43 = vpop.permute.xlu0 %2420 }
 0xa50   :  { %v2203_v45 = vsub.f32 %v2188_v18, %v2200_v42  ;;  %v13040_v46 = vpop.f32.mrf.mxu1 }
 0xa52   :  { %v2208_v47 = vmul.f32 1.442695, %v2203_v45 }
 0xa53   :  { %v2419_v25 = vpop.permute.xlu1 %2418 }
 0xa54   :  { %14343 = vpow2.f32 %v2208_v47 }
 0xa57   :  { %v2423_v50 = vpop.permute.xlu1 %2422 }
 0xa5b   :  { %v2554_v53 = vpop.permute.xlu1 %2553 }
 0xa5f   :  { %v2550_v54 = vpop.permute.xlu1 %2549 }
 0xa61   :  { %v14344_v49 = vpop.eup %14343 }
 0xa62   :  { %13069 = vmatmul.mubr.msk.f32.gmra.mxu1 %vm551_vm6, %v14344_v49  ;;  %v2216_v19 = vsel %vm558_vm7, %v14344_v49, 0.0 }
 0xa63   :  { %2217 = vadd.xlane.f32.xlu0 %v2216_v19  ;;  %13088 = vmatprep.mubr.msk.f32.mxu1 %vm14728_vm2, %v14727_v13 }
 0xa66   :  { %13089 = vmatmul.mubr.msk.f32.vlgmr.msra.gmra.mxu1 %vm452_vm5, %v2419_v25 }
 0xa67   :  { %13091 = vmatprep.mubr.msk.f32.mxu1 %vm14728_vm2, %v14727_v13 }
 0xa6a   :  { %13092 = vmatmul.mubr.msk.f32.gmra.mxu1 %vm452_vm5, %v2421_v43 }
 0xa6b   :  { %13094 = vmatprep.mubr.msk.f32.mxu1 %vm14728_vm2, %v14727_v13 }
 0xa6e   :  { %13095 = vmatmul.mubr.msk.f32.gmra.mxu1 %vm452_vm5, %v2423_v50 }
 0xa6f   :  { %13114 = vmatprep.mubr.msk.f32.mxu1 %vm14728_vm2, %v14727_v13 }
 0xab7   :  { %v2212_v56 = vpop.xlane.xlu0 %2211 }
 0xab8   :  { %14345 = vrcp.f32 %v2212_v56 }
 0xabb   :  { %v2215_v33 = vpop.xlane.xlu1 %2214  ;;  %v2552_v4 = vpop.permute.xlu0 %2551 }
 0xabc   :  { %14347 = vrcp.f32 %v2215_v33 }
 0xabf   :  { %v2759_v29 = vpop.permute.xlu1 %2758 }
 0xac5   :  { %v14346_v59 = vpop.eup %14345 }
 0xac9   :  { %v14348_v2 = vpop.eup %14347 }
 0xaec   :  { %v2218_v8 = vpop.xlane.xlu0 %2217 }
 0xaed   :  { %v2304_v62 = vpop.f32.mrf.mxu1  ;;  %14349 = vrcp.f32 %v2218_v8 }
 0xaee   :  { %v2321_v0 = vmul.f32 %v14346_v59, %v2304_v62  ;;  %v11819_v59 = vld [vmem:[%s17623_s7 + $0x30] sm:$0xff] }
 0xaef   :  { %v13064_v1 = vpop.f32.mrf.mxu1  ;;  %13113 = vmatpush3.msra.mxu1 %v11819_v59 }
 0xaf0   :  { %13074 = vmatmul.mubr.msk.f32.vlgmr.msra.gmra.mxu0 %vm452_vm5, %v2321_v0  ;;  %13138 = vmatprep.subr.mxu1 %v14727_v13 }
 0xaf1   :  { %13098 = vmatpush3.msk.msra.mxu0 %vm589_vm4, %v2554_v53  ;;  %v2309_v3 = vpop.f32.mrf.mxu1  ;;  %13076 = vmatprep.mubr.msk.f32.mxu0 %vm14728_vm2, %v14727_v13 }
 0xaf2   :  { %v2322_v5 = vmul.f32 %v14348_v2, %v2309_v3  ;;  %13099 = vmatprep.subr.mxu0 %v14727_v13 }
 0xaf3   :  { %13100 = vmatpush3.msra.mxu0 %v2552_v4  ;;  %v13067_v7 = vpop.f32.mrf.mxu1 }
 0xaf4   :  { %13101 = vmatprep.subr.mxu0 %v14727_v13  ;;  %13077 = vmatmul.mubr.msk.f32.gmra.mxu0 %vm452_vm5, %v2322_v5 }
 0xaf5   :  { %13102 = vmatpush3.msra.mxu0 %v2550_v54  ;;  %13079 = vmatprep.mubr.msk.f32.mxu0 %vm14728_vm2, %v14727_v13 }
 0xaf6   :  { %13123 = vmatprep.subr.mxu0 %v14727_v13 }
 0xafa   :  { %v14350_v10 = vpop.eup %14349 }
 0xb22   :  { %v2314_v11 = vpop.f32.mrf.mxu1 }
 0xb23   :  { %v2323_v14 = vmul.f32 %v14350_v10, %v2314_v11 }
 0xb24   :  { %v13070_v15 = vpop.f32.mrf.mxu1 }
 0xb25   :  { %13080 = vmatmul.mubr.msk.f32.gmra.mxu0 %vm452_vm5, %v2323_v14 }
 0xb26   :  { %v2508_v16 = vpop.f32.mrf.mxu1  ;;  %13103 = vmatprep.mubr.msk.f32.mxu0 %vm14728_vm2, %v14727_v13 }
 0xb27   :  { %v2522_v17 = vsel %vm551_vm6, %v2508_v16, -inf }
 0xb28   :  { %2523 = vmax.xlane.f32.xlu0 %v2522_v17  ;;  %v13090_v18 = vpop.f32.mrf.mxu1 }
 0xb2a   :  { %v2513_v20 = vpop.f32.mrf.mxu1 }
 0xb2b   :  { %v2525_v21 = vsel %vm551_vm6, %v2513_v20, -inf }
 0xb2c   :  { %2526 = vmax.xlane.f32.xlu1 %v2525_v21  ;;  %v13093_v22 = vpop.f32.mrf.mxu1 }
 0xb2e   :  { %v2518_v23 = vpop.f32.mrf.mxu1 }
 0xb2f   :  { %v2528_v24 = vsel %vm558_vm7, %v2518_v23, -inf }
 0xb30   :  { %2529 = vmax.xlane.f32.xlu0 %v2528_v24  ;;  %v13096_v26 = vpop.f32.mrf.mxu1 }
 0xb3d   :  { %2754 = vrot.lane.b32.xlu1 %v14983_v55, %s14735_s0 }
 0xb41   :  { %2750 = vrot.lane.b32.xlu1 %v15013_v63, %s14735_s0 }
 0xb45   :  { %2881 = vrot.lane.b32.xlu1 %v14975_v48, %s14735_s0 }
 0xb46   :  { %2756 = vrot.lane.b32.xlu0 %v14992_v58, %s14735_s0 }
 0xb49   :  { %2879 = vrot.lane.b32.xlu1 %v14973_v44, %s14735_s0 }
 0xb4a   :  { %2748 = vrot.lane.b32.xlu0 %v14990_v57, %s14735_s0 }
 0xb4e   :  { %2752 = vrot.lane.b32.xlu0 %v14996_v60, %s14735_s0 }
 0xb52   :  { %2883 = vrot.lane.b32.xlu0 %v14977_v52, %s14735_s0 }
 0xbb0   :  { %v2401_v28 = vpop.f32.mrf.mxu0 }
 0xbb1   :  { %v15473_v31 = vadd.f32 %v2401_v28, %v15415_v38  ;;  %v2524_v32 = vpop.xlane.xlu0 %2523 }
 0xbb2   :  { %v2531_v34 = vsub.f32 %v2508_v16, %v2524_v32  ;;  %v13075_v35 = vpop.f32.mrf.mxu0 }
 0xbb4   :  { %v2534_v27 = vmul.f32 1.442695, %v2531_v34  ;;  %v2406_v36 = vpop.f32.mrf.mxu0 }
 0xbb5   :  { %v15476_v30 = vadd.f32 %v2406_v36, %v15418_v12  ;;  %v2527_v37 = vpop.xlane.xlu1 %2526 }
 0xbb6   :  { %14351 = vpow2.f32 %v2534_v27  ;;  %v2532_v6 = vsub.f32 %v2513_v20, %v2527_v37  ;;  %v13078_v9 = vpop.f32.mrf.mxu0 }
 0xbb8   :  { %v2536_v39 = vmul.f32 1.442695, %v2532_v6 }
 0xbb9   :  { %v2530_v40 = vpop.xlane.xlu0 %2529  ;;  %v2755_v25 = vpop.permute.xlu1 %2754 }
 0xbba   :  { %14353 = vpow2.f32 %v2536_v39  ;;  %v2533_v42 = vsub.f32 %v2518_v23, %v2530_v40 }
 0xbbc   :  { %v2538_v45 = vmul.f32 1.442695, %v2533_v42 }
 0xbbd   :  { %v2757_v47 = vpop.permute.xlu0 %2756  ;;  %v2751_v51 = vpop.permute.xlu1 %2750 }
 0xbbe   :  { %14355 = vpow2.f32 %v2538_v45 }
 0xbc1   :  { %v2749_v50 = vpop.permute.xlu0 %2748  ;;  %v2882_v62 = vpop.permute.xlu1 %2881 }
 0xbc3   :  { %v14352_v38 = vpop.eup %14351 }
 0xbc4   :  { %13104 = vmatmul.mubr.msk.f32.vlgmr.msra.gmra.mxu0 %vm551_vm6, %v14352_v38  ;;  %v2540_v46 = vsel %vm551_vm6, %v14352_v38, 0.0 }
 0xbc5   :  { %13124 = vmatpush3.xpose.msk.msra.mxu0 %vm452_vm5, %v2759_v29  ;;  %2541 = vadd.xlane.f32.xlu1 %v2540_v46  ;;  %v2753_v53 = vpop.permute.xlu0 %2752  ;;  %v2880_v0 = vpop.permute.xlu1 %2879 }
 0xbc6   :  { %13106 = vmatprep.mubr.msk.f32.mxu0 %vm14728_vm2, %v14727_v13  ;;  %13125 = vmatprep.subr.mxu0 %v14727_v13 }
 0xbc7   :  { %v14354_v12 = vpop.eup %14353 }
 0xbc8   :  { %13107 = vmatmul.mubr.msk.f32.gmra.mxu0 %vm551_vm6, %v14354_v12  ;;  %v2543_v49 = vsel %vm551_vm6, %v14354_v12, 0.0 }
 0xbc9   :  { %13126 = vmatpush3.xpose.msk.msra.mxu0 %vm452_vm5, %v2757_v47  ;;  %2544 = vadd.xlane.f32.xlu0 %v2543_v49  ;;  %v2884_v1 = vpop.permute.xlu0 %2883 }
 0xbca   :  { %13109 = vmatprep.mubr.msk.f32.mxu0 %vm14728_vm2, %v14727_v13  ;;  %13127 = vmatprep.subr.mxu0 %v14727_v13 }
 0xbcb   :  { %v14356_v19 = vpop.eup %14355 }
 0xbcc   :  { %13110 = vmatmul.mubr.msk.f32.gmra.mxu0 %vm551_vm6, %v14356_v19  ;;  %v2546_v43 = vsel %vm558_vm7, %v14356_v19, 0.0 }
 0xbcd   :  { %13128 = vmatpush3.xpose.msk.msra.mxu0 %vm452_vm5, %v2755_v25  ;;  %2547 = vadd.xlane.f32.xlu0 %v2546_v43 }
 0xbce   :  { %13129 = vmatprep.mubr.msk.f32.mxu0 %vm14728_vm2, %v14727_v13  ;;  %13153 = vmatprep.subr.mxu0 %v14727_v13 }
 0xbd0   :  { %13130 = vmatmul.mubr.msk.f32.vlgmr.msra.gmra.mxu0 %vm452_vm5, %v2749_v50 }
 0xbd1   :  { %13132 = vmatprep.mubr.msk.f32.mxu0 %vm14728_vm2, %v14727_v13 }
 0xbd4   :  { %13133 = vmatmul.mubr.msk.f32.gmra.mxu0 %vm452_vm5, %v2751_v51 }
 0xbd5   :  { %13135 = vmatprep.mubr.msk.f32.mxu0 %vm14728_vm2, %v14727_v13 }
 0xbd8   :  { %13136 = vmatmul.mubr.msk.f32.gmra.mxu0 %vm452_vm5, %v2753_v53 }
 0xbd9   :  { %13155 = vmatprep.mubr.msk.f32.mxu0 %vm14728_vm2, %v14727_v13 }
 0xbe5   :  { %v2411_v54 = vpop.f32.mrf.mxu0 }
 0xbe6   :  { %v15506_v56 = vadd.f32 %v2411_v54, %v15421_v41 }
 0xbe7   :  { %v13081_v33 = vpop.f32.mrf.mxu0 }
 0xc4e   :  { %v2542_v2 = vpop.xlane.xlu1 %2541 }
 0xc4f   :  { %14357 = vrcp.f32 %v2542_v2  ;;  %v11833_v2 = vld [vmem:[%s17623_s7 + $0x38] sm:$0xff] }
 0xc50   :  { %13154 = vmatpush3.msra.mxu0 %v11833_v2 }
 0xc51   :  { %13179 = vmatprep.subr.mxu0 %v14727_v13 }
 0xc52   :  { %v2545_v3 = vpop.xlane.xlu0 %2544 }
 0xc53   :  { %14359 = vrcp.f32 %v2545_v3 }
 0xc56   :  { %v2548_v4 = vpop.xlane.xlu0 %2547 }
 0xc57   :  { %14361 = vrcp.f32 %v2548_v4 }
 0xc5c   :  { %v14358_v5 = vpop.eup %14357 }
 0xc60   :  { %v14360_v10 = vpop.eup %14359 }
 0xc64   :  { %v14362_v16 = vpop.eup %14361 }
 0xc84   :  { %v2634_v41 = vpop.f32.mrf.mxu0 }
 0xc85   :  { %v2651_v7 = vmul.f32 %v14358_v5, %v2634_v41 }
 0xc86   :  { %v13105_v8 = vpop.f32.mrf.mxu0 }
 0xc87   :  { %13115 = vmatmul.mubr.msk.f32.vlgmr.msra.gmra.mxu1 %vm452_vm5, %v2651_v7 }
 0xc88   :  { %13139 = vmatpush3.msk.msra.mxu1 %vm589_vm4, %v2884_v1  ;;  %v2639_v11 = vpop.f32.mrf.mxu0  ;;  %13117 = vmatprep.mubr.msk.f32.mxu1 %vm14728_vm2, %v14727_v13 }
 0xc89   :  { %v2652_v14 = vmul.f32 %v14360_v10, %v2639_v11  ;;  %13140 = vmatprep.subr.mxu1 %v14727_v13 }
 0xc8a   :  { %13141 = vmatpush3.msra.mxu1 %v2882_v62  ;;  %v13108_v15 = vpop.f32.mrf.mxu0 }
 0xc8b   :  { %13142 = vmatprep.subr.mxu1 %v14727_v13  ;;  %13118 = vmatmul.mubr.msk.f32.gmra.mxu1 %vm452_vm5, %v2652_v14 }
 0xc8c   :  { %13143 = vmatpush3.msra.mxu1 %v2880_v0  ;;  %v2644_v17 = vpop.f32.mrf.mxu0  ;;  %13120 = vmatprep.mubr.msk.f32.mxu1 %vm14728_vm2, %v14727_v13 }
 0xc8d   :  { %v2653_v18 = vmul.f32 %v14362_v16, %v2644_v17  ;;  %13164 = vmatprep.subr.mxu1 %v14727_v13 }
 0xc8e   :  { %v13111_v20 = vpop.f32.mrf.mxu0 }
 0xc8f   :  { %13121 = vmatmul.mubr.msk.f32.gmra.mxu1 %vm452_vm5, %v2653_v18 }
 0xc90   :  { %v2838_v21 = vpop.f32.mrf.mxu0  ;;  %13144 = vmatprep.mubr.msk.f32.mxu1 %vm14728_vm2, %v14727_v13 }
 0xc91   :  { %v2852_v22 = vsel %vm551_vm6, %v2838_v21, -inf }
 0xc92   :  { %2853 = vmax.xlane.f32.xlu1 %v2852_v22  ;;  %v13131_v23 = vpop.f32.mrf.mxu0 }
 0xc94   :  { %v2843_v24 = vpop.f32.mrf.mxu0 }
 0xc95   :  { %v2855_v26 = vsel %vm551_vm6, %v2843_v24, -inf }
 0xc96   :  { %2856 = vmax.xlane.f32.xlu0 %v2855_v26  ;;  %v13134_v28 = vpop.f32.mrf.mxu0 }
 0xc98   :  { %v2848_v29 = vpop.f32.mrf.mxu0 }
 0xc99   :  { %v2858_v34 = vsel %vm558_vm7, %v2848_v29, -inf }
 0xc9a   :  { %v13137_v32 = vpop.f32.mrf.mxu0 }
 0xca3   :  { %3086 = vrot.lane.b32.xlu1 %v14992_v58, %s14736_s2 }
 0xcac   :  { %3088 = vrot.lane.b32.xlu0 %v14998_v61, %s14736_s2 }
 0xcb0   :  { %3084 = vrot.lane.b32.xlu0 %v14983_v55, %s14736_s2 }
 0xcb4   :  { %3080 = vrot.lane.b32.xlu0 %v15013_v63, %s14736_s2 }
 0xcc7   :  { %2859 = vmax.xlane.f32.xlu1 %v2858_v34 }
 0xcd8   :  { %3078 = vrot.lane.b32.xlu1 %v14990_v57, %s14736_s2 }
 0xcdc   :  { %3082 = vrot.lane.b32.xlu1 %v14996_v60, %s14736_s2 }
 0xce0   :  { %3213 = vrot.lane.b32.xlu1 %v14977_v52, %s14736_s2 }
 0xce4   :  { %3209 = vrot.lane.b32.xlu1 %v14973_v44, %s14736_s2 }
 0xd1b   :  { %v2854_v35 = vpop.xlane.xlu1 %2853 }
 0xd1c   :  { %v2861_v27 = vsub.f32 %v2838_v21, %v2854_v35 }
 0xd1e   :  { %v2864_v36 = vmul.f32 1.442695, %v2861_v27 }
 0xd1f   :  { %v2857_v37 = vpop.xlane.xlu0 %2856  ;;  %v3087_v38 = vpop.permute.xlu1 %3086 }
 0xd20   :  { %14363 = vpow2.f32 %v2864_v36  ;;  %v2862_v6 = vsub.f32 %v2843_v24, %v2857_v37 }
 0xd22   :  { %v2866_v9 = vmul.f32 1.442695, %v2862_v6 }
 0xd23   :  { %v3089_v40 = vpop.permute.xlu0 %3088 }
 0xd24   :  { %14365 = vpow2.f32 %v2866_v9 }
 0xd27   :  { %v3085_v12 = vpop.permute.xlu0 %3084 }
 0xd2d   :  { %v14364_v39 = vpop.eup %14363 }
 0xd2e   :  { %13145 = vmatmul.mubr.msk.f32.vlgmr.msra.gmra.mxu1 %vm551_vm6, %v14364_v39  ;;  %v2870_v42 = vsel %vm551_vm6, %v14364_v39, 0.0 }
 0xd2f   :  { %13165 = vmatpush3.xpose.msk.msra.mxu1 %vm452_vm5, %v3089_v40  ;;  %2871 = vadd.xlane.f32.xlu0 %v2870_v42 }
 0xd30   :  { %13147 = vmatprep.mubr.msk.f32.mxu1 %vm14728_vm2, %v14727_v13  ;;  %13166 = vmatprep.subr.mxu1 %v14727_v13 }
 0xd31   :  { %v14366_v45 = vpop.eup %14365 }
 0xd32   :  { %13148 = vmatmul.mubr.msk.f32.gmra.mxu1 %vm551_vm6, %v14366_v45  ;;  %v2873_v46 = vsel %vm551_vm6, %v14366_v45, 0.0 }
 0xd33   :  { %13167 = vmatpush3.xpose.msk.msra.mxu1 %vm452_vm5, %v3087_v38  ;;  %2874 = vadd.xlane.f32.xlu1 %v2873_v46 }
 0xd34   :  { %13168 = vmatprep.subr.mxu1 %v14727_v13  ;;  %13150 = vmatprep.mubr.msk.f32.mxu1 %vm14728_vm2, %v14727_v13 }
 0xd37   :  { %13169 = vmatpush3.xpose.msk.msra.mxu1 %vm452_vm5, %v3085_v12 }
 0xd38   :  { %13194 = vmatprep.subr.mxu1 %v14727_v13 }
 0xd44   :  { %3418 = vrot.lane.b32.xlu1 %v14998_v61, %s14737_s22 }
 0xd45   :  { %3211 = vrot.lane.b32.xlu0 %v14975_v48, %s14736_s2 }
 0xd47   :  { %v2731_v47 = vpop.f32.mrf.mxu1 }
 0xd48   :  { %v15563_v49 = vadd.f32 %v2731_v47, %v15473_v31 }
 0xd49   :  { %v13116_v19 = vpop.f32.mrf.mxu1 }
 0xd4b   :  { %v2736_v25 = vpop.f32.mrf.mxu1 }
 0xd4c   :  { %v15566_v43 = vadd.f32 %v2736_v25, %v15476_v30 }
 0xd4d   :  { %v13119_v50 = vpop.f32.mrf.mxu1 }
 0xd4f   :  { %v2741_v51 = vpop.f32.mrf.mxu1 }
 0xd50   :  { %v15569_v53 = vadd.f32 %v2741_v51, %v15506_v56  ;;  %v2860_v54 = vpop.xlane.xlu1 %2859  ;;  %v3081_v56 = vpop.permute.xlu0 %3080 }
 0xd51   :  { %v2863_v33 = vsub.f32 %v2848_v29, %v2860_v54  ;;  %v13122_v59 = vpop.f32.mrf.mxu1 }
 0xd53   :  { %v2868_v62 = vmul.f32 1.442695, %v2863_v33 }
 0xd54   :  { %v3079_v30 = vpop.permute.xlu1 %3078 }
 0xd55   :  { %14367 = vpow2.f32 %v2868_v62 }
 0xd58   :  { %v3083_v1 = vpop.permute.xlu1 %3082 }
 0xd5c   :  { %v3214_v3 = vpop.permute.xlu1 %3213 }
 0xd60   :  { %v3210_v4 = vpop.permute.xlu1 %3209 }
 0xd62   :  { %v14368_v0 = vpop.eup %14367 }
 0xd63   :  { %13151 = vmatmul.mubr.msk.f32.gmra.mxu1 %vm551_vm6, %v14368_v0  ;;  %v2876_v31 = vsel %vm558_vm7, %v14368_v0, 0.0 }
 0xd64   :  { %2877 = vadd.xlane.f32.xlu0 %v2876_v31  ;;  %13170 = vmatprep.mubr.msk.f32.mxu1 %vm14728_vm2, %v14727_v13 }
 0xd67   :  { %13171 = vmatmul.mubr.msk.f32.vlgmr.msra.gmra.mxu1 %vm452_vm5, %v3079_v30 }
 0xd68   :  { %13173 = vmatprep.mubr.msk.f32.mxu1 %vm14728_vm2, %v14727_v13 }
 0xd6b   :  { %13174 = vmatmul.mubr.msk.f32.gmra.mxu1 %vm452_vm5, %v3081_v56 }
 0xd6c   :  { %13176 = vmatprep.mubr.msk.f32.mxu1 %vm14728_vm2, %v14727_v13 }
 0xd6f   :  { %13177 = vmatmul.mubr.msk.f32.gmra.mxu1 %vm452_vm5, %v3083_v1 }
 0xd70   :  { %13196 = vmatprep.mubr.msk.f32.mxu1 %vm14728_vm2, %v14727_v13 }
 0xdb8   :  { %v2872_v5 = vpop.xlane.xlu0 %2871 }
 0xdb9   :  { %14369 = vrcp.f32 %v2872_v5 }
 0xdbc   :  { %v2875_v41 = vpop.xlane.xlu1 %2874  ;;  %v3212_v16 = vpop.permute.xlu0 %3211 }
 0xdbd   :  { %14371 = vrcp.f32 %v2875_v41 }
 0xdc0   :  { %v3419_v9 = vpop.permute.xlu1 %3418 }
 0xdc6   :  { %v14370_v7 = vpop.eup %14369 }
 0xdca   :  { %v14372_v14 = vpop.eup %14371 }
 0xded   :  { %v2878_v20 = vpop.xlane.xlu0 %2877 }
 0xdee   :  { %v2964_v8 = vpop.f32.mrf.mxu1  ;;  %14373 = vrcp.f32 %v2878_v20 }
 0xdef   :  { %v2981_v10 = vmul.f32 %v14370_v7, %v2964_v8  ;;  %v11847_v7 = vld [vmem:[%s17623_s7 + $0x40] sm:$0xff] }
 0xdf0   :  { %v13146_v11 = vpop.f32.mrf.mxu1  ;;  %13195 = vmatpush3.msra.mxu1 %v11847_v7 }
 0xdf1   :  { %13156 = vmatmul.mubr.msk.f32.vlgmr.msra.gmra.mxu0 %vm452_vm5, %v2981_v10  ;;  %13220 = vmatprep.subr.mxu1 %v14727_v13 }
 0xdf2   :  { %13180 = vmatpush3.msk.msra.mxu0 %vm589_vm4, %v3214_v3  ;;  %v2969_v15 = vpop.f32.mrf.mxu1  ;;  %13158 = vmatprep.mubr.msk.f32.mxu0 %vm14728_vm2, %v14727_v13 }
 0xdf3   :  { %v2982_v17 = vmul.f32 %v14372_v14, %v2969_v15  ;;  %13181 = vmatprep.subr.mxu0 %v14727_v13 }
 0xdf4   :  { %13182 = vmatpush3.msra.mxu0 %v3212_v16  ;;  %v13149_v18 = vpop.f32.mrf.mxu1 }
 0xdf5   :  { %13183 = vmatprep.subr.mxu0 %v14727_v13  ;;  %13159 = vmatmul.mubr.msk.f32.gmra.mxu0 %vm452_vm5, %v2982_v17 }
 0xdf6   :  { %13184 = vmatpush3.msra.mxu0 %v3210_v4  ;;  %13161 = vmatprep.mubr.msk.f32.mxu0 %vm14728_vm2, %v14727_v13 }
 0xdf7   :  { %13205 = vmatprep.subr.mxu0 %v14727_v13 }
 0xdfb   :  { %v14374_v21 = vpop.eup %14373 }
 0xe23   :  { %v2974_v22 = vpop.f32.mrf.mxu1 }
 0xe24   :  { %v2983_v23 = vmul.f32 %v14374_v21, %v2974_v22 }
 0xe25   :  { %v13152_v24 = vpop.f32.mrf.mxu1 }
 0xe26   :  { %13162 = vmatmul.mubr.msk.f32.gmra.mxu0 %vm452_vm5, %v2983_v23 }
 0xe27   :  { %v3168_v26 = vpop.f32.mrf.mxu1  ;;  %13185 = vmatprep.mubr.msk.f32.mxu0 %vm14728_vm2, %v14727_v13 }
 0xe28   :  { %v3182_v28 = vsel %vm551_vm6, %v3168_v26, -inf }
 0xe29   :  { %3183 = vmax.xlane.f32.xlu0 %v3182_v28  ;;  %v13172_v29 = vpop.f32.mrf.mxu1 }
 0xe2b   :  { %v3173_v32 = vpop.f32.mrf.mxu1 }
 0xe2c   :  { %v3185_v34 = vsel %vm551_vm6, %v3173_v32, -inf }
 0xe2d   :  { %3186 = vmax.xlane.f32.xlu1 %v3185_v34  ;;  %v13175_v35 = vpop.f32.mrf.mxu1 }
 0xe2f   :  { %v3178_v27 = vpop.f32.mrf.mxu1 }
 0xe30   :  { %v3188_v36 = vsel %vm558_vm7, %v3178_v27, -inf }
 0xe31   :  { %3189 = vmax.xlane.f32.xlu0 %v3188_v36  ;;  %v13178_v37 = vpop.f32.mrf.mxu1 }
 0xe3e   :  { %3414 = vrot.lane.b32.xlu1 %v14983_v55, %s14737_s22 }
 0xe42   :  { %3410 = vrot.lane.b32.xlu1 %v15013_v63, %s14737_s22 }
 0xe46   :  { %3541 = vrot.lane.b32.xlu1 %v14975_v48, %s14737_s22 }
 0xe47   :  { %3416 = vrot.lane.b32.xlu0 %v14992_v58, %s14737_s22 }
 0xe4a   :  { %3539 = vrot.lane.b32.xlu1 %v14973_v44, %s14737_s22 }
 0xe4b   :  { %3408 = vrot.lane.b32.xlu0 %v14990_v57, %s14737_s22 }
 0xe4f   :  { %3412 = vrot.lane.b32.xlu0 %v14996_v60, %s14737_s22 }
 0xe53   :  { %3543 = vrot.lane.b32.xlu0 %v14977_v52, %s14737_s22 }
 0xeb1   :  { %v3061_v6 = vpop.f32.mrf.mxu0 }
 0xeb2   :  { %v15621_v39 = vadd.f32 %v3061_v6, %v15563_v49  ;;  %v3184_v40 = vpop.xlane.xlu0 %3183 }
 0xeb3   :  { %v3191_v42 = vsub.f32 %v3168_v26, %v3184_v40  ;;  %v13157_v45 = vpop.f32.mrf.mxu0 }
 0xeb5   :  { %v3194_v38 = vmul.f32 1.442695, %v3191_v42  ;;  %v3066_v46 = vpop.f32.mrf.mxu0 }
 0xeb6   :  { %v15624_v12 = vadd.f32 %v3066_v46, %v15566_v43  ;;  %v3187_v47 = vpop.xlane.xlu1 %3186 }
 0xeb7   :  { %14375 = vpow2.f32 %v3194_v38  ;;  %v3192_v19 = vsub.f32 %v3173_v32, %v3187_v47  ;;  %v13160_v25 = vpop.f32.mrf.mxu0 }
 0xeb9   :  { %v3196_v50 = vmul.f32 1.442695, %v3192_v19 }
 0xeba   :  { %v3190_v51 = vpop.xlane.xlu0 %3189  ;;  %v3415_v30 = vpop.permute.xlu1 %3414 }
 0xebb   :  { %14377 = vpow2.f32 %v3196_v50  ;;  %v3193_v54 = vsub.f32 %v3178_v27, %v3190_v51 }
 0xebd   :  { %v3198_v33 = vmul.f32 1.442695, %v3193_v54 }
 0xebe   :  { %v3417_v62 = vpop.permute.xlu0 %3416  ;;  %v3411_v2 = vpop.permute.xlu1 %3410 }
 0xebf   :  { %14379 = vpow2.f32 %v3198_v33 }
 0xec2   :  { %v3409_v1 = vpop.permute.xlu0 %3408  ;;  %v3542_v8 = vpop.permute.xlu1 %3541 }
 0xec4   :  { %v14376_v49 = vpop.eup %14375 }
 0xec5   :  { %13186 = vmatmul.mubr.msk.f32.vlgmr.msra.gmra.mxu0 %vm551_vm6, %v14376_v49  ;;  %v3200_v59 = vsel %vm551_vm6, %v14376_v49, 0.0 }
 0xec6   :  { %13206 = vmatpush3.xpose.msk.msra.mxu0 %vm452_vm5, %v3419_v9  ;;  %3201 = vadd.xlane.f32.xlu1 %v3200_v59  ;;  %v3413_v3 = vpop.permute.xlu0 %3412  ;;  %v3540_v10 = vpop.permute.xlu1 %3539 }
 0xec7   :  { %13188 = vmatprep.mubr.msk.f32.mxu0 %vm14728_vm2, %v14727_v13  ;;  %13207 = vmatprep.subr.mxu0 %v14727_v13 }
 0xec8   :  { %v14378_v43 = vpop.eup %14377 }
 0xec9   :  { %13189 = vmatmul.mubr.msk.f32.gmra.mxu0 %vm551_vm6, %v14378_v43  ;;  %v3203_v0 = vsel %vm551_vm6, %v14378_v43, 0.0 }
 0xeca   :  { %13208 = vmatpush3.xpose.msk.msra.mxu0 %vm452_vm5, %v3417_v62  ;;  %3204 = vadd.xlane.f32.xlu0 %v3203_v0  ;;  %v3544_v11 = vpop.permute.xlu0 %3543 }
 0xecb   :  { %13191 = vmatprep.mubr.msk.f32.mxu0 %vm14728_vm2, %v14727_v13  ;;  %13209 = vmatprep.subr.mxu0 %v14727_v13 }
 0xecc   :  { %v14380_v31 = vpop.eup %14379 }
 0xecd   :  { %13192 = vmatmul.mubr.msk.f32.gmra.mxu0 %vm551_vm6, %v14380_v31  ;;  %v3206_v56 = vsel %vm558_vm7, %v14380_v31, 0.0 }
 0xece   :  { %13210 = vmatpush3.xpose.msk.msra.mxu0 %vm452_vm5, %v3415_v30  ;;  %3207 = vadd.xlane.f32.xlu0 %v3206_v56 }
 0xecf   :  { %13211 = vmatprep.mubr.msk.f32.mxu0 %vm14728_vm2, %v14727_v13  ;;  %13235 = vmatprep.subr.mxu0 %v14727_v13 }
 0xed1   :  { %13212 = vmatmul.mubr.msk.f32.vlgmr.msra.gmra.mxu0 %vm452_vm5, %v3409_v1 }
 0xed2   :  { %13214 = vmatprep.mubr.msk.f32.mxu0 %vm14728_vm2, %v14727_v13 }
 0xed5   :  { %13215 = vmatmul.mubr.msk.f32.gmra.mxu0 %vm452_vm5, %v3411_v2 }
 0xed6   :  { %13217 = vmatprep.mubr.msk.f32.mxu0 %vm14728_vm2, %v14727_v13 }
 0xed9   :  { %13218 = vmatmul.mubr.msk.f32.gmra.mxu0 %vm452_vm5, %v3413_v3 }
 0xeda   :  { %13237 = vmatprep.mubr.msk.f32.mxu0 %vm14728_vm2, %v14727_v13 }
 0xee6   :  { %v3071_v4 = vpop.f32.mrf.mxu0 }
 0xee7   :  { %v15654_v5 = vadd.f32 %v3071_v4, %v15569_v53 }
 0xee8   :  { %v13163_v41 = vpop.f32.mrf.mxu0 }
 0xf4f   :  { %v3202_v14 = vpop.xlane.xlu1 %3201 }
 0xf50   :  { %14381 = vrcp.f32 %v3202_v14  ;;  %v11861_v14 = vld [vmem:[%s17623_s7 + $0x48] sm:$0xff] }
 0xf51   :  { %13236 = vmatpush3.msra.mxu0 %v11861_v14 }
 0xf52   :  { %13261 = vmatprep.subr.mxu0 %v14727_v13 }
 0xf53   :  { %v3205_v15 = vpop.xlane.xlu0 %3204 }
 0xf54   :  { %14383 = vrcp.f32 %v3205_v15 }
 0xf57   :  { %v3208_v16 = vpop.xlane.xlu0 %3207 }
 0xf58   :  { %14385 = vrcp.f32 %v3208_v16 }
 0xf5d   :  { %v14382_v17 = vpop.eup %14381 }
 0xf61   :  { %v14384_v21 = vpop.eup %14383 }
 0xf65   :  { %v14386_v26 = vpop.eup %14385 }
 0xf85   :  { %v3294_v53 = vpop.f32.mrf.mxu0 }
 0xf86   :  { %v3311_v18 = vmul.f32 %v14382_v17, %v3294_v53 }
 0xf87   :  { %v13187_v20 = vpop.f32.mrf.mxu0 }
 0xf88   :  { %13197 = vmatmul.mubr.msk.f32.vlgmr.msra.gmra.mxu1 %vm452_vm5, %v3311_v18 }
 0xf89   :  { %13221 = vmatpush3.msk.msra.mxu1 %vm589_vm4, %v3544_v11  ;;  %v3299_v22 = vpop.f32.mrf.mxu0  ;;  %13199 = vmatprep.mubr.msk.f32.mxu1 %vm14728_vm2, %v14727_v13 }
 0xf8a   :  { %v3312_v23 = vmul.f32 %v14384_v21, %v3299_v22  ;;  %13222 = vmatprep.subr.mxu1 %v14727_v13 }
 0xf8b   :  { %13223 = vmatpush3.msra.mxu1 %v3542_v8  ;;  %v13190_v24 = vpop.f32.mrf.mxu0 }
 0xf8c   :  { %13224 = vmatprep.subr.mxu1 %v14727_v13  ;;  %13200 = vmatmul.mubr.msk.f32.gmra.mxu1 %vm452_vm5, %v3312_v23 }
 0xf8d   :  { %13225 = vmatpush3.msra.mxu1 %v3540_v10  ;;  %v3304_v28 = vpop.f32.mrf.mxu0  ;;  %13202 = vmatprep.mubr.msk.f32.mxu1 %vm14728_vm2, %v14727_v13 }
 0xf8e   :  { %v3313_v29 = vmul.f32 %v14386_v26, %v3304_v28  ;;  %13246 = vmatprep.subr.mxu1 %v14727_v13 }
 0xf8f   :  { %v13193_v32 = vpop.f32.mrf.mxu0 }
 0xf90   :  { %13203 = vmatmul.mubr.msk.f32.gmra.mxu1 %vm452_vm5, %v3313_v29 }
 0xf91   :  { %v3498_v34 = vpop.f32.mrf.mxu0  ;;  %13226 = vmatprep.mubr.msk.f32.mxu1 %vm14728_vm2, %v14727_v13 }
 0xf92   :  { %v3512_v35 = vsel %vm551_vm6, %v3498_v34, -inf }
 0xf93   :  { %3513 = vmax.xlane.f32.xlu1 %v3512_v35  ;;  %v13213_v27 = vpop.f32.mrf.mxu0 }
 0xf95   :  { %v3503_v36 = vpop.f32.mrf.mxu0 }
 0xf96   :  { %v3515_v37 = vsel %vm551_vm6, %v3503_v36, -inf }
 0xf97   :  { %3516 = vmax.xlane.f32.xlu0 %v3515_v37  ;;  %v13216_v6 = vpop.f32.mrf.mxu0 }
 0xf99   :  { %v3508_v9 = vpop.f32.mrf.mxu0 }
 0xf9a   :  { %v3518_v42 = vsel %vm558_vm7, %v3508_v9, -inf }
 0xf9b   :  { %v13219_v40 = vpop.f32.mrf.mxu0 }
 0xfa4   :  { %3746 = vrot.lane.b32.xlu1 %v14992_v58, %s14738_s3 }
 0xfad   :  { %3748 = vrot.lane.b32.xlu0 %v14998_v61, %s14738_s3 }
 0xfb1   :  { %3744 = vrot.lane.b32.xlu0 %v14983_v55, %s14738_s3 }
 0xfb5   :  { %3740 = vrot.lane.b32.xlu0 %v15013_v63, %s14738_s3 }
 0xfc8   :  { %3519 = vmax.xlane.f32.xlu1 %v3518_v42 }
 0xfd9   :  { %3738 = vrot.lane.b32.xlu1 %v14990_v57, %s14738_s3 }
 0xfdd   :  { %3742 = vrot.lane.b32.xlu1 %v14996_v60, %s14738_s3 }
 0xfe1   :  { %3873 = vrot.lane.b32.xlu1 %v14977_v52, %s14738_s3 }
 0xfe5   :  { %3869 = vrot.lane.b32.xlu1 %v14973_v44, %s14738_s3 }
0x101c   :  { %v3514_v45 = vpop.xlane.xlu1 %3513 }
0x101d   :  { %v3521_v38 = vsub.f32 %v3498_v34, %v3514_v45 }
0x101f   :  { %v3524_v46 = vmul.f32 1.442695, %v3521_v38 }
0x1020   :  { %v3517_v47 = vpop.xlane.xlu0 %3516  ;;  %v3747_v49 = vpop.permute.xlu1 %3746 }
0x1021   :  { %14387 = vpow2.f32 %v3524_v46  ;;  %v3522_v19 = vsub.f32 %v3503_v36, %v3517_v47 }
0x1023   :  { %v3526_v25 = vmul.f32 1.442695, %v3522_v19 }
0x1024   :  { %v3749_v51 = vpop.permute.xlu0 %3748 }
0x1025   :  { %14389 = vpow2.f32 %v3526_v25 }
0x1028   :  { %v3745_v43 = vpop.permute.xlu0 %3744 }
0x102e   :  { %v14388_v50 = vpop.eup %14387 }
0x102f   :  { %13227 = vmatmul.mubr.msk.f32.vlgmr.msra.gmra.mxu1 %vm551_vm6, %v14388_v50  ;;  %v3530_v54 = vsel %vm551_vm6, %v14388_v50, 0.0 }
0x1030   :  { %13247 = vmatpush3.xpose.msk.msra.mxu1 %vm452_vm5, %v3749_v51  ;;  %3531 = vadd.xlane.f32.xlu0 %v3530_v54 }
0x1031   :  { %13229 = vmatprep.mubr.msk.f32.mxu1 %vm14728_vm2, %v14727_v13  ;;  %13248 = vmatprep.subr.mxu1 %v14727_v13 }
0x1032   :  { %v14390_v33 = vpop.eup %14389 }
0x1033   :  { %13230 = vmatmul.mubr.msk.f32.gmra.mxu1 %vm551_vm6, %v14390_v33  ;;  %v3533_v59 = vsel %vm551_vm6, %v14390_v33, 0.0 }
0x1034   :  { %13249 = vmatpush3.xpose.msk.msra.mxu1 %vm452_vm5, %v3747_v49  ;;  %3534 = vadd.xlane.f32.xlu1 %v3533_v59 }
0x1035   :  { %13250 = vmatprep.subr.mxu1 %v14727_v13  ;;  %13232 = vmatprep.mubr.msk.f32.mxu1 %vm14728_vm2, %v14727_v13 }
0x1038   :  { %13251 = vmatpush3.xpose.msk.msra.mxu1 %vm452_vm5, %v3745_v43 }
0x1039   :  { %13276 = vmatprep.subr.mxu1 %v14727_v13 }
0x1045   :  { %4078 = vrot.lane.b32.xlu1 %v14998_v61, %s14739_s1 }
0x1046   :  { %3871 = vrot.lane.b32.xlu0 %v14975_v48, %s14738_s3 }
0x1048   :  { %v3391_v62 = vpop.f32.mrf.mxu1 }
0x1049   :  { %v15711_v0 = vadd.f32 %v3391_v62, %v15621_v39 }
0x104a   :  { %v13198_v31 = vpop.f32.mrf.mxu1 }
0x104c   :  { %v3396_v30 = vpop.f32.mrf.mxu1 }
0x104d   :  { %v15714_v56 = vadd.f32 %v3396_v30, %v15624_v12 }
0x104e   :  { %v13201_v1 = vpop.f32.mrf.mxu1 }
0x1050   :  { %v3401_v2 = vpop.f32.mrf.mxu1 }
0x1051   :  { %v15717_v3 = vadd.f32 %v3401_v2, %v15654_v5  ;;  %v3520_v4 = vpop.xlane.xlu1 %3519  ;;  %v3741_v5 = vpop.permute.xlu0 %3740 }
0x1052   :  { %v3523_v41 = vsub.f32 %v3508_v9, %v3520_v4  ;;  %v13204_v7 = vpop.f32.mrf.mxu1 }
0x1054   :  { %v3528_v8 = vmul.f32 1.442695, %v3523_v41 }
0x1055   :  { %v3739_v12 = vpop.permute.xlu1 %3738 }
0x1056   :  { %14391 = vpow2.f32 %v3528_v8 }
0x1059   :  { %v3743_v11 = vpop.permute.xlu1 %3742 }
0x105d   :  { %v3874_v15 = vpop.permute.xlu1 %3873 }
0x1061   :  { %v3870_v16 = vpop.permute.xlu1 %3869 }
0x1063   :  { %v14392_v10 = vpop.eup %14391 }
0x1064   :  { %13233 = vmatmul.mubr.msk.f32.gmra.mxu1 %vm551_vm6, %v14392_v10  ;;  %v3536_v39 = vsel %vm558_vm7, %v14392_v10, 0.0 }
0x1065   :  { %3537 = vadd.xlane.f32.xlu0 %v3536_v39  ;;  %13252 = vmatprep.mubr.msk.f32.mxu1 %vm14728_vm2, %v14727_v13 }
0x1068   :  { %13253 = vmatmul.mubr.msk.f32.vlgmr.msra.gmra.mxu1 %vm452_vm5, %v3739_v12 }
0x1069   :  { %13255 = vmatprep.mubr.msk.f32.mxu1 %vm14728_vm2, %v14727_v13 }
0x106c   :  { %13256 = vmatmul.mubr.msk.f32.gmra.mxu1 %vm452_vm5, %v3741_v5 }
0x106d   :  { %13258 = vmatprep.mubr.msk.f32.mxu1 %vm14728_vm2, %v14727_v13 }
0x1070   :  { %13259 = vmatmul.mubr.msk.f32.gmra.mxu1 %vm452_vm5, %v3743_v11 }
0x1071   :  { %13278 = vmatprep.mubr.msk.f32.mxu1 %vm14728_vm2, %v14727_v13 }
0x10b9   :  { %v3532_v17 = vpop.xlane.xlu0 %3531 }
0x10ba   :  { %14393 = vrcp.f32 %v3532_v17 }
0x10bd   :  { %v3535_v53 = vpop.xlane.xlu1 %3534  ;;  %v3872_v26 = vpop.permute.xlu0 %3871 }
0x10be   :  { %14395 = vrcp.f32 %v3535_v53 }
0x10c1   :  { %v4079_v25 = vpop.permute.xlu1 %4078 }
0x10c7   :  { %v14394_v18 = vpop.eup %14393 }
0x10cb   :  { %v14396_v23 = vpop.eup %14395 }
0x10ee   :  { %v3538_v32 = vpop.xlane.xlu0 %3537 }
0x10ef   :  { %v3624_v20 = vpop.f32.mrf.mxu1  ;;  %14397 = vrcp.f32 %v3538_v32 }
0x10f0   :  { %v3641_v21 = vmul.f32 %v14394_v18, %v3624_v20  ;;  %v11875_v18 = vld [vmem:[%s17623_s7 + $0x50] sm:$0xff] }
0x10f1   :  { %v13228_v22 = vpop.f32.mrf.mxu1  ;;  %13277 = vmatpush3.msra.mxu1 %v11875_v18 }
0x10f2   :  { %13238 = vmatmul.mubr.msk.f32.vlgmr.msra.gmra.mxu0 %vm452_vm5, %v3641_v21  ;;  %13302 = vmatprep.subr.mxu1 %v14727_v13 }
0x10f3   :  { %13262 = vmatpush3.msk.msra.mxu0 %vm589_vm4, %v3874_v15  ;;  %v3629_v24 = vpop.f32.mrf.mxu1  ;;  %13240 = vmatprep.mubr.msk.f32.mxu0 %vm14728_vm2, %v14727_v13 }
0x10f4   :  { %v3642_v28 = vmul.f32 %v14396_v23, %v3629_v24  ;;  %13263 = vmatprep.subr.mxu0 %v14727_v13 }
0x10f5   :  { %13264 = vmatpush3.msra.mxu0 %v3872_v26  ;;  %v13231_v29 = vpop.f32.mrf.mxu1 }
0x10f6   :  { %13265 = vmatprep.subr.mxu0 %v14727_v13  ;;  %13241 = vmatmul.mubr.msk.f32.gmra.mxu0 %vm452_vm5, %v3642_v28 }
0x10f7   :  { %13266 = vmatpush3.msra.mxu0 %v3870_v16  ;;  %13243 = vmatprep.mubr.msk.f32.mxu0 %vm14728_vm2, %v14727_v13 }
0x10f8   :  { %13287 = vmatprep.subr.mxu0 %v14727_v13 }
0x10fc   :  { %v14398_v34 = vpop.eup %14397 }
0x1124   :  { %v3634_v35 = vpop.f32.mrf.mxu1 }
0x1125   :  { %v3643_v27 = vmul.f32 %v14398_v34, %v3634_v35 }
0x1126   :  { %v13234_v36 = vpop.f32.mrf.mxu1 }
0x1127   :  { %13244 = vmatmul.mubr.msk.f32.gmra.mxu0 %vm452_vm5, %v3643_v27 }
0x1128   :  { %v3828_v37 = vpop.f32.mrf.mxu1  ;;  %13267 = vmatprep.mubr.msk.f32.mxu0 %vm14728_vm2, %v14727_v13 }
0x1129   :  { %v3842_v6 = vsel %vm551_vm6, %v3828_v37, -inf }
0x112a   :  { %3843 = vmax.xlane.f32.xlu0 %v3842_v6  ;;  %v13254_v9 = vpop.f32.mrf.mxu1 }
0x112c   :  { %v3833_v40 = vpop.f32.mrf.mxu1 }
0x112d   :  { %v3845_v42 = vsel %vm551_vm6, %v3833_v40, -inf }
0x112e   :  { %3846 = vmax.xlane.f32.xlu1 %v3845_v42  ;;  %v13257_v45 = vpop.f32.mrf.mxu1 }
0x1130   :  { %v3838_v38 = vpop.f32.mrf.mxu1 }
0x1131   :  { %v3848_v46 = vsel %vm558_vm7, %v3838_v38, -inf }
0x1132   :  { %3849 = vmax.xlane.f32.xlu0 %v3848_v46  ;;  %v13260_v47 = vpop.f32.mrf.mxu1 }
0x113f   :  { %4074 = vrot.lane.b32.xlu1 %v14983_v55, %s14739_s1 }
0x1143   :  { %4070 = vrot.lane.b32.xlu1 %v15013_v63, %s14739_s1 }
0x1147   :  { %4201 = vrot.lane.b32.xlu1 %v14975_v48, %s14739_s1 }
0x1148   :  { %4076 = vrot.lane.b32.xlu0 %v14992_v58, %s14739_s1 }
0x114b   :  { %4199 = vrot.lane.b32.xlu1 %v14973_v44, %s14739_s1 }
0x114c   :  { %4068 = vrot.lane.b32.xlu0 %v14990_v57, %s14739_s1 }
0x1150   :  { %4072 = vrot.lane.b32.xlu0 %v14996_v60, %s14739_s1 }
0x1154   :  { %4203 = vrot.lane.b32.xlu0 %v14977_v52, %s14739_s1 }
0x11b2   :  { %v3721_v19 = vpop.f32.mrf.mxu0 }
0x11b3   :  { %v15769_v50 = vadd.f32 %v3721_v19, %v15711_v0  ;;  %v3844_v51 = vpop.xlane.xlu0 %3843 }
0x11b4   :  { %v3851_v54 = vsub.f32 %v3828_v37, %v3844_v51  ;;  %v13239_v33 = vpop.f32.mrf.mxu0 }
0x11b6   :  { %v3854_v49 = vmul.f32 1.442695, %v3851_v54  ;;  %v3726_v59 = vpop.f32.mrf.mxu0 }
0x11b7   :  { %v15772_v43 = vadd.f32 %v3726_v59, %v15714_v56  ;;  %v3847_v62 = vpop.xlane.xlu1 %3846 }
0x11b8   :  { %14399 = vpow2.f32 %v3854_v49  ;;  %v3852_v31 = vsub.f32 %v3833_v40, %v3847_v62  ;;  %v13242_v30 = vpop.f32.mrf.mxu0 }
0x11ba   :  { %v3856_v1 = vmul.f32 1.442695, %v3852_v31 }
0x11bb   :  { %v3850_v2 = vpop.xlane.xlu0 %3849  ;;  %v4075_v12 = vpop.permute.xlu1 %4074 }
0x11bc   :  { %14401 = vpow2.f32 %v3856_v1  ;;  %v3853_v4 = vsub.f32 %v3838_v38, %v3850_v2 }
0x11be   :  { %v3858_v41 = vmul.f32 1.442695, %v3853_v4 }
0x11bf   :  { %v4077_v8 = vpop.permute.xlu0 %4076  ;;  %v4071_v14 = vpop.permute.xlu1 %4070 }
0x11c0   :  { %14403 = vpow2.f32 %v3858_v41 }
0x11c3   :  { %v4069_v11 = vpop.permute.xlu0 %4068  ;;  %v4202_v20 = vpop.permute.xlu1 %4201 }
0x11c5   :  { %v14400_v0 = vpop.eup %14399 }
0x11c6   :  { %13268 = vmatmul.mubr.msk.f32.vlgmr.msra.gmra.mxu0 %vm551_vm6, %v14400_v0  ;;  %v3860_v7 = vsel %vm551_vm6, %v14400_v0, 0.0 }
0x11c7   :  { %13288 = vmatpush3.xpose.msk.msra.mxu0 %vm452_vm5, %v4079_v25  ;;  %3861 = vadd.xlane.f32.xlu1 %v3860_v7  ;;  %v4073_v15 = vpop.permute.xlu0 %4072  ;;  %v4200_v21 = vpop.permute.xlu1 %4199 }
0x11c8   :  { %13270 = vmatprep.mubr.msk.f32.mxu0 %vm14728_vm2, %v14727_v13  ;;  %13289 = vmatprep.subr.mxu0 %v14727_v13 }
0x11c9   :  { %v14402_v56 = vpop.eup %14401 }
0x11ca   :  { %13271 = vmatmul.mubr.msk.f32.gmra.mxu0 %vm551_vm6, %v14402_v56  ;;  %v3863_v10 = vsel %vm551_vm6, %v14402_v56, 0.0 }
0x11cb   :  { %13290 = vmatpush3.xpose.msk.msra.mxu0 %vm452_vm5, %v4077_v8  ;;  %3864 = vadd.xlane.f32.xlu0 %v3863_v10  ;;  %v4204_v22 = vpop.permute.xlu0 %4203 }
0x11cc   :  { %13273 = vmatprep.mubr.msk.f32.mxu0 %vm14728_vm2, %v14727_v13  ;;  %13291 = vmatprep.subr.mxu0 %v14727_v13 }
0x11cd   :  { %v14404_v39 = vpop.eup %14403 }
0x11ce   :  { %13274 = vmatmul.mubr.msk.f32.gmra.mxu0 %vm551_vm6, %v14404_v39  ;;  %v3866_v5 = vsel %vm558_vm7, %v14404_v39, 0.0 }
0x11cf   :  { %13292 = vmatpush3.xpose.msk.msra.mxu0 %vm452_vm5, %v4075_v12  ;;  %3867 = vadd.xlane.f32.xlu0 %v3866_v5 }
0x11d0   :  { %13293 = vmatprep.mubr.msk.f32.mxu0 %vm14728_vm2, %v14727_v13  ;;  %13317 = vmatprep.subr.mxu0 %v14727_v13 }
0x11d2   :  { %13294 = vmatmul.mubr.msk.f32.vlgmr.msra.gmra.mxu0 %vm452_vm5, %v4069_v11 }
0x11d3   :  { %13296 = vmatprep.mubr.msk.f32.mxu0 %vm14728_vm2, %v14727_v13 }
0x11d6   :  { %13297 = vmatmul.mubr.msk.f32.gmra.mxu0 %vm452_vm5, %v4071_v14 }
0x11d7   :  { %13299 = vmatprep.mubr.msk.f32.mxu0 %vm14728_vm2, %v14727_v13 }
0x11da   :  { %13300 = vmatmul.mubr.msk.f32.gmra.mxu0 %vm452_vm5, %v4073_v15 }
0x11db   :  { %13319 = vmatprep.mubr.msk.f32.mxu0 %vm14728_vm2, %v14727_v13 }
0x11e7   :  { %v3731_v16 = vpop.f32.mrf.mxu0 }
0x11e8   :  { %v15802_v17 = vadd.f32 %v3731_v16, %v15717_v3 }
0x11e9   :  { %v13245_v53 = vpop.f32.mrf.mxu0 }
0x1250   :  { %v3862_v23 = vpop.xlane.xlu1 %3861 }
0x1251   :  { %14405 = vrcp.f32 %v3862_v23  ;;  %v11889_v23 = vld [vmem:[%s17623_s7 + $0x58] sm:$0xff] }
0x1252   :  { %13318 = vmatpush3.msra.mxu0 %v11889_v23 }
0x1253   :  { %13343 = vmatprep.subr.mxu0 %v14727_v13 }
0x1254   :  { %v3865_v24 = vpop.xlane.xlu0 %3864 }
0x1255   :  { %14407 = vrcp.f32 %v3865_v24 }
0x1258   :  { %v3868_v26 = vpop.xlane.xlu0 %3867 }
0x1259   :  { %14409 = vrcp.f32 %v3868_v26 }
0x125e   :  { %v14406_v28 = vpop.eup %14405 }
0x1262   :  { %v14408_v34 = vpop.eup %14407 }
0x1266   :  { %v14410_v37 = vpop.eup %14409 }
0x1286   :  { %v3954_v3 = vpop.f32.mrf.mxu0 }
0x1287   :  { %v3971_v29 = vmul.f32 %v14406_v28, %v3954_v3 }
0x1288   :  { %v13269_v32 = vpop.f32.mrf.mxu0 }
0x1289   :  { %13279 = vmatmul.mubr.msk.f32.vlgmr.msra.gmra.mxu1 %vm452_vm5, %v3971_v29 }
0x128a   :  { %13303 = vmatpush3.msk.msra.mxu1 %vm589_vm4, %v4204_v22  ;;  %v3959_v35 = vpop.f32.mrf.mxu0  ;;  %13281 = vmatprep.mubr.msk.f32.mxu1 %vm14728_vm2, %v14727_v13 }
0x128b   :  { %v3972_v27 = vmul.f32 %v14408_v34, %v3959_v35  ;;  %13304 = vmatprep.subr.mxu1 %v14727_v13 }
0x128c   :  { %13305 = vmatpush3.msra.mxu1 %v4202_v20  ;;  %v13272_v36 = vpop.f32.mrf.mxu0 }
0x128d   :  { %13306 = vmatprep.subr.mxu1 %v14727_v13  ;;  %13282 = vmatmul.mubr.msk.f32.gmra.mxu1 %vm452_vm5, %v3972_v27 }
0x128e   :  { %13307 = vmatpush3.msra.mxu1 %v4200_v21  ;;  %v3964_v6 = vpop.f32.mrf.mxu0  ;;  %13284 = vmatprep.mubr.msk.f32.mxu1 %vm14728_vm2, %v14727_v13 }
0x128f   :  { %v3973_v9 = vmul.f32 %v14410_v37, %v3964_v6  ;;  %13328 = vmatprep.subr.mxu1 %v14727_v13 }
0x1290   :  { %v13275_v40 = vpop.f32.mrf.mxu0 }
0x1291   :  { %13285 = vmatmul.mubr.msk.f32.gmra.mxu1 %vm452_vm5, %v3973_v9 }
0x1292   :  { %v4158_v42 = vpop.f32.mrf.mxu0  ;;  %13308 = vmatprep.mubr.msk.f32.mxu1 %vm14728_vm2, %v14727_v13 }
0x1293   :  { %v4172_v45 = vsel %vm551_vm6, %v4158_v42, -inf }
0x1294   :  { %4173 = vmax.xlane.f32.xlu1 %v4172_v45  ;;  %v13295_v38 = vpop.f32.mrf.mxu0 }
0x1296   :  { %v4163_v46 = vpop.f32.mrf.mxu0 }
0x1297   :  { %v4175_v47 = vsel %vm551_vm6, %v4163_v46, -inf }
0x1298   :  { %4176 = vmax.xlane.f32.xlu0 %v4175_v47  ;;  %v13298_v19 = vpop.f32.mrf.mxu0 }
0x129a   :  { %v4168_v25 = vpop.f32.mrf.mxu0 }
0x129b   :  { %v4178_v54 = vsel %vm558_vm7, %v4168_v25, -inf }
0x129c   :  { %v13301_v51 = vpop.f32.mrf.mxu0 }
0x12a5   :  { %4406 = vrot.lane.b32.xlu1 %v14992_v58, %s14740_s26 }
0x12ae   :  { %4408 = vrot.lane.b32.xlu0 %v14998_v61, %s14740_s26 }
0x12b2   :  { %4404 = vrot.lane.b32.xlu0 %v14983_v55, %s14740_s26 }
0x12b6   :  { %4400 = vrot.lane.b32.xlu0 %v15013_v63, %s14740_s26 }
0x12c9   :  { %4179 = vmax.xlane.f32.xlu1 %v4178_v54 }
0x12da   :  { %4398 = vrot.lane.b32.xlu1 %v14990_v57, %s14740_s26 }
0x12de   :  { %4402 = vrot.lane.b32.xlu1 %v14996_v60, %s14740_s26 }
0x12e2   :  { %4533 = vrot.lane.b32.xlu1 %v14977_v52, %s14740_s26 }
0x12e6   :  { %4529 = vrot.lane.b32.xlu1 %v14973_v44, %s14740_s26 }
0x131d   :  { %v4174_v33 = vpop.xlane.xlu1 %4173 }
0x131e   :  { %v4181_v49 = vsub.f32 %v4158_v42, %v4174_v33 }
0x1320   :  { %v4184_v59 = vmul.f32 1.442695, %v4181_v49 }
0x1321   :  { %v4177_v62 = vpop.xlane.xlu0 %4176  ;;  %v4407_v0 = vpop.permute.xlu1 %4406 }
0x1322   :  { %14411 = vpow2.f32 %v4184_v59  ;;  %v4182_v31 = vsub.f32 %v4163_v46, %v4177_v62 }
0x1324   :  { %v4186_v30 = vmul.f32 1.442695, %v4182_v31 }
0x1325   :  { %v4409_v2 = vpop.permute.xlu0 %4408 }
0x1326   :  { %14413 = vpow2.f32 %v4186_v30 }
0x1329   :  { %v4405_v56 = vpop.permute.xlu0 %4404 }
0x132f   :  { %v14412_v1 = vpop.eup %14411 }
0x1330   :  { %13309 = vmatmul.mubr.msk.f32.vlgmr.msra.gmra.mxu1 %vm551_vm6, %v14412_v1  ;;  %v4190_v4 = vsel %vm551_vm6, %v14412_v1, 0.0 }
0x1331   :  { %13329 = vmatpush3.xpose.msk.msra.mxu1 %vm452_vm5, %v4409_v2  ;;  %4191 = vadd.xlane.f32.xlu0 %v4190_v4 }
0x1332   :  { %13311 = vmatprep.mubr.msk.f32.mxu1 %vm14728_vm2, %v14727_v13  ;;  %13330 = vmatprep.subr.mxu1 %v14727_v13 }
0x1333   :  { %v14414_v41 = vpop.eup %14413 }
0x1334   :  { %13312 = vmatmul.mubr.msk.f32.gmra.mxu1 %vm551_vm6, %v14414_v41  ;;  %v4193_v7 = vsel %vm551_vm6, %v14414_v41, 0.0 }
0x1335   :  { %13331 = vmatpush3.xpose.msk.msra.mxu1 %vm452_vm5, %v4407_v0  ;;  %4194 = vadd.xlane.f32.xlu1 %v4193_v7 }
0x1336   :  { %13332 = vmatprep.subr.mxu1 %v14727_v13  ;;  %13314 = vmatprep.mubr.msk.f32.mxu1 %vm14728_vm2, %v14727_v13 }
0x1339   :  { %13333 = vmatpush3.xpose.msk.msra.mxu1 %vm452_vm5, %v4405_v56 }
0x133a   :  { %13358 = vmatprep.subr.mxu1 %v14727_v13 }
0x1346   :  { %4738 = vrot.lane.b32.xlu1 %v14998_v61, %s17638_s27 }
0x1347   :  { %4531 = vrot.lane.b32.xlu0 %v14975_v48, %s14740_s26 }
0x1349   :  { %v4051_v8 = vpop.f32.mrf.mxu1 }
0x134a   :  { %v15859_v10 = vadd.f32 %v4051_v8, %v15769_v50 }
0x134b   :  { %v13280_v39 = vpop.f32.mrf.mxu1 }
0x134d   :  { %v4056_v12 = vpop.f32.mrf.mxu1 }
0x134e   :  { %v15862_v5 = vadd.f32 %v4056_v12, %v15772_v43 }
0x134f   :  { %v13283_v11 = vpop.f32.mrf.mxu1 }
0x1351   :  { %v4061_v14 = vpop.f32.mrf.mxu1 }
0x1352   :  { %v15865_v15 = vadd.f32 %v4061_v14, %v15802_v17  ;;  %v4180_v16 = vpop.xlane.xlu1 %4179  ;;  %v4401_v17 = vpop.permute.xlu0 %4400 }
0x1353   :  { %v4183_v53 = vsub.f32 %v4168_v25, %v4180_v16  ;;  %v13286_v18 = vpop.f32.mrf.mxu1 }
0x1355   :  { %v4188_v20 = vmul.f32 1.442695, %v4183_v53 }
0x1356   :  { %v4399_v43 = vpop.permute.xlu1 %4398 }
0x1357   :  { %14415 = vpow2.f32 %v4188_v20 }
0x135a   :  { %v4403_v22 = vpop.permute.xlu1 %4402 }
0x135e   :  { %v4534_v24 = vpop.permute.xlu1 %4533 }
0x1362   :  { %v4530_v26 = vpop.permute.xlu1 %4529 }
0x1364   :  { %v14416_v21 = vpop.eup %14415 }
0x1365   :  { %13315 = vmatmul.mubr.msk.f32.gmra.mxu1 %vm551_vm6, %v14416_v21  ;;  %v4196_v50 = vsel %vm558_vm7, %v14416_v21, 0.0 }
0x1366   :  { %4197 = vadd.xlane.f32.xlu0 %v4196_v50  ;;  %13334 = vmatprep.mubr.msk.f32.mxu1 %vm14728_vm2, %v14727_v13 }
0x1369   :  { %13335 = vmatmul.mubr.msk.f32.vlgmr.msra.gmra.mxu1 %vm452_vm5, %v4399_v43 }
0x136a   :  { %13337 = vmatprep.mubr.msk.f32.mxu1 %vm14728_vm2, %v14727_v13 }
0x136d   :  { %13338 = vmatmul.mubr.msk.f32.gmra.mxu1 %vm452_vm5, %v4401_v17 }
0x136e   :  { %13340 = vmatprep.mubr.msk.f32.mxu1 %vm14728_vm2, %v14727_v13 }
0x1371   :  { %13341 = vmatmul.mubr.msk.f32.gmra.mxu1 %vm452_vm5, %v4403_v22 }
0x1372   :  { %13360 = vmatprep.mubr.msk.f32.mxu1 %vm14728_vm2, %v14727_v13 }
0x13ba   :  { %v4192_v28 = vpop.xlane.xlu0 %4191 }
0x13bb   :  { %14417 = vrcp.f32 %v4192_v28 }
0x13be   :  { %v4195_v3 = vpop.xlane.xlu1 %4194  ;;  %v4532_v37 = vpop.permute.xlu0 %4531 }
0x13bf   :  { %14419 = vrcp.f32 %v4195_v3 }
0x13c2   :  { %v4739_v30 = vpop.permute.xlu1 %4738 }
0x13c8   :  { %v14418_v29 = vpop.eup %14417 }
0x13cc   :  { %v14420_v27 = vpop.eup %14419 }
0x13ef   :  { %v4198_v40 = vpop.xlane.xlu0 %4197 }
0x13f0   :  { %v4284_v32 = vpop.f32.mrf.mxu1  ;;  %14421 = vrcp.f32 %v4198_v40 }
0x13f1   :  { %v4301_v34 = vmul.f32 %v14418_v29, %v4284_v32  ;;  %v11903_v29 = vld [vmem:[%s17623_s7 + $0x60] sm:$0xff] }
0x13f2   :  { %v13310_v35 = vpop.f32.mrf.mxu1  ;;  %13359 = vmatpush3.msra.mxu1 %v11903_v29 }
0x13f3   :  { %13320 = vmatmul.mubr.msk.f32.vlgmr.msra.gmra.mxu0 %vm452_vm5, %v4301_v34  ;;  %13384 = vmatprep.subr.mxu1 %v14727_v13 }
0x13f4   :  { %13344 = vmatpush3.msk.msra.mxu0 %vm589_vm4, %v4534_v24  ;;  %v4289_v36 = vpop.f32.mrf.mxu1  ;;  %13322 = vmatprep.mubr.msk.f32.mxu0 %vm14728_vm2, %v14727_v13 }
0x13f5   :  { %v4302_v6 = vmul.f32 %v14420_v27, %v4289_v36  ;;  %13345 = vmatprep.subr.mxu0 %v14727_v13 }
0x13f6   :  { %13346 = vmatpush3.msra.mxu0 %v4532_v37  ;;  %v13313_v9 = vpop.f32.mrf.mxu1 }
0x13f7   :  { %13347 = vmatprep.subr.mxu0 %v14727_v13  ;;  %13323 = vmatmul.mubr.msk.f32.gmra.mxu0 %vm452_vm5, %v4302_v6 }
0x13f8   :  { %13348 = vmatpush3.msra.mxu0 %v4530_v26  ;;  %13325 = vmatprep.mubr.msk.f32.mxu0 %vm14728_vm2, %v14727_v13 }
0x13f9   :  { %13369 = vmatprep.subr.mxu0 %v14727_v13 }
0x13fd   :  { %v14422_v42 = vpop.eup %14421 }
0x1425   :  { %v4294_v45 = vpop.f32.mrf.mxu1 }
0x1426   :  { %v4303_v38 = vmul.f32 %v14422_v42, %v4294_v45 }
0x1427   :  { %v13316_v46 = vpop.f32.mrf.mxu1 }
0x1428   :  { %13326 = vmatmul.mubr.msk.f32.gmra.mxu0 %vm452_vm5, %v4303_v38 }
0x1429   :  { %v4488_v47 = vpop.f32.mrf.mxu1  ;;  %13349 = vmatprep.mubr.msk.f32.mxu0 %vm14728_vm2, %v14727_v13 }
0x142a   :  { %v4502_v19 = vsel %vm551_vm6, %v4488_v47, -inf }
0x142b   :  { %4503 = vmax.xlane.f32.xlu0 %v4502_v19  ;;  %v13336_v25 = vpop.f32.mrf.mxu1 }
0x142d   :  { %v4493_v51 = vpop.f32.mrf.mxu1 }
0x142e   :  { %v4505_v54 = vsel %vm551_vm6, %v4493_v51, -inf }
0x142f   :  { %4506 = vmax.xlane.f32.xlu1 %v4505_v54  ;;  %v13339_v33 = vpop.f32.mrf.mxu1 }
0x1431   :  { %v4498_v49 = vpop.f32.mrf.mxu1 }
0x1432   :  { %v4508_v59 = vsel %vm558_vm7, %v4498_v49, -inf }
0x1433   :  { %4509 = vmax.xlane.f32.xlu0 %v4508_v59  ;;  %v13342_v62 = vpop.f32.mrf.mxu1 }
0x1440   :  { %4734 = vrot.lane.b32.xlu1 %v14983_v55, %s17638_s27 }
0x1444   :  { %4730 = vrot.lane.b32.xlu1 %v15013_v63, %s17638_s27 }
0x1448   :  { %4861 = vrot.lane.b32.xlu1 %v14975_v48, %s17638_s27 }
0x1449   :  { %4736 = vrot.lane.b32.xlu0 %v14992_v58, %s17638_s27 }
0x144c   :  { %4859 = vrot.lane.b32.xlu1 %v14973_v44, %s17638_s27 }
0x144d   :  { %4728 = vrot.lane.b32.xlu0 %v14990_v57, %s17638_s27 }
0x1451   :  { %4732 = vrot.lane.b32.xlu0 %v14996_v60, %s17638_s27 }
0x1455   :  { %4863 = vrot.lane.b32.xlu0 %v14977_v52, %s17638_s27 }
0x14b3   :  { %v4381_v31 = vpop.f32.mrf.mxu0 }
0x14b4   :  { %v15917_v1 = vadd.f32 %v4381_v31, %v15859_v10  ;;  %v4504_v2 = vpop.xlane.xlu0 %4503 }
0x14b5   :  { %v4511_v4 = vsub.f32 %v4488_v47, %v4504_v2  ;;  %v13321_v41 = vpop.f32.mrf.mxu0 }
0x14b7   :  { %v4514_v0 = vmul.f32 1.442695, %v4511_v4  ;;  %v4386_v7 = vpop.f32.mrf.mxu0 }
0x14b8   :  { %v15920_v56 = vadd.f32 %v4386_v7, %v15862_v5  ;;  %v4507_v8 = vpop.xlane.xlu1 %4506 }
0x14b9   :  { %14423 = vpow2.f32 %v4514_v0  ;;  %v4512_v39 = vsub.f32 %v4493_v51, %v4507_v8  ;;  %v13324_v12 = vpop.f32.mrf.mxu0 }
0x14bb   :  { %v4516_v11 = vmul.f32 1.442695, %v4512_v39 }
0x14bc   :  { %v4510_v14 = vpop.xlane.xlu0 %4509  ;;  %v4735_v43 = vpop.permute.xlu1 %4734 }
0x14bd   :  { %14425 = vpow2.f32 %v4516_v11  ;;  %v4513_v16 = vsub.f32 %v4498_v49, %v4510_v14 }
0x14bf   :  { %v4518_v53 = vmul.f32 1.442695, %v4513_v16 }
0x14c0   :  { %v4737_v20 = vpop.permute.xlu0 %4736  ;;  %v4731_v23 = vpop.permute.xlu1 %4730 }
0x14c1   :  { %14427 = vpow2.f32 %v4518_v53 }
0x14c4   :  { %v4729_v22 = vpop.permute.xlu0 %4728  ;;  %v4862_v32 = vpop.permute.xlu1 %4861 }
0x14c6   :  { %v14424_v10 = vpop.eup %14423 }
0x14c7   :  { %13350 = vmatmul.mubr.msk.f32.vlgmr.msra.gmra.mxu0 %vm551_vm6, %v14424_v10  ;;  %v4520_v18 = vsel %vm551_vm6, %v14424_v10, 0.0 }
0x14c8   :  { %13370 = vmatpush3.xpose.msk.msra.mxu0 %vm452_vm5, %v4739_v30  ;;  %4521 = vadd.xlane.f32.xlu1 %v4520_v18  ;;  %v4733_v24 = vpop.permute.xlu0 %4732  ;;  %v4860_v34 = vpop.permute.xlu1 %4859 }
0x14c9   :  { %13352 = vmatprep.mubr.msk.f32.mxu0 %vm14728_vm2, %v14727_v13  ;;  %13371 = vmatprep.subr.mxu0 %v14727_v13 }
0x14ca   :  { %v14426_v5 = vpop.eup %14425 }
0x14cb   :  { %13353 = vmatmul.mubr.msk.f32.gmra.mxu0 %vm551_vm6, %v14426_v5  ;;  %v4523_v21 = vsel %vm551_vm6, %v14426_v5, 0.0 }
0x14cc   :  { %13372 = vmatpush3.xpose.msk.msra.mxu0 %vm452_vm5, %v4737_v20  ;;  %4524 = vadd.xlane.f32.xlu0 %v4523_v21  ;;  %v4864_v35 = vpop.permute.xlu0 %4863 }
0x14cd   :  { %13355 = vmatprep.mubr.msk.f32.mxu0 %vm14728_vm2, %v14727_v13  ;;  %13373 = vmatprep.subr.mxu0 %v14727_v13 }
0x14ce   :  { %v14428_v50 = vpop.eup %14427 }
0x14cf   :  { %13356 = vmatmul.mubr.msk.f32.gmra.mxu0 %vm551_vm6, %v14428_v50  ;;  %v4526_v17 = vsel %vm558_vm7, %v14428_v50, 0.0 }
0x14d0   :  { %13374 = vmatpush3.xpose.msk.msra.mxu0 %vm452_vm5, %v4735_v43  ;;  %4527 = vadd.xlane.f32.xlu0 %v4526_v17 }
0x14d1   :  { %13375 = vmatprep.mubr.msk.f32.mxu0 %vm14728_vm2, %v14727_v13  ;;  %13399 = vmatprep.subr.mxu0 %v14727_v13 }
0x14d3   :  { %13376 = vmatmul.mubr.msk.f32.vlgmr.msra.gmra.mxu0 %vm452_vm5, %v4729_v22 }
0x14d4   :  { %13378 = vmatprep.mubr.msk.f32.mxu0 %vm14728_vm2, %v14727_v13 }
0x14d7   :  { %13379 = vmatmul.mubr.msk.f32.gmra.mxu0 %vm452_vm5, %v4731_v23 }
0x14d8   :  { %13381 = vmatprep.mubr.msk.f32.mxu0 %vm14728_vm2, %v14727_v13 }
0x14db   :  { %13382 = vmatmul.mubr.msk.f32.gmra.mxu0 %vm452_vm5, %v4733_v24 }
0x14dc   :  { %13401 = vmatprep.mubr.msk.f32.mxu0 %vm14728_vm2, %v14727_v13 }
0x14e8   :  { %v4391_v26 = vpop.f32.mrf.mxu0 }
0x14e9   :  { %v15950_v28 = vadd.f32 %v4391_v26, %v15865_v15 }
0x14ea   :  { %v13327_v3 = vpop.f32.mrf.mxu0 }
0x1551   :  { %v4522_v27 = vpop.xlane.xlu1 %4521 }
0x1552   :  { %14429 = vrcp.f32 %v4522_v27 }
0x1555   :  { %v4525_v36 = vpop.xlane.xlu0 %4524 }
0x1556   :  { %14431 = vrcp.f32 %v4525_v36 }
0x1559   :  { %v4528_v37 = vpop.xlane.xlu0 %4527 }
0x155a   :  { %14433 = vrcp.f32 %v4528_v37 }
0x155f   :  { %v14430_v6 = vpop.eup %14429 }
0x1563   :  { %v14432_v42 = vpop.eup %14431 }
0x1567   :  { %v14434_v47 = vpop.eup %14433 }
0x1587   :  { %v4614_v15 = vpop.f32.mrf.mxu0 }
0x1588   :  { %v4631_v9 = vmul.f32 %v14430_v6, %v4614_v15 }
0x1589   :  { %v13351_v40 = vpop.f32.mrf.mxu0 }
0x158a   :  { %13361 = vmatmul.mubr.msk.f32.vlgmr.msra.gmra.mxu1 %vm452_vm5, %v4631_v9 }
0x158b   :  { %13385 = vmatpush3.msk.msra.mxu1 %vm589_vm4, %v4864_v35  ;;  %v4619_v45 = vpop.f32.mrf.mxu0  ;;  %13363 = vmatprep.mubr.msk.f32.mxu1 %vm14728_vm2, %v14727_v13  ;;  %v11917_v35 = vld [vmem:[%s17623_s7 + $0x68] sm:$0xff] }
0x158c   :  { %v4632_v38 = vmul.f32 %v14432_v42, %v4619_v45  ;;  %13386 = vmatprep.subr.mxu1 %v14727_v13  ;;  %13400 = vmatpush3.msra.mxu0 %v11917_v35 }
0x158d   :  { %13387 = vmatpush3.msra.mxu1 %v4862_v32  ;;  %v13354_v46 = vpop.f32.mrf.mxu0  ;;  %13425 = vmatprep.subr.mxu0 %v14727_v13 }
0x158e   :  { %13388 = vmatprep.subr.mxu1 %v14727_v13  ;;  %13364 = vmatmul.mubr.msk.f32.gmra.mxu1 %vm452_vm5, %v4632_v38 }
0x158f   :  { %13389 = vmatpush3.msra.mxu1 %v4860_v34  ;;  %v4624_v19 = vpop.f32.mrf.mxu0  ;;  %13366 = vmatprep.mubr.msk.f32.mxu1 %vm14728_vm2, %v14727_v13 }
0x1590   :  { %v4633_v25 = vmul.f32 %v14434_v47, %v4624_v19  ;;  %13410 = vmatprep.subr.mxu1 %v14727_v13 }
0x1591   :  { %v13357_v51 = vpop.f32.mrf.mxu0 }
0x1592   :  { %13367 = vmatmul.mubr.msk.f32.gmra.mxu1 %vm452_vm5, %v4633_v25 }
0x1593   :  { %v4818_v54 = vpop.f32.mrf.mxu0  ;;  %13390 = vmatprep.mubr.msk.f32.mxu1 %vm14728_vm2, %v14727_v13 }
0x1594   :  { %v4832_v33 = vsel %vm551_vm6, %v4818_v54, -inf }
0x1595   :  { %4833 = vmax.xlane.f32.xlu1 %v4832_v33  ;;  %v13377_v49 = vpop.f32.mrf.mxu0 }
0x1597   :  { %v4823_v59 = vpop.f32.mrf.mxu0 }
0x1598   :  { %v4835_v62 = vsel %vm551_vm6, %v4823_v59, -inf }
0x1599   :  { %4836 = vmax.xlane.f32.xlu0 %v4835_v62  ;;  %v13380_v31 = vpop.f32.mrf.mxu0 }
0x159b   :  { %v4828_v30 = vpop.f32.mrf.mxu0 }
0x159c   :  { %v4838_v4 = vsel %vm558_vm7, %v4828_v30, -inf }
0x159d   :  { %v13383_v2 = vpop.f32.mrf.mxu0 }
0x15a6   :  { %5066 = vrot.lane.b32.xlu1 %v14992_v58, %s17636_s23 }
0x15af   :  { %5068 = vrot.lane.b32.xlu0 %v14998_v61, %s17636_s23 }
0x15b3   :  { %5064 = vrot.lane.b32.xlu0 %v14983_v55, %s17636_s23 }
0x15b7   :  { %5060 = vrot.lane.b32.xlu0 %v15013_v63, %s17636_s23 }
0x15ca   :  { %4839 = vmax.xlane.f32.xlu1 %v4838_v4 }
0x15db   :  { %5058 = vrot.lane.b32.xlu1 %v14990_v57, %s17636_s23 }
0x15df   :  { %5062 = vrot.lane.b32.xlu1 %v14996_v60, %s17636_s23 }
0x15e3   :  { %5193 = vrot.lane.b32.xlu1 %v14977_v52, %s17636_s23 }
0x15e7   :  { %5189 = vrot.lane.b32.xlu1 %v14973_v44, %s17636_s23 }
0x161e   :  { %v4834_v41 = vpop.xlane.xlu1 %4833 }
0x161f   :  { %v4841_v0 = vsub.f32 %v4818_v54, %v4834_v41 }
0x1621   :  { %v4844_v7 = vmul.f32 1.442695, %v4841_v0 }
0x1622   :  { %v4837_v8 = vpop.xlane.xlu0 %4836  ;;  %v5067_v10 = vpop.permute.xlu1 %5066 }
0x1623   :  { %14435 = vpow2.f32 %v4844_v7  ;;  %v4842_v39 = vsub.f32 %v4823_v59, %v4837_v8 }
0x1625   :  { %v4846_v12 = vmul.f32 1.442695, %v4842_v39 }
0x1626   :  { %v5069_v14 = vpop.permute.xlu0 %5068 }
0x1627   :  { %14437 = vpow2.f32 %v4846_v12 }
0x162a   :  { %v5065_v5 = vpop.permute.xlu0 %5064 }
0x1630   :  { %v14436_v11 = vpop.eup %14435 }
0x1631   :  { %13391 = vmatmul.mubr.msk.f32.vlgmr.msra.gmra.mxu1 %vm551_vm6, %v14436_v11  ;;  %v4850_v16 = vsel %vm551_vm6, %v14436_v11, 0.0 }
0x1632   :  { %13411 = vmatpush3.xpose.msk.msra.mxu1 %vm452_vm5, %v5069_v14  ;;  %4851 = vadd.xlane.f32.xlu0 %v4850_v16 }
0x1633   :  { %13393 = vmatprep.mubr.msk.f32.mxu1 %vm14728_vm2, %v14727_v13  ;;  %13412 = vmatprep.subr.mxu1 %v14727_v13 }
0x1634   :  { %v14438_v53 = vpop.eup %14437 }
0x1635   :  { %13394 = vmatmul.mubr.msk.f32.gmra.mxu1 %vm551_vm6, %v14438_v53  ;;  %v4853_v18 = vsel %vm551_vm6, %v14438_v53, 0.0 }
0x1636   :  { %13413 = vmatpush3.xpose.msk.msra.mxu1 %vm452_vm5, %v5067_v10  ;;  %4854 = vadd.xlane.f32.xlu1 %v4853_v18 }
0x1637   :  { %13414 = vmatprep.subr.mxu1 %v14727_v13  ;;  %13396 = vmatprep.mubr.msk.f32.mxu1 %vm14728_vm2, %v14727_v13 }
0x163a   :  { %13415 = vmatpush3.xpose.msk.msra.mxu1 %vm452_vm5, %v5065_v5 }
0x163b   :  { %13440 = vmatprep.subr.mxu1 %v14727_v13 }
0x1647   :  { %5398 = vrot.lane.b32.xlu1 %v14998_v61, %s17634_s28 }
0x1648   :  { %5191 = vrot.lane.b32.xlu0 %v14975_v48, %s17636_s23 }
0x164a   :  { %v4711_v20 = vpop.f32.mrf.mxu1 }
0x164b   :  { %v16007_v21 = vadd.f32 %v4711_v20, %v15917_v1 }
0x164c   :  { %v13362_v50 = vpop.f32.mrf.mxu1 }
0x164e   :  { %v4716_v43 = vpop.f32.mrf.mxu1 }
0x164f   :  { %v16010_v17 = vadd.f32 %v4716_v43, %v15920_v56 }
0x1650   :  { %v13365_v22 = vpop.f32.mrf.mxu1 }
0x1652   :  { %v4721_v23 = vpop.f32.mrf.mxu1 }
0x1653   :  { %v16013_v24 = vadd.f32 %v4721_v23, %v15950_v28  ;;  %v4840_v26 = vpop.xlane.xlu1 %4839  ;;  %v5061_v28 = vpop.permute.xlu0 %5060 }
0x1654   :  { %v4843_v3 = vsub.f32 %v4828_v30, %v4840_v26  ;;  %v13368_v61 = vpop.f32.mrf.mxu1 }
0x1656   :  { %v4848_v29 = vmul.f32 1.442695, %v4843_v3 }
0x1657   :  { %v5059_v56 = vpop.permute.xlu1 %5058 }
0x1658   :  { %14439 = vpow2.f32 %v4848_v29 }
0x165b   :  { %v5063_v34 = vpop.permute.xlu1 %5062 }
0x165f   :  { %v5194_v27 = vpop.permute.xlu1 %5193 }
0x1663   :  { %v5190_v36 = vpop.permute.xlu1 %5189 }
0x1665   :  { %v14440_v32 = vpop.eup %14439 }
0x1666   :  { %13397 = vmatmul.mubr.msk.f32.gmra.mxu1 %vm551_vm6, %v14440_v32  ;;  %v4856_v1 = vsel %vm558_vm7, %v14440_v32, 0.0 }
0x1667   :  { %4857 = vadd.xlane.f32.xlu0 %v4856_v1  ;;  %13416 = vmatprep.mubr.msk.f32.mxu1 %vm14728_vm2, %v14727_v13 }
0x166a   :  { %13417 = vmatmul.mubr.msk.f32.vlgmr.msra.gmra.mxu1 %vm452_vm5, %v5059_v56 }
0x166b   :  { %13419 = vmatprep.mubr.msk.f32.mxu1 %vm14728_vm2, %v14727_v13 }
0x166e   :  { %13420 = vmatmul.mubr.msk.f32.gmra.mxu1 %vm452_vm5, %v5061_v28 }
0x166f   :  { %13422 = vmatprep.mubr.msk.f32.mxu1 %vm14728_vm2, %v14727_v13 }
0x1672   :  { %13423 = vmatmul.mubr.msk.f32.gmra.mxu1 %vm452_vm5, %v5063_v34  ;;  %v11931_v34 = vld [vmem:[%s17623_s7 + $0x70] sm:$0xff] }
0x1673   :  { %13442 = vmatprep.mubr.msk.f32.mxu1 %vm14728_vm2, %v14727_v13  ;;  %13441 = vmatpush3.msra.mxu1 %v11931_v34  ;;  %v11945_v34 = vld [vmem:[%s17623_s7 + $0x78] sm:$0xff] }
0x1674   :  { %13466 = vmatprep.subr.mxu1 %v14727_v13 }
0x16bb   :  { %v4852_v37 = vpop.xlane.xlu0 %4851 }
0x16bc   :  { %14441 = vrcp.f32 %v4852_v37 }
0x16bf   :  { %v4855_v6 = vpop.xlane.xlu1 %4854  ;;  %v5192_v46 = vpop.permute.xlu0 %5191 }
0x16c0   :  { %14443 = vrcp.f32 %v4855_v6 }
0x16c3   :  { %v5399_v39 = vpop.permute.xlu1 %5398 }
0x16c9   :  { %v14442_v15 = vpop.eup %14441 }
0x16cd   :  { %v14444_v45 = vpop.eup %14443 }
0x16f0   :  { %v4858_v25 = vpop.xlane.xlu0 %4857 }
0x16f1   :  { %v4944_v9 = vpop.f32.mrf.mxu1  ;;  %14445 = vrcp.f32 %v4858_v25 }
0x16f2   :  { %v4961_v40 = vmul.f32 %v14442_v15, %v4944_v9 }
0x16f3   :  { %v13392_v42 = vpop.f32.mrf.mxu1 }
0x16f4   :  { %13402 = vmatmul.mubr.msk.f32.vlgmr.msra.gmra.mxu0 %vm452_vm5, %v4961_v40 }
0x16f5   :  { %13426 = vmatpush3.msk.msra.mxu0 %vm589_vm4, %v5194_v27  ;;  %v4949_v38 = vpop.f32.mrf.mxu1  ;;  %13404 = vmatprep.mubr.msk.f32.mxu0 %vm14728_vm2, %v14727_v13 }
0x16f6   :  { %v4962_v47 = vmul.f32 %v14444_v45, %v4949_v38  ;;  %13427 = vmatprep.subr.mxu0 %v14727_v13 }
0x16f7   :  { %13428 = vmatpush3.msra.mxu0 %v5192_v46  ;;  %v13395_v19 = vpop.f32.mrf.mxu1 }
0x16f8   :  { %13429 = vmatprep.subr.mxu0 %v14727_v13  ;;  %13405 = vmatmul.mubr.msk.f32.gmra.mxu0 %vm452_vm5, %v4962_v47 }
0x16f9   :  { %13430 = vmatpush3.msra.mxu0 %v5190_v36  ;;  %13407 = vmatprep.mubr.msk.f32.mxu0 %vm14728_vm2, %v14727_v13 }
0x16fa   :  { %13451 = vmatprep.subr.mxu0 %v14727_v13 }
0x16fe   :  { %v14446_v51 = vpop.eup %14445 }
0x1726   :  { %v4954_v54 = vpop.f32.mrf.mxu1 }
0x1727   :  { %v4963_v33 = vmul.f32 %v14446_v51, %v4954_v54 }
0x1728   :  { %v13398_v49 = vpop.f32.mrf.mxu1 }
0x1729   :  { %13408 = vmatmul.mubr.msk.f32.gmra.mxu0 %vm452_vm5, %v4963_v33 }
0x172a   :  { %v5148_v59 = vpop.f32.mrf.mxu1  ;;  %13431 = vmatprep.mubr.msk.f32.mxu0 %vm14728_vm2, %v14727_v13 }
0x172b   :  { %v5162_v62 = vsel %vm551_vm6, %v5148_v59, -inf }
0x172c   :  { %5163 = vmax.xlane.f32.xlu0 %v5162_v62  ;;  %v13418_v31 = vpop.f32.mrf.mxu1 }
0x172e   :  { %v5153_v30 = vpop.f32.mrf.mxu1 }
0x172f   :  { %v5165_v2 = vsel %vm551_vm6, %v5153_v30, -inf }
0x1730   :  { %5166 = vmax.xlane.f32.xlu1 %v5165_v2  ;;  %v13421_v4 = vpop.f32.mrf.mxu1 }
0x1732   :  { %v5158_v41 = vpop.f32.mrf.mxu1 }
0x1733   :  { %v5168_v0 = vsel %vm558_vm7, %v5158_v41, -inf }
0x1734   :  { %5169 = vmax.xlane.f32.xlu0 %v5168_v0  ;;  %v13424_v7 = vpop.f32.mrf.mxu1 }
0x1741   :  { %5394 = vrot.lane.b32.xlu1 %v14983_v55, %s17634_s28 }
0x1745   :  { %5390 = vrot.lane.b32.xlu1 %v15013_v63, %s17634_s28 }
0x174a   :  { %5396 = vrot.lane.b32.xlu0 %v14992_v58, %s17634_s28 }
0x174e   :  { %5388 = vrot.lane.b32.xlu0 %v14990_v57, %s17634_s28 }
0x1752   :  { %5392 = vrot.lane.b32.xlu0 %v14996_v60, %s17634_s28 }
0x17b4   :  { %v5041_v8 = vpop.f32.mrf.mxu0 }
0x17b5   :  { %v16059_v12 = vadd.f32 %v5041_v8, %v16007_v21  ;;  %v5164_v11 = vpop.xlane.xlu0 %5163 }
0x17b6   :  { %v5171_v14 = vsub.f32 %v5148_v59, %v5164_v11  ;;  %v13403_v55 = vpop.f32.mrf.mxu0 }
0x17b8   :  { %v5174_v16 = vmul.f32 1.442695, %v5171_v14  ;;  %v5046_v53 = vpop.f32.mrf.mxu0 }
0x17b9   :  { %v16062_v63 = vadd.f32 %v5046_v53, %v16010_v17  ;;  %v5167_v58 = vpop.xlane.xlu1 %5166 }
0x17ba   :  { %14447 = vpow2.f32 %v5174_v16  ;;  %v5172_v10 = vsub.f32 %v5153_v30, %v5167_v58  ;;  %v13406_v57 = vpop.f32.mrf.mxu0 }
0x17bc   :  { %v5176_v18 = vmul.f32 1.442695, %v5172_v10 }
0x17bd   :  { %v5170_v5 = vpop.xlane.xlu0 %5169  ;;  %v5395_v26 = vpop.permute.xlu1 %5394 }
0x17be   :  { %14449 = vpow2.f32 %v5176_v18  ;;  %v5173_v60 = vsub.f32 %v5158_v41, %v5170_v5 }
0x17c0   :  { %v5178_v20 = vmul.f32 1.442695, %v5173_v60 }
0x17c1   :  { %v5397_v17 = vpop.permute.xlu0 %5396  ;;  %v5391_v29 = vpop.permute.xlu1 %5390 }
0x17c2   :  { %14451 = vpow2.f32 %v5178_v20 }
0x17c5   :  { %v5389_v61 = vpop.permute.xlu0 %5388 }
0x17c7   :  { %v14448_v21 = vpop.eup %14447 }
0x17c8   :  { %13432 = vmatmul.mubr.msk.f32.vlgmr.msra.gmra.mxu0 %vm551_vm6, %v14448_v21  ;;  %v5180_v50 = vsel %vm551_vm6, %v14448_v21, 0.0 }
0x17c9   :  { %13452 = vmatpush3.xpose.msk.msra.mxu0 %vm452_vm5, %v5399_v39  ;;  %5181 = vadd.xlane.f32.xlu1 %v5180_v50  ;;  %v5393_v32 = vpop.permute.xlu0 %5392 }
0x17ca   :  { %13434 = vmatprep.mubr.msk.f32.mxu0 %vm14728_vm2, %v14727_v13  ;;  %13453 = vmatprep.subr.mxu0 %v14727_v13 }
0x17cb   :  { %v14450_v43 = vpop.eup %14449 }
0x17cc   :  { %13435 = vmatmul.mubr.msk.f32.gmra.mxu0 %vm551_vm6, %v14450_v43  ;;  %v5183_v22 = vsel %vm551_vm6, %v14450_v43, 0.0 }
0x17cd   :  { %13454 = vmatpush3.xpose.msk.msra.mxu0 %vm452_vm5, %v5397_v17  ;;  %5184 = vadd.xlane.f32.xlu0 %v5183_v22  ;;  %v14673_v17 = vld [vmem:[%s17620_s4 + $0x8] sm:$0xff]  ;;  %v14674_v22 = vld [vmem:[%s17620_s4] sm:$0xff] }
0x17ce   :  { %13437 = vmatprep.mubr.msk.f32.mxu0 %vm14728_vm2, %v14727_v13  ;;  %13455 = vmatprep.subr.mxu0 %v14727_v13 }
0x17cf   :  { %v14452_v23 = vpop.eup %14451 }
0x17d0   :  { %13438 = vmatmul.mubr.msk.f32.gmra.mxu0 %vm551_vm6, %v14452_v23  ;;  %v5186_v3 = vsel %vm558_vm7, %v14452_v23, 0.0 }
0x17d1   :  { %13456 = vmatpush3.xpose.msk.msra.mxu0 %vm452_vm5, %v5395_v26  ;;  %5187 = vadd.xlane.f32.xlu0 %v5186_v3  ;;  %v16157_v3 = vld [vmem:[#allocation2 + $0x18] sm:$0xff] }
0x17d2   :  { %13457 = vmatprep.mubr.msk.f32.mxu0 %vm14728_vm2, %v14727_v13  ;;  %13481 = vmatprep.subr.mxu0 %v14727_v13 }
0x17d4   :  { %13458 = vmatmul.mubr.msk.f32.vlgmr.msra.gmra.mxu0 %vm452_vm5, %v5389_v61  ;;  %v14675_v61 = vld [vmem:[%s17622_s6 + $0x18] sm:$0xff] }
0x17d5   :  { %13460 = vmatprep.mubr.msk.f32.mxu0 %vm14728_vm2, %v14727_v13  ;;  %13482 = vmatpush3.msra.mxu0 %v11945_v34 }
0x17d6   :  { %13509 = vmatprep.subr.mxu0 %v14727_v13 }
0x17d8   :  { %13461 = vmatmul.mubr.msk.f32.gmra.mxu0 %vm452_vm5, %v5391_v29  ;;  %v16167_v29 = vld [vmem:[#allocation2 + $0x20] sm:$0xff] }
0x17d9   :  { %13463 = vmatprep.mubr.msk.f32.mxu0 %vm14728_vm2, %v14727_v13 }
0x17dc   :  { %13464 = vmatmul.mubr.msk.f32.gmra.mxu0 %vm452_vm5, %v5393_v32  ;;  %v14676_v32 = vld [vmem:[%s17622_s6 + $0x10] sm:$0xff] }
0x17dd   :  { %13483 = vmatprep.mubr.msk.f32.mxu0 %vm14728_vm2, %v14727_v13 }
0x17e9   :  { %v5051_v1 = vpop.f32.mrf.mxu0 }
0x17ea   :  { %v16092_v56 = vadd.f32 %v5051_v1, %v16013_v24  ;;  %v14677_v1 = vld [vmem:[%s17622_s6 + $0x8] sm:$0xff] }
0x17eb   :  { %v13409_v28 = vpop.f32.mrf.mxu0 }
0x17ec   :  { %v14678_v28 = vld [vmem:[%s17622_s6] sm:$0xff] }
0x1852   :  { %v5182_v35 = vpop.xlane.xlu1 %5181 }
0x1853   :  { %14453 = vrcp.f32 %v5182_v35 }
0x1856   :  { %v5185_v27 = vpop.xlane.xlu0 %5184 }
0x1857   :  { %14455 = vrcp.f32 %v5185_v27 }
0x185a   :  { %v5188_v36 = vpop.xlane.xlu0 %5187 }
0x185b   :  { %14457 = vrcp.f32 %v5188_v36 }
0x1860   :  { %v14454_v37 = vpop.eup %14453 }
0x1864   :  { %v14456_v24 = vpop.eup %14455 }
0x1868   :  { %v14458_v38 = vpop.eup %14457 }
0x1888   :  { %v5274_v6 = vpop.f32.mrf.mxu0 }
0x1889   :  { %v5291_v15 = vmul.f32 %v14454_v37, %v5274_v6 }
0x188a   :  { %v13433_v9 = vpop.f32.mrf.mxu0 }
0x188b   :  { %13443 = vmatmul.mubr.msk.f32.vlgmr.msra.gmra.mxu1 %vm452_vm5, %v5291_v15 }
0x188c   :  { %v5279_v40 = vpop.f32.mrf.mxu0  ;;  %13445 = vmatprep.mubr.msk.f32.mxu1 %vm14728_vm2, %v14727_v13 }
0x188d   :  { %v5292_v42 = vmul.f32 %v14456_v24, %v5279_v40 }
0x188e   :  { %v13436_v45 = vpop.f32.mrf.mxu0 }
0x188f   :  { %13446 = vmatmul.mubr.msk.f32.gmra.mxu1 %vm452_vm5, %v5292_v42  ;;  %v14679_v42 = vld [vmem:[%s17621_s5 + $0x18] sm:$0xff] }
0x1890   :  { %v5284_v46 = vpop.f32.mrf.mxu0  ;;  %13448 = vmatprep.mubr.msk.f32.mxu1 %vm14728_vm2, %v14727_v13 }
0x1891   :  { %v5293_v47 = vmul.f32 %v14458_v38, %v5284_v46  ;;  %v14680_v46 = vld [vmem:[%s17621_s5 + $0x10] sm:$0xff] }
0x1892   :  { %v13439_v19 = vpop.f32.mrf.mxu0 }
0x1893   :  { %13449 = vmatmul.mubr.msk.f32.gmra.mxu1 %vm452_vm5, %v5293_v47  ;;  %v14681_v47 = vld [vmem:[%s17621_s5 + $0x8] sm:$0xff]  ;;  %v14682_v19 = vld [vmem:[%s17621_s5] sm:$0xff] }
0x1894   :  { %v5478_v25 = vpop.f32.mrf.mxu0  ;;  %13472 = vmatprep.mubr.msk.f32.mxu1 %vm14728_vm2, %v14727_v13 }
0x1895   :  { %v5492_v51 = vsel %vm551_vm6, %v5478_v25, -inf }
0x1896   :  { %5493 = vmax.xlane.f32.xlu1 %v5492_v51  ;;  %v13459_v54 = vpop.f32.mrf.mxu0 }
0x1898   :  { %v5483_v33 = vpop.f32.mrf.mxu0 }
0x1899   :  { %v5495_v49 = vsel %vm551_vm6, %v5483_v33, -inf }
0x189a   :  { %5496 = vmax.xlane.f32.xlu0 %v5495_v49  ;;  %v13462_v59 = vpop.f32.mrf.mxu0 }
0x189c   :  { %v5488_v62 = vpop.f32.mrf.mxu0 }
0x189d   :  { %v5498_v30 = vsel %vm558_vm7, %v5488_v62, -inf }
0x189e   :  { %v13465_v31 = vpop.f32.mrf.mxu0 }
0x18a7   :  { %5521 = vrot.lane.b32.xlu1 %v14975_v48, %s17634_s28 }
0x18b0   :  { %5523 = vrot.lane.b32.xlu0 %v14977_v52, %s17634_s28 }
0x18cb   :  { %5499 = vmax.xlane.f32.xlu1 %v5498_v30 }
0x18dc   :  { %5519 = vrot.lane.b32.xlu1 %v14973_v44, %s17634_s28 }
0x191f   :  { %v5494_v2 = vpop.xlane.xlu1 %5493 }
0x1920   :  { %v5501_v4 = vsub.f32 %v5478_v25, %v5494_v2 }
0x1922   :  { %v5504_v41 = vmul.f32 1.442695, %v5501_v4 }
0x1923   :  { %v5497_v0 = vpop.xlane.xlu0 %5496  ;;  %v5522_v48 = vpop.permute.xlu1 %5521 }
0x1924   :  { %14459 = vpow2.f32 %v5504_v41  ;;  %v5502_v7 = vsub.f32 %v5483_v33, %v5497_v0 }
0x1926   :  { %v5506_v8 = vmul.f32 1.442695, %v5502_v7 }
0x1927   :  { %v5524_v39 = vpop.permute.xlu0 %5523 }
0x1928   :  { %14461 = vpow2.f32 %v5506_v8  ;;  %13467 = vmatpush3.msk.msra.mxu1 %vm589_vm4, %v5524_v39 }
0x1929   :  { %13468 = vmatprep.subr.mxu1 %v14727_v13 }
0x192a   :  { %13469 = vmatpush3.msra.mxu1 %v5522_v48 }
0x192b   :  { %13470 = vmatprep.subr.mxu1 %v14727_v13 }
0x1931   :  { %v14460_v52 = vpop.eup %14459 }
0x1932   :  { %v5510_v44 = vsel %vm551_vm6, %v14460_v52, 0.0 }
0x1933   :  { %5511 = vadd.xlane.f32.xlu0 %v5510_v44 }
0x1935   :  { %v14462_v11 = vpop.eup %14461 }
0x1936   :  { %v5513_v14 = vsel %vm551_vm6, %v14462_v11, 0.0 }
0x1937   :  { %5514 = vadd.xlane.f32.xlu1 %v5513_v14 }
0x194b   :  { %v5371_v55 = vpop.f32.mrf.mxu1 }
0x194c   :  { %v16122_v16 = vadd.f32 %v5371_v55, %v16059_v12  ;;  %v14671_v12 = vld [vmem:[%s17620_s4 + $0x18] sm:$0xff] }
0x194d   :  { %v13444_v53 = vpop.f32.mrf.mxu1 }
0x194f   :  { %v5376_v58 = vpop.f32.mrf.mxu1 }
0x1950   :  { %v16125_v10 = vadd.f32 %v5376_v58, %v16062_v63  ;;  %v14672_v63 = vld [vmem:[%s17620_s4 + $0x10] sm:$0xff]  ;;  %s17644_s4 = smov 8  }
0x1951   :  { %v13447_v57 = vpop.f32.mrf.mxu1 }
0x1953   :  { %v5381_v18 = vpop.f32.mrf.mxu1 }
0x1954   :  { %v16128_v5 = vadd.f32 %v5381_v18, %v16092_v56  ;;  %v5500_v60 = vpop.xlane.xlu1 %5499  ;;  %v5720_v56 = vld [vmem:[#allocation2 + $0x28] sm:$0x1] }
0x1955   :  { %v5503_v20 = vsub.f32 %v5488_v62, %v5500_v60  ;;  %v13450_v21 = vpop.f32.mrf.mxu1 }
0x1957   :  { %v5508_v50 = vmul.f32 1.442695, %v5503_v20 }
0x1958   :  { %v5520_v43 = vpop.permute.xlu1 %5519 }
0x1959   :  { %14463 = vpow2.f32 %v5508_v50  ;;  %13471 = vmatpush3.msra.mxu1 %v5520_v43 }
0x195a   :  { %13473 = vmatmul.mubr.msk.f32.vlgmr.msra.gmra.mxu1 %vm551_vm6, %v14460_v52  ;;  %13492 = vmatprep.subr.mxu1 %v14727_v13 }
0x195b   :  { %13475 = vmatprep.mubr.msk.f32.mxu1 %vm14728_vm2, %v14727_v13  ;;  %13493 = vmatpush3.msra.mxu1 %v14671_v12 }
0x195c   :  { %13494 = vmatprep.subr.mxu1 %v14727_v13 }
0x195d   :  { %13495 = vmatpush3.msra.mxu1 %v14672_v63 }
0x195e   :  { %13476 = vmatmul.mubr.msk.f32.gmra.mxu1 %vm551_vm6, %v14462_v11  ;;  %13496 = vmatprep.subr.mxu1 %v14727_v13 }
0x195f   :  { %13478 = vmatprep.mubr.msk.f32.mxu1 %vm14728_vm2, %v14727_v13  ;;  %13497 = vmatpush3.msra.mxu1 %v14673_v17 }
0x1960   :  { %13498 = vmatprep.subr.mxu1 %v14727_v13 }
0x1961   :  { %13499 = vmatpush3.msra.mxu1 %v14674_v22 }
0x1962   :  { %13526 = vmatprep.subr.mxu1 %v14727_v13 }
0x1966   :  { %v14464_v23 = vpop.eup %14463 }
0x1967   :  { %13479 = vmatmul.mubr.msk.f32.gmra.mxu1 %vm551_vm6, %v14464_v23  ;;  %v5516_v26 = vsel %vm558_vm7, %v14464_v23, 0.0  ;;  %v14683_v23 = vld [vmem:[%s17623_s7 + $0x8] sm:$0xff] }
0x1968   :  { %5517 = vadd.xlane.f32.xlu0 %v5516_v26  ;;  %13500 = vmatprep.mubr.msk.f32.mxu1 %vm14728_vm2, %v14727_v13 }
0x196b   :  { %13501 = vmatmul.mubr.msk.f32.vlgmr.msra.gmra.mxu1 %vm173_vm3, %v16157_v3 }
0x196c   :  { %13503 = vmatprep.mubr.msk.f32.mxu1 %vm14728_vm2, %v14727_v13  ;;  %13527 = vmatpush3.msra.mxu1 %v14675_v61 }
0x196d   :  { %13528 = vmatprep.subr.mxu1 %v14727_v13 }
0x196e   :  { %13529 = vmatpush3.msra.mxu1 %v14676_v32 }
0x196f   :  { %13504 = vmatmul.mubr.msk.f32.gmra.mxu1 %vm173_vm3, %v16167_v29  ;;  %13530 = vmatprep.subr.mxu1 %v14727_v13 }
0x1970   :  { %13506 = vmatprep.mubr.msk.f32.mxu1 %vm14728_vm2, %v14727_v13  ;;  %13531 = vmatpush3.msra.mxu1 %v14677_v1 }
0x1971   :  { %13532 = vmatprep.subr.mxu1 %v14727_v13 }
0x1972   :  { %13533 = vmatpush3.msra.mxu1 %v14678_v28 }
0x1973   :  { %13507 = vmatmul.mubr.msk.f32.gmra.mxu1 %vm173_vm3, %v5720_v56  ;;  %13558 = vmatprep.subr.mxu1 %v14727_v13 }
0x1974   :  { %13534 = vmatprep.mubr.msk.f32.mxu1 %vm14728_vm2, %v14727_v13 }
0x1977   :  { %13535 = vmatmul.mubr.msk.f32.vlgmr.msra.gmra.mxu1 %vm173_vm3, %v16157_v3 }
0x1978   :  { %13537 = vmatprep.mubr.msk.f32.mxu1 %vm14728_vm2, %v14727_v13 }
0x197b   :  { %13538 = vmatmul.mubr.msk.f32.gmra.mxu1 %vm173_vm3, %v16167_v29 }
0x197c   :  { %13540 = vmatprep.mubr.msk.f32.mxu1 %vm14728_vm2, %v14727_v13 }
0x197f   :  { %13541 = vmatmul.mubr.msk.f32.gmra.mxu1 %vm173_vm3, %v5720_v56 }
0x1980   :  { %13564 = vmatprep.mubr.msk.f32.mxu1 %vm14728_vm2, %v14727_v13 }
0x19bc   :  { %v5512_v35 = vpop.xlane.xlu0 %5511 }
0x19bd   :  { %14465 = vrcp.f32 %v5512_v35 }
0x19c0   :  { %v5515_v27 = vpop.xlane.xlu1 %5514 }
0x19c1   :  { %14467 = vrcp.f32 %v5515_v27 }
0x19ca   :  { %v14466_v37 = vpop.eup %14465 }
0x19ce   :  { %v14468_v24 = vpop.eup %14467 }
0x19f1   :  { %v5518_v36 = vpop.xlane.xlu0 %5517 }
0x19f2   :  { %14469 = vrcp.f32 %v5518_v36 }
0x19ff   :  { %v14470_v25 = vpop.eup %14469 }
0x1a1a   :  { %v5604_v6 = vpop.f32.mrf.mxu1 }
0x1a1b   :  { %v5621_v15 = vmul.f32 %v14466_v37, %v5604_v6 }
0x1a1c   :  { %v13474_v9 = vpop.f32.mrf.mxu1 }
0x1a1d   :  { %13484 = vmatmul.mubr.msk.f32.vlgmr.msra.gmra.mxu0 %vm452_vm5, %v5621_v15 }
0x1a1e   :  { %v5609_v40 = vpop.f32.mrf.mxu1  ;;  %13486 = vmatprep.mubr.msk.f32.mxu0 %vm14728_vm2, %v14727_v13  ;;  %13510 = vmatpush3.msra.mxu0 %v14679_v42 }
0x1a1f   :  { %v5622_v45 = vmul.f32 %v14468_v24, %v5609_v40  ;;  %13511 = vmatprep.subr.mxu0 %v14727_v13 }
0x1a20   :  { %v13477_v38 = vpop.f32.mrf.mxu1  ;;  %13512 = vmatpush3.msra.mxu0 %v14680_v46 }
0x1a21   :  { %13487 = vmatmul.mubr.msk.f32.gmra.mxu0 %vm452_vm5, %v5622_v45  ;;  %13513 = vmatprep.subr.mxu0 %v14727_v13 }
0x1a22   :  { %13489 = vmatprep.mubr.msk.f32.mxu0 %vm14728_vm2, %v14727_v13  ;;  %13514 = vmatpush3.msra.mxu0 %v14681_v47 }
0x1a23   :  { %13515 = vmatprep.subr.mxu0 %v14727_v13 }
0x1a24   :  { %13516 = vmatpush3.msra.mxu0 %v14682_v19 }
0x1a25   :  { %13543 = vmatprep.subr.mxu0 %v14727_v13 }
0x1a27   :  { %v5614_v51 = vpop.f32.mrf.mxu1 }
0x1a28   :  { %v5623_v54 = vmul.f32 %v14470_v25, %v5614_v51 }
0x1a29   :  { %v13480_v33 = vpop.f32.mrf.mxu1 }
0x1a2a   :  { %13490 = vmatmul.mubr.msk.f32.gmra.mxu0 %vm452_vm5, %v5623_v54 }
0x1a2b   :  { %v5796_v49 = vpop.f32.mrf.mxu1  ;;  %13517 = vmatprep.mubr.msk.f32.mxu0 %vm14728_vm2, %v14727_v13 }
0x1a2d   :  { %v13502_v59 = vpop.f32.mrf.mxu1 }
0x1a2e   :  { %13518 = vmatmul.mubr.msk.f32.vlgmr.msra.gmra.mxu0 %vm173_vm3, %v16157_v3 }
0x1a2f   :  { %v5801_v62 = vpop.f32.mrf.mxu1  ;;  %13520 = vmatprep.mubr.msk.f32.mxu0 %vm14728_vm2, %v14727_v13 }
0x1a30   :  { %v16277_v50 = vmul.f32 0.35355338, %v5801_v62 }
0x1a31   :  { %v13505_v31 = vpop.f32.mrf.mxu1 }
0x1a32   :  { %13521 = vmatmul.mubr.msk.f32.gmra.mxu0 %vm173_vm3, %v16167_v29 }
0x1a33   :  { %v5806_v30 = vpop.f32.mrf.mxu1  ;;  %13523 = vmatprep.mubr.msk.f32.mxu0 %vm14728_vm2, %v14727_v13 }
0x1a34   :  { %v16286_v43 = vmul.f32 0.35355338, %v5806_v30 }
0x1a35   :  { %v13508_v2 = vpop.f32.mrf.mxu1 }
0x1a36   :  { %13524 = vmatmul.mubr.msk.f32.gmra.mxu0 %vm173_vm3, %v5720_v56 }
0x1a37   :  { %v16237_v4 = vpop.f32.mrf.mxu1  ;;  %13549 = vmatprep.mubr.msk.f32.mxu0 %vm14728_vm2, %v14727_v13 }
0x1a39   :  { %v13536_v41 = vpop.f32.mrf.mxu1 }
0x1a3b   :  { %v16241_v0 = vpop.f32.mrf.mxu1 }
0x1a3d   :  { %v13539_v7 = vpop.f32.mrf.mxu1 }
0x1a3f   :  { %v16243_v8 = vpop.f32.mrf.mxu1 }
0x1a40   :  { %13559 = vmatpush3.msk.msra.mxu1 %vm589_vm4, %v16243_v8 }
0x1a41   :  { %v13542_v39 = vpop.f32.mrf.mxu1  ;;  %13560 = vmatprep.subr.mxu1 %v14727_v13 }
0x1a42   :  { %13561 = vmatpush3.msra.mxu1 %v16241_v0 }
0x1a43   :  { %13562 = vmatprep.subr.mxu1 %v14727_v13 }
0x1a44   :  { %13563 = vmatpush3.msra.mxu1 %v16237_v4 }
0x1a45   :  { %13588 = vmatprep.subr.mxu1 %v14727_v13 }
0x1add   :  { %v5701_v48 = vpop.f32.mrf.mxu0 }
0x1ade   :  { %v16253_v52 = vadd.f32 %v5701_v48, %v16122_v16 }
0x1adf   :  { %v13485_v44 = vpop.f32.mrf.mxu0 }
0x1ae1   :  { %v5706_v11 = vpop.f32.mrf.mxu0 }
0x1ae2   :  { %v16256_v14 = vadd.f32 %v5706_v11, %v16125_v10 }
0x1ae3   :  { %v13488_v55 = vpop.f32.mrf.mxu0 }
0x1aea   :  { %v5711_v53 = vpop.f32.mrf.mxu0 }
0x1aeb   :  { %v16259_v58 = vadd.f32 %v5711_v53, %v16128_v5  ;;  %v16275_v5 = vmul.f32 0.35355338, %v5796_v49 }
0x1aec   :  { %v13491_v57 = vpop.f32.mrf.mxu0 }
0x1aee   :  { %v16261_v18 = vpop.f32.mrf.mxu0 }
0x1af0   :  { %v13519_v60 = vpop.f32.mrf.mxu0 }
0x1af2   :  { %v16263_v20 = vpop.f32.mrf.mxu0 }
0x1af3   :  { %6204 = vrot.lane.b32.xlu1 %v16263_v20, %s14729_s17 }
0x1af4   :  { %v13522_v16 = vpop.f32.mrf.mxu0 }
0x1af6   :  { %v16267_v21 = vpop.f32.mrf.mxu0 }
0x1af7   :  { %6202 = vrot.lane.b32.xlu1 %v16261_v18, %s14729_s17  ;;  %6206 = vrot.lane.b32.xlu0 %v16267_v21, %s14729_s17 }
0x1af8   :  { %13544 = vmatpush3.xpose.msk.msra.mxu0 %vm452_vm5, %v16267_v21  ;;  %v13525_v10 = vpop.f32.mrf.mxu0 }
0x1af9   :  { %13545 = vmatprep.subr.mxu0 %v14727_v13 }
0x1afb   :  { %6196 = vrot.lane.b32.xlu0 %v16275_v5, %s14729_s17  ;;  %6198 = vrot.lane.b32.xlu1 %v16277_v50, %s14729_s17 }
0x1afc   :  { %13546 = vmatpush3.xpose.msk.msra.mxu0 %vm452_vm5, %v16263_v20 }
0x1afd   :  { %13547 = vmatprep.subr.mxu0 %v14727_v13 }
0x1aff   :  { %6200 = vrot.lane.b32.xlu0 %v16286_v43, %s14729_s17 }
0x1b00   :  { %13548 = vmatpush3.xpose.msk.msra.mxu0 %vm452_vm5, %v16261_v18 }
0x1b01   :  { %13573 = vmatprep.subr.mxu0 %v14727_v13 }
0x1b03   :  { %13550 = vmatmul.mubr.msk.f32.vlgmr.msra.gmra.mxu0 %vm452_vm5, %v16275_v5 }
0x1b04   :  { %13552 = vmatprep.mubr.msk.f32.mxu0 %vm14728_vm2, %v14727_v13 }
0x1b07   :  { %13553 = vmatmul.mubr.msk.f32.gmra.mxu0 %vm452_vm5, %v16277_v50 }
0x1b08   :  { %13555 = vmatprep.mubr.msk.f32.mxu0 %vm14728_vm2, %v14727_v13 }
0x1b0b   :  { %13556 = vmatmul.mubr.msk.f32.gmra.mxu0 %vm452_vm5, %v16286_v43 }
0x1b0c   :  { %13579 = vmatprep.mubr.msk.f32.mxu0 %vm14728_vm2, %v14727_v13 }
0x1b65   :  { %v6205_v63 = vpop.permute.xlu1 %6204 }
0x1b69   :  { %v6207_v12 = vpop.permute.xlu0 %6206  ;;  %v6203_v17 = vpop.permute.xlu1 %6202 }
0x1b6a   :  { %13574 = vmatpush3.xpose.msk.msra.mxu0 %vm452_vm5, %v6207_v12 }
0x1b6b   :  { %13575 = vmatprep.subr.mxu0 %v14727_v13 }
0x1b6d   :  { %v6197_v22 = vpop.permute.xlu0 %6196  ;;  %v6199_v26 = vpop.permute.xlu1 %6198 }
0x1b6e   :  { %13576 = vmatpush3.xpose.msk.msra.mxu0 %vm452_vm5, %v6205_v63 }
0x1b6f   :  { %13577 = vmatprep.subr.mxu0 %v14727_v13 }
0x1b71   :  { %v6201_v3 = vpop.permute.xlu0 %6200 }
0x1b72   :  { %13578 = vmatpush3.xpose.msk.msra.mxu0 %vm452_vm5, %v6203_v17  ;;  %v14684_v17 = vld [vmem:[%s17623_s7] sm:$0xff] }
0x1b73   :  { %13603 = vmatprep.subr.mxu0 %v14727_v13 }
0x1b75   :  { %13580 = vmatmul.mubr.msk.f32.vlgmr.msra.gmra.mxu0 %vm452_vm5, %v6197_v22 }
0x1b76   :  { %13582 = vmatprep.mubr.msk.f32.mxu0 %vm14728_vm2, %v14727_v13  ;;  %13604 = vmatpush3.msra.mxu0 %v14683_v23 }
0x1b77   :  { %13625 = vmatprep.subr.mxu0 %v14727_v13 }
0x1b79   :  { %13583 = vmatmul.mubr.msk.f32.gmra.mxu0 %vm452_vm5, %v6199_v26 }
0x1b7a   :  { %13585 = vmatprep.mubr.msk.f32.mxu0 %vm14728_vm2, %v14727_v13 }
0x1b7d   :  { %13586 = vmatmul.mubr.msk.f32.gmra.mxu0 %vm452_vm5, %v6201_v3 }
0x1b7e   :  { %13605 = vmatprep.mubr.msk.f32.mxu0 %vm14728_vm2, %v14727_v13 }
0x1bc3   :  { %v6057_v61 = vpop.f32.mrf.mxu0 }
0x1bc4   :  { %v6071_v29 = vsel %vm551_vm6, %v6057_v61, -inf }
0x1bc5   :  { %v13551_v32 = vpop.f32.mrf.mxu0  ;;  %6072 = vmax.xlane.f32.xlu1 %v6071_v29 }
0x1bc7   :  { %v6062_v1 = vpop.f32.mrf.mxu0 }
0x1bc8   :  { %v6074_v56 = vsel %vm551_vm6, %v6062_v1, -inf }
0x1bc9   :  { %v13554_v28 = vpop.f32.mrf.mxu0  ;;  %6075 = vmax.xlane.f32.xlu0 %v6074_v56 }
0x1bcb   :  { %v6067_v34 = vpop.f32.mrf.mxu0 }
0x1bcc   :  { %v6077_v35 = vsel %vm558_vm7, %v6067_v34, -inf }
0x1bcd   :  { %6078 = vmax.xlane.f32.xlu0 %v6077_v35  ;;  %v13557_v27 = vpop.f32.mrf.mxu0 }
0x1c35   :  { %v6286_v36 = vpop.f32.mrf.mxu0 }
0x1c36   :  { %v6300_v37 = vsel %vm551_vm6, %v6286_v36, -inf }
0x1c37   :  { %6301 = vmax.xlane.f32.xlu1 %v6300_v37  ;;  %v13581_v6 = vpop.f32.mrf.mxu0 }
0x1c39   :  { %v6291_v15 = vpop.f32.mrf.mxu0 }
0x1c3a   :  { %v6303_v9 = vsel %vm551_vm6, %v6291_v15, -inf }
0x1c3b   :  { %6304 = vmax.xlane.f32.xlu0 %v6303_v9  ;;  %v13584_v24 = vpop.f32.mrf.mxu0 }
0x1c3d   :  { %v6296_v40 = vpop.f32.mrf.mxu0 }
0x1c3e   :  { %v6306_v31 = vsel %vm558_vm7, %v6296_v40, -inf }
0x1c3f   :  { %v13587_v42 = vpop.f32.mrf.mxu0 }
0x1c48   :  { %6331 = vrot.lane.b32.xlu1 %v16241_v0, %s14729_s17 }
0x1c4e   :  { %v6073_v45 = vpop.xlane.xlu1 %6072 }
0x1c4f   :  { %v6080_v38 = vsub.f32 %v6057_v61, %v6073_v45 }
0x1c51   :  { %v6083_v46 = vmul.f32 1.442695, %v6080_v38  ;;  %6333 = vrot.lane.b32.xlu0 %v16243_v8, %s14729_s17 }
0x1c52   :  { %v6076_v47 = vpop.xlane.xlu0 %6075 }
0x1c53   :  { %14471 = vpow2.f32 %v6083_v46  ;;  %v6081_v19 = vsub.f32 %v6062_v1, %v6076_v47 }
0x1c55   :  { %v6085_v25 = vmul.f32 1.442695, %v6081_v19 }
0x1c56   :  { %v6079_v51 = vpop.xlane.xlu0 %6078 }
0x1c57   :  { %14473 = vpow2.f32 %v6085_v25  ;;  %v6082_v54 = vsub.f32 %v6067_v34, %v6079_v51 }
0x1c59   :  { %v6087_v33 = vmul.f32 1.442695, %v6082_v54 }
0x1c5b   :  { %14475 = vpow2.f32 %v6087_v33 }
0x1c60   :  { %v14472_v49 = vpop.eup %14471 }
0x1c61   :  { %13565 = vmatmul.mubr.msk.f32.vlgmr.msra.gmra.mxu1 %vm551_vm6, %v14472_v49  ;;  %v6089_v26 = vsel %vm551_vm6, %v14472_v49, 0.0 }
0x1c62   :  { %13567 = vmatprep.mubr.msk.f32.mxu1 %vm14728_vm2, %v14727_v13 }
0x1c64   :  { %v16337_v59 = vpop.eup %14473 }
0x1c65   :  { %13568 = vmatmul.mubr.msk.f32.gmra.mxu1 %vm551_vm6, %v16337_v59  ;;  %v6092_v28 = vsel %vm551_vm6, %v16337_v59, 0.0 }
0x1c66   :  { %13570 = vmatprep.mubr.msk.f32.mxu1 %vm14728_vm2, %v14727_v13 }
0x1c68   :  { %v16343_v62 = vpop.eup %14475 }
0x1c69   :  { %13571 = vmatmul.mubr.msk.f32.gmra.mxu1 %vm551_vm6, %v16343_v62  ;;  %v6095_v34 = vsel %vm558_vm7, %v16343_v62, 0.0 }
0x1c6a   :  { %13594 = vmatprep.mubr.msk.f32.mxu1 %vm14728_vm2, %v14727_v13 }
0x1c6c   :  { %6307 = vmax.xlane.f32.xlu1 %v6306_v31 }
0x1c7d   :  { %6329 = vrot.lane.b32.xlu1 %v16237_v4, %s14729_s17 }
0x1cc0   :  { %v6302_v30 = vpop.xlane.xlu1 %6301 }
0x1cc1   :  { %v6309_v2 = vsub.f32 %v6286_v36, %v6302_v30 }
0x1cc3   :  { %v6312_v41 = vmul.f32 1.442695, %v6309_v2 }
0x1cc4   :  { %v6305_v7 = vpop.xlane.xlu0 %6304  ;;  %v6332_v11 = vpop.permute.xlu1 %6331 }
0x1cc5   :  { %14477 = vpow2.f32 %v6312_v41  ;;  %v6310_v39 = vsub.f32 %v6291_v15, %v6305_v7  ;;  %v14685_v41 = vld [vmem:[%s17623_s7 + $0x10] sm:$0xff] }
0x1cc7   :  { %v6314_v48 = vmul.f32 1.442695, %v6310_v39 }
0x1cc8   :  { %v6334_v44 = vpop.permute.xlu0 %6333 }
0x1cc9   :  { %14479 = vpow2.f32 %v6314_v48  ;;  %13589 = vmatpush3.msk.msra.mxu1 %vm589_vm4, %v6334_v44 }
0x1cca   :  { %13590 = vmatprep.subr.mxu1 %v14727_v13 }
0x1ccb   :  { %13591 = vmatpush3.msra.mxu1 %v6332_v11 }
0x1ccc   :  { %13592 = vmatprep.subr.mxu1 %v14727_v13 }
0x1cd2   :  { %v14478_v55 = vpop.eup %14477 }
0x1cd3   :  { %v6318_v53 = vsel %vm551_vm6, %v14478_v55, 0.0 }
0x1cd4   :  { %6319 = vadd.xlane.f32.xlu0 %v6318_v53 }
0x1cd6   :  { %v14480_v57 = vpop.eup %14479 }
0x1cd7   :  { %v6321_v60 = vsel %vm551_vm6, %v14480_v57, 0.0 }
0x1cd8   :  { %6322 = vadd.xlane.f32.xlu1 %v6321_v60 }
0x1ce9   :  { %6620 = vrot.lane.b32.xlu1 %v16263_v20, %s14730_s18 }
0x1ced   :  { %6618 = vrot.lane.b32.xlu1 %v16261_v18, %s14730_s18 }
0x1cf1   :  { %6614 = vrot.lane.b32.xlu1 %v16277_v50, %s14730_s18 }
0x1cf5   :  { %v6308_v16 = vpop.xlane.xlu1 %6307 }
0x1cf6   :  { %v6311_v10 = vsub.f32 %v6296_v40, %v6308_v16 }
0x1cf8   :  { %v6316_v12 = vmul.f32 1.442695, %v6311_v10 }
0x1cf9   :  { %v6330_v63 = vpop.permute.xlu1 %6329 }
0x1cfa   :  { %14481 = vpow2.f32 %v6316_v12  ;;  %13593 = vmatpush3.msra.mxu1 %v6330_v63 }
0x1cfb   :  { %13595 = vmatmul.mubr.msk.f32.vlgmr.msra.gmra.mxu1 %vm551_vm6, %v14478_v55  ;;  %13614 = vmatprep.subr.mxu1 %v14727_v13 }
0x1cfc   :  { %13597 = vmatprep.mubr.msk.f32.mxu1 %vm14728_vm2, %v14727_v13  ;;  %13615 = vmatpush3.msra.mxu1 %v14684_v17 }
0x1cfd   :  { %13640 = vmatprep.subr.mxu1 %v14727_v13 }
0x1cff   :  { %13598 = vmatmul.mubr.msk.f32.gmra.mxu1 %vm551_vm6, %v14480_v57 }
0x1d00   :  { %13600 = vmatprep.mubr.msk.f32.mxu1 %vm14728_vm2, %v14727_v13 }
0x1d07   :  { %v14482_v22 = vpop.eup %14481 }
0x1d08   :  { %13601 = vmatmul.mubr.msk.f32.gmra.mxu1 %vm551_vm6, %v14482_v22  ;;  %v6324_v23 = vsel %vm558_vm7, %v14482_v22, 0.0 }
0x1d09   :  { %6325 = vadd.xlane.f32.xlu0 %v6324_v23  ;;  %13616 = vmatprep.mubr.msk.f32.mxu1 %vm14728_vm2, %v14727_v13 }
0x1d15   :  { %6090 = vadd.xlane.f32.xlu1 %v6089_v26 }
0x1d1f   :  { %6622 = vrot.lane.b32.xlu0 %v16267_v21, %s14730_s18 }
0x1d21   :  { %v6176_v3 = vpop.f32.mrf.mxu1 }
0x1d23   :  { %v13566_v61 = vpop.f32.mrf.mxu1  ;;  %6612 = vrot.lane.b32.xlu0 %v16275_v5, %s14730_s18 }
0x1d25   :  { %v16383_v29 = vpop.f32.mrf.mxu1 }
0x1d26   :  { %6745 = vrot.lane.b32.xlu1 %v16241_v0, %s14730_s18 }
0x1d27   :  { %v13569_v32 = vpop.f32.mrf.mxu1  ;;  %6616 = vrot.lane.b32.xlu0 %v16286_v43, %s14730_s18 }
0x1d29   :  { %v16389_v1 = vpop.f32.mrf.mxu1 }
0x1d2a   :  { %6743 = vrot.lane.b32.xlu1 %v16237_v4, %s14730_s18 }
0x1d2b   :  { %v13572_v56 = vpop.f32.mrf.mxu1 }
0x1d46   :  { %6093 = vadd.xlane.f32.xlu0 %v6092_v28 }
0x1d4a   :  { %6096 = vadd.xlane.f32.xlu0 %v6095_v34 }
0x1d5d   :  { %v6320_v15 = vpop.xlane.xlu0 %6319 }
0x1d60   :  { %6747 = vrot.lane.b32.xlu0 %v16243_v8, %s14730_s18 }
0x1d61   :  { %v6323_v35 = vpop.xlane.xlu1 %6322 }
0x1d65   :  { %v6621_v27 = vpop.permute.xlu1 %6620 }
0x1d69   :  { %v6619_v36 = vpop.permute.xlu1 %6618 }
0x1d6d   :  { %v6615_v37 = vpop.permute.xlu1 %6614 }
0x1d92   :  { %v6326_v40 = vpop.xlane.xlu0 %6325 }
0x1d96   :  { %v6623_v47 = vpop.permute.xlu0 %6622 }
0x1d9a   :  { %v6613_v33 = vpop.permute.xlu0 %6612 }
0x1d9e   :  { %v6091_v6 = vpop.xlane.xlu1 %6090  ;;  %v6617_v30 = vpop.permute.xlu0 %6616 }
0x1d9f   :  { %14483 = vrcp.f32 %v6091_v6 }
0x1da0   :  { %14485 = vrcp.f32 %v6320_v15 }
0x1da1   :  { %14487 = vrcp.f32 %v6323_v35 }
0x1da2   :  { %14489 = vrcp.f32 %v6326_v40  ;;  %v6746_v39 = vpop.permute.xlu1 %6745 }
0x1da6   :  { %v6744_v44 = vpop.permute.xlu1 %6743 }
0x1dac   :  { %v14484_v9 = vpop.eup %14483 }
0x1dad   :  { %v6193_v24 = vmul.f32 %v14484_v9, %v6176_v3  ;;  %v14486_v42 = vpop.eup %14485 }
0x1dae   :  { %v14488_v19 = vpop.eup %14487 }
0x1daf   :  { %13617 = vmatmul.mubr.msk.f32.vlgmr.msra.gmra.mxu1 %vm452_vm5, %v6193_v24  ;;  %v14490_v49 = vpop.eup %14489 }
0x1db0   :  { %13619 = vmatprep.mubr.msk.f32.mxu1 %vm14728_vm2, %v14727_v13 }
0x1dbb   :  { %v6414_v45 = vpop.f32.mrf.mxu1 }
0x1dbc   :  { %v6431_v38 = vmul.f32 %v14486_v42, %v6414_v45 }
0x1dbd   :  { %v13596_v46 = vpop.f32.mrf.mxu1 }
0x1dbe   :  { %13606 = vmatmul.mubr.msk.f32.vlgmr.msra.gmra.mxu0 %vm452_vm5, %v6431_v38 }
0x1dbf   :  { %13626 = vmatpush3.xpose.msk.msra.mxu0 %vm452_vm5, %v6623_v47  ;;  %v6419_v25 = vpop.f32.mrf.mxu1  ;;  %13608 = vmatprep.mubr.msk.f32.mxu0 %vm14728_vm2, %v14727_v13 }
0x1dc0   :  { %v6432_v51 = vmul.f32 %v14488_v19, %v6419_v25  ;;  %13627 = vmatprep.subr.mxu0 %v14727_v13 }
0x1dc1   :  { %v13599_v54 = vpop.f32.mrf.mxu1 }
0x1dc2   :  { %13609 = vmatmul.mubr.msk.f32.gmra.mxu0 %vm452_vm5, %v6432_v51 }
0x1dc3   :  { %13628 = vmatpush3.xpose.msk.msra.mxu0 %vm452_vm5, %v6621_v27  ;;  %13611 = vmatprep.mubr.msk.f32.mxu0 %vm14728_vm2, %v14727_v13 }
0x1dc4   :  { %13629 = vmatprep.subr.mxu0 %v14727_v13 }
0x1dc7   :  { %13630 = vmatpush3.xpose.msk.msra.mxu0 %vm452_vm5, %v6619_v36 }
0x1dc8   :  { %v6424_v59 = vpop.f32.mrf.mxu1  ;;  %13655 = vmatprep.subr.mxu0 %v14727_v13 }
0x1dc9   :  { %v6433_v62 = vmul.f32 %v14490_v49, %v6424_v59 }
0x1dca   :  { %v13602_v31 = vpop.f32.mrf.mxu1 }
0x1dcb   :  { %13612 = vmatmul.mubr.msk.f32.gmra.mxu0 %vm452_vm5, %v6433_v62 }
0x1dcc   :  { %13631 = vmatprep.mubr.msk.f32.mxu0 %vm14728_vm2, %v14727_v13 }
0x1dcf   :  { %v6094_v2 = vpop.xlane.xlu0 %6093  ;;  %13632 = vmatmul.mubr.msk.f32.vlgmr.msra.gmra.mxu0 %vm452_vm5, %v6613_v33 }
0x1dd0   :  { %14491 = vrcp.f32 %v6094_v2  ;;  %13634 = vmatprep.mubr.msk.f32.mxu0 %vm14728_vm2, %v14727_v13  ;;  %13656 = vmatpush3.msra.mxu0 %v14685_v41 }
0x1dd1   :  { %13681 = vmatprep.subr.mxu0 %v14727_v13 }
0x1dd3   :  { %v6097_v7 = vpop.xlane.xlu0 %6096  ;;  %13635 = vmatmul.mubr.msk.f32.gmra.mxu0 %vm452_vm5, %v6615_v37 }
0x1dd4   :  { %14493 = vrcp.f32 %v6097_v7  ;;  %13637 = vmatprep.mubr.msk.f32.mxu0 %vm14728_vm2, %v14727_v13  ;;  %v14686_v7 = vld [vmem:[%s17623_s7 + $0x18] sm:$0xff] }
0x1dd7   :  { %v6748_v48 = vpop.permute.xlu0 %6747  ;;  %13638 = vmatmul.mubr.msk.f32.gmra.mxu0 %vm452_vm5, %v6617_v30 }
0x1dd8   :  { %13641 = vmatpush3.msk.msra.mxu1 %vm589_vm4, %v6748_v48  ;;  %13657 = vmatprep.mubr.msk.f32.mxu0 %vm14728_vm2, %v14727_v13 }
0x1dd9   :  { %13642 = vmatprep.subr.mxu1 %v14727_v13 }
0x1dda   :  { %13643 = vmatpush3.msra.mxu1 %v6746_v39 }
0x1ddb   :  { %13644 = vmatprep.subr.mxu1 %v14727_v13 }
0x1ddc   :  { %13645 = vmatpush3.msra.mxu1 %v6744_v44 }
0x1ddd   :  { %v14492_v11 = vpop.eup %14491  ;;  %13666 = vmatprep.subr.mxu1 %v14727_v13 }
0x1dde   :  { %v6194_v55 = vmul.f32 %v14492_v11, %v16383_v29 }
0x1de0   :  { %13620 = vmatmul.mubr.msk.f32.gmra.mxu1 %vm452_vm5, %v6194_v55 }
0x1de1   :  { %v14494_v53 = vpop.eup %14493  ;;  %13622 = vmatprep.mubr.msk.f32.mxu1 %vm14728_vm2, %v14727_v13 }
0x1de2   :  { %v6195_v57 = vmul.f32 %v14494_v53, %v16389_v1 }
0x1de4   :  { %13623 = vmatmul.mubr.msk.f32.gmra.mxu1 %vm452_vm5, %v6195_v57 }
0x1de5   :  { %13646 = vmatprep.mubr.msk.f32.mxu1 %vm14728_vm2, %v14727_v13 }
0x1e6f   :  { %v6598_v60 = vpop.f32.mrf.mxu1 }
0x1e71   :  { %v13618_v16 = vpop.f32.mrf.mxu1 }
0x1e7e   :  { %v6509_v10 = vpop.f32.mrf.mxu0 }
0x1e7f   :  { %v16442_v12 = vadd.f32 %v6598_v60, %v6509_v10 }
0x1e80   :  { %v13607_v63 = vpop.f32.mrf.mxu0 }
0x1e82   :  { %v6514_v17 = vpop.f32.mrf.mxu0 }
0x1e84   :  { %v13610_v22 = vpop.f32.mrf.mxu0 }
0x1e8b   :  { %v6519_v23 = vpop.f32.mrf.mxu0 }
0x1e8d   :  { %v13613_v26 = vpop.f32.mrf.mxu0 }
0x1e8f   :  { %v6702_v3 = vpop.f32.mrf.mxu0 }
0x1e90   :  { %v6716_v61 = vsel %vm551_vm6, %v6702_v3, -inf }
0x1e91   :  { %6717 = vmax.xlane.f32.xlu1 %v6716_v61  ;;  %v13633_v29 = vpop.f32.mrf.mxu0 }
0x1e93   :  { %v6707_v32 = vpop.f32.mrf.mxu0 }
0x1e94   :  { %v6719_v1 = vsel %vm551_vm6, %v6707_v32, -inf }
0x1e95   :  { %6720 = vmax.xlane.f32.xlu0 %v6719_v1  ;;  %v13636_v56 = vpop.f32.mrf.mxu0 }
0x1e97   :  { %v6712_v28 = vpop.f32.mrf.mxu0 }
0x1e98   :  { %v6722_v9 = vsel %vm558_vm7, %v6712_v28, -inf }
0x1e99   :  { %v13639_v34 = vpop.f32.mrf.mxu0 }
0x1ea0   :  { %v6603_v35 = vpop.f32.mrf.mxu1 }
0x1ea1   :  { %v16446_v27 = vadd.f32 %v6603_v35, %v6514_v17 }
0x1ea2   :  { %6948 = vrot.lane.b32.xlu1 %v16263_v20, %s14731_s20  ;;  %v13621_v36 = vpop.f32.mrf.mxu1 }
0x1ea4   :  { %v6608_v37 = vpop.f32.mrf.mxu1 }
0x1ea5   :  { %v16450_v6 = vadd.f32 %v6608_v37, %v6519_v23 }
0x1ea6   :  { %v13624_v15 = vpop.f32.mrf.mxu1 }
0x1eab   :  { %6950 = vrot.lane.b32.xlu0 %v16267_v21, %s14731_s20 }
0x1eaf   :  { %6946 = vrot.lane.b32.xlu0 %v16261_v18, %s14731_s20 }
0x1eb3   :  { %6942 = vrot.lane.b32.xlu0 %v16277_v50, %s14731_s20 }
0x1ec6   :  { %6723 = vmax.xlane.f32.xlu1 %v6722_v9 }
0x1ed7   :  { %6940 = vrot.lane.b32.xlu1 %v16275_v5, %s14731_s20 }
0x1edb   :  { %6944 = vrot.lane.b32.xlu1 %v16286_v43, %s14731_s20 }
0x1edf   :  { %7075 = vrot.lane.b32.xlu1 %v16243_v8, %s14731_s20 }
0x1ee3   :  { %7071 = vrot.lane.b32.xlu1 %v16237_v4, %s14731_s20 }
0x1f1a   :  { %v6718_v24 = vpop.xlane.xlu1 %6717 }
0x1f1b   :  { %v6725_v40 = vsub.f32 %v6702_v3, %v6718_v24 }
0x1f1d   :  { %v6728_v42 = vmul.f32 1.442695, %v6725_v40 }
0x1f1e   :  { %v6721_v45 = vpop.xlane.xlu0 %6720  ;;  %v6949_v54 = vpop.permute.xlu1 %6948 }
0x1f1f   :  { %14495 = vpow2.f32 %v6728_v42  ;;  %v6726_v38 = vsub.f32 %v6707_v32, %v6721_v45 }
0x1f21   :  { %v6730_v46 = vmul.f32 1.442695, %v6726_v38 }
0x1f22   :  { %v6951_v19 = vpop.permute.xlu0 %6950 }
0x1f23   :  { %14497 = vpow2.f32 %v6730_v46 }
0x1f26   :  { %v6947_v49 = vpop.permute.xlu0 %6946 }
0x1f2a   :  { %v6943_v39 = vpop.permute.xlu0 %6942 }
0x1f2c   :  { %v14496_v47 = vpop.eup %14495 }
0x1f2d   :  { %13647 = vmatmul.mubr.msk.f32.vlgmr.msra.gmra.mxu1 %vm551_vm6, %v14496_v47  ;;  %v6734_v25 = vsel %vm551_vm6, %v14496_v47, 0.0 }
0x1f2e   :  { %13667 = vmatpush3.xpose.msk.msra.mxu1 %vm452_vm5, %v6951_v19  ;;  %6735 = vadd.xlane.f32.xlu0 %v6734_v25 }
0x1f2f   :  { %13649 = vmatprep.mubr.msk.f32.mxu1 %vm14728_vm2, %v14727_v13  ;;  %13668 = vmatprep.subr.mxu1 %v14727_v13 }
0x1f30   :  { %v14498_v51 = vpop.eup %14497 }
0x1f31   :  { %13650 = vmatmul.mubr.msk.f32.gmra.mxu1 %vm551_vm6, %v14498_v51  ;;  %v6737_v33 = vsel %vm551_vm6, %v14498_v51, 0.0 }
0x1f32   :  { %13669 = vmatpush3.xpose.msk.msra.mxu1 %vm452_vm5, %v6949_v54  ;;  %6738 = vadd.xlane.f32.xlu1 %v6737_v33 }
0x1f33   :  { %13670 = vmatprep.subr.mxu1 %v14727_v13  ;;  %13652 = vmatprep.mubr.msk.f32.mxu1 %vm14728_vm2, %v14727_v13 }
0x1f36   :  { %13671 = vmatpush3.xpose.msk.msra.mxu1 %vm452_vm5, %v6947_v49 }
0x1f37   :  { %13696 = vmatprep.subr.mxu1 %v14727_v13 }
0x1f43   :  { %7278 = vrot.lane.b32.xlu1 %v16267_v21, %s14732_s24 }
0x1f44   :  { %7073 = vrot.lane.b32.xlu0 %v16241_v0, %s14731_s20  ;;  %s17643_s20 = smov 16  }
0x1f4f   :  { %v6724_v59 = vpop.xlane.xlu1 %6723 }
0x1f50   :  { %v6727_v62 = vsub.f32 %v6712_v28, %v6724_v59 }
0x1f52   :  { %v6732_v31 = vmul.f32 1.442695, %v6727_v62 }
0x1f53   :  { %v6941_v41 = vpop.permute.xlu1 %6940 }
0x1f54   :  { %14499 = vpow2.f32 %v6732_v31 }
0x1f57   :  { %v6945_v48 = vpop.permute.xlu1 %6944 }
0x1f5b   :  { %v7076_v44 = vpop.permute.xlu1 %7075 }
0x1f5f   :  { %v7072_v11 = vpop.permute.xlu1 %7071 }
0x1f61   :  { %v14500_v30 = vpop.eup %14499 }
0x1f62   :  { %13653 = vmatmul.mubr.msk.f32.gmra.mxu1 %vm551_vm6, %v14500_v30  ;;  %v6740_v2 = vsel %vm558_vm7, %v14500_v30, 0.0 }
0x1f63   :  { %6741 = vadd.xlane.f32.xlu0 %v6740_v2  ;;  %13672 = vmatprep.mubr.msk.f32.mxu1 %vm14728_vm2, %v14727_v13 }
0x1f66   :  { %13673 = vmatmul.mubr.msk.f32.vlgmr.msra.gmra.mxu1 %vm452_vm5, %v6941_v41 }
0x1f67   :  { %13675 = vmatprep.mubr.msk.f32.mxu1 %vm14728_vm2, %v14727_v13  ;;  %13697 = vmatpush3.msra.mxu1 %v14686_v7 }
0x1f68   :  { %13722 = vmatprep.subr.mxu1 %v14727_v13 }
0x1f6a   :  { %13676 = vmatmul.mubr.msk.f32.gmra.mxu1 %vm452_vm5, %v6943_v39 }
0x1f6b   :  { %13678 = vmatprep.mubr.msk.f32.mxu1 %vm14728_vm2, %v14727_v13 }
0x1f6e   :  { %13679 = vmatmul.mubr.msk.f32.gmra.mxu1 %vm452_vm5, %v6945_v48 }
0x1f6f   :  { %13698 = vmatprep.mubr.msk.f32.mxu1 %vm14728_vm2, %v14727_v13 }
0x1fb7   :  { %v6736_v55 = vpop.xlane.xlu0 %6735 }
0x1fb8   :  { %14501 = vrcp.f32 %v6736_v55  ;;  %v14687_v55 = vld [vmem:[%s17623_s7 + $0x20] sm:$0xff] }
0x1fbb   :  { %v6739_v53 = vpop.xlane.xlu1 %6738  ;;  %v7074_v22 = vpop.permute.xlu0 %7073 }
0x1fbc   :  { %14503 = vrcp.f32 %v6739_v53 }
0x1fbf   :  { %v7279_v42 = vpop.permute.xlu1 %7278 }
0x1fc5   :  { %v14502_v57 = vpop.eup %14501 }
0x1fc9   :  { %v14504_v63 = vpop.eup %14503 }
0x1fec   :  { %v6742_v3 = vpop.xlane.xlu0 %6741 }
0x1fed   :  { %v6828_v60 = vpop.f32.mrf.mxu1  ;;  %14505 = vrcp.f32 %v6742_v3 }
0x1fee   :  { %v6845_v16 = vmul.f32 %v14502_v57, %v6828_v60 }
0x1fef   :  { %v13648_v10 = vpop.f32.mrf.mxu1 }
0x1ff0   :  { %13658 = vmatmul.mubr.msk.f32.vlgmr.msra.gmra.mxu0 %vm452_vm5, %v6845_v16 }
0x1ff1   :  { %13682 = vmatpush3.msk.msra.mxu0 %vm589_vm4, %v7076_v44  ;;  %v6833_v17 = vpop.f32.mrf.mxu1  ;;  %13660 = vmatprep.mubr.msk.f32.mxu0 %vm14728_vm2, %v14727_v13 }
0x1ff2   :  { %v6846_v23 = vmul.f32 %v14504_v63, %v6833_v17  ;;  %13683 = vmatprep.subr.mxu0 %v14727_v13 }
0x1ff3   :  { %13684 = vmatpush3.msra.mxu0 %v7074_v22  ;;  %v13651_v26 = vpop.f32.mrf.mxu1 }
0x1ff4   :  { %13685 = vmatprep.subr.mxu0 %v14727_v13  ;;  %13661 = vmatmul.mubr.msk.f32.gmra.mxu0 %vm452_vm5, %v6846_v23 }
0x1ff5   :  { %13686 = vmatpush3.msra.mxu0 %v7072_v11  ;;  %13663 = vmatprep.mubr.msk.f32.mxu0 %vm14728_vm2, %v14727_v13 }
0x1ff6   :  { %13707 = vmatprep.subr.mxu0 %v14727_v13 }
0x1ffa   :  { %v14506_v61 = vpop.eup %14505 }
0x2022   :  { %v6838_v29 = vpop.f32.mrf.mxu1 }
0x2023   :  { %v6847_v32 = vmul.f32 %v14506_v61, %v6838_v29 }
0x2024   :  { %v13654_v1 = vpop.f32.mrf.mxu1 }
0x2025   :  { %13664 = vmatmul.mubr.msk.f32.gmra.mxu0 %vm452_vm5, %v6847_v32 }
0x2026   :  { %v7030_v56 = vpop.f32.mrf.mxu1  ;;  %13687 = vmatprep.mubr.msk.f32.mxu0 %vm14728_vm2, %v14727_v13 }
0x2027   :  { %v7044_v28 = vsel %vm551_vm6, %v7030_v56, -inf }
0x2028   :  { %7045 = vmax.xlane.f32.xlu0 %v7044_v28  ;;  %v13674_v34 = vpop.f32.mrf.mxu1 }
0x202a   :  { %v7035_v35 = vpop.f32.mrf.mxu1 }
0x202b   :  { %v7047_v36 = vsel %vm551_vm6, %v7035_v35, -inf }
0x202c   :  { %7048 = vmax.xlane.f32.xlu1 %v7047_v36  ;;  %v13677_v37 = vpop.f32.mrf.mxu1 }
0x202e   :  { %v7040_v15 = vpop.f32.mrf.mxu1 }
0x202f   :  { %v7050_v9 = vsel %vm558_vm7, %v7040_v15, -inf }
0x2030   :  { %7051 = vmax.xlane.f32.xlu0 %v7050_v9  ;;  %v13680_v24 = vpop.f32.mrf.mxu1 }
0x203d   :  { %7274 = vrot.lane.b32.xlu1 %v16261_v18, %s14732_s24 }
0x2041   :  { %7270 = vrot.lane.b32.xlu1 %v16277_v50, %s14732_s24 }
0x2045   :  { %7401 = vrot.lane.b32.xlu1 %v16241_v0, %s14732_s24 }
0x2046   :  { %7276 = vrot.lane.b32.xlu0 %v16263_v20, %s14732_s24 }
0x2049   :  { %7399 = vrot.lane.b32.xlu1 %v16237_v4, %s14732_s24 }
0x204a   :  { %7268 = vrot.lane.b32.xlu0 %v16275_v5, %s14732_s24 }
0x204e   :  { %7272 = vrot.lane.b32.xlu0 %v16286_v43, %s14732_s24 }
0x2052   :  { %7403 = vrot.lane.b32.xlu0 %v16243_v8, %s14732_s24 }
0x20b0   :  { %v6923_v40 = vpop.f32.mrf.mxu0 }
0x20b1   :  { %v16535_v45 = vadd.f32 %v6923_v40, %v16442_v12  ;;  %v7046_v38 = vpop.xlane.xlu0 %7045 }
0x20b2   :  { %v7053_v46 = vsub.f32 %v7030_v56, %v7046_v38  ;;  %v13659_v47 = vpop.f32.mrf.mxu0 }
0x20b4   :  { %v7056_v19 = vmul.f32 1.442695, %v7053_v46  ;;  %v6928_v25 = vpop.f32.mrf.mxu0 }
0x20b5   :  { %v16538_v51 = vadd.f32 %v6928_v25, %v16446_v27  ;;  %v7049_v54 = vpop.xlane.xlu1 %7048 }
0x20b6   :  { %14507 = vpow2.f32 %v7056_v19  ;;  %v7054_v33 = vsub.f32 %v7035_v35, %v7049_v54  ;;  %v13662_v49 = vpop.f32.mrf.mxu0 }
0x20b8   :  { %v7058_v59 = vmul.f32 1.442695, %v7054_v33 }
0x20b9   :  { %v7052_v62 = vpop.xlane.xlu0 %7051  ;;  %v7275_v48 = vpop.permute.xlu1 %7274 }
0x20ba   :  { %14509 = vpow2.f32 %v7058_v59  ;;  %v7055_v31 = vsub.f32 %v7040_v15, %v7052_v62 }
0x20bc   :  { %v7060_v30 = vmul.f32 1.442695, %v7055_v31 }
0x20bd   :  { %v7277_v41 = vpop.permute.xlu0 %7276  ;;  %v7271_v53 = vpop.permute.xlu1 %7270 }
0x20be   :  { %14511 = vpow2.f32 %v7060_v30 }
0x20c1   :  { %v7269_v11 = vpop.permute.xlu0 %7268  ;;  %v7402_v63 = vpop.permute.xlu1 %7401 }
0x20c3   :  { %v14508_v12 = vpop.eup %14507 }
0x20c4   :  { %13688 = vmatmul.mubr.msk.f32.vlgmr.msra.gmra.mxu0 %vm551_vm6, %v14508_v12  ;;  %v7062_v2 = vsel %vm551_vm6, %v14508_v12, 0.0 }
0x20c5   :  { %13708 = vmatpush3.xpose.msk.msra.mxu0 %vm452_vm5, %v7279_v42  ;;  %7063 = vadd.xlane.f32.xlu1 %v7062_v2  ;;  %v7273_v57 = vpop.permute.xlu0 %7272  ;;  %v7400_v17 = vpop.permute.xlu1 %7399 }
0x20c6   :  { %13690 = vmatprep.mubr.msk.f32.mxu0 %vm14728_vm2, %v14727_v13  ;;  %13709 = vmatprep.subr.mxu0 %v14727_v13 }
0x20c7   :  { %v14510_v27 = vpop.eup %14509 }
0x20c8   :  { %13691 = vmatmul.mubr.msk.f32.gmra.mxu0 %vm551_vm6, %v14510_v27  ;;  %v7065_v7 = vsel %vm551_vm6, %v14510_v27, 0.0 }
0x20c9   :  { %13710 = vmatpush3.xpose.msk.msra.mxu0 %vm452_vm5, %v7277_v41  ;;  %7066 = vadd.xlane.f32.xlu0 %v7065_v7  ;;  %v7404_v22 = vpop.permute.xlu0 %7403 }
0x20ca   :  { %13693 = vmatprep.mubr.msk.f32.mxu0 %vm14728_vm2, %v14727_v13  ;;  %13711 = vmatprep.subr.mxu0 %v14727_v13 }
0x20cb   :  { %v14512_v39 = vpop.eup %14511 }
0x20cc   :  { %13694 = vmatmul.mubr.msk.f32.gmra.mxu0 %vm551_vm6, %v14512_v39  ;;  %v7068_v44 = vsel %vm558_vm7, %v14512_v39, 0.0 }
0x20cd   :  { %13712 = vmatpush3.xpose.msk.msra.mxu0 %vm452_vm5, %v7275_v48  ;;  %7069 = vadd.xlane.f32.xlu0 %v7068_v44 }
0x20ce   :  { %13713 = vmatprep.mubr.msk.f32.mxu0 %vm14728_vm2, %v14727_v13  ;;  %13737 = vmatprep.subr.mxu0 %v14727_v13 }
0x20d0   :  { %13714 = vmatmul.mubr.msk.f32.vlgmr.msra.gmra.mxu0 %vm452_vm5, %v7269_v11 }
0x20d1   :  { %13716 = vmatprep.mubr.msk.f32.mxu0 %vm14728_vm2, %v14727_v13  ;;  %13738 = vmatpush3.msra.mxu0 %v14687_v55 }
0x20d2   :  { %13763 = vmatprep.subr.mxu0 %v14727_v13 }
0x20d4   :  { %13717 = vmatmul.mubr.msk.f32.gmra.mxu0 %vm452_vm5, %v7271_v53 }
0x20d5   :  { %13719 = vmatprep.mubr.msk.f32.mxu0 %vm14728_vm2, %v14727_v13 }
0x20d8   :  { %13720 = vmatmul.mubr.msk.f32.gmra.mxu0 %vm452_vm5, %v7273_v57 }
0x20d9   :  { %13739 = vmatprep.mubr.msk.f32.mxu0 %vm14728_vm2, %v14727_v13 }
0x20e5   :  { %v6933_v60 = vpop.f32.mrf.mxu0 }
0x20e6   :  { %v16572_v16 = vadd.f32 %v6933_v60, %v16450_v6 }
0x20e7   :  { %v13665_v10 = vpop.f32.mrf.mxu0 }
0x214e   :  { %v7064_v23 = vpop.xlane.xlu1 %7063 }
0x214f   :  { %14513 = vrcp.f32 %v7064_v23 }
0x2152   :  { %v7067_v26 = vpop.xlane.xlu0 %7066 }
0x2153   :  { %14515 = vrcp.f32 %v7067_v26 }
0x2156   :  { %v7070_v3 = vpop.xlane.xlu0 %7069 }
0x2157   :  { %14517 = vrcp.f32 %v7070_v3 }
0x215c   :  { %v14514_v61 = vpop.eup %14513 }
0x2160   :  { %v14516_v56 = vpop.eup %14515 }
0x2164   :  { %v14518_v35 = vpop.eup %14517 }
0x2184   :  { %v7156_v29 = vpop.f32.mrf.mxu0 }
0x2185   :  { %v7173_v32 = vmul.f32 %v14514_v61, %v7156_v29 }
0x2186   :  { %v13689_v1 = vpop.f32.mrf.mxu0 }
0x2187   :  { %13699 = vmatmul.mubr.msk.f32.vlgmr.msra.gmra.mxu1 %vm452_vm5, %v7173_v32 }
0x2188   :  { %13723 = vmatpush3.msk.msra.mxu1 %vm589_vm4, %v7404_v22  ;;  %v7161_v6 = vpop.f32.mrf.mxu0  ;;  %13701 = vmatprep.mubr.msk.f32.mxu1 %vm14728_vm2, %v14727_v13 }
0x2189   :  { %v7174_v28 = vmul.f32 %v14516_v56, %v7161_v6  ;;  %13724 = vmatprep.subr.mxu1 %v14727_v13 }
0x218a   :  { %13725 = vmatpush3.msra.mxu1 %v7402_v63  ;;  %v13692_v34 = vpop.f32.mrf.mxu0 }
0x218b   :  { %13726 = vmatprep.subr.mxu1 %v14727_v13  ;;  %13702 = vmatmul.mubr.msk.f32.gmra.mxu1 %vm452_vm5, %v7174_v28 }
0x218c   :  { %13727 = vmatpush3.msra.mxu1 %v7400_v17  ;;  %v7166_v36 = vpop.f32.mrf.mxu0  ;;  %13704 = vmatprep.mubr.msk.f32.mxu1 %vm14728_vm2, %v14727_v13 }
0x218d   :  { %v7175_v37 = vmul.f32 %v14518_v35, %v7166_v36  ;;  %13748 = vmatprep.subr.mxu1 %v14727_v13 }
0x218e   :  { %v13695_v15 = vpop.f32.mrf.mxu0 }
0x218f   :  { %13705 = vmatmul.mubr.msk.f32.gmra.mxu1 %vm452_vm5, %v7175_v37 }
0x2190   :  { %v7358_v9 = vpop.f32.mrf.mxu0  ;;  %13728 = vmatprep.mubr.msk.f32.mxu1 %vm14728_vm2, %v14727_v13 }
0x2191   :  { %v7372_v24 = vsel %vm551_vm6, %v7358_v9, -inf }
0x2192   :  { %7373 = vmax.xlane.f32.xlu1 %v7372_v24  ;;  %v13715_v40 = vpop.f32.mrf.mxu0 }
0x2194   :  { %v7363_v42 = vpop.f32.mrf.mxu0 }
0x2195   :  { %v7375_v38 = vsel %vm551_vm6, %v7363_v42, -inf }
0x2196   :  { %7376 = vmax.xlane.f32.xlu0 %v7375_v38  ;;  %v13718_v46 = vpop.f32.mrf.mxu0 }
0x2198   :  { %v7368_v47 = vpop.f32.mrf.mxu0 }
0x2199   :  { %v7378_v25 = vsel %vm558_vm7, %v7368_v47, -inf }
0x219a   :  { %v13721_v19 = vpop.f32.mrf.mxu0 }
0x21a3   :  { %7604 = vrot.lane.b32.xlu1 %v16263_v20, %s14733_s25 }
0x21ac   :  { %7606 = vrot.lane.b32.xlu0 %v16267_v21, %s14733_s25 }
0x21b0   :  { %7602 = vrot.lane.b32.xlu0 %v16261_v18, %s14733_s25 }
0x21b4   :  { %7598 = vrot.lane.b32.xlu0 %v16277_v50, %s14733_s25 }
0x21c7   :  { %7379 = vmax.xlane.f32.xlu1 %v7378_v25 }
0x21d8   :  { %7596 = vrot.lane.b32.xlu1 %v16275_v5, %s14733_s25 }
0x21dc   :  { %7600 = vrot.lane.b32.xlu1 %v16286_v43, %s14733_s25 }
0x21e0   :  { %7731 = vrot.lane.b32.xlu1 %v16243_v8, %s14733_s25 }
0x21e4   :  { %7727 = vrot.lane.b32.xlu1 %v16237_v4, %s14733_s25 }
0x221b   :  { %v7374_v54 = vpop.xlane.xlu1 %7373 }
0x221c   :  { %v7381_v33 = vsub.f32 %v7358_v9, %v7374_v54 }
0x221e   :  { %v7384_v49 = vmul.f32 1.442695, %v7381_v33 }
0x221f   :  { %v7377_v59 = vpop.xlane.xlu0 %7376  ;;  %v7605_v41 = vpop.permute.xlu1 %7604 }
0x2220   :  { %14519 = vpow2.f32 %v7384_v49  ;;  %v7382_v62 = vsub.f32 %v7363_v42, %v7377_v59 }
0x2222   :  { %v7386_v31 = vmul.f32 1.442695, %v7382_v62 }
0x2223   :  { %v7607_v12 = vpop.permute.xlu0 %7606 }
0x2224   :  { %14521 = vpow2.f32 %v7386_v31 }
0x2227   :  { %v7603_v39 = vpop.permute.xlu0 %7602 }
0x222b   :  { %v7599_v3 = vpop.permute.xlu0 %7598 }
0x222d   :  { %v14520_v30 = vpop.eup %14519 }
0x222e   :  { %13729 = vmatmul.mubr.msk.f32.vlgmr.msra.gmra.mxu1 %vm551_vm6, %v14520_v30  ;;  %v7390_v2 = vsel %vm551_vm6, %v14520_v30, 0.0 }
0x222f   :  { %13749 = vmatpush3.xpose.msk.msra.mxu1 %vm452_vm5, %v7607_v12  ;;  %7391 = vadd.xlane.f32.xlu0 %v7390_v2 }
0x2230   :  { %13731 = vmatprep.mubr.msk.f32.mxu1 %vm14728_vm2, %v14727_v13  ;;  %13750 = vmatprep.subr.mxu1 %v14727_v13 }
0x2231   :  { %v14522_v27 = vpop.eup %14521 }
0x2232   :  { %13732 = vmatmul.mubr.msk.f32.gmra.mxu1 %vm551_vm6, %v14522_v27  ;;  %v7393_v7 = vsel %vm551_vm6, %v14522_v27, 0.0 }
0x2233   :  { %13751 = vmatpush3.xpose.msk.msra.mxu1 %vm452_vm5, %v7605_v41  ;;  %7394 = vadd.xlane.f32.xlu1 %v7393_v7 }
0x2234   :  { %13752 = vmatprep.subr.mxu1 %v14727_v13  ;;  %13734 = vmatprep.mubr.msk.f32.mxu1 %vm14728_vm2, %v14727_v13 }
0x2237   :  { %13753 = vmatpush3.xpose.msk.msra.mxu1 %vm452_vm5, %v7603_v39 }
0x2238   :  { %13778 = vmatprep.subr.mxu1 %v14727_v13 }
0x2244   :  { %7934 = vrot.lane.b32.xlu1 %v16267_v21, %s14734_s30 }
0x2245   :  { %7729 = vrot.lane.b32.xlu0 %v16241_v0, %s14733_s25 }
0x2247   :  { %v7251_v48 = vpop.f32.mrf.mxu1 }
0x2248   :  { %v16625_v44 = vadd.f32 %v7251_v48, %v16535_v45 }
0x2249   :  { %v13700_v11 = vpop.f32.mrf.mxu1 }
0x224b   :  { %v7256_v55 = vpop.f32.mrf.mxu1 }
0x224c   :  { %v16628_v53 = vadd.f32 %v7256_v55, %v16538_v51 }
0x224d   :  { %v13703_v57 = vpop.f32.mrf.mxu1 }
0x224f   :  { %v7261_v60 = vpop.f32.mrf.mxu1 }
0x2250   :  { %v16631_v10 = vadd.f32 %v7261_v60, %v16572_v16  ;;  %v7380_v63 = vpop.xlane.xlu1 %7379  ;;  %v14688_v16 = vld [vmem:[%s17623_s7 + $0x28] sm:$0xff] }
0x2251   :  { %v7383_v17 = vsub.f32 %v7368_v47, %v7380_v63  ;;  %v13706_v22 = vpop.f32.mrf.mxu1 }
0x2253   :  { %v7388_v23 = vmul.f32 1.442695, %v7383_v17 }
0x2254   :  { %v7597_v51 = vpop.permute.xlu1 %7596 }
0x2255   :  { %14523 = vpow2.f32 %v7388_v23 }
0x2258   :  { %v7601_v61 = vpop.permute.xlu1 %7600 }
0x225c   :  { %v7732_v29 = vpop.permute.xlu1 %7731 }
0x2260   :  { %v7728_v32 = vpop.permute.xlu1 %7727 }
0x2262   :  { %v14524_v26 = vpop.eup %14523 }
0x2263   :  { %13735 = vmatmul.mubr.msk.f32.gmra.mxu1 %vm551_vm6, %v14524_v26  ;;  %v7396_v45 = vsel %vm558_vm7, %v14524_v26, 0.0 }
0x2264   :  { %7397 = vadd.xlane.f32.xlu0 %v7396_v45  ;;  %13754 = vmatprep.mubr.msk.f32.mxu1 %vm14728_vm2, %v14727_v13 }
0x2267   :  { %13755 = vmatmul.mubr.msk.f32.vlgmr.msra.gmra.mxu1 %vm452_vm5, %v7597_v51 }
0x2268   :  { %13757 = vmatprep.mubr.msk.f32.mxu1 %vm14728_vm2, %v14727_v13  ;;  %13779 = vmatpush3.msra.mxu1 %v14688_v16 }
0x2269   :  { %13804 = vmatprep.subr.mxu1 %v14727_v13 }
0x226b   :  { %13758 = vmatmul.mubr.msk.f32.gmra.mxu1 %vm452_vm5, %v7599_v3 }
0x226c   :  { %13760 = vmatprep.mubr.msk.f32.mxu1 %vm14728_vm2, %v14727_v13 }
0x226f   :  { %13761 = vmatmul.mubr.msk.f32.gmra.mxu1 %vm452_vm5, %v7601_v61 }
0x2270   :  { %13780 = vmatprep.mubr.msk.f32.mxu1 %vm14728_vm2, %v14727_v13 }
0x22b8   :  { %v7392_v1 = vpop.xlane.xlu0 %7391 }
0x22b9   :  { %14525 = vrcp.f32 %v7392_v1  ;;  %v14689_v1 = vld [vmem:[%s17623_s7 + $0x30] sm:$0xff] }
0x22bc   :  { %v7395_v56 = vpop.xlane.xlu1 %7394  ;;  %v7730_v15 = vpop.permute.xlu0 %7729 }
0x22bd   :  { %14527 = vrcp.f32 %v7395_v56 }
0x22c0   :  { %v7935_v2 = vpop.permute.xlu1 %7934 }
0x22c6   :  { %v14526_v6 = vpop.eup %14525 }
0x22ca   :  { %v14528_v36 = vpop.eup %14527 }
0x22ed   :  { %v7398_v40 = vpop.xlane.xlu0 %7397 }
0x22ee   :  { %v7484_v28 = vpop.f32.mrf.mxu1  ;;  %14529 = vrcp.f32 %v7398_v40 }
0x22ef   :  { %v7501_v34 = vmul.f32 %v14526_v6, %v7484_v28 }
0x22f0   :  { %v13730_v35 = vpop.f32.mrf.mxu1 }
0x22f1   :  { %13740 = vmatmul.mubr.msk.f32.vlgmr.msra.gmra.mxu0 %vm452_vm5, %v7501_v34 }
0x22f2   :  { %13764 = vmatpush3.msk.msra.mxu0 %vm589_vm4, %v7732_v29  ;;  %v7489_v37 = vpop.f32.mrf.mxu1  ;;  %13742 = vmatprep.mubr.msk.f32.mxu0 %vm14728_vm2, %v14727_v13 }
0x22f3   :  { %v7502_v9 = vmul.f32 %v14528_v36, %v7489_v37  ;;  %13765 = vmatprep.subr.mxu0 %v14727_v13 }
0x22f4   :  { %13766 = vmatpush3.msra.mxu0 %v7730_v15  ;;  %v13733_v24 = vpop.f32.mrf.mxu1 }
0x22f5   :  { %13767 = vmatprep.subr.mxu0 %v14727_v13  ;;  %13743 = vmatmul.mubr.msk.f32.gmra.mxu0 %vm452_vm5, %v7502_v9 }
0x22f6   :  { %13768 = vmatpush3.msra.mxu0 %v7728_v32  ;;  %13745 = vmatprep.mubr.msk.f32.mxu0 %vm14728_vm2, %v14727_v13 }
0x22f7   :  { %13789 = vmatprep.subr.mxu0 %v14727_v13 }
0x22fb   :  { %v14530_v42 = vpop.eup %14529 }
0x2323   :  { %v7494_v38 = vpop.f32.mrf.mxu1 }
0x2324   :  { %v7503_v46 = vmul.f32 %v14530_v42, %v7494_v38 }
0x2325   :  { %v13736_v47 = vpop.f32.mrf.mxu1 }
0x2326   :  { %13746 = vmatmul.mubr.msk.f32.gmra.mxu0 %vm452_vm5, %v7503_v46 }
0x2327   :  { %v7686_v19 = vpop.f32.mrf.mxu1  ;;  %13769 = vmatprep.mubr.msk.f32.mxu0 %vm14728_vm2, %v14727_v13 }
0x2328   :  { %v7700_v25 = vsel %vm551_vm6, %v7686_v19, -inf }
0x2329   :  { %7701 = vmax.xlane.f32.xlu0 %v7700_v25  ;;  %v13756_v54 = vpop.f32.mrf.mxu1 }
0x232b   :  { %v7691_v33 = vpop.f32.mrf.mxu1 }
0x232c   :  { %v7703_v49 = vsel %vm551_vm6, %v7691_v33, -inf }
0x232d   :  { %7704 = vmax.xlane.f32.xlu1 %v7703_v49  ;;  %v13759_v59 = vpop.f32.mrf.mxu1 }
0x232f   :  { %v7696_v62 = vpop.f32.mrf.mxu1 }
0x2330   :  { %v7706_v31 = vsel %vm558_vm7, %v7696_v62, -inf }
0x2331   :  { %7707 = vmax.xlane.f32.xlu0 %v7706_v31  ;;  %v13762_v30 = vpop.f32.mrf.mxu1 }
0x233e   :  { %7930 = vrot.lane.b32.xlu1 %v16261_v18, %s14734_s30 }
0x2342   :  { %7926 = vrot.lane.b32.xlu1 %v16277_v50, %s14734_s30 }
0x2346   :  { %8057 = vrot.lane.b32.xlu1 %v16241_v0, %s14734_s30 }
0x2347   :  { %7932 = vrot.lane.b32.xlu0 %v16263_v20, %s14734_s30 }
0x234a   :  { %8055 = vrot.lane.b32.xlu1 %v16237_v4, %s14734_s30 }
0x234b   :  { %7924 = vrot.lane.b32.xlu0 %v16275_v5, %s14734_s30 }
0x234f   :  { %7928 = vrot.lane.b32.xlu0 %v16286_v43, %s14734_s30 }
0x2353   :  { %8059 = vrot.lane.b32.xlu0 %v16243_v8, %s14734_s30 }
0x23b1   :  { %v7579_v12 = vpop.f32.mrf.mxu0 }
0x23b2   :  { %v16683_v27 = vadd.f32 %v7579_v12, %v16625_v44  ;;  %v7702_v41 = vpop.xlane.xlu0 %7701 }
0x23b3   :  { %v7709_v7 = vsub.f32 %v7686_v19, %v7702_v41  ;;  %v13741_v39 = vpop.f32.mrf.mxu0 }
0x23b5   :  { %v7712_v48 = vmul.f32 1.442695, %v7709_v7  ;;  %v7584_v11 = vpop.f32.mrf.mxu0 }
0x23b6   :  { %v16686_v55 = vadd.f32 %v7584_v11, %v16628_v53  ;;  %v7705_v57 = vpop.xlane.xlu1 %7704 }
0x23b7   :  { %14531 = vpow2.f32 %v7712_v48  ;;  %v7710_v60 = vsub.f32 %v7691_v33, %v7705_v57  ;;  %v13744_v63 = vpop.f32.mrf.mxu0 }
0x23b9   :  { %v7714_v17 = vmul.f32 1.442695, %v7710_v60 }
0x23ba   :  { %v7708_v22 = vpop.xlane.xlu0 %7707  ;;  %v7931_v61 = vpop.permute.xlu1 %7930 }
0x23bb   :  { %14533 = vpow2.f32 %v7714_v17  ;;  %v7711_v23 = vsub.f32 %v7696_v62, %v7708_v22 }
0x23bd   :  { %v7716_v26 = vmul.f32 1.442695, %v7711_v23 }
0x23be   :  { %v7933_v51 = vpop.permute.xlu0 %7932  ;;  %v7927_v56 = vpop.permute.xlu1 %7926 }
0x23bf   :  { %14535 = vpow2.f32 %v7716_v26 }
0x23c2   :  { %v7925_v32 = vpop.permute.xlu0 %7924  ;;  %v8058_v36 = vpop.permute.xlu1 %8057 }
0x23c4   :  { %v14532_v44 = vpop.eup %14531 }
0x23c5   :  { %13770 = vmatmul.mubr.msk.f32.vlgmr.msra.gmra.mxu0 %vm551_vm6, %v14532_v44  ;;  %v7718_v45 = vsel %vm551_vm6, %v14532_v44, 0.0 }
0x23c6   :  { %13790 = vmatpush3.xpose.msk.msra.mxu0 %vm452_vm5, %v7935_v2  ;;  %7719 = vadd.xlane.f32.xlu1 %v7718_v45  ;;  %v7929_v6 = vpop.permute.xlu0 %7928  ;;  %v8056_v37 = vpop.permute.xlu1 %8055 }
0x23c7   :  { %13772 = vmatprep.mubr.msk.f32.mxu0 %vm14728_vm2, %v14727_v13  ;;  %13791 = vmatprep.subr.mxu0 %v14727_v13 }
0x23c8   :  { %v14534_v53 = vpop.eup %14533 }
0x23c9   :  { %13773 = vmatmul.mubr.msk.f32.gmra.mxu0 %vm551_vm6, %v14534_v53  ;;  %v7721_v16 = vsel %vm551_vm6, %v14534_v53, 0.0 }
0x23ca   :  { %13792 = vmatpush3.xpose.msk.msra.mxu0 %vm452_vm5, %v7933_v51  ;;  %7722 = vadd.xlane.f32.xlu0 %v7721_v16  ;;  %v8060_v15 = vpop.permute.xlu0 %8059 }
0x23cb   :  { %13775 = vmatprep.mubr.msk.f32.mxu0 %vm14728_vm2, %v14727_v13  ;;  %13793 = vmatprep.subr.mxu0 %v14727_v13 }
0x23cc   :  { %v14536_v3 = vpop.eup %14535 }
0x23cd   :  { %13776 = vmatmul.mubr.msk.f32.gmra.mxu0 %vm551_vm6, %v14536_v3  ;;  %v7724_v29 = vsel %vm558_vm7, %v14536_v3, 0.0 }
0x23ce   :  { %13794 = vmatpush3.xpose.msk.msra.mxu0 %vm452_vm5, %v7931_v61  ;;  %7725 = vadd.xlane.f32.xlu0 %v7724_v29 }
0x23cf   :  { %13795 = vmatprep.mubr.msk.f32.mxu0 %vm14728_vm2, %v14727_v13  ;;  %13819 = vmatprep.subr.mxu0 %v14727_v13 }
0x23d1   :  { %13796 = vmatmul.mubr.msk.f32.vlgmr.msra.gmra.mxu0 %vm452_vm5, %v7925_v32 }
0x23d2   :  { %13798 = vmatprep.mubr.msk.f32.mxu0 %vm14728_vm2, %v14727_v13  ;;  %13820 = vmatpush3.msra.mxu0 %v14689_v1 }
0x23d3   :  { %13845 = vmatprep.subr.mxu0 %v14727_v13 }
0x23d5   :  { %13799 = vmatmul.mubr.msk.f32.gmra.mxu0 %vm452_vm5, %v7927_v56 }
0x23d6   :  { %13801 = vmatprep.mubr.msk.f32.mxu0 %vm14728_vm2, %v14727_v13 }
0x23d9   :  { %13802 = vmatmul.mubr.msk.f32.gmra.mxu0 %vm452_vm5, %v7929_v6 }
0x23da   :  { %13821 = vmatprep.mubr.msk.f32.mxu0 %vm14728_vm2, %v14727_v13 }
0x23e6   :  { %v7589_v28 = vpop.f32.mrf.mxu0 }
0x23e7   :  { %v16720_v34 = vadd.f32 %v7589_v28, %v16631_v10 }
0x23e8   :  { %v13747_v35 = vpop.f32.mrf.mxu0 }
0x244f   :  { %v7720_v9 = vpop.xlane.xlu1 %7719 }
0x2450   :  { %14537 = vrcp.f32 %v7720_v9 }
0x2453   :  { %v7723_v24 = vpop.xlane.xlu0 %7722 }
0x2454   :  { %14539 = vrcp.f32 %v7723_v24 }
0x2457   :  { %v7726_v40 = vpop.xlane.xlu0 %7725 }
0x2458   :  { %14541 = vrcp.f32 %v7726_v40 }
0x245d   :  { %v14538_v42 = vpop.eup %14537 }
0x2461   :  { %v14540_v19 = vpop.eup %14539 }
0x2465   :  { %v14542_v33 = vpop.eup %14541 }
0x2485   :  { %v7812_v38 = vpop.f32.mrf.mxu0 }
0x2486   :  { %v7829_v46 = vmul.f32 %v14538_v42, %v7812_v38 }
0x2487   :  { %v13771_v47 = vpop.f32.mrf.mxu0 }
0x2488   :  { %13781 = vmatmul.mubr.msk.f32.vlgmr.msra.gmra.mxu1 %vm452_vm5, %v7829_v46 }
0x2489   :  { %13805 = vmatpush3.msk.msra.mxu1 %vm589_vm4, %v8060_v15  ;;  %v7817_v10 = vpop.f32.mrf.mxu0  ;;  %13783 = vmatprep.mubr.msk.f32.mxu1 %vm14728_vm2, %v14727_v13 }
0x248a   :  { %v7830_v25 = vmul.f32 %v14540_v19, %v7817_v10  ;;  %13806 = vmatprep.subr.mxu1 %v14727_v13 }
0x248b   :  { %13807 = vmatpush3.msra.mxu1 %v8058_v36  ;;  %v13774_v54 = vpop.f32.mrf.mxu0 }
0x248c   :  { %13808 = vmatprep.subr.mxu1 %v14727_v13  ;;  %13784 = vmatmul.mubr.msk.f32.gmra.mxu1 %vm452_vm5, %v7830_v25 }
0x248d   :  { %13809 = vmatpush3.msra.mxu1 %v8056_v37  ;;  %v7822_v49 = vpop.f32.mrf.mxu0  ;;  %13786 = vmatprep.mubr.msk.f32.mxu1 %vm14728_vm2, %v14727_v13 }
0x248e   :  { %v7831_v59 = vmul.f32 %v14542_v33, %v7822_v49  ;;  %13830 = vmatprep.subr.mxu1 %v14727_v13 }
0x248f   :  { %v13777_v62 = vpop.f32.mrf.mxu0 }
0x2490   :  { %13787 = vmatmul.mubr.msk.f32.gmra.mxu1 %vm452_vm5, %v7831_v59 }
0x2491   :  { %v8014_v31 = vpop.f32.mrf.mxu0  ;;  %13810 = vmatprep.mubr.msk.f32.mxu1 %vm14728_vm2, %v14727_v13 }
0x2492   :  { %v8028_v30 = vsel %vm551_vm6, %v8014_v31, -inf }
0x2493   :  { %8029 = vmax.xlane.f32.xlu1 %v8028_v30  ;;  %v13797_v12 = vpop.f32.mrf.mxu0 }
0x2495   :  { %v8019_v2 = vpop.f32.mrf.mxu0 }
0x2496   :  { %v8031_v41 = vsel %vm551_vm6, %v8019_v2, -inf }
0x2497   :  { %8032 = vmax.xlane.f32.xlu0 %v8031_v41  ;;  %v13800_v7 = vpop.f32.mrf.mxu0 }
0x2499   :  { %v8024_v39 = vpop.f32.mrf.mxu0 }
0x249a   :  { %v8034_v11 = vsel %vm558_vm7, %v8024_v39, -inf }
0x249b   :  { %v13803_v48 = vpop.f32.mrf.mxu0 }
0x24a4   :  { %8260 = vrot.lane.b32.xlu1 %v16263_v20, %s14735_s0 }
0x24ad   :  { %8262 = vrot.lane.b32.xlu0 %v16267_v21, %s14735_s0 }
0x24b1   :  { %8258 = vrot.lane.b32.xlu0 %v16261_v18, %s14735_s0 }
0x24b5   :  { %8254 = vrot.lane.b32.xlu0 %v16277_v50, %s14735_s0 }
0x24c8   :  { %8035 = vmax.xlane.f32.xlu1 %v8034_v11 }
0x24d9   :  { %8252 = vrot.lane.b32.xlu1 %v16275_v5, %s14735_s0 }
0x24dd   :  { %8256 = vrot.lane.b32.xlu1 %v16286_v43, %s14735_s0 }
0x24e1   :  { %8387 = vrot.lane.b32.xlu1 %v16243_v8, %s14735_s0 }
0x24e5   :  { %8383 = vrot.lane.b32.xlu1 %v16237_v4, %s14735_s0 }
0x251c   :  { %v8030_v57 = vpop.xlane.xlu1 %8029 }
0x251d   :  { %v8037_v60 = vsub.f32 %v8014_v31, %v8030_v57 }
0x251f   :  { %v8040_v63 = vmul.f32 1.442695, %v8037_v60 }
0x2520   :  { %v8033_v17 = vpop.xlane.xlu0 %8032  ;;  %v8261_v51 = vpop.permute.xlu1 %8260 }
0x2521   :  { %14543 = vpow2.f32 %v8040_v63  ;;  %v8038_v22 = vsub.f32 %v8019_v2, %v8033_v17 }
0x2523   :  { %v8042_v23 = vmul.f32 1.442695, %v8038_v22 }
0x2524   :  { %v8263_v44 = vpop.permute.xlu0 %8262 }
0x2525   :  { %14545 = vpow2.f32 %v8042_v23 }
0x2528   :  { %v8259_v3 = vpop.permute.xlu0 %8258 }
0x252c   :  { %v8255_v40 = vpop.permute.xlu0 %8254 }
0x252e   :  { %v14544_v26 = vpop.eup %14543 }
0x252f   :  { %13811 = vmatmul.mubr.msk.f32.vlgmr.msra.gmra.mxu1 %vm551_vm6, %v14544_v26  ;;  %v8046_v45 = vsel %vm551_vm6, %v14544_v26, 0.0 }
0x2530   :  { %13831 = vmatpush3.xpose.msk.msra.mxu1 %vm452_vm5, %v8263_v44  ;;  %8047 = vadd.xlane.f32.xlu0 %v8046_v45 }
0x2531   :  { %13813 = vmatprep.mubr.msk.f32.mxu1 %vm14728_vm2, %v14727_v13  ;;  %13832 = vmatprep.subr.mxu1 %v14727_v13 }
0x2532   :  { %v14546_v53 = vpop.eup %14545 }
0x2533   :  { %13814 = vmatmul.mubr.msk.f32.gmra.mxu1 %vm551_vm6, %v14546_v53  ;;  %v8049_v16 = vsel %vm551_vm6, %v14546_v53, 0.0 }
0x2534   :  { %13833 = vmatpush3.xpose.msk.msra.mxu1 %vm452_vm5, %v8261_v51  ;;  %8050 = vadd.xlane.f32.xlu1 %v8049_v16 }
0x2535   :  { %13834 = vmatprep.subr.mxu1 %v14727_v13  ;;  %13816 = vmatprep.mubr.msk.f32.mxu1 %vm14728_vm2, %v14727_v13 }
0x2538   :  { %13835 = vmatpush3.xpose.msk.msra.mxu1 %vm452_vm5, %v8259_v3 }
0x2539   :  { %13860 = vmatprep.subr.mxu1 %v14727_v13 }
0x2545   :  { %8590 = vrot.lane.b32.xlu1 %v16267_v21, %s14736_s2 }
0x2546   :  { %8385 = vrot.lane.b32.xlu0 %v16241_v0, %s14735_s0 }
0x2548   :  { %v7907_v61 = vpop.f32.mrf.mxu1 }
0x2549   :  { %v16773_v29 = vadd.f32 %v7907_v61, %v16683_v27 }
0x254a   :  { %v13782_v32 = vpop.f32.mrf.mxu1 }
0x254c   :  { %v7912_v1 = vpop.f32.mrf.mxu1 }
0x254d   :  { %v16776_v56 = vadd.f32 %v7912_v1, %v16686_v55 }
0x254e   :  { %v13785_v6 = vpop.f32.mrf.mxu1 }
0x2550   :  { %v7917_v28 = vpop.f32.mrf.mxu1 }
0x2551   :  { %v16779_v35 = vadd.f32 %v7917_v28, %v16720_v34  ;;  %v8036_v36 = vpop.xlane.xlu1 %8035  ;;  %v14690_v34 = vld [vmem:[%s17623_s7 + $0x38] sm:$0xff] }
0x2552   :  { %v8039_v37 = vsub.f32 %v8024_v39, %v8036_v36  ;;  %v13788_v15 = vpop.f32.mrf.mxu1 }
0x2554   :  { %v8044_v9 = vmul.f32 1.442695, %v8039_v37 }
0x2555   :  { %v8253_v55 = vpop.permute.xlu1 %8252 }
0x2556   :  { %14547 = vpow2.f32 %v8044_v9 }
0x2559   :  { %v8257_v42 = vpop.permute.xlu1 %8256 }
0x255d   :  { %v8388_v38 = vpop.permute.xlu1 %8387 }
0x2561   :  { %v8384_v46 = vpop.permute.xlu1 %8383 }
0x2563   :  { %v14548_v24 = vpop.eup %14547 }
0x2564   :  { %13817 = vmatmul.mubr.msk.f32.gmra.mxu1 %vm551_vm6, %v14548_v24  ;;  %v8052_v27 = vsel %vm558_vm7, %v14548_v24, 0.0 }
0x2565   :  { %8053 = vadd.xlane.f32.xlu0 %v8052_v27  ;;  %13836 = vmatprep.mubr.msk.f32.mxu1 %vm14728_vm2, %v14727_v13 }
0x2568   :  { %13837 = vmatmul.mubr.msk.f32.vlgmr.msra.gmra.mxu1 %vm452_vm5, %v8253_v55 }
0x2569   :  { %13839 = vmatprep.mubr.msk.f32.mxu1 %vm14728_vm2, %v14727_v13  ;;  %13861 = vmatpush3.msra.mxu1 %v14690_v34 }
0x256a   :  { %13886 = vmatprep.subr.mxu1 %v14727_v13 }
0x256c   :  { %13840 = vmatmul.mubr.msk.f32.gmra.mxu1 %vm452_vm5, %v8255_v40 }
0x256d   :  { %13842 = vmatprep.mubr.msk.f32.mxu1 %vm14728_vm2, %v14727_v13 }
0x2570   :  { %13843 = vmatmul.mubr.msk.f32.gmra.mxu1 %vm452_vm5, %v8257_v42 }
0x2571   :  { %13862 = vmatprep.mubr.msk.f32.mxu1 %vm14728_vm2, %v14727_v13 }
0x25b9   :  { %v8048_v47 = vpop.xlane.xlu0 %8047 }
0x25ba   :  { %14549 = vrcp.f32 %v8048_v47  ;;  %v14691_v47 = vld [vmem:[%s17623_s7 + $0x40] sm:$0xff] }
0x25bd   :  { %v8051_v19 = vpop.xlane.xlu1 %8050  ;;  %v8386_v62 = vpop.permute.xlu0 %8385 }
0x25be   :  { %14551 = vrcp.f32 %v8051_v19 }
0x25c1   :  { %v8591_v45 = vpop.permute.xlu1 %8590 }
0x25c7   :  { %v14550_v10 = vpop.eup %14549 }
0x25cb   :  { %v14552_v49 = vpop.eup %14551 }
0x25ee   :  { %v8054_v12 = vpop.xlane.xlu0 %8053 }
0x25ef   :  { %v8140_v25 = vpop.f32.mrf.mxu1  ;;  %14553 = vrcp.f32 %v8054_v12 }
0x25f0   :  { %v8157_v54 = vmul.f32 %v14550_v10, %v8140_v25 }
0x25f1   :  { %v13812_v33 = vpop.f32.mrf.mxu1 }
0x25f2   :  { %13822 = vmatmul.mubr.msk.f32.vlgmr.msra.gmra.mxu0 %vm452_vm5, %v8157_v54 }
0x25f3   :  { %13846 = vmatpush3.msk.msra.mxu0 %vm589_vm4, %v8388_v38  ;;  %v8145_v59 = vpop.f32.mrf.mxu1  ;;  %13824 = vmatprep.mubr.msk.f32.mxu0 %vm14728_vm2, %v14727_v13 }
0x25f4   :  { %v8158_v31 = vmul.f32 %v14552_v49, %v8145_v59  ;;  %13847 = vmatprep.subr.mxu0 %v14727_v13 }
0x25f5   :  { %13848 = vmatpush3.msra.mxu0 %v8386_v62  ;;  %v13815_v30 = vpop.f32.mrf.mxu1 }
0x25f6   :  { %13849 = vmatprep.subr.mxu0 %v14727_v13  ;;  %13825 = vmatmul.mubr.msk.f32.gmra.mxu0 %vm452_vm5, %v8158_v31 }
0x25f7   :  { %13850 = vmatpush3.msra.mxu0 %v8384_v46  ;;  %13827 = vmatprep.mubr.msk.f32.mxu0 %vm14728_vm2, %v14727_v13 }
0x25f8   :  { %13871 = vmatprep.subr.mxu0 %v14727_v13 }
0x25fc   :  { %v14554_v2 = vpop.eup %14553 }
0x2624   :  { %v8150_v41 = vpop.f32.mrf.mxu1 }
0x2625   :  { %v8159_v7 = vmul.f32 %v14554_v2, %v8150_v41 }
0x2626   :  { %v13818_v39 = vpop.f32.mrf.mxu1 }
0x2627   :  { %13828 = vmatmul.mubr.msk.f32.gmra.mxu0 %vm452_vm5, %v8159_v7 }
0x2628   :  { %v8342_v48 = vpop.f32.mrf.mxu1  ;;  %13851 = vmatprep.mubr.msk.f32.mxu0 %vm14728_vm2, %v14727_v13 }
0x2629   :  { %v8356_v11 = vsel %vm551_vm6, %v8342_v48, -inf }
0x262a   :  { %8357 = vmax.xlane.f32.xlu0 %v8356_v11  ;;  %v13838_v57 = vpop.f32.mrf.mxu1 }
0x262c   :  { %v8347_v60 = vpop.f32.mrf.mxu1 }
0x262d   :  { %v8359_v63 = vsel %vm551_vm6, %v8347_v60, -inf }
0x262e   :  { %8360 = vmax.xlane.f32.xlu1 %v8359_v63  ;;  %v13841_v17 = vpop.f32.mrf.mxu1 }
0x2630   :  { %v8352_v22 = vpop.f32.mrf.mxu1 }
0x2631   :  { %v8362_v23 = vsel %vm558_vm7, %v8352_v22, -inf }
0x2632   :  { %8363 = vmax.xlane.f32.xlu0 %v8362_v23  ;;  %v13844_v26 = vpop.f32.mrf.mxu1 }
0x263f   :  { %8586 = vrot.lane.b32.xlu1 %v16261_v18, %s14736_s2 }
0x2643   :  { %8582 = vrot.lane.b32.xlu1 %v16277_v50, %s14736_s2 }
0x2647   :  { %8713 = vrot.lane.b32.xlu1 %v16241_v0, %s14736_s2 }
0x2648   :  { %8588 = vrot.lane.b32.xlu0 %v16263_v20, %s14736_s2 }
0x264b   :  { %8711 = vrot.lane.b32.xlu1 %v16237_v4, %s14736_s2 }
0x264c   :  { %8580 = vrot.lane.b32.xlu0 %v16275_v5, %s14736_s2 }
0x2650   :  { %8584 = vrot.lane.b32.xlu0 %v16286_v43, %s14736_s2 }
0x2654   :  { %8715 = vrot.lane.b32.xlu0 %v16243_v8, %s14736_s2 }
0x26b2   :  { %v8235_v44 = vpop.f32.mrf.mxu0 }
0x26b3   :  { %v16831_v53 = vadd.f32 %v8235_v44, %v16773_v29  ;;  %v8358_v51 = vpop.xlane.xlu0 %8357 }
0x26b4   :  { %v8365_v16 = vsub.f32 %v8342_v48, %v8358_v51  ;;  %v13823_v3 = vpop.f32.mrf.mxu0 }
0x26b6   :  { %v8368_v61 = vmul.f32 1.442695, %v8365_v16  ;;  %v8240_v32 = vpop.f32.mrf.mxu0 }
0x26b7   :  { %v16834_v1 = vadd.f32 %v8240_v32, %v16776_v56  ;;  %v8361_v6 = vpop.xlane.xlu1 %8360 }
0x26b8   :  { %14555 = vpow2.f32 %v8368_v61  ;;  %v8366_v28 = vsub.f32 %v8347_v60, %v8361_v6  ;;  %v13826_v36 = vpop.f32.mrf.mxu0 }
0x26ba   :  { %v8370_v37 = vmul.f32 1.442695, %v8366_v28 }
0x26bb   :  { %v8364_v15 = vpop.xlane.xlu0 %8363  ;;  %v8587_v42 = vpop.permute.xlu1 %8586 }
0x26bc   :  { %14557 = vpow2.f32 %v8370_v37  ;;  %v8367_v9 = vsub.f32 %v8352_v22, %v8364_v15 }
0x26be   :  { %v8372_v24 = vmul.f32 1.442695, %v8367_v9 }
0x26bf   :  { %v8589_v55 = vpop.permute.xlu0 %8588  ;;  %v8583_v19 = vpop.permute.xlu1 %8582 }
0x26c0   :  { %14559 = vpow2.f32 %v8372_v24 }
0x26c3   :  { %v8581_v46 = vpop.permute.xlu0 %8580  ;;  %v8714_v49 = vpop.permute.xlu1 %8713 }
0x26c5   :  { %v14556_v29 = vpop.eup %14555 }
0x26c6   :  { %13852 = vmatmul.mubr.msk.f32.vlgmr.msra.gmra.mxu0 %vm551_vm6, %v14556_v29  ;;  %v8374_v27 = vsel %vm551_vm6, %v14556_v29, 0.0 }
0x26c7   :  { %13872 = vmatpush3.xpose.msk.msra.mxu0 %vm452_vm5, %v8591_v45  ;;  %8375 = vadd.xlane.f32.xlu1 %v8374_v27  ;;  %v8585_v10 = vpop.permute.xlu0 %8584  ;;  %v8712_v59 = vpop.permute.xlu1 %8711 }
0x26c8   :  { %13854 = vmatprep.mubr.msk.f32.mxu0 %vm14728_vm2, %v14727_v13  ;;  %13873 = vmatprep.subr.mxu0 %v14727_v13 }
0x26c9   :  { %v14558_v56 = vpop.eup %14557 }
0x26ca   :  { %13855 = vmatmul.mubr.msk.f32.gmra.mxu0 %vm551_vm6, %v14558_v56  ;;  %v8377_v34 = vsel %vm551_vm6, %v14558_v56, 0.0 }
0x26cb   :  { %13874 = vmatpush3.xpose.msk.msra.mxu0 %vm452_vm5, %v8589_v55  ;;  %8378 = vadd.xlane.f32.xlu0 %v8377_v34  ;;  %v8716_v62 = vpop.permute.xlu0 %8715 }
0x26cc   :  { %13857 = vmatprep.mubr.msk.f32.mxu0 %vm14728_vm2, %v14727_v13  ;;  %13875 = vmatprep.subr.mxu0 %v14727_v13 }
0x26cd   :  { %v14560_v40 = vpop.eup %14559 }
0x26ce   :  { %13858 = vmatmul.mubr.msk.f32.gmra.mxu0 %vm551_vm6, %v14560_v40  ;;  %v8380_v38 = vsel %vm558_vm7, %v14560_v40, 0.0 }
0x26cf   :  { %13876 = vmatpush3.xpose.msk.msra.mxu0 %vm452_vm5, %v8587_v42  ;;  %8381 = vadd.xlane.f32.xlu0 %v8380_v38 }
0x26d0   :  { %13877 = vmatprep.mubr.msk.f32.mxu0 %vm14728_vm2, %v14727_v13  ;;  %13901 = vmatprep.subr.mxu0 %v14727_v13 }
0x26d2   :  { %13878 = vmatmul.mubr.msk.f32.vlgmr.msra.gmra.mxu0 %vm452_vm5, %v8581_v46 }
0x26d3   :  { %13880 = vmatprep.mubr.msk.f32.mxu0 %vm14728_vm2, %v14727_v13  ;;  %13902 = vmatpush3.msra.mxu0 %v14691_v47 }
0x26d4   :  { %13927 = vmatprep.subr.mxu0 %v14727_v13 }
0x26d6   :  { %13881 = vmatmul.mubr.msk.f32.gmra.mxu0 %vm452_vm5, %v8583_v19 }
0x26d7   :  { %13883 = vmatprep.mubr.msk.f32.mxu0 %vm14728_vm2, %v14727_v13 }
0x26da   :  { %13884 = vmatmul.mubr.msk.f32.gmra.mxu0 %vm452_vm5, %v8585_v10 }
0x26db   :  { %13903 = vmatprep.mubr.msk.f32.mxu0 %vm14728_vm2, %v14727_v13 }
0x26e7   :  { %v8245_v25 = vpop.f32.mrf.mxu0 }
0x26e8   :  { %v16868_v54 = vadd.f32 %v8245_v25, %v16779_v35 }
0x26e9   :  { %v13829_v33 = vpop.f32.mrf.mxu0 }
0x2750   :  { %v8376_v31 = vpop.xlane.xlu1 %8375 }
0x2751   :  { %14561 = vrcp.f32 %v8376_v31 }
0x2754   :  { %v8379_v30 = vpop.xlane.xlu0 %8378 }
0x2755   :  { %14563 = vrcp.f32 %v8379_v30 }
0x2758   :  { %v8382_v12 = vpop.xlane.xlu0 %8381 }
0x2759   :  { %14565 = vrcp.f32 %v8382_v12 }
0x275e   :  { %v14562_v2 = vpop.eup %14561 }
0x2762   :  { %v14564_v48 = vpop.eup %14563 }
0x2766   :  { %v14566_v60 = vpop.eup %14565 }
0x2786   :  { %v8468_v41 = vpop.f32.mrf.mxu0 }
0x2787   :  { %v8485_v7 = vmul.f32 %v14562_v2, %v8468_v41 }
0x2788   :  { %v13853_v39 = vpop.f32.mrf.mxu0 }
0x2789   :  { %13863 = vmatmul.mubr.msk.f32.vlgmr.msra.gmra.mxu1 %vm452_vm5, %v8485_v7 }
0x278a   :  { %13887 = vmatpush3.msk.msra.mxu1 %vm589_vm4, %v8716_v62  ;;  %v8473_v35 = vpop.f32.mrf.mxu0  ;;  %13865 = vmatprep.mubr.msk.f32.mxu1 %vm14728_vm2, %v14727_v13 }
0x278b   :  { %v8486_v11 = vmul.f32 %v14564_v48, %v8473_v35  ;;  %13888 = vmatprep.subr.mxu1 %v14727_v13 }
0x278c   :  { %13889 = vmatpush3.msra.mxu1 %v8714_v49  ;;  %v13856_v57 = vpop.f32.mrf.mxu0 }
0x278d   :  { %13890 = vmatprep.subr.mxu1 %v14727_v13  ;;  %13866 = vmatmul.mubr.msk.f32.gmra.mxu1 %vm452_vm5, %v8486_v11 }
0x278e   :  { %13891 = vmatpush3.msra.mxu1 %v8712_v59  ;;  %v8478_v63 = vpop.f32.mrf.mxu0  ;;  %13868 = vmatprep.mubr.msk.f32.mxu1 %vm14728_vm2, %v14727_v13 }
0x278f   :  { %v8487_v17 = vmul.f32 %v14566_v60, %v8478_v63  ;;  %13912 = vmatprep.subr.mxu1 %v14727_v13 }
0x2790   :  { %v13859_v22 = vpop.f32.mrf.mxu0 }
0x2791   :  { %13869 = vmatmul.mubr.msk.f32.gmra.mxu1 %vm452_vm5, %v8487_v17 }
0x2792   :  { %v8670_v23 = vpop.f32.mrf.mxu0  ;;  %13892 = vmatprep.mubr.msk.f32.mxu1 %vm14728_vm2, %v14727_v13 }
0x2793   :  { %v8684_v26 = vsel %vm551_vm6, %v8670_v23, -inf }
0x2794   :  { %8685 = vmax.xlane.f32.xlu1 %v8684_v26  ;;  %v13879_v44 = vpop.f32.mrf.mxu0 }
0x2796   :  { %v8675_v45 = vpop.f32.mrf.mxu0 }
0x2797   :  { %v8687_v51 = vsel %vm551_vm6, %v8675_v45, -inf }
0x2798   :  { %8688 = vmax.xlane.f32.xlu0 %v8687_v51  ;;  %v13882_v16 = vpop.f32.mrf.mxu0 }
0x279a   :  { %v8680_v3 = vpop.f32.mrf.mxu0 }
0x279b   :  { %v8690_v32 = vsel %vm558_vm7, %v8680_v3, -inf }
0x279c   :  { %v13885_v61 = vpop.f32.mrf.mxu0 }
0x27a5   :  { %8916 = vrot.lane.b32.xlu1 %v16263_v20, %s14737_s22 }
0x27ae   :  { %8918 = vrot.lane.b32.xlu0 %v16267_v21, %s14737_s22 }
0x27b2   :  { %8914 = vrot.lane.b32.xlu0 %v16261_v18, %s14737_s22 }
0x27b6   :  { %8910 = vrot.lane.b32.xlu0 %v16277_v50, %s14737_s22 }
0x27c9   :  { %8691 = vmax.xlane.f32.xlu1 %v8690_v32 }
0x27da   :  { %8908 = vrot.lane.b32.xlu1 %v16275_v5, %s14737_s22 }
0x27de   :  { %8912 = vrot.lane.b32.xlu1 %v16286_v43, %s14737_s22 }
0x27e2   :  { %9043 = vrot.lane.b32.xlu1 %v16243_v8, %s14737_s22 }
0x27e6   :  { %9039 = vrot.lane.b32.xlu1 %v16237_v4, %s14737_s22 }
0x281d   :  { %v8686_v6 = vpop.xlane.xlu1 %8685 }
0x281e   :  { %v8693_v28 = vsub.f32 %v8670_v23, %v8686_v6 }
0x2820   :  { %v8696_v36 = vmul.f32 1.442695, %v8693_v28 }
0x2821   :  { %v8689_v37 = vpop.xlane.xlu0 %8688  ;;  %v8917_v55 = vpop.permute.xlu1 %8916 }
0x2822   :  { %14567 = vpow2.f32 %v8696_v36  ;;  %v8694_v15 = vsub.f32 %v8675_v45, %v8689_v37 }
0x2824   :  { %v8698_v9 = vmul.f32 1.442695, %v8694_v15 }
0x2825   :  { %v8919_v29 = vpop.permute.xlu0 %8918 }
0x2826   :  { %14569 = vpow2.f32 %v8698_v9 }
0x2829   :  { %v8915_v40 = vpop.permute.xlu0 %8914 }
0x282d   :  { %v8911_v12 = vpop.permute.xlu0 %8910 }
0x282f   :  { %v14568_v24 = vpop.eup %14567 }
0x2830   :  { %13893 = vmatmul.mubr.msk.f32.vlgmr.msra.gmra.mxu1 %vm551_vm6, %v14568_v24  ;;  %v8702_v27 = vsel %vm551_vm6, %v14568_v24, 0.0 }
0x2831   :  { %13913 = vmatpush3.xpose.msk.msra.mxu1 %vm452_vm5, %v8919_v29  ;;  %8703 = vadd.xlane.f32.xlu0 %v8702_v27 }
0x2832   :  { %13895 = vmatprep.mubr.msk.f32.mxu1 %vm14728_vm2, %v14727_v13  ;;  %13914 = vmatprep.subr.mxu1 %v14727_v13 }
0x2833   :  { %v14570_v56 = vpop.eup %14569 }
0x2834   :  { %13896 = vmatmul.mubr.msk.f32.gmra.mxu1 %vm551_vm6, %v14570_v56  ;;  %v8705_v34 = vsel %vm551_vm6, %v14570_v56, 0.0 }
0x2835   :  { %13915 = vmatpush3.xpose.msk.msra.mxu1 %vm452_vm5, %v8917_v55  ;;  %8706 = vadd.xlane.f32.xlu1 %v8705_v34 }
0x2836   :  { %13916 = vmatprep.subr.mxu1 %v14727_v13  ;;  %13898 = vmatprep.mubr.msk.f32.mxu1 %vm14728_vm2, %v14727_v13 }
0x2839   :  { %13917 = vmatpush3.xpose.msk.msra.mxu1 %vm452_vm5, %v8915_v40 }
0x283a   :  { %13942 = vmatprep.subr.mxu1 %v14727_v13 }
0x2846   :  { %9246 = vrot.lane.b32.xlu1 %v16267_v21, %s14738_s3 }
0x2847   :  { %9041 = vrot.lane.b32.xlu0 %v16241_v0, %s14737_s22 }
0x2849   :  { %v8563_v42 = vpop.f32.mrf.mxu1 }
0x284a   :  { %v16921_v38 = vadd.f32 %v8563_v42, %v16831_v53 }
0x284b   :  { %v13864_v46 = vpop.f32.mrf.mxu1 }
0x284d   :  { %v8568_v47 = vpop.f32.mrf.mxu1 }
0x284e   :  { %v16924_v19 = vadd.f32 %v8568_v47, %v16834_v1 }
0x284f   :  { %v13867_v10 = vpop.f32.mrf.mxu1 }
0x2851   :  { %v8573_v25 = vpop.f32.mrf.mxu1 }
0x2852   :  { %v16927_v33 = vadd.f32 %v8573_v25, %v16868_v54  ;;  %v8692_v49 = vpop.xlane.xlu1 %8691  ;;  %v14692_v54 = vld [vmem:[%s17623_s7 + $0x48] sm:$0xff] }
0x2853   :  { %v8695_v59 = vsub.f32 %v8680_v3, %v8692_v49  ;;  %v13870_v62 = vpop.f32.mrf.mxu1 }
0x2855   :  { %v8700_v31 = vmul.f32 1.442695, %v8695_v59 }
0x2856   :  { %v8909_v1 = vpop.permute.xlu1 %8908 }
0x2857   :  { %14571 = vpow2.f32 %v8700_v31 }
0x285a   :  { %v8913_v2 = vpop.permute.xlu1 %8912 }
0x285e   :  { %v9044_v41 = vpop.permute.xlu1 %9043 }
0x2862   :  { %v9040_v7 = vpop.permute.xlu1 %9039 }
0x2864   :  { %v14572_v30 = vpop.eup %14571 }
0x2865   :  { %13899 = vmatmul.mubr.msk.f32.gmra.mxu1 %vm551_vm6, %v14572_v30  ;;  %v8708_v53 = vsel %vm558_vm7, %v14572_v30, 0.0 }
0x2866   :  { %8709 = vadd.xlane.f32.xlu0 %v8708_v53  ;;  %13918 = vmatprep.mubr.msk.f32.mxu1 %vm14728_vm2, %v14727_v13 }
0x2869   :  { %13919 = vmatmul.mubr.msk.f32.vlgmr.msra.gmra.mxu1 %vm452_vm5, %v8909_v1 }
0x286a   :  { %13921 = vmatprep.mubr.msk.f32.mxu1 %vm14728_vm2, %v14727_v13  ;;  %13943 = vmatpush3.msra.mxu1 %v14692_v54 }
0x286b   :  { %13968 = vmatprep.subr.mxu1 %v14727_v13 }
0x286d   :  { %13922 = vmatmul.mubr.msk.f32.gmra.mxu1 %vm452_vm5, %v8911_v12 }
0x286e   :  { %13924 = vmatprep.mubr.msk.f32.mxu1 %vm14728_vm2, %v14727_v13 }
0x2871   :  { %13925 = vmatmul.mubr.msk.f32.gmra.mxu1 %vm452_vm5, %v8913_v2 }
0x2872   :  { %13944 = vmatprep.mubr.msk.f32.mxu1 %vm14728_vm2, %v14727_v13 }
0x28ba   :  { %v8704_v39 = vpop.xlane.xlu0 %8703 }
0x28bb   :  { %14573 = vrcp.f32 %v8704_v39  ;;  %v14693_v39 = vld [vmem:[%s17623_s7 + $0x50] sm:$0xff] }
0x28be   :  { %v8707_v48 = vpop.xlane.xlu1 %8706  ;;  %v9042_v22 = vpop.permute.xlu0 %9041 }
0x28bf   :  { %14575 = vrcp.f32 %v8707_v48 }
0x28c2   :  { %v9247_v27 = vpop.permute.xlu1 %9246 }
0x28c8   :  { %v14574_v35 = vpop.eup %14573 }
0x28cc   :  { %v14576_v63 = vpop.eup %14575 }
0x28ef   :  { %v8710_v44 = vpop.xlane.xlu0 %8709 }
0x28f0   :  { %v8796_v11 = vpop.f32.mrf.mxu1  ;;  %14577 = vrcp.f32 %v8710_v44 }
0x28f1   :  { %v8813_v57 = vmul.f32 %v14574_v35, %v8796_v11 }
0x28f2   :  { %v13894_v60 = vpop.f32.mrf.mxu1 }
0x28f3   :  { %13904 = vmatmul.mubr.msk.f32.vlgmr.msra.gmra.mxu0 %vm452_vm5, %v8813_v57 }
0x28f4   :  { %13928 = vmatpush3.msk.msra.mxu0 %vm589_vm4, %v9044_v41  ;;  %v8801_v17 = vpop.f32.mrf.mxu1  ;;  %13906 = vmatprep.mubr.msk.f32.mxu0 %vm14728_vm2, %v14727_v13 }
0x28f5   :  { %v8814_v23 = vmul.f32 %v14576_v63, %v8801_v17  ;;  %13929 = vmatprep.subr.mxu0 %v14727_v13 }
0x28f6   :  { %13930 = vmatpush3.msra.mxu0 %v9042_v22  ;;  %v13897_v26 = vpop.f32.mrf.mxu1 }
0x28f7   :  { %13931 = vmatprep.subr.mxu0 %v14727_v13  ;;  %13907 = vmatmul.mubr.msk.f32.gmra.mxu0 %vm452_vm5, %v8814_v23 }
0x28f8   :  { %13932 = vmatpush3.msra.mxu0 %v9040_v7  ;;  %13909 = vmatprep.mubr.msk.f32.mxu0 %vm14728_vm2, %v14727_v13 }
0x28f9   :  { %13953 = vmatprep.subr.mxu0 %v14727_v13 }
0x28fd   :  { %v14578_v45 = vpop.eup %14577 }
0x2925   :  { %v8806_v51 = vpop.f32.mrf.mxu1 }
0x2926   :  { %v8815_v16 = vmul.f32 %v14578_v45, %v8806_v51 }
0x2927   :  { %v13900_v3 = vpop.f32.mrf.mxu1 }
0x2928   :  { %13910 = vmatmul.mubr.msk.f32.gmra.mxu0 %vm452_vm5, %v8815_v16 }
0x2929   :  { %v8998_v61 = vpop.f32.mrf.mxu1  ;;  %13933 = vmatprep.mubr.msk.f32.mxu0 %vm14728_vm2, %v14727_v13 }
0x292a   :  { %v9012_v32 = vsel %vm551_vm6, %v8998_v61, -inf }
0x292b   :  { %9013 = vmax.xlane.f32.xlu0 %v9012_v32  ;;  %v13920_v6 = vpop.f32.mrf.mxu1 }
0x292d   :  { %v9003_v28 = vpop.f32.mrf.mxu1 }
0x292e   :  { %v9015_v36 = vsel %vm551_vm6, %v9003_v28, -inf }
0x292f   :  { %9016 = vmax.xlane.f32.xlu1 %v9015_v36  ;;  %v13923_v37 = vpop.f32.mrf.mxu1 }
0x2931   :  { %v9008_v15 = vpop.f32.mrf.mxu1 }
0x2932   :  { %v9018_v9 = vsel %vm558_vm7, %v9008_v15, -inf }
0x2933   :  { %9019 = vmax.xlane.f32.xlu0 %v9018_v9  ;;  %v13926_v24 = vpop.f32.mrf.mxu1 }
0x2940   :  { %9242 = vrot.lane.b32.xlu1 %v16261_v18, %s14738_s3 }
0x2944   :  { %9238 = vrot.lane.b32.xlu1 %v16277_v50, %s14738_s3 }
0x2948   :  { %9369 = vrot.lane.b32.xlu1 %v16241_v0, %s14738_s3 }
0x2949   :  { %9244 = vrot.lane.b32.xlu0 %v16263_v20, %s14738_s3 }
0x294c   :  { %9367 = vrot.lane.b32.xlu1 %v16237_v4, %s14738_s3 }
0x294d   :  { %9236 = vrot.lane.b32.xlu0 %v16275_v5, %s14738_s3 }
0x2951   :  { %9240 = vrot.lane.b32.xlu0 %v16286_v43, %s14738_s3 }
0x2955   :  { %9371 = vrot.lane.b32.xlu0 %v16243_v8, %s14738_s3 }
0x29b3   :  { %v8891_v29 = vpop.f32.mrf.mxu0 }
0x29b4   :  { %v16979_v56 = vadd.f32 %v8891_v29, %v16921_v38  ;;  %v9014_v55 = vpop.xlane.xlu0 %9013 }
0x29b5   :  { %v9021_v34 = vsub.f32 %v8998_v61, %v9014_v55  ;;  %v13905_v40 = vpop.f32.mrf.mxu0 }
0x29b7   :  { %v9024_v42 = vmul.f32 1.442695, %v9021_v34  ;;  %v8896_v46 = vpop.f32.mrf.mxu0 }
0x29b8   :  { %v16982_v47 = vadd.f32 %v8896_v46, %v16924_v19  ;;  %v9017_v10 = vpop.xlane.xlu1 %9016 }
0x29b9   :  { %14579 = vpow2.f32 %v9024_v42  ;;  %v9022_v25 = vsub.f32 %v9003_v28, %v9017_v10  ;;  %v13908_v49 = vpop.f32.mrf.mxu0 }
0x29bb   :  { %v9026_v59 = vmul.f32 1.442695, %v9022_v25 }
0x29bc   :  { %v9020_v62 = vpop.xlane.xlu0 %9019  ;;  %v9243_v2 = vpop.permute.xlu1 %9242 }
0x29bd   :  { %14581 = vpow2.f32 %v9026_v59  ;;  %v9023_v31 = vsub.f32 %v9008_v15, %v9020_v62 }
0x29bf   :  { %v9028_v30 = vmul.f32 1.442695, %v9023_v31 }
0x29c0   :  { %v9245_v1 = vpop.permute.xlu0 %9244  ;;  %v9239_v48 = vpop.permute.xlu1 %9238 }
0x29c1   :  { %14583 = vpow2.f32 %v9028_v30 }
0x29c4   :  { %v9237_v7 = vpop.permute.xlu0 %9236  ;;  %v9370_v63 = vpop.permute.xlu1 %9369 }
0x29c6   :  { %v14580_v38 = vpop.eup %14579 }
0x29c7   :  { %13934 = vmatmul.mubr.msk.f32.vlgmr.msra.gmra.mxu0 %vm551_vm6, %v14580_v38  ;;  %v9030_v53 = vsel %vm551_vm6, %v14580_v38, 0.0 }
0x29c8   :  { %13954 = vmatpush3.xpose.msk.msra.mxu0 %vm452_vm5, %v9247_v27  ;;  %9031 = vadd.xlane.f32.xlu1 %v9030_v53  ;;  %v9241_v35 = vpop.permute.xlu0 %9240  ;;  %v9368_v17 = vpop.permute.xlu1 %9367 }
0x29c9   :  { %13936 = vmatprep.mubr.msk.f32.mxu0 %vm14728_vm2, %v14727_v13  ;;  %13955 = vmatprep.subr.mxu0 %v14727_v13 }
0x29ca   :  { %v14582_v19 = vpop.eup %14581 }
0x29cb   :  { %13937 = vmatmul.mubr.msk.f32.gmra.mxu0 %vm551_vm6, %v14582_v19  ;;  %v9033_v54 = vsel %vm551_vm6, %v14582_v19, 0.0 }
0x29cc   :  { %13956 = vmatpush3.xpose.msk.msra.mxu0 %vm452_vm5, %v9245_v1  ;;  %9034 = vadd.xlane.f32.xlu0 %v9033_v54  ;;  %v9372_v22 = vpop.permute.xlu0 %9371 }
0x29cd   :  { %13939 = vmatprep.mubr.msk.f32.mxu0 %vm14728_vm2, %v14727_v13  ;;  %13957 = vmatprep.subr.mxu0 %v14727_v13 }
0x29ce   :  { %v14584_v12 = vpop.eup %14583 }
0x29cf   :  { %13940 = vmatmul.mubr.msk.f32.gmra.mxu0 %vm551_vm6, %v14584_v12  ;;  %v9036_v41 = vsel %vm558_vm7, %v14584_v12, 0.0 }
0x29d0   :  { %13958 = vmatpush3.xpose.msk.msra.mxu0 %vm452_vm5, %v9243_v2  ;;  %9037 = vadd.xlane.f32.xlu0 %v9036_v41 }
0x29d1   :  { %13959 = vmatprep.mubr.msk.f32.mxu0 %vm14728_vm2, %v14727_v13  ;;  %13983 = vmatprep.subr.mxu0 %v14727_v13 }
0x29d3   :  { %13960 = vmatmul.mubr.msk.f32.vlgmr.msra.gmra.mxu0 %vm452_vm5, %v9237_v7 }
0x29d4   :  { %13962 = vmatprep.mubr.msk.f32.mxu0 %vm14728_vm2, %v14727_v13  ;;  %13984 = vmatpush3.msra.mxu0 %v14693_v39 }
0x29d5   :  { %14009 = vmatprep.subr.mxu0 %v14727_v13 }
0x29d7   :  { %13963 = vmatmul.mubr.msk.f32.gmra.mxu0 %vm452_vm5, %v9239_v48 }
0x29d8   :  { %13965 = vmatprep.mubr.msk.f32.mxu0 %vm14728_vm2, %v14727_v13 }
0x29db   :  { %13966 = vmatmul.mubr.msk.f32.gmra.mxu0 %vm452_vm5, %v9241_v35 }
0x29dc   :  { %13985 = vmatprep.mubr.msk.f32.mxu0 %vm14728_vm2, %v14727_v13 }
0x29e8   :  { %v8901_v11 = vpop.f32.mrf.mxu0 }
0x29e9   :  { %v17016_v57 = vadd.f32 %v8901_v11, %v16927_v33 }
0x29ea   :  { %v13911_v60 = vpop.f32.mrf.mxu0 }
0x2a51   :  { %v9032_v23 = vpop.xlane.xlu1 %9031 }
0x2a52   :  { %14585 = vrcp.f32 %v9032_v23 }
0x2a55   :  { %v9035_v26 = vpop.xlane.xlu0 %9034 }
0x2a56   :  { %14587 = vrcp.f32 %v9035_v26 }
0x2a59   :  { %v9038_v44 = vpop.xlane.xlu0 %9037 }
0x2a5a   :  { %14589 = vrcp.f32 %v9038_v44 }
0x2a5f   :  { %v14586_v45 = vpop.eup %14585 }
0x2a63   :  { %v14588_v61 = vpop.eup %14587 }
0x2a67   :  { %v14590_v28 = vpop.eup %14589 }
0x2a87   :  { %v9124_v51 = vpop.f32.mrf.mxu0 }
0x2a88   :  { %v9141_v16 = vmul.f32 %v14586_v45, %v9124_v51 }
0x2a89   :  { %v13935_v3 = vpop.f32.mrf.mxu0 }
0x2a8a   :  { %13945 = vmatmul.mubr.msk.f32.vlgmr.msra.gmra.mxu1 %vm452_vm5, %v9141_v16 }
0x2a8b   :  { %13969 = vmatpush3.msk.msra.mxu1 %vm589_vm4, %v9372_v22  ;;  %v9129_v33 = vpop.f32.mrf.mxu0  ;;  %13947 = vmatprep.mubr.msk.f32.mxu1 %vm14728_vm2, %v14727_v13 }
0x2a8c   :  { %v9142_v32 = vmul.f32 %v14588_v61, %v9129_v33  ;;  %13970 = vmatprep.subr.mxu1 %v14727_v13 }
0x2a8d   :  { %13971 = vmatpush3.msra.mxu1 %v9370_v63  ;;  %v13938_v6 = vpop.f32.mrf.mxu0 }
0x2a8e   :  { %13972 = vmatprep.subr.mxu1 %v14727_v13  ;;  %13948 = vmatmul.mubr.msk.f32.gmra.mxu1 %vm452_vm5, %v9142_v32 }
0x2a8f   :  { %13973 = vmatpush3.msra.mxu1 %v9368_v17  ;;  %v9134_v36 = vpop.f32.mrf.mxu0  ;;  %13950 = vmatprep.mubr.msk.f32.mxu1 %vm14728_vm2, %v14727_v13 }
0x2a90   :  { %v9143_v37 = vmul.f32 %v14590_v28, %v9134_v36  ;;  %13994 = vmatprep.subr.mxu1 %v14727_v13 }
0x2a91   :  { %v13941_v15 = vpop.f32.mrf.mxu0 }
0x2a92   :  { %13951 = vmatmul.mubr.msk.f32.gmra.mxu1 %vm452_vm5, %v9143_v37 }
0x2a93   :  { %v9326_v9 = vpop.f32.mrf.mxu0  ;;  %13974 = vmatprep.mubr.msk.f32.mxu1 %vm14728_vm2, %v14727_v13 }
0x2a94   :  { %v9340_v24 = vsel %vm551_vm6, %v9326_v9, -inf }
0x2a95   :  { %9341 = vmax.xlane.f32.xlu1 %v9340_v24  ;;  %v13961_v29 = vpop.f32.mrf.mxu0 }
0x2a97   :  { %v9331_v27 = vpop.f32.mrf.mxu0 }
0x2a98   :  { %v9343_v55 = vsel %vm551_vm6, %v9331_v27, -inf }
0x2a99   :  { %9344 = vmax.xlane.f32.xlu0 %v9343_v55  ;;  %v13964_v34 = vpop.f32.mrf.mxu0 }
0x2a9b   :  { %v9336_v40 = vpop.f32.mrf.mxu0 }
0x2a9c   :  { %v9346_v46 = vsel %vm558_vm7, %v9336_v40, -inf }
0x2a9d   :  { %v13967_v42 = vpop.f32.mrf.mxu0 }
0x2aa6   :  { %9572 = vrot.lane.b32.xlu1 %v16263_v20, %s14739_s1 }
0x2aaf   :  { %9574 = vrot.lane.b32.xlu0 %v16267_v21, %s14739_s1 }
0x2ab3   :  { %9570 = vrot.lane.b32.xlu0 %v16261_v18, %s14739_s1 }
0x2ab7   :  { %9566 = vrot.lane.b32.xlu0 %v16277_v50, %s14739_s1 }
0x2aca   :  { %9347 = vmax.xlane.f32.xlu1 %v9346_v46 }
0x2adb   :  { %9564 = vrot.lane.b32.xlu1 %v16275_v5, %s14739_s1 }
0x2adf   :  { %9568 = vrot.lane.b32.xlu1 %v16286_v43, %s14739_s1 }
0x2ae3   :  { %9699 = vrot.lane.b32.xlu1 %v16243_v8, %s14739_s1 }
0x2ae7   :  { %9695 = vrot.lane.b32.xlu1 %v16237_v4, %s14739_s1 }
0x2b1e   :  { %v9342_v10 = vpop.xlane.xlu1 %9341 }
0x2b1f   :  { %v9349_v25 = vsub.f32 %v9326_v9, %v9342_v10 }
0x2b21   :  { %v9352_v49 = vmul.f32 1.442695, %v9349_v25 }
0x2b22   :  { %v9345_v59 = vpop.xlane.xlu0 %9344  ;;  %v9573_v1 = vpop.permute.xlu1 %9572 }
0x2b23   :  { %14591 = vpow2.f32 %v9352_v49  ;;  %v9350_v62 = vsub.f32 %v9331_v27, %v9345_v59 }
0x2b25   :  { %v9354_v31 = vmul.f32 1.442695, %v9350_v62 }
0x2b26   :  { %v9575_v38 = vpop.permute.xlu0 %9574 }
0x2b27   :  { %14593 = vpow2.f32 %v9354_v31 }
0x2b2a   :  { %v9571_v12 = vpop.permute.xlu0 %9570 }
0x2b2e   :  { %v9567_v44 = vpop.permute.xlu0 %9566 }
0x2b30   :  { %v14592_v30 = vpop.eup %14591 }
0x2b31   :  { %13975 = vmatmul.mubr.msk.f32.vlgmr.msra.gmra.mxu1 %vm551_vm6, %v14592_v30  ;;  %v9358_v53 = vsel %vm551_vm6, %v14592_v30, 0.0 }
0x2b32   :  { %13995 = vmatpush3.xpose.msk.msra.mxu1 %vm452_vm5, %v9575_v38  ;;  %9359 = vadd.xlane.f32.xlu0 %v9358_v53 }
0x2b33   :  { %13977 = vmatprep.mubr.msk.f32.mxu1 %vm14728_vm2, %v14727_v13  ;;  %13996 = vmatprep.subr.mxu1 %v14727_v13 }
0x2b34   :  { %v14594_v19 = vpop.eup %14593 }
0x2b35   :  { %13978 = vmatmul.mubr.msk.f32.gmra.mxu1 %vm551_vm6, %v14594_v19  ;;  %v9361_v54 = vsel %vm551_vm6, %v14594_v19, 0.0 }
0x2b36   :  { %13997 = vmatpush3.xpose.msk.msra.mxu1 %vm452_vm5, %v9573_v1  ;;  %9362 = vadd.xlane.f32.xlu1 %v9361_v54 }
0x2b37   :  { %13998 = vmatprep.subr.mxu1 %v14727_v13  ;;  %13980 = vmatprep.mubr.msk.f32.mxu1 %vm14728_vm2, %v14727_v13 }
0x2b3a   :  { %13999 = vmatpush3.xpose.msk.msra.mxu1 %vm452_vm5, %v9571_v12 }
0x2b3b   :  { %14024 = vmatprep.subr.mxu1 %v14727_v13 }
0x2b47   :  { %9902 = vrot.lane.b32.xlu1 %v16267_v21, %s14740_s26 }
0x2b48   :  { %9697 = vrot.lane.b32.xlu0 %v16241_v0, %s14739_s1 }
0x2b4a   :  { %v9219_v2 = vpop.f32.mrf.mxu1 }
0x2b4b   :  { %v17069_v41 = vadd.f32 %v9219_v2, %v16979_v56 }
0x2b4c   :  { %v13946_v7 = vpop.f32.mrf.mxu1 }
0x2b4e   :  { %v9224_v39 = vpop.f32.mrf.mxu1 }
0x2b4f   :  { %v17072_v48 = vadd.f32 %v9224_v39, %v16982_v47 }
0x2b50   :  { %v13949_v35 = vpop.f32.mrf.mxu1 }
0x2b52   :  { %v9229_v11 = vpop.f32.mrf.mxu1 }
0x2b53   :  { %v17075_v60 = vadd.f32 %v9229_v11, %v17016_v57  ;;  %v9348_v63 = vpop.xlane.xlu1 %9347  ;;  %v14694_v57 = vld [vmem:[%s17623_s7 + $0x58] sm:$0xff] }
0x2b54   :  { %v9351_v17 = vsub.f32 %v9336_v40, %v9348_v63  ;;  %v13952_v22 = vpop.f32.mrf.mxu1 }
0x2b56   :  { %v9356_v23 = vmul.f32 1.442695, %v9351_v17 }
0x2b57   :  { %v9565_v47 = vpop.permute.xlu1 %9564 }
0x2b58   :  { %14595 = vpow2.f32 %v9356_v23 }
0x2b5b   :  { %v9569_v45 = vpop.permute.xlu1 %9568 }
0x2b5f   :  { %v9700_v51 = vpop.permute.xlu1 %9699 }
0x2b63   :  { %v9696_v16 = vpop.permute.xlu1 %9695 }
0x2b65   :  { %v14596_v26 = vpop.eup %14595 }
0x2b66   :  { %13981 = vmatmul.mubr.msk.f32.gmra.mxu1 %vm551_vm6, %v14596_v26  ;;  %v9364_v56 = vsel %vm558_vm7, %v14596_v26, 0.0 }
0x2b67   :  { %9365 = vadd.xlane.f32.xlu0 %v9364_v56  ;;  %14000 = vmatprep.mubr.msk.f32.mxu1 %vm14728_vm2, %v14727_v13 }
0x2b6a   :  { %14001 = vmatmul.mubr.msk.f32.vlgmr.msra.gmra.mxu1 %vm452_vm5, %v9565_v47 }
0x2b6b   :  { %14003 = vmatprep.mubr.msk.f32.mxu1 %vm14728_vm2, %v14727_v13  ;;  %14025 = vmatpush3.msra.mxu1 %v14694_v57 }
0x2b6c   :  { %14050 = vmatprep.subr.mxu1 %v14727_v13 }
0x2b6e   :  { %14004 = vmatmul.mubr.msk.f32.gmra.mxu1 %vm452_vm5, %v9567_v44 }
0x2b6f   :  { %14006 = vmatprep.mubr.msk.f32.mxu1 %vm14728_vm2, %v14727_v13 }
0x2b72   :  { %14007 = vmatmul.mubr.msk.f32.gmra.mxu1 %vm452_vm5, %v9569_v45 }
0x2b73   :  { %14026 = vmatprep.mubr.msk.f32.mxu1 %vm14728_vm2, %v14727_v13 }
0x2bbb   :  { %v9360_v3 = vpop.xlane.xlu0 %9359 }
0x2bbc   :  { %14597 = vrcp.f32 %v9360_v3  ;;  %v14695_v3 = vld [vmem:[%s17623_s7 + $0x60] sm:$0xff] }
0x2bbf   :  { %v9363_v61 = vpop.xlane.xlu1 %9362  ;;  %v9698_v15 = vpop.permute.xlu0 %9697 }
0x2bc0   :  { %14599 = vrcp.f32 %v9363_v61 }
0x2bc3   :  { %v9903_v53 = vpop.permute.xlu1 %9902 }
0x2bc9   :  { %v14598_v33 = vpop.eup %14597 }
0x2bcd   :  { %v14600_v36 = vpop.eup %14599 }
0x2bf0   :  { %v9366_v29 = vpop.xlane.xlu0 %9365 }
0x2bf1   :  { %v9452_v32 = vpop.f32.mrf.mxu1  ;;  %14601 = vrcp.f32 %v9366_v29 }
0x2bf2   :  { %v9469_v6 = vmul.f32 %v14598_v33, %v9452_v32 }
0x2bf3   :  { %v13976_v28 = vpop.f32.mrf.mxu1 }
0x2bf4   :  { %13986 = vmatmul.mubr.msk.f32.vlgmr.msra.gmra.mxu0 %vm452_vm5, %v9469_v6 }
0x2bf5   :  { %14010 = vmatpush3.msk.msra.mxu0 %vm589_vm4, %v9700_v51  ;;  %v9457_v37 = vpop.f32.mrf.mxu1  ;;  %13988 = vmatprep.mubr.msk.f32.mxu0 %vm14728_vm2, %v14727_v13 }
0x2bf6   :  { %v9470_v9 = vmul.f32 %v14600_v36, %v9457_v37  ;;  %14011 = vmatprep.subr.mxu0 %v14727_v13 }
0x2bf7   :  { %14012 = vmatpush3.msra.mxu0 %v9698_v15  ;;  %v13979_v24 = vpop.f32.mrf.mxu1 }
0x2bf8   :  { %14013 = vmatprep.subr.mxu0 %v14727_v13  ;;  %13989 = vmatmul.mubr.msk.f32.gmra.mxu0 %vm452_vm5, %v9470_v9 }
0x2bf9   :  { %14014 = vmatpush3.msra.mxu0 %v9696_v16  ;;  %13991 = vmatprep.mubr.msk.f32.mxu0 %vm14728_vm2, %v14727_v13 }
0x2bfa   :  { %14035 = vmatprep.subr.mxu0 %v14727_v13 }
0x2bfe   :  { %v14602_v27 = vpop.eup %14601 }
0x2c26   :  { %v9462_v55 = vpop.f32.mrf.mxu1 }
0x2c27   :  { %v9471_v34 = vmul.f32 %v14602_v27, %v9462_v55 }
0x2c28   :  { %v13982_v40 = vpop.f32.mrf.mxu1 }
0x2c29   :  { %13992 = vmatmul.mubr.msk.f32.gmra.mxu0 %vm452_vm5, %v9471_v34 }
0x2c2a   :  { %v9654_v42 = vpop.f32.mrf.mxu1  ;;  %14015 = vmatprep.mubr.msk.f32.mxu0 %vm14728_vm2, %v14727_v13 }
0x2c2b   :  { %v9668_v46 = vsel %vm551_vm6, %v9654_v42, -inf }
0x2c2c   :  { %9669 = vmax.xlane.f32.xlu0 %v9668_v46  ;;  %v14002_v10 = vpop.f32.mrf.mxu1 }
0x2c2e   :  { %v9659_v25 = vpop.f32.mrf.mxu1 }
0x2c2f   :  { %v9671_v49 = vsel %vm551_vm6, %v9659_v25, -inf }
0x2c30   :  { %9672 = vmax.xlane.f32.xlu1 %v9671_v49  ;;  %v14005_v59 = vpop.f32.mrf.mxu1 }
0x2c32   :  { %v9664_v62 = vpop.f32.mrf.mxu1 }
0x2c33   :  { %v9674_v31 = vsel %vm558_vm7, %v9664_v62, -inf }
0x2c34   :  { %9675 = vmax.xlane.f32.xlu0 %v9674_v31  ;;  %v14008_v30 = vpop.f32.mrf.mxu1 }
0x2c41   :  { %9898 = vrot.lane.b32.xlu1 %v16261_v18, %s14740_s26 }
0x2c45   :  { %9894 = vrot.lane.b32.xlu1 %v16277_v50, %s14740_s26 }
0x2c49   :  { %10025 = vrot.lane.b32.xlu1 %v16241_v0, %s14740_s26 }
0x2c4a   :  { %9900 = vrot.lane.b32.xlu0 %v16263_v20, %s14740_s26 }
0x2c4d   :  { %10023 = vrot.lane.b32.xlu1 %v16237_v4, %s14740_s26 }
0x2c4e   :  { %9892 = vrot.lane.b32.xlu0 %v16275_v5, %s14740_s26 }
0x2c52   :  { %9896 = vrot.lane.b32.xlu0 %v16286_v43, %s14740_s26 }
0x2c56   :  { %10027 = vrot.lane.b32.xlu0 %v16243_v8, %s14740_s26 }
0x2cb4   :  { %v9547_v38 = vpop.f32.mrf.mxu0 }
0x2cb5   :  { %v17127_v19 = vadd.f32 %v9547_v38, %v17069_v41  ;;  %v9670_v1 = vpop.xlane.xlu0 %9669 }
0x2cb6   :  { %v9677_v54 = vsub.f32 %v9654_v42, %v9670_v1  ;;  %v13987_v12 = vpop.f32.mrf.mxu0 }
0x2cb8   :  { %v9680_v2 = vmul.f32 1.442695, %v9677_v54  ;;  %v9552_v7 = vpop.f32.mrf.mxu0 }
0x2cb9   :  { %v17130_v39 = vadd.f32 %v9552_v7, %v17072_v48  ;;  %v9673_v35 = vpop.xlane.xlu1 %9672 }
0x2cba   :  { %14603 = vpow2.f32 %v9680_v2  ;;  %v9678_v11 = vsub.f32 %v9659_v25, %v9673_v35  ;;  %v13990_v63 = vpop.f32.mrf.mxu0 }
0x2cbc   :  { %v9682_v17 = vmul.f32 1.442695, %v9678_v11 }
0x2cbd   :  { %v9676_v22 = vpop.xlane.xlu0 %9675  ;;  %v9899_v45 = vpop.permute.xlu1 %9898 }
0x2cbe   :  { %14605 = vpow2.f32 %v9682_v17  ;;  %v9679_v23 = vsub.f32 %v9664_v62, %v9676_v22 }
0x2cc0   :  { %v9684_v26 = vmul.f32 1.442695, %v9679_v23 }
0x2cc1   :  { %v9901_v47 = vpop.permute.xlu0 %9900  ;;  %v9895_v61 = vpop.permute.xlu1 %9894 }
0x2cc2   :  { %14607 = vpow2.f32 %v9684_v26 }
0x2cc5   :  { %v9893_v16 = vpop.permute.xlu0 %9892  ;;  %v10026_v36 = vpop.permute.xlu1 %10025 }
0x2cc7   :  { %v14604_v41 = vpop.eup %14603 }
0x2cc8   :  { %14016 = vmatmul.mubr.msk.f32.vlgmr.msra.gmra.mxu0 %vm551_vm6, %v14604_v41  ;;  %v9686_v56 = vsel %vm551_vm6, %v14604_v41, 0.0 }
0x2cc9   :  { %14036 = vmatpush3.xpose.msk.msra.mxu0 %vm452_vm5, %v9903_v53  ;;  %9687 = vadd.xlane.f32.xlu1 %v9686_v56  ;;  %v9897_v33 = vpop.permute.xlu0 %9896  ;;  %v10024_v37 = vpop.permute.xlu1 %10023 }
0x2cca   :  { %14018 = vmatprep.mubr.msk.f32.mxu0 %vm14728_vm2, %v14727_v13  ;;  %14037 = vmatprep.subr.mxu0 %v14727_v13 }
0x2ccb   :  { %v14606_v48 = vpop.eup %14605 }
0x2ccc   :  { %14019 = vmatmul.mubr.msk.f32.gmra.mxu0 %vm551_vm6, %v14606_v48  ;;  %v9689_v57 = vsel %vm551_vm6, %v14606_v48, 0.0 }
0x2ccd   :  { %14038 = vmatpush3.xpose.msk.msra.mxu0 %vm452_vm5, %v9901_v47  ;;  %9690 = vadd.xlane.f32.xlu0 %v9689_v57  ;;  %v10028_v15 = vpop.permute.xlu0 %10027 }
0x2cce   :  { %14021 = vmatprep.mubr.msk.f32.mxu0 %vm14728_vm2, %v14727_v13  ;;  %14039 = vmatprep.subr.mxu0 %v14727_v13 }
0x2ccf   :  { %v14608_v44 = vpop.eup %14607 }
0x2cd0   :  { %14022 = vmatmul.mubr.msk.f32.gmra.mxu0 %vm551_vm6, %v14608_v44  ;;  %v9692_v51 = vsel %vm558_vm7, %v14608_v44, 0.0 }
0x2cd1   :  { %14040 = vmatpush3.xpose.msk.msra.mxu0 %vm452_vm5, %v9899_v45  ;;  %9693 = vadd.xlane.f32.xlu0 %v9692_v51 }
0x2cd2   :  { %14041 = vmatprep.mubr.msk.f32.mxu0 %vm14728_vm2, %v14727_v13  ;;  %14065 = vmatprep.subr.mxu0 %v14727_v13 }
0x2cd4   :  { %14042 = vmatmul.mubr.msk.f32.vlgmr.msra.gmra.mxu0 %vm452_vm5, %v9893_v16 }
0x2cd5   :  { %14044 = vmatprep.mubr.msk.f32.mxu0 %vm14728_vm2, %v14727_v13  ;;  %14066 = vmatpush3.msra.mxu0 %v14695_v3 }
0x2cd6   :  { %14091 = vmatprep.subr.mxu0 %v14727_v13 }
0x2cd8   :  { %14045 = vmatmul.mubr.msk.f32.gmra.mxu0 %vm452_vm5, %v9895_v61 }
0x2cd9   :  { %14047 = vmatprep.mubr.msk.f32.mxu0 %vm14728_vm2, %v14727_v13 }
0x2cdc   :  { %14048 = vmatmul.mubr.msk.f32.gmra.mxu0 %vm452_vm5, %v9897_v33 }
0x2cdd   :  { %14067 = vmatprep.mubr.msk.f32.mxu0 %vm14728_vm2, %v14727_v13 }
0x2ce9   :  { %v9557_v32 = vpop.f32.mrf.mxu0 }
0x2cea   :  { %v17164_v6 = vadd.f32 %v9557_v32, %v17075_v60 }
0x2ceb   :  { %v13993_v28 = vpop.f32.mrf.mxu0 }
0x2d52   :  { %v9688_v9 = vpop.xlane.xlu1 %9687 }
0x2d53   :  { %14609 = vrcp.f32 %v9688_v9 }
0x2d56   :  { %v9691_v24 = vpop.xlane.xlu0 %9690 }
0x2d57   :  { %14611 = vrcp.f32 %v9691_v24 }
0x2d5a   :  { %v9694_v29 = vpop.xlane.xlu0 %9693 }
0x2d5b   :  { %14613 = vrcp.f32 %v9694_v29 }
0x2d60   :  { %v14610_v27 = vpop.eup %14609 }
0x2d64   :  { %v14612_v42 = vpop.eup %14611 }
0x2d68   :  { %v14614_v25 = vpop.eup %14613 }
0x2d88   :  { %v9780_v55 = vpop.f32.mrf.mxu0 }
0x2d89   :  { %v9797_v34 = vmul.f32 %v14610_v27, %v9780_v55 }
0x2d8a   :  { %v14017_v40 = vpop.f32.mrf.mxu0 }
0x2d8b   :  { %14027 = vmatmul.mubr.msk.f32.vlgmr.msra.gmra.mxu1 %vm452_vm5, %v9797_v34 }
0x2d8c   :  { %14051 = vmatpush3.msk.msra.mxu1 %vm589_vm4, %v10028_v15  ;;  %v9785_v60 = vpop.f32.mrf.mxu0  ;;  %14029 = vmatprep.mubr.msk.f32.mxu1 %vm14728_vm2, %v14727_v13 }
0x2d8d   :  { %v9798_v46 = vmul.f32 %v14612_v42, %v9785_v60  ;;  %14052 = vmatprep.subr.mxu1 %v14727_v13 }
0x2d8e   :  { %14053 = vmatpush3.msra.mxu1 %v10026_v36  ;;  %v14020_v10 = vpop.f32.mrf.mxu0 }
0x2d8f   :  { %14054 = vmatprep.subr.mxu1 %v14727_v13  ;;  %14030 = vmatmul.mubr.msk.f32.gmra.mxu1 %vm452_vm5, %v9798_v46 }
0x2d90   :  { %14055 = vmatpush3.msra.mxu1 %v10024_v37  ;;  %v9790_v49 = vpop.f32.mrf.mxu0  ;;  %14032 = vmatprep.mubr.msk.f32.mxu1 %vm14728_vm2, %v14727_v13 }
0x2d91   :  { %v9799_v59 = vmul.f32 %v14614_v25, %v9790_v49  ;;  %14076 = vmatprep.subr.mxu1 %v14727_v13 }
0x2d92   :  { %v14023_v62 = vpop.f32.mrf.mxu0 }
0x2d93   :  { %14033 = vmatmul.mubr.msk.f32.gmra.mxu1 %vm452_vm5, %v9799_v59 }
0x2d94   :  { %v9982_v31 = vpop.f32.mrf.mxu0  ;;  %14056 = vmatprep.mubr.msk.f32.mxu1 %vm14728_vm2, %v14727_v13 }
0x2d95   :  { %v9996_v30 = vsel %vm551_vm6, %v9982_v31, -inf }
0x2d96   :  { %9997 = vmax.xlane.f32.xlu1 %v9996_v30  ;;  %v14043_v38 = vpop.f32.mrf.mxu0 }
0x2d98   :  { %v9987_v53 = vpop.f32.mrf.mxu0 }
0x2d99   :  { %v9999_v1 = vsel %vm551_vm6, %v9987_v53, -inf }
0x2d9a   :  { %10000 = vmax.xlane.f32.xlu0 %v9999_v1  ;;  %v14046_v54 = vpop.f32.mrf.mxu0 }
0x2d9c   :  { %v9992_v12 = vpop.f32.mrf.mxu0 }
0x2d9d   :  { %v10002_v7 = vsel %vm558_vm7, %v9992_v12, -inf }
0x2d9e   :  { %v14049_v2 = vpop.f32.mrf.mxu0 }
0x2da7   :  { %10228 = vrot.lane.b32.xlu1 %v16263_v20, %s17642_s29 }
0x2db0   :  { %10230 = vrot.lane.b32.xlu0 %v16267_v21, %s17642_s29 }
0x2db4   :  { %10226 = vrot.lane.b32.xlu0 %v16261_v18, %s17642_s29 }
0x2db8   :  { %10222 = vrot.lane.b32.xlu0 %v16277_v50, %s17642_s29 }
0x2dcb   :  { %10003 = vmax.xlane.f32.xlu1 %v10002_v7 }
0x2ddc   :  { %10220 = vrot.lane.b32.xlu1 %v16275_v5, %s17642_s29 }
0x2de0   :  { %10224 = vrot.lane.b32.xlu1 %v16286_v43, %s17642_s29 }
0x2de4   :  { %10355 = vrot.lane.b32.xlu1 %v16243_v8, %s17642_s29 }
0x2de8   :  { %10351 = vrot.lane.b32.xlu1 %v16237_v4, %s17642_s29 }
0x2e1f   :  { %v9998_v35 = vpop.xlane.xlu1 %9997 }
0x2e20   :  { %v10005_v11 = vsub.f32 %v9982_v31, %v9998_v35 }
0x2e22   :  { %v10008_v63 = vmul.f32 1.442695, %v10005_v11 }
0x2e23   :  { %v10001_v17 = vpop.xlane.xlu0 %10000  ;;  %v10229_v47 = vpop.permute.xlu1 %10228 }
0x2e24   :  { %14615 = vpow2.f32 %v10008_v63  ;;  %v10006_v22 = vsub.f32 %v9987_v53, %v10001_v17 }
0x2e26   :  { %v10010_v23 = vmul.f32 1.442695, %v10006_v22 }
0x2e27   :  { %v10231_v41 = vpop.permute.xlu0 %10230 }
0x2e28   :  { %14617 = vpow2.f32 %v10010_v23 }
0x2e2b   :  { %v10227_v44 = vpop.permute.xlu0 %10226 }
0x2e2f   :  { %v10223_v29 = vpop.permute.xlu0 %10222 }
0x2e31   :  { %v14616_v26 = vpop.eup %14615 }
0x2e32   :  { %14057 = vmatmul.mubr.msk.f32.vlgmr.msra.gmra.mxu1 %vm551_vm6, %v14616_v26  ;;  %v10014_v56 = vsel %vm551_vm6, %v14616_v26, 0.0 }
0x2e33   :  { %14077 = vmatpush3.xpose.msk.msra.mxu1 %vm452_vm5, %v10231_v41  ;;  %10015 = vadd.xlane.f32.xlu0 %v10014_v56 }
0x2e34   :  { %14059 = vmatprep.mubr.msk.f32.mxu1 %vm14728_vm2, %v14727_v13  ;;  %14078 = vmatprep.subr.mxu1 %v14727_v13 }
0x2e35   :  { %v14618_v48 = vpop.eup %14617 }
0x2e36   :  { %14060 = vmatmul.mubr.msk.f32.gmra.mxu1 %vm551_vm6, %v14618_v48  ;;  %v10017_v57 = vsel %vm551_vm6, %v14618_v48, 0.0 }
0x2e37   :  { %14079 = vmatpush3.xpose.msk.msra.mxu1 %vm452_vm5, %v10229_v47  ;;  %10018 = vadd.xlane.f32.xlu1 %v10017_v57 }
0x2e38   :  { %14080 = vmatprep.subr.mxu1 %v14727_v13  ;;  %14062 = vmatprep.mubr.msk.f32.mxu1 %vm14728_vm2, %v14727_v13 }
0x2e3b   :  { %14081 = vmatpush3.xpose.msk.msra.mxu1 %vm452_vm5, %v10227_v44 }
0x2e3c   :  { %14106 = vmatprep.subr.mxu1 %v14727_v13 }
0x2e48   :  { %10558 = vrot.lane.b32.xlu1 %v16267_v21, %s17643_s20 }
0x2e49   :  { %10353 = vrot.lane.b32.xlu0 %v16241_v0, %s17642_s29  ;;  %s14745_s29 = smov [#allocation3]  }
0x2e4b   :  { %v9875_v45 = vpop.f32.mrf.mxu1 }
0x2e4c   :  { %v17217_v51 = vadd.f32 %v9875_v45, %v17127_v19 }
0x2e4d   :  { %v14028_v16 = vpop.f32.mrf.mxu1 }
0x2e4f   :  { %v9880_v3 = vpop.f32.mrf.mxu1 }
0x2e50   :  { %v17220_v61 = vadd.f32 %v9880_v3, %v17130_v39 }
0x2e51   :  { %v14031_v33 = vpop.f32.mrf.mxu1 }
0x2e53   :  { %v9885_v32 = vpop.f32.mrf.mxu1 }
0x2e54   :  { %v17223_v28 = vadd.f32 %v9885_v32, %v17164_v6  ;;  %v10004_v36 = vpop.xlane.xlu1 %10003  ;;  %v14696_v6 = vld [vmem:[%s17623_s7 + $0x68] sm:$0xff] }
0x2e55   :  { %v10007_v37 = vsub.f32 %v9992_v12, %v10004_v36  ;;  %v14034_v15 = vpop.f32.mrf.mxu1 }
0x2e57   :  { %v10012_v9 = vmul.f32 1.442695, %v10007_v37 }
0x2e58   :  { %v10221_v39 = vpop.permute.xlu1 %10220 }
0x2e59   :  { %14619 = vpow2.f32 %v10012_v9 }
0x2e5c   :  { %v10225_v27 = vpop.permute.xlu1 %10224 }
0x2e60   :  { %v10356_v55 = vpop.permute.xlu1 %10355 }
0x2e64   :  { %v10352_v34 = vpop.permute.xlu1 %10351 }
0x2e66   :  { %v14620_v24 = vpop.eup %14619 }
0x2e67   :  { %14063 = vmatmul.mubr.msk.f32.gmra.mxu1 %vm551_vm6, %v14620_v24  ;;  %v10020_v19 = vsel %vm558_vm7, %v14620_v24, 0.0 }
0x2e68   :  { %10021 = vadd.xlane.f32.xlu0 %v10020_v19  ;;  %14082 = vmatprep.mubr.msk.f32.mxu1 %vm14728_vm2, %v14727_v13 }
0x2e6b   :  { %14083 = vmatmul.mubr.msk.f32.vlgmr.msra.gmra.mxu1 %vm452_vm5, %v10221_v39 }
0x2e6c   :  { %14085 = vmatprep.mubr.msk.f32.mxu1 %vm14728_vm2, %v14727_v13  ;;  %14107 = vmatpush3.msra.mxu1 %v14696_v6 }
0x2e6d   :  { %14132 = vmatprep.subr.mxu1 %v14727_v13 }
0x2e6f   :  { %14086 = vmatmul.mubr.msk.f32.gmra.mxu1 %vm452_vm5, %v10223_v29 }
0x2e70   :  { %14088 = vmatprep.mubr.msk.f32.mxu1 %vm14728_vm2, %v14727_v13 }
0x2e73   :  { %14089 = vmatmul.mubr.msk.f32.gmra.mxu1 %vm452_vm5, %v10225_v27 }
0x2e74   :  { %14108 = vmatprep.mubr.msk.f32.mxu1 %vm14728_vm2, %v14727_v13 }
0x2ebc   :  { %v10016_v40 = vpop.xlane.xlu0 %10015 }
0x2ebd   :  { %14621 = vrcp.f32 %v10016_v40  ;;  %v14697_v40 = vld [vmem:[%s17623_s7 + $0x70] sm:$0xff] }
0x2ec0   :  { %v10019_v42 = vpop.xlane.xlu1 %10018  ;;  %v10354_v62 = vpop.permute.xlu0 %10353 }
0x2ec1   :  { %14623 = vrcp.f32 %v10019_v42 }
0x2ec4   :  { %v10559_v56 = vpop.permute.xlu1 %10558 }
0x2eca   :  { %v14622_v60 = vpop.eup %14621 }
0x2ece   :  { %v14624_v49 = vpop.eup %14623 }
0x2ef1   :  { %v10022_v38 = vpop.xlane.xlu0 %10021 }
0x2ef2   :  { %v10108_v46 = vpop.f32.mrf.mxu1  ;;  %14625 = vrcp.f32 %v10022_v38 }
0x2ef3   :  { %v10125_v10 = vmul.f32 %v14622_v60, %v10108_v46 }
0x2ef4   :  { %v14058_v25 = vpop.f32.mrf.mxu1 }
0x2ef5   :  { %14068 = vmatmul.mubr.msk.f32.vlgmr.msra.gmra.mxu0 %vm452_vm5, %v10125_v10 }
0x2ef6   :  { %14092 = vmatpush3.msk.msra.mxu0 %vm589_vm4, %v10356_v55  ;;  %v10113_v59 = vpop.f32.mrf.mxu1  ;;  %14070 = vmatprep.mubr.msk.f32.mxu0 %vm14728_vm2, %v14727_v13 }
0x2ef7   :  { %v10126_v31 = vmul.f32 %v14624_v49, %v10113_v59  ;;  %14093 = vmatprep.subr.mxu0 %v14727_v13 }
0x2ef8   :  { %14094 = vmatpush3.msra.mxu0 %v10354_v62  ;;  %v14061_v30 = vpop.f32.mrf.mxu1 }
0x2ef9   :  { %14095 = vmatprep.subr.mxu0 %v14727_v13  ;;  %14071 = vmatmul.mubr.msk.f32.gmra.mxu0 %vm452_vm5, %v10126_v31 }
0x2efa   :  { %14096 = vmatpush3.msra.mxu0 %v10352_v34  ;;  %14073 = vmatprep.mubr.msk.f32.mxu0 %vm14728_vm2, %v14727_v13 }
0x2efb   :  { %14117 = vmatprep.subr.mxu0 %v14727_v13 }
0x2eff   :  { %v14626_v53 = vpop.eup %14625 }
0x2f27   :  { %v10118_v1 = vpop.f32.mrf.mxu1 }
0x2f28   :  { %v10127_v54 = vmul.f32 %v14626_v53, %v10118_v1 }
0x2f29   :  { %v14064_v12 = vpop.f32.mrf.mxu1 }
0x2f2a   :  { %14074 = vmatmul.mubr.msk.f32.gmra.mxu0 %vm452_vm5, %v10127_v54 }
0x2f2b   :  { %v10310_v2 = vpop.f32.mrf.mxu1  ;;  %14097 = vmatprep.mubr.msk.f32.mxu0 %vm14728_vm2, %v14727_v13 }
0x2f2c   :  { %v10324_v7 = vsel %vm551_vm6, %v10310_v2, -inf }
0x2f2d   :  { %10325 = vmax.xlane.f32.xlu0 %v10324_v7  ;;  %v14084_v35 = vpop.f32.mrf.mxu1 }
0x2f2f   :  { %v10315_v11 = vpop.f32.mrf.mxu1 }
0x2f30   :  { %v10327_v63 = vsel %vm551_vm6, %v10315_v11, -inf }
0x2f31   :  { %10328 = vmax.xlane.f32.xlu1 %v10327_v63  ;;  %v14087_v17 = vpop.f32.mrf.mxu1 }
0x2f33   :  { %v10320_v22 = vpop.f32.mrf.mxu1 }
0x2f34   :  { %v10330_v23 = vsel %vm558_vm7, %v10320_v22, -inf }
0x2f35   :  { %10331 = vmax.xlane.f32.xlu0 %v10330_v23  ;;  %v14090_v26 = vpop.f32.mrf.mxu1 }
0x2f42   :  { %10554 = vrot.lane.b32.xlu1 %v16261_v18, %s17643_s20 }
0x2f46   :  { %10550 = vrot.lane.b32.xlu1 %v16277_v50, %s17643_s20 }
0x2f4a   :  { %10681 = vrot.lane.b32.xlu1 %v16241_v0, %s17643_s20 }
0x2f4b   :  { %10556 = vrot.lane.b32.xlu0 %v16263_v20, %s17643_s20 }
0x2f4e   :  { %10679 = vrot.lane.b32.xlu1 %v16237_v4, %s17643_s20 }
0x2f4f   :  { %10548 = vrot.lane.b32.xlu0 %v16275_v5, %s17643_s20 }
0x2f53   :  { %10552 = vrot.lane.b32.xlu0 %v16286_v43, %s17643_s20 }
0x2f57   :  { %10683 = vrot.lane.b32.xlu0 %v16243_v8, %s17643_s20  ;;  %s11704_s20 = sshll.u32 %s14745_s29, 4  ;;  %s11705_s20 = int_to_ptr.vmem [resolvable:$true] %s11704_s20 }
0x2f58   :  { %p14710_p1 = scmp.lt.s32.totalorder %s11705_s20, %s11705_s20 }
0x2fb5   :  { %v10203_v41 = vpop.f32.mrf.mxu0 }
0x2fb6   :  { %v17275_v48 = vadd.f32 %v10203_v41, %v17217_v51  ;;  %v10326_v47 = vpop.xlane.xlu0 %10325 }
0x2fb7   :  { %v10333_v57 = vsub.f32 %v10310_v2, %v10326_v47  ;;  %v14069_v44 = vpop.f32.mrf.mxu0 }
0x2fb9   :  { %v10336_v45 = vmul.f32 1.442695, %v10333_v57  ;;  %v10208_v16 = vpop.f32.mrf.mxu0 }
0x2fba   :  { %v17278_v3 = vadd.f32 %v10208_v16, %v17220_v61  ;;  %v10329_v33 = vpop.xlane.xlu1 %10328 }
0x2fbb   :  { %14627 = vpow2.f32 %v10336_v45  ;;  %v10334_v32 = vsub.f32 %v10315_v11, %v10329_v33  ;;  %v14072_v36 = vpop.f32.mrf.mxu0 }
0x2fbd   :  { %v10338_v37 = vmul.f32 1.442695, %v10334_v32 }
0x2fbe   :  { %v10332_v15 = vpop.xlane.xlu0 %10331  ;;  %v10555_v27 = vpop.permute.xlu1 %10554 }
0x2fbf   :  { %14629 = vpow2.f32 %v10338_v37  ;;  %v10335_v9 = vsub.f32 %v10320_v22, %v10332_v15 }
0x2fc1   :  { %v10340_v24 = vmul.f32 1.442695, %v10335_v9 }
0x2fc2   :  { %v10557_v39 = vpop.permute.xlu0 %10556  ;;  %v10551_v42 = vpop.permute.xlu1 %10550 }
0x2fc3   :  { %14631 = vpow2.f32 %v10340_v24 }
0x2fc6   :  { %v10549_v34 = vpop.permute.xlu0 %10548  ;;  %v10682_v49 = vpop.permute.xlu1 %10681 }
0x2fc8   :  { %v14628_v51 = vpop.eup %14627 }
0x2fc9   :  { %14098 = vmatmul.mubr.msk.f32.vlgmr.msra.gmra.mxu0 %vm551_vm6, %v14628_v51  ;;  %v10342_v19 = vsel %vm551_vm6, %v14628_v51, 0.0 }
0x2fca   :  { %14118 = vmatpush3.xpose.msk.msra.mxu0 %vm452_vm5, %v10559_v56  ;;  %10343 = vadd.xlane.f32.xlu1 %v10342_v19  ;;  %v10553_v60 = vpop.permute.xlu0 %10552  ;;  %v10680_v59 = vpop.permute.xlu1 %10679 }
0x2fcb   :  { %14100 = vmatprep.mubr.msk.f32.mxu0 %vm14728_vm2, %v14727_v13  ;;  %14119 = vmatprep.subr.mxu0 %v14727_v13 }
0x2fcc   :  { %v14630_v61 = vpop.eup %14629 }
0x2fcd   :  { %14101 = vmatmul.mubr.msk.f32.gmra.mxu0 %vm551_vm6, %v14630_v61  ;;  %v10345_v6 = vsel %vm551_vm6, %v14630_v61, 0.0 }
0x2fce   :  { %14120 = vmatpush3.xpose.msk.msra.mxu0 %vm452_vm5, %v10557_v39  ;;  %10346 = vadd.xlane.f32.xlu0 %v10345_v6  ;;  %v10684_v62 = vpop.permute.xlu0 %10683 }
0x2fcf   :  { %14103 = vmatprep.mubr.msk.f32.mxu0 %vm14728_vm2, %v14727_v13  ;;  %14121 = vmatprep.subr.mxu0 %v14727_v13 }
0x2fd0   :  { %v14632_v29 = vpop.eup %14631 }
0x2fd1   :  { %14104 = vmatmul.mubr.msk.f32.gmra.mxu0 %vm551_vm6, %v14632_v29  ;;  %v10348_v55 = vsel %vm558_vm7, %v14632_v29, 0.0 }
0x2fd2   :  { %14122 = vmatpush3.xpose.msk.msra.mxu0 %vm452_vm5, %v10555_v27  ;;  %10349 = vadd.xlane.f32.xlu0 %v10348_v55 }
0x2fd3   :  { %14123 = vmatprep.mubr.msk.f32.mxu0 %vm14728_vm2, %v14727_v13  ;;  %14147 = vmatprep.subr.mxu0 %v14727_v13 }
0x2fd5   :  { %14124 = vmatmul.mubr.msk.f32.vlgmr.msra.gmra.mxu0 %vm452_vm5, %v10549_v34 }
0x2fd6   :  { %14126 = vmatprep.mubr.msk.f32.mxu0 %vm14728_vm2, %v14727_v13  ;;  %14148 = vmatpush3.msra.mxu0 %v14697_v40 }
0x2fd7   :  { %14173 = vmatprep.subr.mxu0 %v14727_v13 }
0x2fd9   :  { %14127 = vmatmul.mubr.msk.f32.gmra.mxu0 %vm452_vm5, %v10551_v42 }
0x2fda   :  { %14129 = vmatprep.mubr.msk.f32.mxu0 %vm14728_vm2, %v14727_v13 }
0x2fdd   :  { %14130 = vmatmul.mubr.msk.f32.gmra.mxu0 %vm452_vm5, %v10553_v60 }
0x2fde   :  { %14149 = vmatprep.mubr.msk.f32.mxu0 %vm14728_vm2, %v14727_v13 }
0x2fea   :  { %v10213_v46 = vpop.f32.mrf.mxu0 }
0x2feb   :  { %v17312_v10 = vadd.f32 %v10213_v46, %v17223_v28  ;;  %v14698_v46 = vld [vmem:[%s17623_s7 + $0x78] sm:$0xff] }
0x2fec   :  { %v14075_v25 = vpop.f32.mrf.mxu0 }
0x3053   :  { %v10344_v31 = vpop.xlane.xlu1 %10343 }
0x3054   :  { %14633 = vrcp.f32 %v10344_v31 }
0x3057   :  { %v10347_v30 = vpop.xlane.xlu0 %10346 }
0x3058   :  { %14635 = vrcp.f32 %v10347_v30 }
0x305b   :  { %v10350_v38 = vpop.xlane.xlu0 %10349 }
0x305c   :  { %14637 = vrcp.f32 %v10350_v38 }
0x3061   :  { %v14634_v53 = vpop.eup %14633 }
0x3065   :  { %v14636_v2 = vpop.eup %14635 }
0x3069   :  { %v14638_v11 = vpop.eup %14637 }
0x3089   :  { %v10436_v1 = vpop.f32.mrf.mxu0 }
0x308a   :  { %v10453_v54 = vmul.f32 %v14634_v53, %v10436_v1 }
0x308b   :  { %v14099_v12 = vpop.f32.mrf.mxu0 }
0x308c   :  { %14109 = vmatmul.mubr.msk.f32.vlgmr.msra.gmra.mxu1 %vm452_vm5, %v10453_v54 }
0x308d   :  { %14133 = vmatpush3.msk.msra.mxu1 %vm589_vm4, %v10684_v62  ;;  %v10441_v28 = vpop.f32.mrf.mxu0  ;;  %14111 = vmatprep.mubr.msk.f32.mxu1 %vm14728_vm2, %v14727_v13 }
0x308e   :  { %v10454_v7 = vmul.f32 %v14636_v2, %v10441_v28  ;;  %14134 = vmatprep.subr.mxu1 %v14727_v13 }
0x308f   :  { %14135 = vmatpush3.msra.mxu1 %v10682_v49  ;;  %v14102_v35 = vpop.f32.mrf.mxu0 }
0x3090   :  { %14136 = vmatprep.subr.mxu1 %v14727_v13  ;;  %14112 = vmatmul.mubr.msk.f32.gmra.mxu1 %vm452_vm5, %v10454_v7 }
0x3091   :  { %14137 = vmatpush3.msra.mxu1 %v10680_v59  ;;  %v10446_v63 = vpop.f32.mrf.mxu0  ;;  %14114 = vmatprep.mubr.msk.f32.mxu1 %vm14728_vm2, %v14727_v13 }
0x3092   :  { %v10455_v17 = vmul.f32 %v14638_v11, %v10446_v63  ;;  %14158 = vmatprep.subr.mxu1 %v14727_v13 }
0x3093   :  { %v14105_v22 = vpop.f32.mrf.mxu0 }
0x3094   :  { %14115 = vmatmul.mubr.msk.f32.gmra.mxu1 %vm452_vm5, %v10455_v17 }
0x3095   :  { %v10638_v23 = vpop.f32.mrf.mxu0  ;;  %14138 = vmatprep.mubr.msk.f32.mxu1 %vm14728_vm2, %v14727_v13 }
0x3096   :  { %v10652_v26 = vsel %vm551_vm6, %v10638_v23, -inf }
0x3097   :  { %10653 = vmax.xlane.f32.xlu1 %v10652_v26  ;;  %v14125_v41 = vpop.f32.mrf.mxu0 }
0x3099   :  { %v10643_v56 = vpop.f32.mrf.mxu0 }
0x309a   :  { %v10655_v47 = vsel %vm551_vm6, %v10643_v56, -inf }
0x309b   :  { %10656 = vmax.xlane.f32.xlu0 %v10655_v47  ;;  %v14128_v57 = vpop.f32.mrf.mxu0 }
0x309d   :  { %v10648_v44 = vpop.f32.mrf.mxu0 }
0x309e   :  { %v10658_v16 = vsel %vm558_vm7, %v10648_v44, -inf }
0x309f   :  { %v14131_v45 = vpop.f32.mrf.mxu0 }
0x30a8   :  { %10884 = vrot.lane.b32.xlu1 %v16263_v20, %s17644_s4 }
0x30b1   :  { %10886 = vrot.lane.b32.xlu0 %v16267_v21, %s17644_s4 }
0x30b5   :  { %10882 = vrot.lane.b32.xlu0 %v16261_v18, %s17644_s4 }
0x30b9   :  { %10878 = vrot.lane.b32.xlu0 %v16277_v50, %s17644_s4 }
0x30cc   :  { %10659 = vmax.xlane.f32.xlu1 %v10658_v16 }
0x30dd   :  { %10876 = vrot.lane.b32.xlu1 %v16275_v5, %s17644_s4 }
0x30e1   :  { %10880 = vrot.lane.b32.xlu1 %v16286_v43, %s17644_s4 }
0x30e5   :  { %11011 = vrot.lane.b32.xlu1 %v16243_v8, %s17644_s4 }
0x3120   :  { %v10654_v20 = vpop.xlane.xlu1 %10653 }
0x3121   :  { %v10661_v21 = vsub.f32 %v10638_v23, %v10654_v20 }
0x3123   :  { %v10664_v33 = vmul.f32 1.442695, %v10661_v21 }
0x3124   :  { %v10657_v32 = vpop.xlane.xlu0 %10656  ;;  %v10885_v43 = vpop.permute.xlu1 %10884 }
0x3125   :  { %14639 = vpow2.f32 %v10664_v33  ;;  %v10662_v18 = vsub.f32 %v10643_v56, %v10657_v32 }
0x3127   :  { %v10666_v36 = vmul.f32 1.442695, %v10662_v18 }
0x3128   :  { %v10887_v37 = vpop.permute.xlu0 %10886 }
0x3129   :  { %14641 = vpow2.f32 %v10666_v36 }
0x312c   :  { %v10883_v9 = vpop.permute.xlu0 %10882 }
0x3132   :  { %v14640_v50 = vpop.eup %14639 }
0x3133   :  { %14139 = vmatmul.mubr.msk.f32.vlgmr.msra.gmra.mxu1 %vm551_vm6, %v14640_v50  ;;  %v10670_v5 = vsel %vm551_vm6, %v14640_v50, 0.0 }
0x3134   :  { %14159 = vmatpush3.xpose.msk.msra.mxu1 %vm452_vm5, %v10887_v37  ;;  %10671 = vadd.xlane.f32.xlu0 %v10670_v5 }
0x3135   :  { %14141 = vmatprep.mubr.msk.f32.mxu1 %vm14728_vm2, %v14727_v13  ;;  %14160 = vmatprep.subr.mxu1 %v14727_v13 }
0x3136   :  { %v14642_v8 = vpop.eup %14641 }
0x3137   :  { %14142 = vmatmul.mubr.msk.f32.gmra.mxu1 %vm551_vm6, %v14642_v8  ;;  %v10673_v15 = vsel %vm551_vm6, %v14642_v8, 0.0 }
0x3138   :  { %14161 = vmatpush3.xpose.msk.msra.mxu1 %vm452_vm5, %v10885_v43  ;;  %10674 = vadd.xlane.f32.xlu1 %v10673_v15 }
0x3139   :  { %14162 = vmatprep.subr.mxu1 %v14727_v13  ;;  %14144 = vmatprep.mubr.msk.f32.mxu1 %vm14728_vm2, %v14727_v13 }
0x313c   :  { %14163 = vmatpush3.xpose.msk.msra.mxu1 %vm452_vm5, %v10883_v9 }
0x313d   :  { %14188 = vmatprep.subr.mxu1 %v14727_v13 }
0x314c   :  { %v10531_v24 = vpop.f32.mrf.mxu1 }
0x314d   :  { %v17359_v51 = vadd.f32 %v10531_v24, %v17275_v48  ;;  %v11205_v24 = vsel %vm173_vm3, %v16256_v14, 0.0 }
0x314e   :  { %v14110_v19 = vpop.f32.mrf.mxu1 }
0x314f   :  { %v11204_v19 = vsel %vm173_vm3, %v16253_v52, 0.0 }
0x3150   :  { %v10536_v61 = vpop.f32.mrf.mxu1 }
0x3151   :  { %v17362_v39 = vadd.f32 %v10536_v61, %v17278_v3 }
0x3152   :  { %v14113_v6 = vpop.f32.mrf.mxu1 }
0x3153   :  { %v11206_v6 = vadd.f32 %v11205_v24, %v11204_v19 }
0x3154   :  { %v10541_v29 = vpop.f32.mrf.mxu1 }
0x3155   :  { %v17365_v27 = vadd.f32 %v10541_v29, %v17312_v10  ;;  %v10660_v55 = vpop.xlane.xlu1 %10659  ;;  %v10879_v10 = vpop.permute.xlu0 %10878  ;;  %v11219_v29 = vmul.f32 %v16256_v14, %v16256_v14 }
0x3156   :  { %v10663_v34 = vsub.f32 %v10648_v44, %v10660_v55  ;;  %v14116_v40 = vpop.f32.mrf.mxu1 }
0x3157   :  { %v11218_v40 = vmul.f32 %v16253_v52, %v16253_v52 }
0x3158   :  { %v10668_v42 = vmul.f32 1.442695, %v10663_v34 }
0x3159   :  { %v10877_v3 = vpop.permute.xlu1 %10876 }
0x315a   :  { %14643 = vpow2.f32 %v10668_v42  ;;  %v11220_v42 = vmul.f32 %v16259_v58, %v16259_v58 }
0x315d   :  { %v10881_v25 = vpop.permute.xlu1 %10880 }
0x3161   :  { %v11012_v49 = vpop.permute.xlu1 %11011 }
0x3167   :  { %v14644_v60 = vpop.eup %14643 }
0x3168   :  { %14145 = vmatmul.mubr.msk.f32.gmra.mxu1 %vm551_vm6, %v14644_v60  ;;  %v10676_v48 = vsel %vm558_vm7, %v14644_v60, 0.0 }
0x3169   :  { %10677 = vadd.xlane.f32.xlu0 %v10676_v48  ;;  %14164 = vmatprep.mubr.msk.f32.mxu1 %vm14728_vm2, %v14727_v13  ;;  %v11222_v48 = vsel %vm173_vm3, %v11219_v29, 0.0 }
0x316c   :  { %14165 = vmatmul.mubr.msk.f32.vlgmr.msra.gmra.mxu1 %vm452_vm5, %v10877_v3 }
0x316d   :  { %14167 = vmatprep.mubr.msk.f32.mxu1 %vm14728_vm2, %v14727_v13  ;;  %14189 = vmatpush3.msra.mxu1 %v14698_v46 }
0x316e   :  { %14210 = vmatprep.subr.mxu1 %v14727_v13 }
0x3170   :  { %14168 = vmatmul.mubr.msk.f32.gmra.mxu1 %vm452_vm5, %v10879_v10  ;;  %v11221_v10 = vsel %vm173_vm3, %v11218_v40, 0.0 }
0x3171   :  { %14170 = vmatprep.mubr.msk.f32.mxu1 %vm14728_vm2, %v14727_v13 }
0x3174   :  { %14171 = vmatmul.mubr.msk.f32.gmra.mxu1 %vm452_vm5, %v10881_v25  ;;  %v11224_v25 = vsel %vm169_vm1, %v11220_v42, 0.0 }
0x3175   :  { %14190 = vmatprep.mubr.msk.f32.mxu1 %vm14728_vm2, %v14727_v13 }
0x31bd   :  { %v10672_v59 = vpop.xlane.xlu0 %10671 }
0x31be   :  { %14645 = vrcp.f32 %v10672_v59 }
0x31c1   :  { %v10675_v62 = vpop.xlane.xlu1 %10674 }
0x31c2   :  { %14647 = vrcp.f32 %v10675_v62 }
0x31cb   :  { %v14646_v31 = vpop.eup %14645 }
0x31cf   :  { %v14648_v1 = vpop.eup %14647 }
0x31f2   :  { %v10678_v28 = vpop.xlane.xlu0 %10677 }
0x31f3   :  { %v10764_v30 = vpop.f32.mrf.mxu1  ;;  %14649 = vrcp.f32 %v10678_v28 }
0x31f4   :  { %v10781_v38 = vmul.f32 %v14646_v31, %v10764_v30 }
0x31f5   :  { %v14140_v53 = vpop.f32.mrf.mxu1 }
0x31f6   :  { %14150 = vmatmul.mubr.msk.f32.vlgmr.msra.gmra.mxu0 %vm452_vm5, %v10781_v38 }
0x31f7   :  { %14174 = vmatpush3.msk.msra.mxu0 %vm589_vm4, %v11012_v49  ;;  %v10769_v54 = vpop.f32.mrf.mxu1  ;;  %14152 = vmatprep.mubr.msk.f32.mxu0 %vm14728_vm2, %v14727_v13  ;;  %v11223_v49 = vadd.f32 %v11222_v48, %v11221_v10 }
0x31f8   :  { %v10782_v12 = vmul.f32 %v14648_v1, %v10769_v54  ;;  %14175 = vmatprep.subr.mxu0 %v14727_v13 }
0x31f9   :  { %v14143_v2 = vpop.f32.mrf.mxu1  ;;  %v11225_v59 = vadd.f32 %v11224_v25, %v11223_v49 }
0x31fa   :  { %14153 = vmatmul.mubr.msk.f32.gmra.mxu0 %vm452_vm5, %v10782_v12 }
0x31fb   :  { %14155 = vmatprep.mubr.msk.f32.mxu0 %vm14728_vm2, %v14727_v13 }
0x3200   :  { %v14650_v7 = vpop.eup %14649 }
0x3228   :  { %v10774_v35 = vpop.f32.mrf.mxu1 }
0x3229   :  { %v10783_v11 = vmul.f32 %v14650_v7, %v10774_v35 }
0x322a   :  { %v14146_v63 = vpop.f32.mrf.mxu1 }
0x322b   :  { %14156 = vmatmul.mubr.msk.f32.gmra.mxu0 %vm452_vm5, %v10783_v11 }
0x322c   :  { %v10966_v17 = vpop.f32.mrf.mxu1  ;;  %14179 = vmatprep.mubr.msk.f32.mxu0 %vm14728_vm2, %v14727_v13 }
0x322d   :  { %v10980_v22 = vsel %vm551_vm6, %v10966_v17, -inf }
0x322e   :  { %10981 = vmax.xlane.f32.xlu0 %v10980_v22  ;;  %v14166_v23 = vpop.f32.mrf.mxu1 }
0x3230   :  { %v10971_v26 = vpop.f32.mrf.mxu1 }
0x3231   :  { %v10983_v41 = vsel %vm551_vm6, %v10971_v26, -inf }
0x3232   :  { %10984 = vmax.xlane.f32.xlu1 %v10983_v41  ;;  %v14169_v56 = vpop.f32.mrf.mxu1 }
0x3234   :  { %v10976_v47 = vpop.f32.mrf.mxu1 }
0x3235   :  { %v10986_v57 = vsel %vm558_vm7, %v10976_v47, -inf }
0x3236   :  { %10987 = vmax.xlane.f32.xlu0 %v10986_v57  ;;  %v14172_v44 = vpop.f32.mrf.mxu1 }
0x3243   :  { %11007 = vrot.lane.b32.xlu1 %v16237_v4, %s17644_s4 }
0x324c   :  { %11009 = vrot.lane.b32.xlu0 %v16241_v0, %s17644_s4 }
0x32b6   :  { %v10859_v45 = vpop.f32.mrf.mxu0 }
0x32b7   :  { %v17403_v16 = vadd.f32 %v10859_v45, %v17359_v51  ;;  %v10982_v20 = vpop.xlane.xlu0 %10981 }
0x32b8   :  { %v10989_v21 = vsub.f32 %v10966_v17, %v10982_v20  ;;  %v14151_v33 = vpop.f32.mrf.mxu0 }
0x32ba   :  { %v10992_v32 = vmul.f32 1.442695, %v10989_v21  ;;  %v10864_v18 = vpop.f32.mrf.mxu0 }
0x32bb   :  { %v17406_v36 = vadd.f32 %v10864_v18, %v17362_v39  ;;  %v10985_v50 = vpop.xlane.xlu1 %10984  ;;  %v11207_v39 = vsel %vm169_vm1, %v16259_v58, 0.0 }
0x32bc   :  { %14651 = vpow2.f32 %v10992_v32  ;;  %v10990_v37 = vsub.f32 %v10971_v26, %v10985_v50  ;;  %v14154_v5 = vpop.f32.mrf.mxu0  ;;  %v11208_v34 = vadd.f32 %v11207_v39, %v11206_v6 }
0x32be   :  { %v10994_v4 = vmul.f32 1.442695, %v10990_v37 }
0x32bf   :  { %v10988_v8 = vpop.xlane.xlu0 %10987  ;;  %v11008_v9 = vpop.permute.xlu1 %11007 }
0x32c0   :  { %14653 = vpow2.f32 %v10994_v4  ;;  %v10991_v0 = vsub.f32 %v10976_v47, %v10988_v8 }
0x32c2   :  { %v10996_v43 = vmul.f32 1.442695, %v10991_v0 }
0x32c3   :  { %v11010_v15 = vpop.permute.xlu0 %11009 }
0x32c4   :  { %14655 = vpow2.f32 %v10996_v43  ;;  %14176 = vmatpush3.msra.mxu0 %v11010_v15 }
0x32c5   :  { %14177 = vmatprep.subr.mxu0 %v14727_v13 }
0x32c6   :  { %14178 = vmatpush3.msra.mxu0 %v11008_v9 }
0x32c7   :  { %14199 = vmatprep.subr.mxu0 %v14727_v13 }
0x32c9   :  { %v14652_v51 = vpop.eup %14651 }
0x32ca   :  { %14180 = vmatmul.mubr.msk.f32.vlgmr.msra.gmra.mxu0 %vm551_vm6, %v14652_v51  ;;  %v10998_v61 = vsel %vm551_vm6, %v14652_v51, 0.0 }
0x32cb   :  { %10999 = vadd.xlane.f32.xlu1 %v10998_v61  ;;  %14182 = vmatprep.mubr.msk.f32.mxu0 %vm14728_vm2, %v14727_v13 }
0x32cd   :  { %v14654_v55 = vpop.eup %14653 }
0x32ce   :  { %14183 = vmatmul.mubr.msk.f32.gmra.mxu0 %vm551_vm6, %v14654_v55  ;;  %v11001_v60 = vsel %vm551_vm6, %v14654_v55, 0.0 }
0x32cf   :  { %11209 = vadd.xlane.f32.xlu1 %v11208_v34  ;;  %11002 = vadd.xlane.f32.xlu0 %v11001_v60 }
0x32d0   :  { %14185 = vmatprep.mubr.msk.f32.mxu0 %vm14728_vm2, %v14727_v13 }
0x32d1   :  { %v14656_v3 = vpop.eup %14655 }
0x32d2   :  { %14186 = vmatmul.mubr.msk.f32.gmra.mxu0 %vm551_vm6, %v14656_v3  ;;  %v11004_v46 = vsel %vm558_vm7, %v14656_v3, 0.0 }
0x32d3   :  { %11005 = vadd.xlane.f32.xlu0 %v11004_v46  ;;  %14207 = vmatprep.mubr.msk.f32.mxu0 %vm14728_vm2, %v14727_v13 }
0x32d7   :  { %11226 = vadd.xlane.f32.xlu0 %v11225_v59 }
0x32eb   :  { %v10869_v62 = vpop.f32.mrf.mxu0 }
0x32ec   :  { %v10875_v31 = vadd.f32 %v10869_v62, %v17365_v27 }
0x32ed   :  { %v14157_v30 = vpop.f32.mrf.mxu0 }
0x3354   :  { %v11000_v38 = vpop.xlane.xlu1 %10999 }
0x3355   :  { %14657 = vrcp.f32 %v11000_v38 }
0x3358   :  { %v11210_v53 = vpop.xlane.xlu1 %11209  ;;  %v11003_v1 = vpop.xlane.xlu0 %11002 }
0x3359   :  { %v11211_v54 = vrot.slane %v11210_v53, 4  ;;  %14659 = vrcp.f32 %v11003_v1 }
0x335b   :  { %v11212_v12 = vadd.f32 %v11211_v54, %v11210_v53 }
0x335c   :  { %v11006_v2 = vpop.xlane.xlu0 %11005 }
0x335d   :  { %v11213_v28 = vrot.slane %v11212_v12, 2  ;;  %14661 = vrcp.f32 %v11006_v2 }
0x335f   :  { %v11214_v7 = vadd.f32 %v11213_v28, %v11212_v12 }
0x3360   :  { %v11227_v35 = vpop.xlane.xlu0 %11226 }
0x3361   :  { %v11228_v11 = vrot.slane %v11227_v35, 4  ;;  %v11215_v63 = vrot.slane %v11214_v7, 1 }
0x3362   :  { %v14658_v27 = vpop.eup %14657 }
0x3363   :  { %v11229_v17 = vadd.f32 %v11228_v11, %v11227_v35  ;;  %v11216_v22 = vadd.f32 %v11215_v63, %v11214_v7 }
0x3365   :  { %v11230_v23 = vrot.slane %v11229_v17, 2  ;;  %14240 = vpush %v11216_v22 }
0x3366   :  { %v14660_v45 = vpop.eup %14659 }
0x3367   :  { %v11231_v26 = vadd.f32 %v11230_v23, %v11229_v17  ;;  %v11288_v17 = vld [vmem:[%s17624_s8] sm:$0xff] }
0x3369   :  { %v11232_v41 = vrot.slane %v11231_v26, 1 }
0x336a   :  { %v14662_v32 = vpop.eup %14661 }
0x336b   :  { %v11233_v56 = vadd.f32 %v11232_v41, %v11231_v26  ;;  %v11289_v26 = vld [vmem:[%s17624_s8 + $0x8] sm:$0xff] }
0x336d   :  { %14242 = vpush %v11233_v56 }
0x338a   :  { %v11092_v47 = vpop.f32.mrf.mxu0 }
0x338b   :  { %v11109_v57 = vmul.f32 %v14658_v27, %v11092_v47 }
0x338c   :  { %v14181_v44 = vpop.f32.mrf.mxu0 }
0x338d   :  { %14191 = vmatmul.mubr.msk.f32.vlgmr.msra.gmra.mxu1 %vm452_vm5, %v11109_v57  ;;  %v12167_v44 = vld [vmem:[%s17624_s8 + $0x20] sm:$0xff] }
0x338e   :  { %v11097_v20 = vpop.f32.mrf.mxu0  ;;  %14193 = vmatprep.mubr.msk.f32.mxu1 %vm14728_vm2, %v14727_v13 }
0x338f   :  { %v11110_v21 = vmul.f32 %v14660_v45, %v11097_v20  ;;  %v12168_v45 = vld [vmem:[%s17624_s8 + $0x28] sm:$0x1] }
0x3390   :  { %v14184_v33 = vpop.f32.mrf.mxu0 }
0x3391   :  { %14194 = vmatmul.mubr.msk.f32.gmra.mxu1 %vm452_vm5, %v11110_v21 }
0x3392   :  { %v11102_v18 = vpop.f32.mrf.mxu0  ;;  %14196 = vmatprep.mubr.msk.f32.mxu1 %vm14728_vm2, %v14727_v13 }
0x3393   :  { %v11111_v50 = vmul.f32 %v14662_v32, %v11102_v18 }
0x3394   :  { %v14187_v37 = vpop.f32.mrf.mxu0 }
0x3395   :  { %14197 = vmatmul.mubr.msk.f32.gmra.mxu1 %vm452_vm5, %v11111_v50  ;;  %v11297_v37 = vld [vmem:[%s17625_s9] sm:$0xff] }
0x3396   :  { %14226 = vmatprep.mubr.msk.f32.mxu1 %vm14728_vm2, %v14727_v13  ;;  %s14241_s7 = spop %14240 }
0x339e   :  { %s14243_s0 = spop %14242 }
0x344d   :  { %v11187_v5 = vpop.f32.mrf.mxu1 }
0x344e   :  { %v17448_v8 = vadd.f32 %v11187_v5, %v17403_v16 }
0x344f   :  { %v14192_v4 = vpop.f32.mrf.mxu1 }
0x3450   :  { %v11250_v9 = vmul.f32 %v17448_v8, %v17448_v8  ;;  %v11235_v61 = vsel %vm173_vm3, %v17448_v8, 0.0  ;;  %v11298_v4 = vld [vmem:[%s17625_s9 + $0x8] sm:$0xff] }
0x3451   :  { %v11192_v0 = vpop.f32.mrf.mxu1 }
0x3452   :  { %v17451_v43 = vadd.f32 %v11192_v0, %v17406_v36  ;;  %v11253_v34 = vsel %vm173_vm3, %v11250_v9, 0.0 }
0x3453   :  { %v14195_v15 = vpop.f32.mrf.mxu1 }
0x3454   :  { %v11236_v24 = vsel %vm173_vm3, %v17451_v43, 0.0  ;;  %v11251_v51 = vmul.f32 %v17451_v43, %v17451_v43  ;;  %v14699_v15 = vld [vmem:[#allocation2] sm:$0xff] }
0x3455   :  { %v11197_v19 = vpop.f32.mrf.mxu1  ;;  %v11237_v6 = vadd.f32 %v11236_v24, %v11235_v61  ;;  %v14700_v24 = vld [vmem:[#allocation2 + $0x8] sm:$0xff] }
0x3456   :  { %v17461_v16 = vadd.f32 %v11197_v19, %v10875_v31  ;;  %v11254_v39 = vsel %vm173_vm3, %v11251_v51, 0.0  ;;  %v14701_v19 = vld [vmem:[#allocation2 + $0x10] sm:$0x1] }
0x3457   :  { %v14198_v36 = vpop.f32.mrf.mxu1  ;;  %v11255_v42 = vadd.f32 %v11254_v39, %v11253_v34 }
0x3458   :  { %v11252_v29 = vmul.f32 %v17461_v16, %v17461_v16  ;;  %v11238_v55 = vsel %vm169_vm1, %v17461_v16, 0.0  ;;  %v12170_v36 = vld [vmem:[%s17625_s9 + $0x20] sm:$0xff] }
0x3459   :  { %v11239_v40 = vadd.f32 %v11238_v55, %v11237_v6  ;;  %v14703_v6 = vld [vmem:[#allocation2 + $0x20] sm:$0xff]  ;;  %v14704_v55 = vld [vmem:[#allocation2 + $0x28] sm:$0x1] }
0x345a   :  { %v11256_v60 = vsel %vm169_vm1, %v11252_v29, 0.0 }
0x345b   :  { %11240 = vadd.xlane.f32.xlu1 %v11239_v40  ;;  %v11257_v48 = vadd.f32 %v11256_v60, %v11255_v42  ;;  %v12171_v40 = vld [vmem:[%s17625_s9 + $0x28] sm:$0x1] }
0x345d   :  { %11258 = vadd.xlane.f32.xlu0 %v11257_v48 }
0x34e4   :  { %v11241_v3 = vpop.xlane.xlu1 %11240 }
0x34e5   :  { %v11242_v46 = vrot.slane %v11241_v3, 4 }
0x34e6   :  { %v11259_v10 = vpop.xlane.xlu0 %11258 }
0x34e7   :  { %v11243_v25 = vadd.f32 %v11242_v46, %v11241_v3  ;;  %v11260_v49 = vrot.slane %v11259_v10, 4 }
0x34e9   :  { %v11244_v59 = vrot.slane %v11243_v25, 2  ;;  %v11261_v62 = vadd.f32 %v11260_v49, %v11259_v10 }
0x34eb   :  { %v11262_v31 = vrot.slane %v11261_v62, 2  ;;  %v11245_v30 = vadd.f32 %v11244_v59, %v11243_v25 }
0x34ed   :  { %v11246_v38 = vrot.slane %v11245_v30, 1  ;;  %v11263_v53 = vadd.f32 %v11262_v31, %v11261_v62 }
0x34ef   :  { %v11247_v1 = vadd.f32 %v11246_v38, %v11245_v30  ;;  %v11264_v54 = vrot.slane %v11263_v53, 1 }
0x34f1   :  { %14244 = vpush %v11247_v1  ;;  %v11265_v12 = vadd.f32 %v11264_v54, %v11263_v53 }
0x34f3   :  { %14246 = vpush %v11265_v12 }
0x3522   :  { %s14245_s23 = spop %14244 }
0x3523   :  { %s11249_s2 = sadd.f32 %s14245_s23, %s14241_s7 }
0x3524   :  { %s14247_s5 = spop %14246 }
0x3525   :  { %s11270_s22 = smul.f32 0.00091911765, %s11249_s2  ;;  %s11267_s6 = sadd.f32 %s14247_s5, %s14243_s0 }
0x3527   :  { %s11274_s3 = smul.f32 %s11270_s22, %s11270_s22  ;;  %v11280_v7 = vstv %s11270_s22 }
0x3528   :  { %s11273_s17 = smul.f32 0.00091911765, %s11267_s6  ;;  %v11281_v35 = vsub.f32 %v16253_v52, %v11280_v7  ;;  %v11282_v11 = vsub.f32 %v16256_v14, %v11280_v7  ;;  %v11283_v63 = vsub.f32 %v16259_v58, %v11280_v7  ;;  %v11303_v22 = vsub.f32 %v17448_v8, %v11280_v7  ;;  %v12166_v52 = vld [vmem:[%s17624_s8 + $0x18] sm:$0xff]  ;;  %v11290_v14 = vld [vmem:[%s17624_s8 + $0x10] sm:$0x1] }
0x3529   :  { %v11304_v41 = vsub.f32 %v17451_v43, %v11280_v7  ;;  %v11305_v56 = vsub.f32 %v17461_v16, %v11280_v7  ;;  %v11299_v8 = vld [vmem:[%s17625_s9 + $0x10] sm:$0x1]  ;;  %v12169_v43 = vld [vmem:[%s17625_s9 + $0x18] sm:$0xff] }
0x352a   :  { %s11275_s1 = ssub.f32 %s11273_s17, %s11274_s3  ;;  %v14702_v16 = vld [vmem:[#allocation2 + $0x18] sm:$0xff] }
0x352c   :  { %s11276_s28 = sadd.f32 1e-05, %s11275_s1 }
0x352e   :  { %v11277_v2 = vstv %s11276_s28 }
0x352f   :  { %14663 = vrsqrt.f32 %v11277_v2 }
0x353c   :  { %v14664_v28 = vpop.eup %14663 }
0x353d   :  { %14248 = vpush %v14664_v28 }
0x356e   :  { %s14249_s26 = spop %14248 }
0x356f   :  { %v11284_v23 = vstv %s14249_s26 }
0x3570   :  { %v11285_v58 = vmul.f32 %v11284_v23, %v11281_v35  ;;  %v11286_v27 = vmul.f32 %v11284_v23, %v11282_v11  ;;  %v11287_v47 = vmul.f32 %v11284_v23, %v11283_v63  ;;  %v11306_v57 = vmul.f32 %v11303_v22, %v11284_v23 }
0x3571   :  { %v11307_v20 = vmul.f32 %v11304_v41, %v11284_v23  ;;  %v11308_v21 = vmul.f32 %v11305_v56, %v11284_v23 }
0x3572   :  { %v11291_v33 = vmul.f32 %v11288_v17, %v11285_v58  ;;  %v11292_v32 = vmul.f32 %v11289_v26, %v11286_v27  ;;  %v11313_v18 = vmul.f32 %v12166_v52, %v11306_v57  ;;  %v11293_v50 = vmul.f32 %v11290_v14, %v11287_v47  ;;  %v11429_v57 = vld [vmem:[%s17628_s12 + $0x18] sm:$0xff] }
0x3573   :  { %v11314_v5 = vmul.f32 %v12167_v44, %v11307_v20  ;;  %v11315_v0 = vmul.f32 %v12168_v45, %v11308_v21  ;;  %14200 = vmatpush3.msra.mxu0 %v11429_v57 }
0x3574   :  { %v11294_v9 = vadd.f32 %v14699_v15, %v11291_v33  ;;  %v11295_v51 = vadd.f32 %v14700_v24, %v11292_v32  ;;  %v11296_v61 = vadd.f32 %v14701_v19, %v11293_v50  ;;  %v11316_v39 = vadd.f32 %v14702_v16, %v11313_v18  ;;  %14201 = vmatprep.subr.mxu0 %v14727_v13 }
0x3575   :  { %v11317_v29 = vadd.f32 %v14703_v6, %v11314_v5  ;;  %v11318_v34 = vadd.f32 %v14704_v55, %v11315_v0 }
0x3576   :  { %v11300_v42 = vadd.f32 %v11297_v37, %v11294_v9  ;;  %v11301_v60 = vadd.f32 %v11298_v4, %v11295_v51  ;;  %v11302_v48 = vadd.f32 %v11299_v8, %v11296_v61  ;;  %v11323_v3 = vadd.f32 %v12169_v43, %v11316_v39 }
0x3577   :  { %v11324_v46 = vadd.f32 %v12170_v36, %v11317_v29  ;;  %v11325_v59 = vadd.f32 %v12171_v40, %v11318_v34 }
0x3578   :  { %v11326_v10 = vsel %vm173_vm3, %v11300_v42, 0.0  ;;  %v11327_v25 = vsel %vm173_vm3, %v11301_v60, 0.0  ;;  %v11340_v49 = vmul.f32 %v11300_v42, %v11300_v42  ;;  %v11341_v31 = vmul.f32 %v11301_v60, %v11301_v60  ;;  %v11427_v60 = vld [vmem:[%s17628_s12 + $0x8] sm:$0xff] }
0x3579   :  { %v11328_v62 = vadd.f32 %v11327_v25, %v11326_v10  ;;  %v11342_v30 = vmul.f32 %v11302_v48, %v11302_v48  ;;  %v11357_v38 = vsel %vm173_vm3, %v11323_v3, 0.0  ;;  %v11329_v53 = vsel %vm169_vm1, %v11302_v48, 0.0  ;;  %v11426_v48 = vld [vmem:[%s17628_s12] sm:$0xff]  ;;  %v12172_v10 = vld [vmem:[%s17626_s10 + $0x18] sm:$0x1] }
0x357a   :  { %v11343_v1 = vsel %vm173_vm3, %v11340_v49, 0.0  ;;  %v11358_v54 = vsel %vm173_vm3, %v11324_v46, 0.0  ;;  %v11372_v12 = vmul.f32 %v11323_v3, %v11323_v3  ;;  %v11344_v28 = vsel %vm173_vm3, %v11341_v31, 0.0  ;;  %v12173_v25 = vld [vmem:[%s17627_s11 + $0x18] sm:$0x1] }
0x357b   :  { %v11330_v2 = vadd.f32 %v11329_v53, %v11328_v62  ;;  %v11359_v7 = vadd.f32 %v11358_v54, %v11357_v38  ;;  %v11345_v35 = vadd.f32 %v11344_v28, %v11343_v1  ;;  %v11373_v11 = vmul.f32 %v11324_v46, %v11324_v46  ;;  %v11406_v62 = vld [vmem:[%s17626_s10] sm:$0x1] }
0x357c   :  { %v11375_v63 = vsel %vm173_vm3, %v11372_v12, 0.0  ;;  %v11346_v17 = vsel %vm169_vm1, %v11342_v30, 0.0  ;;  %v11374_v22 = vmul.f32 %v11325_v59, %v11325_v59  ;;  %v11403_v23 = vrot.slane %v11323_v3, 7  ;;  %v11413_v30 = vld [vmem:[%s17627_s11] sm:$0x1] }
0x357d   :  { %11331 = vadd.xlane.f32.xlu1 %v11330_v2  ;;  %v11347_v26 = vadd.f32 %v11346_v17, %v11345_v35  ;;  %v11360_v41 = vsel %vm169_vm1, %v11325_v59, 0.0  ;;  %v11376_v56 = vsel %vm173_vm3, %v11373_v11, 0.0  ;;  %v11410_v59 = vrot.slane %v12172_v10, 7  ;;  %v11536_v35 = vld [vmem:[%s17629_s13 + $0x30] sm:$0xff]  ;;  %v11535_v11 = vld [vmem:[%s17629_s13 + $0x28] sm:$0xff]  ;;  %v11533_v17 = vld [vmem:[%s17629_s13 + $0x18] sm:$0xff] }
0x357e   :  { %v11361_v52 = vadd.f32 %v11360_v41, %v11359_v7  ;;  %v11377_v14 = vadd.f32 %v11376_v56, %v11375_v63  ;;  %v17524_v58 = vsel %vm589_vm4, %v11300_v42, %v11403_v23  ;;  %v11378_v27 = vsel %vm169_vm1, %v11374_v22, 0.0  ;;  %v11428_v42 = vld [vmem:[%s17628_s12 + $0x10] sm:$0xff]  ;;  %v11537_v7 = vld [vmem:[%s17629_s13 + $0x38] sm:$0xff]  ;;  %v11534_v63 = vld [vmem:[%s17629_s13 + $0x20] sm:$0xff] }
0x357f   :  { %11348 = vadd.xlane.f32.xlu0 %v11347_v26  ;;  %14202 = vmatpush3.msra.mxu0 %v11428_v42  ;;  %v11417_v31 = vrot.slane %v12173_v25, 7  ;;  %v11412_v53 = vsel %vm589_vm4, %v11406_v62, %v11410_v59  ;;  %v11532_v22 = vld [vmem:[%s17629_s13 + $0x10] sm:$0xff]  ;;  %v11531_v23 = vld [vmem:[%s17629_s13 + $0x8] sm:$0xff]  ;;  %v11530_v26 = vld [vmem:[%s17629_s13] sm:$0xff] }
0x3580   :  { %v11379_v47 = vadd.f32 %v11378_v27, %v11377_v14  ;;  %14203 = vmatprep.subr.mxu0 %v14727_v13  ;;  %14211 = vmatpush3.msra.mxu1 %v11537_v7  ;;  %v11615_v41 = vld [vmem:[%s17630_s14 + $0x18] sm:$0xff]  ;;  %v11614_v56 = vld [vmem:[%s17630_s14 + $0x10] sm:$0xff]  ;;  %v12176_v42 = vld [vmem:[%s17631_s15] ss:$0 sm:$0xff] }
0x3581   :  { %11362 = vadd.xlane.f32.xlu1 %v11361_v52  ;;  %14204 = vmatpush3.msra.mxu0 %v11427_v60  ;;  %v11419_v12 = vsel %vm589_vm4, %v11413_v30, %v11417_v31 }
0x3582   :  { %14205 = vmatprep.subr.mxu0 %v14727_v13  ;;  %14212 = vmatprep.subr.mxu1 %v14727_v13 }
0x3583   :  { %11380 = vadd.xlane.f32.xlu0 %v11379_v47  ;;  %14206 = vmatpush3.msra.mxu0 %v11426_v48 }
0x3584   :  { %14229 = vmatprep.subr.mxu0 %v14727_v13  ;;  %14213 = vmatpush3.msra.mxu1 %v11536_v35 }
0x3585   :  { %14214 = vmatprep.subr.mxu1 %v14727_v13 }
0x3586   :  { %14215 = vmatpush3.msra.mxu1 %v11535_v11 }
0x3587   :  { %14216 = vmatprep.subr.mxu1 %v14727_v13 }
0x3588   :  { %14217 = vmatpush3.msra.mxu1 %v11534_v63 }
0x3589   :  { %14218 = vmatprep.subr.mxu1 %v14727_v13 }
0x358a   :  { %14219 = vmatpush3.msra.mxu1 %v11533_v17 }
0x358b   :  { %14220 = vmatprep.subr.mxu1 %v14727_v13 }
0x358c   :  { %14221 = vmatpush3.msra.mxu1 %v11532_v22 }
0x358d   :  { %14222 = vmatprep.subr.mxu1 %v14727_v13 }
0x358e   :  { %14223 = vmatpush3.msra.mxu1 %v11531_v23 }
0x358f   :  { %14224 = vmatprep.subr.mxu1 %v14727_v13 }
0x3590   :  { %14225 = vmatpush3.msra.mxu1 %v11530_v26 }
0x3606   :  { %v11332_v44 = vpop.xlane.xlu1 %11331 }
0x3607   :  { %v11333_v45 = vrot.slane %v11332_v44, 4 }
0x3608   :  { %v11349_v21 = vpop.xlane.xlu0 %11348 }
0x3609   :  { %v11334_v20 = vadd.f32 %v11333_v45, %v11332_v44  ;;  %v11350_v33 = vrot.slane %v11349_v21, 4 }
0x360a   :  { %v11363_v32 = vpop.xlane.xlu1 %11362 }
0x360b   :  { %v11335_v18 = vrot.slane %v11334_v20, 2  ;;  %v11364_v50 = vrot.slane %v11363_v32, 4  ;;  %v11351_v37 = vadd.f32 %v11350_v33, %v11349_v21 }
0x360c   :  { %v11381_v4 = vpop.xlane.xlu0 %11380 }
0x360d   :  { %v11365_v5 = vadd.f32 %v11364_v50, %v11363_v32  ;;  %v11336_v8 = vadd.f32 %v11335_v18, %v11334_v20  ;;  %v11352_v0 = vrot.slane %v11351_v37, 2  ;;  %v11382_v43 = vrot.slane %v11381_v4, 4 }
0x360f   :  { %v11366_v15 = vrot.slane %v11365_v5, 2  ;;  %v11337_v9 = vrot.slane %v11336_v8, 1  ;;  %v11383_v24 = vadd.f32 %v11382_v43, %v11381_v4  ;;  %v11353_v51 = vadd.f32 %v11352_v0, %v11351_v37 }
0x3611   :  { %v11367_v19 = vadd.f32 %v11366_v15, %v11365_v5  ;;  %v11338_v61 = vadd.f32 %v11337_v9, %v11336_v8  ;;  %v11384_v16 = vrot.slane %v11383_v24, 2  ;;  %v11354_v39 = vrot.slane %v11353_v51, 1 }
0x3613   :  { %14250 = vpush %v11338_v61  ;;  %v11368_v36 = vrot.slane %v11367_v19, 1  ;;  %v11385_v6 = vadd.f32 %v11384_v16, %v11383_v24  ;;  %v11355_v29 = vadd.f32 %v11354_v39, %v11353_v51  ;;  %v14744_v51 = vmov 1.0  }
0x3615   :  { %v11369_v55 = vadd.f32 %v11368_v36, %v11367_v19  ;;  %14252 = vpush %v11355_v29  ;;  %v11386_v34 = vrot.slane %v11385_v6, 1  ;;  %v11612_v29 = vld [vmem:[%s17630_s14] sm:$0xff] }
0x3617   :  { %14254 = vpush %v11369_v55  ;;  %v11387_v40 = vadd.f32 %v11386_v34, %v11385_v6  ;;  %v11613_v6 = vld [vmem:[%s17630_s14 + $0x8] sm:$0xff]  ;;  %s14705_s14 = scalar_lea.vmem %s11705_s20, 32 }
0x3618   :  { %p14706_p0 = scmp.ne.s32.totalorder %s11705_s20, %s14705_s14  ;;  %p14711_p2 = scmp.lt.s32.totalorder %s14705_s14, %s14705_s14 }
0x3619   :  { %14256 = vpush %v11387_v40 }
0x361a   :  { %p14712_p3 = por %p14711_p2, %p14710_p1 }
0x361c   :  { %p14713_p4 = pnand %p14712_p3, %p14706_p0 }
0x3644   :  { %s14251_s30 = spop %14250 }
0x3646   :  { %s14253_s27 = spop %14252 }
0x3648   :  { %s14255_s7 = spop %14254 }
0x3649   :  { %s11371_s0 = sadd.f32 %s14255_s7, %s14251_s30 }
0x364a   :  { %s14257_s2 = spop %14256 }
0x364b   :  { %s11392_s23 = smul.f32 0.00091911765, %s11371_s0  ;;  %s11389_s5 = sadd.f32 %s14257_s2, %s14253_s27 }
0x364d   :  { %s11396_s22 = smul.f32 %s11392_s23, %s11392_s23  ;;  %v11420_v49 = vstv %s11392_s23 }
0x364e   :  { %s11395_s6 = smul.f32 0.00091911765, %s11389_s5  ;;  %v11421_v38 = vsub.f32 %v17524_v58, %v11420_v49 }
0x3650   :  { %s11397_s3 = ssub.f32 %s11395_s6, %s11396_s22 }
0x3652   :  { %s11398_s8 = sadd.f32 1e-05, %s11397_s3 }
0x3654   :  { %v11399_v3 = vstv %s11398_s8 }
0x3655   :  { %14665 = vrsqrt.f32 %v11399_v3 }
0x3662   :  { %v14666_v46 = vpop.eup %14665 }
0x3663   :  { %14258 = vpush %v14666_v46 }
0x3694   :  { %s14259_s9 = spop %14258 }
0x3695   :  { %v11422_v1 = vstv %s14259_s9 }
0x3696   :  { %v11423_v54 = vmul.f32 %v11422_v1, %v11421_v38 }
0x3698   :  { %v11424_v2 = vmul.f32 %v11423_v54, %v11412_v53 }
0x369a   :  { %v11425_v28 = vadd.f32 %v11424_v2, %v11419_v12 }
0x369c   :  { %14208 = vmatmul.mubr.msk.f32.vlgmr.msra.gmra.mxu0 %vm173_vm3, %v11425_v28 }
0x369d   :  { %14237 = vmatprep.mubr.msk.f32.mxu0 %vm14728_vm2, %v14727_v13  ;;  %14230 = vmatpush3.msra.mxu0 %v11615_v41 }
0x369e   :  { %14231 = vmatprep.subr.mxu0 %v14727_v13 }
0x369f   :  { %14232 = vmatpush3.msra.mxu0 %v11614_v56 }
0x36a0   :  { %14233 = vmatprep.subr.mxu0 %v14727_v13 }
0x36a1   :  { %14234 = vmatpush3.msra.mxu0 %v11613_v6 }
0x36a2   :  { %14235 = vmatprep.subr.mxu0 %v14727_v13 }
0x36a3   :  { %14236 = vmatpush3.msra.mxu0 %v11612_v29 }
0x375c   :  { %v11499_v52 = vpop.f32.mrf.mxu0 }
0x375d   :  { %v11504_v14 = vmul.f32 0.70710677, %v11499_v52  ;;  %v11503_v16 = vmul.f32 0.5, %v11499_v52 }
0x375e   :  { %v14209_v27 = vpop.f32.mrf.mxu0 }
0x375f   :  { %v11507_v47 = vand.u32 2147483647, %v11504_v14  ;;  %vm11505_vm8 = vcmp.lt.f32.partialorder %v11504_v14, 0.0 }
0x3760   :  { %v11506_v19 = vsel %vm11505_vm8, -1.0, %v14744_v51 }
0x3761   :  { %v11508_v57 = vmul.f32 0.3275911, %v11507_v47  ;;  %v11521_v45 = vsub.f32 0.0, %v11507_v47 }
0x3763   :  { %v11509_v44 = vadd.f32 1.0, %v11508_v57  ;;  %v11522_v20 = vmul.f32 %v11521_v45, %v11507_v47 }
0x3765   :  { %14667 = vrcp.f32 %v11509_v44  ;;  %v11523_v32 = vmul.f32 1.442695, %v11522_v20 }
0x3767   :  { %14669 = vpow2.f32 %v11523_v32 }
0x3772   :  { %v14668_v21 = vpop.eup %14667 }
0x3773   :  { %v11512_v33 = vmul.f32 1.0614054, %v14668_v21 }
0x3774   :  { %v14670_v15 = vpop.eup %14669 }
0x3775   :  { %v11513_v18 = vadd.f32 -1.4531521, %v11512_v33 }
0x3777   :  { %v11514_v50 = vmul.f32 %v14668_v21, %v11513_v18 }
0x3779   :  { %v11515_v37 = vadd.f32 1.4214138, %v11514_v50 }
0x377b   :  { %v11516_v5 = vmul.f32 %v14668_v21, %v11515_v37 }
0x377d   :  { %v11517_v4 = vadd.f32 -0.28449672, %v11516_v5 }
0x377f   :  { %v11518_v8 = vmul.f32 %v14668_v21, %v11517_v4 }
0x3781   :  { %v11519_v0 = vadd.f32 0.2548296, %v11518_v8 }
0x3783   :  { %v11520_v43 = vmul.f32 %v14668_v21, %v11519_v0 }
0x3785   :  { %v11525_v9 = vmul.f32 %v14670_v15, %v11520_v43 }
0x3787   :  { %v11526_v24 = vsub.f32 1.0, %v11525_v9 }
0x3789   :  { %v11527_v61 = vmul.f32 %v11526_v24, %v11506_v19 }
0x378b   :  { %v11528_v39 = vadd.f32 1.0, %v11527_v61 }
0x378d   :  { %v11529_v36 = vmul.f32 %v11528_v39, %v11503_v16 }
0x378f   :  { %14227 = vmatmul.mubr.msk.f32.vlgmr.msra.gmra.mxu1 %vm66_vm0, %v11529_v36 }
0x384f   :  { %v11607_v55 = vpop.f32.mrf.mxu1 }
0x3850   :  { %v11611_v34 = vadd.f32 %v11607_v55, %v17524_v58 }
0x3851   :  { %v14228_v40 = vpop.f32.mrf.mxu1 }
0x3852   :  { %14238 = vmatmul.mubr.msk.f32.vlgmr.msra.gmra.mxu0 %vm173_vm3, %v11611_v34 }
0x3912   :  { %v11692_v60 = vpop.f32.mrf.mxu0 }
0x3913   :  { %v11693_v48 = vadd.f32 %v12176_v42, %v11692_v60 }
0x3914   :  { %v14239_v3 = vpop.f32.mrf.mxu0 }
0x3915   :  { %11697 = vst.msk [vmem:[#allocation3] sm:$0x3] %vm11696_vm9, %v11693_v48 }
0x3916   :  { %14716 = shalt.err (!%p14713_p4)
}
0x3917   :  { %11707 = dma.vmem_to_hbm [thread:$0]  %s11705_s20, 32, %s17632_s16, [#allocation4]  }
0x3918   :  { %14725 = dma.done.wait [#allocation4], 32  }
0x3919   :  { %14726 = vsyncadd [#allocation4], 4294967264 }
0x391a   :  { %11711 = vsyncpa [#allocation4], 1 }

</bundles_post_ra>
